<compile_context>
chip_gen: v7x
topology: tpu7x:2x2x1
jax: 0.10.0
libtpu: 0.0.40
codegen_flags: <defaults>
</compile_context>

<pallas_src>
import numpy as np
import jax
import jax.numpy as jnp
from jax.experimental import pallas as pl
from jax.experimental.pallas import tpu as pltpu


def _make_kernel(theta, factor_a, tm, D):
    Dh = D // 2
    theta_f = float(theta)
    deg_scale = 360.0 / theta_f
    half_theta = 0.5 * theta_f

    def kernel(div_ref, w_ref, b_ref, out_ref):
        # div_ref: (1, D) f32  -- div_term duplicated [div | div]
        # w_ref:   (D, D) f32  -- [W_sin ; W_cos] fused projection weight
        # b_ref:   (1, D) f32  -- projection bias
        # out_ref: (tm, D) f32
        #
        # Flat row index of every output row in this tile, replicated over lanes.
        flat = (jax.lax.broadcasted_iota(jnp.int32, (tm, D), 0)
                + pl.program_id(0) * tm).astype(jnp.float32)          # (tm, D)
        # row = flat // theta, col = flat % theta, computed in f32.
        # (Integers up to ~2^24 are exact in f32, i.e. theta up to ~4096.)
        row = jnp.floor((flat + 0.5) / theta_f)
        # Exact fix-up against any rounding in the division (integer products
        # below 2**24 are exact, so these comparisons are exact).
        row = row - (row * theta_f > flat).astype(jnp.float32)
        row = row + ((row + 1.0) * theta_f <= flat).astype(jnp.float32)
        col = flat - row * theta_f

        d = jnp.abs(row - col)                                        # exact integer
        angle = d * deg_scale
        # d > theta/2  <=>  angle_diff > 180 (exact integer condition).
        a_idx = jnp.where(d > half_theta, angle - 360.0, angle) * factor_a

        omegas = a_idx * div_ref[...]                                 # (tm, D)
        lane = jax.lax.broadcasted_iota(jnp.int32, (tm, D), 1)
        emb = jnp.where(lane < Dh, jnp.sin(omegas), jnp.cos(omegas))  # [sin | cos]

        out = jnp.dot(emb, w_ref[...], preferred_element_type=jnp.float32)
        out_ref[...] = out + b_ref[...]

    return kernel


def relative_angle_embedding(theta, hidden_dim, sigma_a, weight, bias, *, tm=None):
    """Pallas implementation of RelativeAngleEmbedding.forward(theta).

    weight: (hidden_dim, hidden_dim) -- nn.Linear weight (out, in)
    bias:   (hidden_dim,)            -- nn.Linear bias
    returns (theta, theta, hidden_dim) float32
    """
    assert hidden_dim % 2 == 0
    D = hidden_dim
    factor_a = float(180.0 / (sigma_a * np.pi))

    M = theta * theta
    if tm is None:
        # Single grid step for small problems; 1024-row tiles for big theta.
        tm = M if M <= 4096 else 1024
    tm = ((tm + 7) // 8) * 8                      # sublane alignment
    n_blocks = pl.cdiv(M, tm)
    M_pad = n_blocks * tm

    # --- plain-JAX glue: sinusoidal div_term and fused projection weight ---
    div_indices = jnp.arange(0, D, 2, dtype=jnp.float32)
    div_term = jnp.exp(div_indices * (-np.log(10000.0) / D))            # (D/2,)
    div_full = jnp.concatenate([div_term, div_term]).reshape(1, D)      # (1, D)
    w32 = weight.astype(jnp.float32)
    w_full = jnp.concatenate([jnp.transpose(w32[:, 0::2]),
                              jnp.transpose(w32[:, 1::2])], axis=0)     # (D, D)
    b_full = bias.reshape(1, D).astype(jnp.float32)

    kernel = _make_kernel(theta, factor_a, tm, D)

    out_flat = pl.pallas_call(
        kernel,
        out_shape=jax.ShapeDtypeStruct((M_pad, D), jnp.float32),
        grid_spec=pltpu.PrefetchScalarGridSpec(
            num_scalar_prefetch=0,
            grid=(n_blocks,),
            in_specs=[
                pl.BlockSpec((1, D), lambda i: (0, 0)),    # div_term (duplicated)
                pl.BlockSpec((D, D), lambda i: (0, 0)),    # fused weight
                pl.BlockSpec((1, D), lambda i: (0, 0)),    # bias
            ],
            out_specs=pl.BlockSpec((tm, D), lambda i: (i, 0)),
        ),
        compiler_params=pltpu.CompilerParams(
            dimension_semantics=("parallel",)),
    )(div_full, w_full, b_full)

    return out_flat[:M].reshape(theta, theta, D)


def _reference(theta, hidden_dim, sigma_a, weight, bias):
    """Pure-JAX reference mirroring the PyTorch module (interleaved sin/cos)."""
    D = hidden_dim
    factor_a = float(180.0 / (sigma_a * np.pi))
    deg_scale = 360.0 / float(theta)
    row = jnp.arange(theta, dtype=jnp.float32)[:, None]
    col = jnp.arange(theta, dtype=jnp.float32)[None, :]
    d = jnp.abs(row - col)
    angle = d * deg_scale
    a_indices = jnp.where(d > 0.5 * theta, angle - 360.0, angle) * factor_a
    div_indices = jnp.arange(0, D, 2, dtype=jnp.float32)
    div_term = jnp.exp(div_indices * (-np.log(10000.0) / D))
    omegas = a_indices.reshape(-1, 1, 1) * div_term.reshape(1, -1, 1)
    emb = jnp.concatenate([jnp.sin(omegas), jnp.cos(omegas)], axis=2)   # interleave
    emb = emb.reshape(theta, theta, D)
    return emb @ weight.T + bias


if __name__ == "__main__":
    theta = 16          # number of discrete angles -> output (16, 16, hidden_dim)
    hidden_dim = 64
    sigma_a = 15.0

    # Deterministic parameter init (same shapes as nn.Linear(hidden_dim, hidden_dim)).
    key = jax.random.PRNGKey(0)
    k_w, k_b = jax.random.split(key)
    bound = 1.0 / np.sqrt(hidden_dim)
    weight = jax.random.uniform(k_w, (hidden_dim, hidden_dim),
                                minval=-bound, maxval=bound, dtype=jnp.float32)
    bias = jax.random.uniform(k_b, (hidden_dim,),
                              minval=-bound, maxval=bound, dtype=jnp.float32)

    out = relative_angle_embedding(theta, hidden_dim, sigma_a, weight, bias)
    out = jax.block_until_ready(out)

    ref = _reference(theta, hidden_dim, sigma_a, weight, bias)
    assert out.shape == (theta, theta, hidden_dim)
    assert out.dtype == jnp.float32
    np.testing.assert_allclose(np.asarray(out), np.asarray(ref), rtol=1e-4, atol=1e-4)

    print("KERNEL_OK")
</pallas_src>

<mosaic_0001>
module attributes {stable_mosaic.version = 11 : i64} {
  func.func @kernel(%arg0: i32, %arg1: memref<1x64xf32, #tpu.memory_space<vmem>>, %arg2: memref<64x64xf32, #tpu.memory_space<vmem>>, %arg3: memref<1x64xf32, #tpu.memory_space<vmem>>, %arg4: memref<256x64xf32, #tpu.memory_space<vmem>>) attributes {dimension_semantics = [#tpu.dimension_semantics<parallel>], iteration_bounds = array<i64: 1>, scalar_prefetch = 0 : i64, scratch_operands = 0 : i64, tpu.core_type = #tpu.core_type<tc>, window_params = [{pipeline_mode = #tpu.pipeline_mode<synchronous>, transform_indices = @transform_0, window_bounds = array<i64: 1, 64>}, {pipeline_mode = #tpu.pipeline_mode<synchronous>, transform_indices = @transform_1, window_bounds = array<i64: 64, 64>}, {pipeline_mode = #tpu.pipeline_mode<synchronous>, transform_indices = @transform_2, window_bounds = array<i64: 1, 64>}, {transform_indices = @transform_3, window_bounds = array<i64: 256, 64>}]} {
    %0 = tpu.iota {dimensions = array<i32: 0>} : vector<256x64xi32>
    %c256_i32 = arith.constant 256 : i32
    %1 = arith.muli %arg0, %c256_i32 : i32
    %2 = vector.broadcast %1 : i32 to vector<256x64xi32>
    %3 = arith.addi %0, %2 : vector<256x64xi32>
    %4 = arith.sitofp %3 : vector<256x64xi32> to vector<256x64xf32>
    %cst = arith.constant 5.000000e-01 : f32
    %5 = vector.broadcast %cst : f32 to vector<256x64xf32>
    %6 = arith.addf %4, %5 : vector<256x64xf32>
    %cst_0 = arith.constant 1.600000e+01 : f32
    %7 = vector.broadcast %cst_0 : f32 to vector<256x64xf32>
    %8 = arith.divf %6, %7 : vector<256x64xf32>
    %9 = math.floor %8 : vector<256x64xf32>
    %cst_1 = arith.constant 1.600000e+01 : f32
    %10 = vector.broadcast %cst_1 : f32 to vector<256x64xf32>
    %11 = arith.mulf %9, %10 : vector<256x64xf32>
    %12 = arith.cmpf ogt, %11, %4 : vector<256x64xf32>
    %13 = arith.extui %12 : vector<256x64xi1> to vector<256x64xi32>
    %14 = arith.sitofp %13 : vector<256x64xi32> to vector<256x64xf32>
    %15 = arith.subf %9, %14 : vector<256x64xf32>
    %cst_2 = arith.constant 1.000000e+00 : f32
    %16 = vector.broadcast %cst_2 : f32 to vector<256x64xf32>
    %17 = arith.addf %15, %16 : vector<256x64xf32>
    %cst_3 = arith.constant 1.600000e+01 : f32
    %18 = vector.broadcast %cst_3 : f32 to vector<256x64xf32>
    %19 = arith.mulf %17, %18 : vector<256x64xf32>
    %20 = arith.cmpf ole, %19, %4 : vector<256x64xf32>
    %21 = arith.extui %20 : vector<256x64xi1> to vector<256x64xi32>
    %22 = arith.sitofp %21 : vector<256x64xi32> to vector<256x64xf32>
    %23 = arith.addf %15, %22 : vector<256x64xf32>
    %cst_4 = arith.constant 1.600000e+01 : f32
    %24 = vector.broadcast %cst_4 : f32 to vector<256x64xf32>
    %25 = arith.mulf %23, %24 : vector<256x64xf32>
    %26 = arith.subf %4, %25 : vector<256x64xf32>
    %27 = arith.subf %23, %26 : vector<256x64xf32>
    %28 = math.absf %27 : vector<256x64xf32>
    %cst_5 = arith.constant 2.250000e+01 : f32
    %29 = vector.broadcast %cst_5 : f32 to vector<256x64xf32>
    %30 = arith.mulf %28, %29 : vector<256x64xf32>
    %cst_6 = arith.constant 8.000000e+00 : f32
    %31 = vector.broadcast %cst_6 : f32 to vector<256x64xf32>
    %32 = arith.cmpf ogt, %28, %31 : vector<256x64xf32>
    %cst_7 = arith.constant 3.600000e+02 : f32
    %33 = vector.broadcast %cst_7 : f32 to vector<256x64xf32>
    %34 = arith.subf %30, %33 : vector<256x64xf32>
    %35 = arith.select %32, %34, %30 : vector<256x64xi1>, vector<256x64xf32>
    %cst_8 = arith.constant 3.8197186 : f32
    %36 = vector.broadcast %cst_8 : f32 to vector<256x64xf32>
    %37 = arith.mulf %35, %36 : vector<256x64xf32>
    %c0 = arith.constant 0 : index
    %c0_9 = arith.constant 0 : index
    %38 = vector.load %arg1[%c0, %c0_9] : memref<1x64xf32, #tpu.memory_space<vmem>>, vector<1x64xf32>
    %39 = vector.broadcast %38 : vector<1x64xf32> to vector<256x64xf32>
    %40 = arith.mulf %37, %39 : vector<256x64xf32>
    %41 = tpu.iota {dimensions = array<i32: 1>} : vector<256x64xi32>
    %c32_i32 = arith.constant 32 : i32
    %42 = vector.broadcast %c32_i32 : i32 to vector<256x64xi32>
    %43 = arith.cmpi slt, %41, %42 : vector<256x64xi32>
    %44 = math.sin %40 : vector<256x64xf32>
    %45 = math.cos %40 : vector<256x64xf32>
    %46 = arith.select %43, %44, %45 : vector<256x64xi1>, vector<256x64xf32>
    %c0_10 = arith.constant 0 : index
    %c0_11 = arith.constant 0 : index
    %47 = vector.load %arg2[%c0_10, %c0_11] : memref<64x64xf32, #tpu.memory_space<vmem>>, vector<64x64xf32>
    %cst_12 = arith.constant dense<0.000000e+00> : vector<256x64xf32>
    %48 = tpu.matmul %46, %47, %cst_12 {dimension_numbers = #tpu.dot_dimension_numbers<[1], [0], [0], [1], [0, 0, 1, 1], [], []>} : vector<256x64xf32>, vector<64x64xf32>, vector<256x64xf32> -> vector<256x64xf32>
    %c0_13 = arith.constant 0 : index
    %c0_14 = arith.constant 0 : index
    %49 = vector.load %arg3[%c0_13, %c0_14] : memref<1x64xf32, #tpu.memory_space<vmem>>, vector<1x64xf32>
    %50 = vector.broadcast %49 : vector<1x64xf32> to vector<256x64xf32>
    %51 = arith.addf %48, %50 : vector<256x64xf32>
    %c0_15 = arith.constant 0 : index
    %c0_16 = arith.constant 0 : index
    %52 = vector.load %arg4[%c0_15, %c0_16] : memref<256x64xf32, #tpu.memory_space<vmem>>, vector<256x64xf32>
    tpu.vector_store %arg4[%c0_15, %c0_16], %51 {strides = array<i32>} : memref<256x64xf32, #tpu.memory_space<vmem>>, vector<256x64xf32>,
    return
  }
  func.func @transform_0(%arg0: i32) -> (i32, i32) {
    %c0_i32 = arith.constant 0 : i32
    %c0_i32_0 = arith.constant 0 : i32
    %c0_i32_1 = arith.constant 0 : i32
    return %c0_i32, %c0_i32_0 : i32, i32
  }
  func.func @transform_1(%arg0: i32) -> (i32, i32) {
    %c0_i32 = arith.constant 0 : i32
    %c0_i32_0 = arith.constant 0 : i32
    %c0_i32_1 = arith.constant 0 : i32
    return %c0_i32, %c0_i32_0 : i32, i32
  }
  func.func @transform_2(%arg0: i32) -> (i32, i32) {
    %c0_i32 = arith.constant 0 : i32
    %c0_i32_0 = arith.constant 0 : i32
    %c0_i32_1 = arith.constant 0 : i32
    return %c0_i32, %c0_i32_0 : i32, i32
  }
  func.func @transform_3(%arg0: i32) -> (i32, i32) {
    %c0_i32 = arith.constant 0 : i32
    %c0_i32_0 = arith.constant 0 : i32
    return %arg0, %c0_i32 : i32, i32
  }
}

</mosaic_0001>

<bundles_post_ra>
// kernel: tpu_custom_call.1
= control target key start
LH: loop header
LB: loop body
LE: loop exit
PB: predicated region body
PF: predicated region fallthrough
CT: control target
= control target key end

     0   :  { %8 = vsyncpa [#allocation3], 0  ;;  %s13235_s0 = inlined_call_operand.hbm [shape: f32[1,64], index: 0, kind: input, shape index: {}]   ;;  %s13236_s1 = inlined_call_operand.hbm [shape: f32[64,64], index: 1, kind: input, shape index: {}]   ;;  %s13237_s2 = inlined_call_operand.vmem [shape: f32[1,64], index: 2, kind: input, shape index: {}]   ;;  %s13238_s3 = inlined_call_operand.vmem [shape: f32[256,64], index: 3, kind: output, shape index: {}]  }
   0x1   :  { %9 = vsyncpa [#allocation5], 0  ;;  %s8784_s12 = smov [#allocation2]   ;;  %s8785_s14 = smov [#allocation4]  }
   0x2   :  { %s16_s13 = sshll.u32 %s8784_s12, 4  ;;  %s25_s15 = sshll.u32 %s8785_s14, 4  ;;  %s17_s13 = int_to_ptr.vmem [resolvable:$true] %s16_s13  ;;  %s8815_s15 = int_to_ptr.vmem [resolvable:$true] %s25_s15 }
   0x3   :  { %s8736_s18 = scalar_lea.hbm %s13235_s0, 16 }
   0x4   :  { %p8737_p0 = scmp.ne.s32.totalorder %s13235_s0, %s8736_s18  ;;  %p8740_p1 = scmp.lt.u32.totalorder %s8736_s18, %s13235_s0 }
   0x6   :  { %p8742_p2 = pnand %p8740_p1, %p8737_p0 }
   0x8   :  { %8745 = shalt.err (!%p8742_p2)
}
   0x9   :  { %s8746_s23 = scalar_lea.vmem %s17_s13, 16  ;;  %s8750_s24 = scalar_lea.vmem %s17_s13, 32 }
   0xa   :  { %p8747_p3 = scmp.ne.s32.totalorder %s17_s13, %s8746_s23  ;;  %p8751_p4 = scmp.lt.s32.totalorder %s17_s13, %s17_s13 }
   0xb   :  { %p8752_p5 = scmp.lt.s32.totalorder %s8750_s24, %s8746_s23 }
   0xd   :  { %p8753_p6 = por %p8752_p5, %p8751_p4 }
   0xf   :  { %p8754_p7 = pnand %p8753_p6, %p8747_p3 }
  0x11   :  { %8757 = shalt.err (!%p8754_p7)
}
  0x12   :  { %19 = dma.hbm_to_vmem [thread:$0]  %s13235_s0, 16, %s17_s13, [#allocation3]  }
  0x13   :  { %s8758_s29 = scalar_lea.hbm %s13236_s1, 1024 }
  0x14   :  { %p8759_p8 = scmp.ne.s32.totalorder %s13236_s1, %s8758_s29  ;;  %p8762_p9 = scmp.lt.u32.totalorder %s8758_s29, %s13236_s1 }
  0x16   :  { %p8764_p10 = pnand %p8762_p9, %p8759_p8 }
  0x18   :  { %8767 = shalt.err (!%p8764_p10)
}
  0x19   :  { %s8768_s7 = scalar_lea.vmem %s8815_s15, 1024  ;;  %p8773_p12 = scmp.lt.s32.totalorder %s8815_s15, %s8815_s15 }
  0x1a   :  { %p8769_p11 = scmp.ne.s32.totalorder %s8815_s15, %s8768_s7  ;;  %p8774_p13 = scmp.lt.s32.totalorder %s8768_s7, %s8768_s7 }
  0x1c   :  { %p8775_p0 = por %p8774_p13, %p8773_p12 }
  0x1e   :  { %p8776_p1 = pnand %p8775_p0, %p8769_p11 }
  0x20   :  { %8779 = shalt.err (!%p8776_p1)
}
  0x21   :  { %s8786_s0 = smov 128   ;;  %s8787_s8 = smov 8  }
  0x22   :  { %31 = dma.hbm_to_vmem [thread:$0]  %s13236_s1, 1024, %s8815_s15, [#allocation5], %s8786_s0, %s8786_s0, %s8787_s8  }
  0x23   :  { %8780 = dma.done.wait [#allocation3], 16  }
  0x24   :  { %8781 = vsyncadd [#allocation3], 4294967280 }
  0x25   :  { %8782 = dma.done.wait [#allocation5], 1024  }
  0x26   :  { %8783 = vsyncadd [#allocation5], 4294966272  ;;  %v40_v0 = vlaneseq  ;;  %v7574_v11 = vld [vmem:[#allocation4] sm:$0xff]  ;;  %v7575_v12 = vld [vmem:[#allocation4 + $0x8] sm:$0xff]  ;;  %v8788_v47 = vmov 0.0  }
  0x27   :  { %v7576_v13 = vld [vmem:[#allocation4 + $0x10] sm:$0xff]  ;;  %v8439_v17 = vpack.c.bf16 %v7575_v12, %v7574_v11  ;;  %v7577_v18 = vld [vmem:[#allocation4 + $0x18] sm:$0xff]  ;;  %v7578_v23 = vld [vmem:[#allocation4 + $0x20] sm:$0xff] }
  0x28   :  { %v8847_v1 = vshrl.u32 %v40_v0, 7  ;;  %v8443_v22 = vpack.c.bf16 %v7577_v18, %v7576_v13  ;;  %v7579_v24 = vld [vmem:[#allocation4 + $0x28] sm:$0xff]  ;;  %v7580_v31 = vld [vmem:[#allocation4 + $0x30] sm:$0xff]  ;;  %v7581_v32 = vld [vmem:[#allocation4 + $0x38] sm:$0xff] }
  0x29   :  { %8440 = vmatprep.subr.bf16.mxu0 %v8439_v17  ;;  %8455 = vmatprep.subr.bf16.mxu1 %v8439_v17  ;;  %v8447_v36 = vpack.c.bf16 %v7579_v24, %v7578_v23  ;;  %v8451_v44 = vpack.c.bf16 %v7581_v32, %v7580_v31 }
  0x2a   :  { %v8850_v2 = vcvt.s32.f32 %v8847_v1  ;;  %v42_v3 = vadd.s32 8, %v8847_v1  ;;  %v57_v4 = vadd.s32 128, %v8847_v1  ;;  %v58_v5 = vadd.s32 136, %v8847_v1  ;;  %8442 = vmatpush3.bf16.msra.mxu0 %v8439_v17  ;;  %8459 = vmatpush3.bf16.msra.mxu1 %v8439_v17 }
  0x2b   :  { %v43_v6 = vadd.s32 16, %v8847_v1  ;;  %v44_v7 = vadd.s32 24, %v8847_v1  ;;  %v59_v27 = vadd.s32 144, %v8847_v1  ;;  %8444 = vmatprep.subr.bf16.mxu0 %v8443_v22  ;;  %8456 = vmatprep.subr.bf16.mxu1 %v8443_v22 }
  0x2c   :  { %v139_v8 = vadd.f32 0.5, %v8850_v2  ;;  %v8858_v9 = vcvt.s32.f32 %v42_v3  ;;  %v8860_v10 = vcvt.s32.f32 %v57_v4  ;;  %v8862_v14 = vcvt.s32.f32 %v58_v5 }
  0x2d   :  { %v8864_v15 = vcvt.s32.f32 %v43_v6  ;;  %v8866_v16 = vcvt.s32.f32 %v44_v7  ;;  %v8874_v43 = vcvt.s32.f32 %v59_v27 }
  0x2e   :  { %v172_v19 = vmul.f32 0.0625, %v139_v8  ;;  %v140_v20 = vadd.f32 0.5, %v8858_v9  ;;  %v155_v21 = vadd.f32 0.5, %v8860_v10  ;;  %v156_v25 = vadd.f32 0.5, %v8862_v14  ;;  %8446 = vmatpush3.bf16.msra.mxu0 %v8443_v22  ;;  %8460 = vmatpush3.bf16.msra.mxu1 %v8443_v22 }
  0x2f   :  { %v141_v26 = vadd.f32 0.5, %v8864_v15  ;;  %v142_v35 = vadd.f32 0.5, %v8866_v16  ;;  %8448 = vmatprep.subr.bf16.mxu0 %v8447_v36  ;;  %8457 = vmatprep.subr.bf16.mxu1 %v8447_v36  ;;  %v157_v62 = vadd.f32 0.5, %v8874_v43 }
  0x30   :  { %v204_v28 = vfloor.f32 %v172_v19  ;;  %v173_v29 = vmul.f32 0.0625, %v140_v20  ;;  %v188_v30 = vmul.f32 0.0625, %v155_v21  ;;  %v189_v33 = vmul.f32 0.0625, %v156_v25 }
  0x31   :  { %v174_v34 = vmul.f32 0.0625, %v141_v26  ;;  %v175_v42 = vmul.f32 0.0625, %v142_v35  ;;  %v8891_v18 = vmul.f32 0.0625, %v157_v62 }
  0x32   :  { %v236_v37 = vmul.f32 16.0, %v204_v28  ;;  %v205_v38 = vfloor.f32 %v173_v29  ;;  %v220_v39 = vfloor.f32 %v188_v30  ;;  %v221_v40 = vfloor.f32 %v189_v33  ;;  %8450 = vmatpush3.bf16.msra.mxu0 %v8447_v36  ;;  %8461 = vmatpush3.bf16.msra.mxu1 %v8447_v36 }
  0x33   :  { %v206_v41 = vfloor.f32 %v174_v34  ;;  %v207_v51 = vfloor.f32 %v175_v42  ;;  %8452 = vmatprep.subr.bf16.mxu0 %v8451_v44  ;;  %8458 = vmatprep.subr.bf16.mxu1 %v8451_v44  ;;  %v222_v29 = vfloor.f32 %v8891_v18 }
  0x34   :  { %vm268_vm0 = vcmp.gt.f32.partialorder %v236_v37, %v8850_v2  ;;  %v237_v45 = vmul.f32 16.0, %v205_v38  ;;  %v252_v46 = vmul.f32 16.0, %v220_v39  ;;  %v253_v49 = vmul.f32 16.0, %v221_v40 }
  0x35   :  { %v7949_v48 = vsel %vm268_vm0, 1.0, %v8788_v47  ;;  %v238_v50 = vmul.f32 16.0, %v206_v41  ;;  %v239_v61 = vmul.f32 16.0, %v207_v51 }
  0x36   :  { %v364_v52 = vsub.f32 %v204_v28, %v7949_v48  ;;  %vm269_vm1 = vcmp.gt.f32.partialorder %v237_v45, %v8858_v9  ;;  %vm284_vm2 = vcmp.gt.f32.partialorder %v252_v46, %v8860_v10  ;;  %vm285_vm3 = vcmp.gt.f32.partialorder %v253_v49, %v8862_v14  ;;  %8454 = vmatpush3.bf16.msra.mxu0 %v8451_v44 }
  0x37   :  { %v7950_v53 = vsel %vm269_vm1, 1.0, %v8788_v47  ;;  %v7965_v54 = vsel %vm284_vm2, 1.0, %v8788_v47  ;;  %vm270_vm4 = vcmp.gt.f32.partialorder %v238_v50, %v8864_v15  ;;  %v7966_v58 = vsel %vm285_vm3, 1.0, %v8788_v47  ;;  %8462 = vmatpush3.bf16.msra.mxu1 %v8451_v44 }
  0x38   :  { %v396_v55 = vadd.f32 1.0, %v364_v52  ;;  %v365_v56 = vsub.f32 %v205_v38, %v7950_v53  ;;  %v380_v57 = vsub.f32 %v220_v39, %v7965_v54  ;;  %v381_v59 = vsub.f32 %v221_v40, %v7966_v58  ;;  %v8908_v54 = vld [vmem:[#allocation2] ss:$0 sm:$0xff] }
  0x39   :  { %v7951_v60 = vsel %vm270_vm4, 1.0, %v8788_v47  ;;  %vm271_vm5 = vcmp.gt.f32.partialorder %v239_v61, %v8866_v16  ;;  %v254_v40 = vmul.f32 16.0, %v222_v29 }
  0x3a   :  { %v428_v63 = vmul.f32 16.0, %v396_v55  ;;  %v397_v3 = vadd.f32 1.0, %v365_v56  ;;  %v412_v4 = vadd.f32 1.0, %v380_v57  ;;  %v366_v5 = vsub.f32 %v206_v41, %v7951_v60 }
  0x3b   :  { %v413_v6 = vadd.f32 1.0, %v381_v59  ;;  %v7952_v17 = vsel %vm271_vm5, 1.0, %v8788_v47  ;;  %vm286_vm12 = vcmp.gt.f32.partialorder %v254_v40, %v8874_v43 }
  0x3c   :  { %vm460_vm6 = vcmp.le.f32.partialorder %v428_v63, %v8850_v2  ;;  %v429_v7 = vmul.f32 16.0, %v397_v3  ;;  %v444_v8 = vmul.f32 16.0, %v412_v4  ;;  %v398_v11 = vadd.f32 1.0, %v366_v5 }
  0x3d   :  { %v7981_v12 = vsel %vm460_vm6, 1.0, %v8788_v47  ;;  %v445_v13 = vmul.f32 16.0, %v413_v6  ;;  %v367_v23 = vsub.f32 %v207_v51, %v7952_v17  ;;  %v7967_v58 = vsel %vm286_vm12, 1.0, %v8788_v47 }
  0x3e   :  { %v556_v19 = vadd.f32 %v7981_v12, %v364_v52  ;;  %vm461_vm7 = vcmp.le.f32.partialorder %v429_v7, %v8858_v9  ;;  %vm476_vm8 = vcmp.le.f32.partialorder %v444_v8, %v8860_v10  ;;  %v430_v20 = vmul.f32 16.0, %v398_v11 }
  0x3f   :  { %v7982_v21 = vsel %vm461_vm7, 1.0, %v8788_v47  ;;  %v7997_v22 = vsel %vm476_vm8, 1.0, %v8788_v47  ;;  %vm477_vm9 = vcmp.le.f32.partialorder %v445_v13, %v8862_v14  ;;  %v399_v35 = vadd.f32 1.0, %v367_v23 }
  0x40   :  { %v588_v24 = vmul.f32 16.0, %v556_v19  ;;  %v557_v25 = vadd.f32 %v7982_v21, %v365_v56  ;;  %v572_v26 = vadd.f32 %v7997_v22, %v380_v57  ;;  %v7998_v27 = vsel %vm477_vm9, 1.0, %v8788_v47 }
  0x41   :  { %v573_v28 = vadd.f32 %v7998_v27, %v381_v59  ;;  %vm462_vm10 = vcmp.le.f32.partialorder %v430_v20, %v8864_v15  ;;  %v8918_v8 = vsub.f32 %v222_v29, %v7967_v58 }
  0x42   :  { %v620_v30 = vsub.f32 %v8850_v2, %v588_v24  ;;  %v589_v31 = vmul.f32 16.0, %v557_v25  ;;  %v604_v32 = vmul.f32 16.0, %v572_v26  ;;  %v7983_v34 = vsel %vm462_vm10, 1.0, %v8788_v47 }
  0x43   :  { %v605_v33 = vmul.f32 16.0, %v573_v28  ;;  %v558_v45 = vadd.f32 %v7983_v34, %v366_v5  ;;  %v431_v2 = vmul.f32 16.0, %v399_v35 }
  0x44   :  { %v652_v36 = vsub.f32 %v556_v19, %v620_v30  ;;  %v621_v37 = vsub.f32 %v8858_v9, %v589_v31  ;;  %v636_v38 = vsub.f32 %v8860_v10, %v604_v32 }
  0x45   :  { %v637_v39 = vsub.f32 %v8862_v14, %v605_v33  ;;  %v590_v53 = vmul.f32 16.0, %v558_v45  ;;  %vm463_vm15 = vcmp.le.f32.partialorder %v431_v2, %v8866_v16 }
  0x46   :  { %v684_v41 = vand.u32 2147483647, %v652_v36  ;;  %v653_v42 = vsub.f32 %v557_v25, %v621_v37  ;;  %v668_v44 = vsub.f32 %v572_v26, %v636_v38  ;;  %v7984_v62 = vsel %vm463_vm15, 1.0, %v8788_v47 }
  0x47   :  { %v669_v46 = vsub.f32 %v573_v28, %v637_v39  ;;  %v622_v61 = vsub.f32 %v8864_v15, %v590_v53  ;;  %v8926_v15 = vadd.f32 %v7984_v62, %v367_v23  ;;  %v414_v25 = vadd.f32 1.0, %v8918_v8 }
  0x48   :  { %v716_v48 = vmul.f32 22.5, %v684_v41  ;;  %v685_v49 = vand.u32 2147483647, %v653_v42  ;;  %v700_v50 = vand.u32 2147483647, %v668_v44  ;;  %vm748_vm11 = vcmp.gt.f32.partialorder %v684_v41, 8.0 }
  0x49   :  { %v701_v10 = vand.u32 2147483647, %v669_v46  ;;  %v8928_v18 = vsub.f32 %v558_v45, %v622_v61  ;;  %v8943_v28 = vmul.f32 16.0, %v8926_v15  ;;  %v8950_v39 = vmul.f32 16.0, %v414_v25 }
  0x4a   :  { %v8013_v51 = vadd.f32 -360.0, %v716_v48  ;;  %v717_v52 = vmul.f32 22.5, %v685_v49  ;;  %v732_v9 = vmul.f32 22.5, %v700_v50  ;;  %vm749_vm13 = vcmp.gt.f32.partialorder %v685_v49, 8.0 }
  0x4b   :  { %vm764_vm14 = vcmp.gt.f32.partialorder %v700_v50, 8.0  ;;  %v733_v5 = vmul.f32 22.5, %v701_v10  ;;  %vm8934_vm0 = vcmp.gt.f32.partialorder %v701_v10, 8.0  ;;  %v686_v31 = vand.u32 2147483647, %v8928_v18 }
  0x4c   :  { %v812_v14 = vsel %vm748_vm11, %v8013_v51, %v716_v48  ;;  %v8014_v55 = vadd.f32 -360.0, %v717_v52  ;;  %v8029_v56 = vadd.f32 -360.0, %v732_v9  ;;  %v623_v38 = vsub.f32 %v8866_v16, %v8943_v28 }
  0x4d   :  { %v844_v57 = vmul.f32 3.8197186, %v812_v14  ;;  %v8030_v17 = vadd.f32 -360.0, %v733_v5  ;;  %v8956_v44 = vmul.f32 22.5, %v686_v31  ;;  %v8789_v49 = vmov 683565275  }
  0x4e   :  { %v813_v59 = vsel %vm749_vm13, %v8014_v55, %v717_v52  ;;  %v828_v60 = vsel %vm764_vm14, %v8029_v56, %v732_v9  ;;  %v8790_v51 = vmov 2475754826   ;;  %v8791_v9 = vmov 2131351028  }
  0x4f   :  { %v8914_v63 = vmul.f32 %v8908_v54, %v844_v57  ;;  %v845_v3 = vmul.f32 3.8197186, %v813_v59  ;;  %v860_v4 = vmul.f32 3.8197186, %v828_v60  ;;  %v829_v30 = vsel %vm8934_vm0, %v8030_v17, %v733_v5 }
  0x50   :  { %v8952_v42 = vmul.f32 3.8197186, %v829_v30  ;;  %v8792_v10 = vmov 2102212464   ;;  %v8793_v55 = vmov 920167782   ;;  %vm478_vm13 = vcmp.le.f32.partialorder %v8950_v39, %v8874_v43 }
  0x51   :  { %v918_v6 = vand.u32 2147483647, %v8914_v63  ;;  %v921_v7 = vand.u32 2139095040, %v8914_v63  ;;  %v8921_v11 = vmul.f32 %v8908_v54, %v845_v3  ;;  %v8924_v12 = vmul.f32 %v8908_v54, %v860_v4 }
  0x52   :  { %v8794_v62 = vmov 1326507024   ;;  %v9046_v16 = vmul.f32 %v8908_v54, %v8952_v42  ;;  %vm9050_vm15 = vcmp.gt.f32.partialorder %v686_v31, 8.0  ;;  %v9055_v28 = vand.u32 127, %v40_v0 }
  0x53   :  { %v922_v13 = vshrl.u32 %v921_v7, 23  ;;  %v925_v19 = vand.u32 8388607, %v918_v6  ;;  %v1022_v20 = vand.u32 2147483647, %v8921_v11  ;;  %v1025_v21 = vand.u32 2139095040, %v8921_v11 }
  0x54   :  { %v2585_v27 = vand.u32 2139095040, %v8924_v12  ;;  %v9061_v42 = vsel %vm478_vm13, 1.0, %v8788_v47  ;;  %vm920_vm0 = vcmp.lt.s32.totalorder %v8914_v63, 0  ;;  %v2686_v31 = vand.u32 2147483647, %v9046_v16 }
  0x55   :  { %v8046_v24 = vadd.s32 4294967169, %v922_v13  ;;  %v1026_v23 = vshrl.u32 %v1025_v21, 23  ;;  %v1029_v26 = vand.u32 8388607, %v1022_v20  ;;  %v926_v32 = vor.u32 8388608, %v925_v19 }
  0x56   :  { %v2586_v35 = vshrl.u32 %v2585_v27, 23 }
  0x57   :  { %v928_v29 = vadd.s32 1, %v8046_v24  ;;  %v8050_v33 = vadd.s32 4294967169, %v1026_v23  ;;  %v1030_v34 = vor.u32 8388608, %v1029_v26  ;;  %v8958_v45 = vshll.u32 %v926_v32, 8 }
  0x58   :  { %v8962_v2 = vadd.s32 4294967169, %v2586_v35 }
  0x59   :  { %vm929_vm1 = vcmp.gt.s32.totalorder %v928_v29, 0  ;;  %v1032_v37 = vadd.s32 1, %v8050_v33  ;;  %v8960_v46 = vshll.u32 %v1030_v34, 8 }
  0x5a   :  { %v930_v36 = vsel %vm929_vm1, %v928_v29, 0  ;;  %vm9071_vm1 = vcmp.le.f32.partialorder %v918_v6, 0.7853982 }
  0x5b   :  { %v931_v40 = vshrl.u32 %v930_v36, 5  ;;  %v932_v41 = vand.u32 31, %v930_v36  ;;  %vm1033_vm2 = vcmp.gt.s32.totalorder %v1032_v37, 0 }
  0x5c   :  { %v1034_v13 = vsel %vm1033_vm2, %v1032_v37, 0 }
  0x5d   :  { %v933_v48 = vsub.s32 32, %v932_v41  ;;  %v935_v50 = vshll.u32 %v8789_v49, %v932_v41  ;;  %v938_v52 = vshll.u32 %v8790_v51, %v932_v41  ;;  %v941_v53 = vshll.u32 %v8791_v9, %v932_v41 }
  0x5e   :  { %v944_v14 = vshll.u32 %v8792_v10, %v932_v41  ;;  %v947_v56 = vshll.u32 %v8793_v55, %v932_v41  ;;  %vm950_vm3 = vcmp.lt.s32.totalorder %v931_v40, 1  ;;  %vm951_vm4 = vcmp.lt.s32.totalorder %v931_v40, 2 }
  0x5f   :  { %v934_v57 = vshrl.u32 %v8789_v49, %v933_v48  ;;  %v936_v58 = vshrl.u32 %v8790_v51, %v933_v48  ;;  %v939_v59 = vshrl.u32 %v8791_v9, %v933_v48  ;;  %v942_v60 = vshrl.u32 %v8792_v10, %v933_v48 }
  0x60   :  { %v945_v61 = vshrl.u32 %v8793_v55, %v933_v48  ;;  %v948_v3 = vshrl.u32 %v8794_v62, %v933_v48  ;;  %vm952_vm5 = vcmp.lt.s32.totalorder %v931_v40, 3  ;;  %vm953_vm6 = vcmp.lt.s32.totalorder %v931_v40, 4 }
  0x61   :  { %v937_v4 = vor.u32 %v936_v58, %v935_v50  ;;  %v940_v5 = vor.u32 %v939_v59, %v938_v52  ;;  %v943_v7 = vor.u32 %v942_v60, %v941_v53  ;;  %v1035_v21 = vshrl.u32 %v1034_v13, 5 }
  0x62   :  { %v946_v17 = vor.u32 %v945_v61, %v944_v14  ;;  %v949_v19 = vor.u32 %v948_v3, %v947_v56  ;;  %v1036_v22 = vand.u32 31, %v1034_v13 }
  0x63   :  { %v954_v24 = vsel %vm950_vm3, %v934_v57, %v937_v4  ;;  %v955_v25 = vsel %vm953_vm6, %v943_v7, 2102212464  ;;  %v958_v23 = vsel %vm950_vm3, %v937_v4, %v940_v5  ;;  %v962_v26 = vsel %vm950_vm3, %v940_v5, %v943_v7 }
  0x64   :  { %v956_v27 = vsel %vm952_vm5, %v940_v5, %v955_v25  ;;  %v959_v29 = vsel %vm953_vm6, %v946_v17, 920167782  ;;  %v963_v30 = vsel %vm953_vm6, %v949_v19, 1326507024  ;;  %v1037_v32 = vsub.s32 32, %v1036_v22 }
  0x65   :  { %v957_v33 = vsel %vm951_vm4, %v954_v24, %v956_v27  ;;  %v960_v34 = vsel %vm952_vm5, %v943_v7, %v959_v29  ;;  %v964_v35 = vsel %vm952_vm5, %v946_v17, %v963_v30  ;;  %v1039_v36 = vshll.u32 %v8789_v49, %v1036_v22 }
  0x66   :  { %v961_v37 = vsel %vm951_vm4, %v958_v23, %v960_v34  ;;  %v965_v41 = vsel %vm951_vm4, %v962_v26, %v964_v35  ;;  %v973_v48 = vmul.u32 %v8958_v45, %v957_v33  ;;  %v1038_v50 = vshrl.u32 %v8789_v49, %v1037_v32 }
  0x67   :  { %v8989_v52 = vmul.u32.u64.low %v8958_v45, %v965_v41  ;;  %v8990_v53 = vmul.u32.u64.high %v8958_v45, %v965_v41, %v8989_v52  ;;  %v8993_v14 = vmul.u32.u64.low %v8958_v45, %v961_v37  ;;  %v8994_v56 = vmul.u32.u64.high %v8958_v45, %v961_v37, %v8993_v14 }
  0x68   :  { %v1040_v57 = vshrl.u32 %v8790_v51, %v1037_v32  ;;  %v1042_v58 = vshll.u32 %v8790_v51, %v1036_v22  ;;  %v1043_v40 = vshrl.u32 %v8791_v9, %v1037_v32  ;;  %v1045_v59 = vshll.u32 %v8791_v9, %v1036_v22 }
  0x69   :  { %v1046_v60 = vshrl.u32 %v8792_v10, %v1037_v32  ;;  %v1048_v61 = vshll.u32 %v8792_v10, %v1036_v22  ;;  %v1049_v3 = vshrl.u32 %v8793_v55, %v1037_v32  ;;  %v1051_v4 = vshll.u32 %v8793_v55, %v1036_v22 }
  0x6a   :  { %v1041_v5 = vor.u32 %v1040_v57, %v1039_v36  ;;  %v1044_v45 = vor.u32 %v1043_v40, %v1042_v58  ;;  %v1052_v7 = vshrl.u32 %v8794_v62, %v1037_v32  ;;  %vm1054_vm7 = vcmp.lt.s32.totalorder %v1035_v21, 1 }
  0x6b   :  { %vm975_vm8 = vc.u32 %v8990_v53, %v8993_v14  ;;  %v976_v13 = vadd.s32 1, %v8994_v56  ;;  %v1047_v17 = vor.u32 %v1046_v60, %v1045_v59  ;;  %v2592_v19 = vadd.s32 1, %v8962_v2 }
  0x6c   :  { %v1050_v24 = vor.u32 %v1049_v3, %v1048_v61  ;;  %v1053_v25 = vor.u32 %v1052_v7, %v1051_v4  ;;  %vm1055_vm9 = vcmp.lt.s32.totalorder %v1035_v21, 2  ;;  %vm1056_vm10 = vcmp.lt.s32.totalorder %v1035_v21, 3 }
  0x6d   :  { %v977_v23 = vsel %vm975_vm8, %v976_v13, %v8994_v56  ;;  %vm1057_vm11 = vcmp.lt.s32.totalorder %v1035_v21, 4  ;;  %v1058_v22 = vsel %vm1054_vm7, %v1038_v50, %v1041_v5  ;;  %v1062_v26 = vsel %vm1054_vm7, %v1041_v5, %v1044_v45 }
  0x6e   :  { %v978_v27 = vadd.s32 %v977_v23, %v973_v48  ;;  %v1059_v29 = vsel %vm1057_vm11, %v1047_v17, 2102212464  ;;  %v1063_v30 = vsel %vm1057_vm11, %v1050_v24, 920167782  ;;  %v1066_v32 = vsel %vm1054_vm7, %v1044_v45, %v1047_v17 }
  0x6f   :  { %v1060_v33 = vsel %vm1056_vm10, %v1044_v45, %v1059_v29  ;;  %v1064_v34 = vsel %vm1056_vm10, %v1047_v17, %v1063_v30  ;;  %v1067_v35 = vsel %vm1057_vm11, %v1053_v25, 1326507024  ;;  %vm2593_vm12 = vcmp.gt.s32.totalorder %v2592_v19, 0 }
  0x70   :  { %v979_v2 = vadd.s32 536870912, %v978_v27  ;;  %v1065_v36 = vsel %vm1055_vm9, %v1062_v26, %v1064_v34  ;;  %v1068_v37 = vsel %vm1056_vm10, %v1050_v24, %v1067_v35  ;;  %v2582_v41 = vand.u32 2147483647, %v8924_v12 }
  0x71   :  { %v1061_v52 = vsel %vm1055_vm9, %v1058_v22, %v1060_v33  ;;  %v1069_v50 = vsel %vm1055_vm9, %v1066_v32, %v1068_v37  ;;  %v9019_v48 = vmul.u32.u64.low %v8960_v46, %v1065_v36  ;;  %v9020_v56 = vmul.u32.u64.high %v8960_v46, %v1065_v36, %v9019_v48 }
  0x72   :  { %v980_v57 = vshrl.u32 %v979_v2, 30  ;;  %v9023_v58 = vmul.u32.u64.low %v8960_v46, %v1069_v50  ;;  %v9024_v40 = vmul.u32.u64.high %v8960_v46, %v1069_v50, %v9023_v58  ;;  %v2594_v59 = vsel %vm2593_vm12, %v2592_v19, 0 }
  0x73   :  { %v2596_v60 = vand.u32 31, %v2594_v59  ;;  %v1077_v3 = vmul.u32 %v8960_v46, %v1061_v52  ;;  %v9031_v21 = vsub.f32 %v8926_v15, %v623_v38  ;;  %v1080_v4 = vadd.s32 1, %v9020_v56 }
  0x74   :  { %v981_v61 = vshll.u32 %v980_v57, 30  ;;  %v2589_v5 = vand.u32 8388607, %v2582_v41  ;;  %v9037_v45 = vadd.f32 -360.0, %v8956_v44  ;;  %vm1079_vm14 = vc.u32 %v9024_v40, %v9019_v48 }
  0x75   :  { %v1004_v38 = vsub.s32 4, %v980_v57  ;;  %v1081_v39 = vsel %vm1079_vm14, %v1080_v4, %v9020_v56  ;;  %v2597_v46 = vsub.s32 32, %v2596_v60  ;;  %v687_v19 = vand.u32 2147483647, %v9031_v21 }
  0x76   :  { %v9041_v7 = vsub.s32 %v978_v27, %v981_v61  ;;  %v1082_v17 = vadd.s32 %v1081_v39, %v1077_v3  ;;  %v2590_v18 = vor.u32 8388608, %v2589_v5  ;;  %v814_v0 = vsel %vm9050_vm15, %v9037_v45, %v8956_v44 }
  0x77   :  { %v2599_v23 = vshll.u32 %v8789_v49, %v2596_v60  ;;  %v2689_v22 = vand.u32 2139095040, %v9046_v16  ;;  %v1005_v26 = vsel %vm920_vm0, %v1004_v38, %v980_v57  ;;  %v2600_v29 = vshrl.u32 %v8790_v51, %v2597_v46 }
  0x78   :  { %v984_v13 = vsub.s32 0, %v9041_v7  ;;  %v1083_v27 = vadd.s32 536870912, %v1082_v17  ;;  %v2602_v30 = vshll.u32 %v8790_v51, %v2596_v60  ;;  %v2603_v6 = vshrl.u32 %v8791_v9, %v2597_v46 }
  0x79   :  { %v2605_v33 = vshll.u32 %v8791_v9, %v2596_v60  ;;  %v2606_v34 = vshrl.u32 %v8792_v10, %v2597_v46  ;;  %v974_v35 = vadd.s32 %v8993_v14, %v8990_v53  ;;  %v9087_v36 = vshll.u32 %v2590_v18, 8 }
  0x7a   :  { %v8047_v25 = vmin.u32 %v984_v13, %v9041_v7  ;;  %v1084_v2 = vshrl.u32 %v1083_v27, 30  ;;  %v9091_v37 = vand.u32 8388607, %v2686_v31  ;;  %v2595_v50 = vshrl.u32 %v2594_v59, 5 }
  0x7b   :  { %v2608_v56 = vshll.u32 %v8792_v10, %v2596_v60  ;;  %v2609_v57 = vshrl.u32 %v8793_v55, %v2597_v46  ;;  %v1007_v58 = vsel %vm9071_vm1, 0, %v1005_v26  ;;  %v9098_v61 = vadd.s32 %v9019_v48, %v9024_v40 }
  0x7c   :  { %v986_v32 = vclz %v8047_v25  ;;  %v1085_v53 = vshll.u32 %v1084_v2, 30  ;;  %v2690_v14 = vshrl.u32 %v2689_v22, 23  ;;  %vm1024_vm3 = vcmp.lt.s32.totalorder %v8921_v11, 0 }
  0x7d   :  { %v2601_v3 = vor.u32 %v2600_v29, %v2599_v23  ;;  %v2604_v4 = vor.u32 %v2603_v6, %v2602_v30  ;;  %v2607_v5 = vor.u32 %v2606_v34, %v2605_v33  ;;  %v2611_v39 = vshll.u32 %v8793_v55, %v2596_v60 }
  0x7e   :  { %v8048_v52 = vadd.s32 4294967294, %v986_v32  ;;  %v9101_v59 = vsub.s32 %v1082_v17, %v1085_v53  ;;  %v2612_v13 = vshrl.u32 %v8794_v62, %v2597_v46  ;;  %v2610_v40 = vor.u32 %v2609_v57, %v2608_v56 }
  0x7f   :  { %v2598_v26 = vshrl.u32 %v8789_v49, %v2597_v46  ;;  %vm2614_vm4 = vcmp.lt.s32.totalorder %v2595_v50, 1  ;;  %vm2617_vm5 = vcmp.lt.s32.totalorder %v2595_v50, 4  ;;  %vm2615_vm6 = vcmp.lt.s32.totalorder %v2595_v50, 2 }
  0x80   :  { %vm8049_vm2 = vcmp.lt.s32.totalorder %v8048_v52, 0  ;;  %v1088_v22 = vsub.s32 0, %v9101_v59  ;;  %v2619_v17 = vsel %vm2617_vm5, %v2607_v5, 2102212464  ;;  %v1108_v29 = vsub.s32 4, %v1084_v2 }
  0x81   :  { %v989_v38 = vsel %vm8049_vm2, 0, %v8048_v52  ;;  %v2613_v30 = vor.u32 %v2612_v13, %v2611_v39  ;;  %vm2616_vm7 = vcmp.lt.s32.totalorder %v2595_v50, 3  ;;  %vm9112_vm8 = vcmp.le.f32.partialorder %v1022_v20, 0.7853982 }
  0x82   :  { %v990_v18 = vsub.s32 32, %v989_v38  ;;  %v991_v25 = vshll.u32 %v9041_v7, %v989_v38  ;;  %v994_v48 = vsub.s32 4294967266, %v989_v38  ;;  %v8051_v60 = vmin.u32 %v1088_v22, %v9101_v59 }
  0x83   :  { %v2622_v46 = vsel %vm2614_vm4, %v2601_v3, %v2604_v4  ;;  %v2623_v33 = vsel %vm2617_vm5, %v2610_v40, 920167782  ;;  %v1011_v34 = vadd.s32 3, %v1007_v58  ;;  %v2618_v52 = vsel %vm2614_vm4, %v2598_v26, %v2601_v3 }
  0x84   :  { %v992_v23 = vshrl.u32 %v974_v35, %v990_v18  ;;  %v995_v27 = vadd.s32 127, %v994_v48  ;;  %v1090_v35 = vclz %v8051_v60  ;;  %v2620_v56 = vsel %vm2616_vm7, %v2604_v4, %v2619_v17 }
  0x85   :  { %v2624_v38 = vsel %vm2616_vm7, %v2607_v5, %v2623_v33  ;;  %v2626_v39 = vsel %vm2614_vm4, %v2604_v4, %v2607_v5  ;;  %v1109_v13 = vsel %vm1024_vm3, %v1108_v29, %v1084_v2  ;;  %v8114_v5 = vadd.s32 4294967169, %v2690_v14 }
  0x86   :  { %v993_v32 = vor.u32 %v992_v23, %v991_v25  ;;  %v996_v7 = vshll.u32 %v995_v27, 23  ;;  %v8052_v20 = vadd.s32 4294967294, %v1090_v35  ;;  %v2625_v18 = vsel %vm2615_vm6, %v2622_v46, %v2624_v38 }
  0x87   :  { %v2627_v25 = vsel %vm2617_vm5, %v2613_v30, 1326507024  ;;  %v9128_v3 = vmul.u32.u64.low %v9087_v36, %v2625_v18  ;;  %v9129_v26 = vmul.u32.u64.high %v9087_v36, %v2625_v18, %v9128_v3  ;;  %v2621_v23 = vsel %vm2615_vm6, %v2618_v52, %v2620_v56 }
  0x88   :  { %v997_v57 = vor.u32 4788187, %v996_v7  ;;  %v1000_v53 = vcvt.s32.f32 %v993_v32  ;;  %v2628_v22 = vsel %vm2616_vm7, %v2610_v40, %v2627_v25  ;;  %vm8053_vm9 = vcmp.lt.s32.totalorder %v8052_v20, 0 }
  0x89   :  { %v2629_v4 = vsel %vm2615_vm6, %v2626_v39, %v2628_v22  ;;  %v1093_v2 = vsel %vm8053_vm9, 0, %v8052_v20  ;;  %v2696_v32 = vadd.s32 1, %v8114_v5  ;;  %v9139_v46 = vand.u32 3, %v1007_v58 }
  0x8a   :  { %v998_v48 = vand.u32 2147483647, %v997_v57  ;;  %v9135_v17 = vmul.u32.u64.low %v9087_v36, %v2629_v4  ;;  %v9136_v60 = vmul.u32.u64.high %v9087_v36, %v2629_v4, %v9135_v17  ;;  %v1094_v29 = vsub.s32 32, %v1093_v2 }
  0x8b   :  { %v1095_v40 = vshll.u32 %v9101_v59, %v1093_v2  ;;  %v1098_v30 = vsub.s32 4294967266, %v1093_v2  ;;  %v2637_v33 = vmul.u32 %v9087_v36, %v2621_v23  ;;  %v2640_v50 = vadd.s32 1, %v9129_v26 }
  0x8c   :  { %v1001_v27 = vmul.f32 %v1000_v53, %v998_v48  ;;  %v1096_v14 = vshrl.u32 %v9098_v61, %v1094_v29  ;;  %v1111_v52 = vsel %vm9112_vm8, 0, %v1109_v13  ;;  %vm2697_vm10 = vcmp.gt.s32.totalorder %v2696_v32, 0 }
  0x8d   :  { %v1099_v35 = vadd.s32 127, %v1098_v30  ;;  %v9148_v59 = vand.u32 3, %v1011_v34  ;;  %vm2639_vm11 = vc.u32 %v9136_v60, %v9128_v3  ;;  %v2698_v58 = vsel %vm2697_vm10, %v2696_v32, 0 }
  0x8e   :  { %v1002_v7 = vxor.u32 2147483648, %v1001_v27  ;;  %v1097_v57 = vor.u32 %v1096_v14, %v1095_v40  ;;  %v2641_v53 = vsel %vm2639_vm11, %v2640_v50, %v9129_v26  ;;  %v1115_v38 = vadd.s32 3, %v1111_v52 }
  0x8f   :  { %v1100_v61 = vshll.u32 %v1099_v35, 23  ;;  %v2642_v39 = vadd.s32 %v2641_v53, %v2637_v33  ;;  %v2700_v20 = vand.u32 31, %v2698_v58  ;;  %v2694_v18 = vor.u32 8388608, %v9091_v37 }
  0x90   :  { %v1003_v56 = vsel %vm920_vm0, %v1002_v7, %v1001_v27  ;;  %v1104_v34 = vcvt.s32.f32 %v1097_v57  ;;  %v846_v24 = vmul.f32 3.8197186, %v814_v0  ;;  %v9164_v22 = vmul.f32 22.5, %v687_v19 }
  0x91   :  { %v1006_v36 = vsel %vm9071_vm1, %v8914_v63, %v1003_v56  ;;  %v1101_v13 = vor.u32 4788187, %v1100_v61  ;;  %v2643_v25 = vadd.s32 536870912, %v2642_v39  ;;  %v2701_v48 = vsub.s32 32, %v2700_v20 }
  0x92   :  { %8602 = vcosq.f32 %v1006_v36  ;;  %vm1014_vm12 = vcmp.eq.s32.totalorder %v9148_v59, 0  ;;  %vm4341_vm13 = vcmp.eq.s32.totalorder %v9139_v46, 0  ;;  %vm4344_vm14 = vcmp.eq.s32.totalorder %v9139_v46, 2 }
  0x93   :  { %8604 = vsinq.f32 %v1006_v36  ;;  %v1102_v26 = vand.u32 2147483647, %v1101_v13  ;;  %vm1013_vm0 = vcmp.lt.s32.totalorder %v9148_v59, 2  ;;  %vm1017_vm1 = vcmp.eq.s32.totalorder %v9148_v59, 2 }
  0x94   :  { %vm4340_vm2 = vcmp.lt.s32.totalorder %v9139_v46, 2  ;;  %v9172_v15 = vand.u32 3, %v1115_v38  ;;  %v9174_v44 = vand.u32 3, %v1111_v52  ;;  %v9176_v45 = vshrl.u32 %v2643_v25, 30 }
  0x95   :  { %vm1010_vm15 = vweird.f32 %v8914_v63  ;;  %v1105_v0 = vmul.f32 %v1104_v34, %v1102_v26  ;;  %v2703_v37 = vshll.u32 %v8789_v49, %v2700_v20  ;;  %v2706_v23 = vshll.u32 %v8790_v51, %v2700_v20 }
  0x96   :  { %v9181_v4 = vshll.u32 %v2694_v18, 8  ;;  %vm917_vm4 = vcmp.lt.s32.totalorder %v9055_v28, 32  ;;  %v2645_v5 = vshll.u32 %v9176_v45, 30  ;;  %v2704_v27 = vshrl.u32 %v8790_v51, %v2701_v48 }
  0x97   :  { %v2707_v2 = vshrl.u32 %v8791_v9, %v2701_v48  ;;  %v2709_v17 = vshll.u32 %v8791_v9, %v2700_v20  ;;  %vm7589_vm5 = vcmask 523264   ;;  %v1106_v29 = vxor.u32 2147483648, %v1105_v0 }
  0x98   :  { %v2710_v40 = vshrl.u32 %v8792_v10, %v2701_v48  ;;  %v2712_v30 = vshll.u32 %v8792_v10, %v2700_v20  ;;  %v2713_v32 = vshrl.u32 %v8793_v55, %v2701_v48  ;;  %v9191_v7 = vsub.s32 %v2642_v39, %v2645_v5 }
  0x99   :  { %v2715_v33 = vshll.u32 %v8793_v55, %v2700_v20  ;;  %v2716_v50 = vshrl.u32 %v8794_v62, %v2701_v48  ;;  %v9196_v14 = vmul.f32 %v8908_v54, %v846_v24  ;;  %v1107_v35 = vsel %vm1024_vm3, %v1106_v29, %v1105_v0 }
  0x9a   :  { %v2668_v52 = vsub.s32 4, %v9176_v45  ;;  %v2699_v56 = vshrl.u32 %v2698_v58, 5  ;;  %v2702_v36 = vshrl.u32 %v8789_v49, %v2701_v48  ;;  %v1110_v61 = vsel %vm9112_vm8, %v8921_v11, %v1107_v35 }
  0x9b   :  { %v2648_v53 = vsub.s32 0, %v9191_v7  ;;  %v2705_v38 = vor.u32 %v2704_v27, %v2703_v37  ;;  %v2708_v39 = vor.u32 %v2707_v2, %v2706_v23  ;;  %8606 = vcosq.f32 %v1110_v61 }
  0x9c   :  { %v8603_v57 = vpop.eup %8602  ;;  %v2711_v34 = vor.u32 %v2710_v40, %v2709_v17  ;;  %v2714_v18 = vor.u32 %v2713_v32, %v2712_v30  ;;  %8608 = vsinq.f32 %v1110_v61  ;;  %vm2584_vm3 = vcmp.lt.s32.totalorder %v8924_v12, 0 }
  0x9d   :  { %v8605_v20 = vpop.eup %8604  ;;  %v1018_v13 = vxor.u32 2147483648, %v8603_v57  ;;  %v8111_v58 = vmin.u32 %v2648_v53, %v9191_v7  ;;  %v2717_v48 = vor.u32 %v2716_v50, %v2715_v33  ;;  %vm1121_vm6 = vcmp.eq.s32.totalorder %v9172_v15, 2 }
  0x9e   :  { %v1015_v25 = vxor.u32 2147483648, %v8605_v20  ;;  %vm2718_vm8 = vcmp.lt.s32.totalorder %v2699_v56, 1  ;;  %vm2721_vm9 = vcmp.lt.s32.totalorder %v2699_v56, 4  ;;  %vm1118_vm10 = vcmp.eq.s32.totalorder %v9172_v15, 0 }
  0x9f   :  { %v1019_v6 = vsel %vm1017_vm1, %v1018_v13, %v8605_v20  ;;  %v4346_v24 = vsel %vm4344_vm14, %v1018_v13, %v8605_v20  ;;  %vm4444_vm11 = vcmp.eq.s32.totalorder %v9174_v44, 0  ;;  %v2650_v37 = vclz %v8111_v58 }
  0xa0   :  { %v1016_v26 = vsel %vm1014_vm12, %v8603_v57, %v1015_v25  ;;  %v4343_v0 = vsel %vm4341_vm13, %v8603_v57, %v1015_v25  ;;  %v2723_v23 = vsel %vm2721_vm9, %v2711_v34, 2102212464  ;;  %vm1117_vm14 = vcmp.lt.s32.totalorder %v9172_v15, 2 }
  0xa1   :  { %v1020_v5 = vsel %vm1013_vm0, %v1016_v26, %v1019_v6  ;;  %v4347_v27 = vsel %vm4340_vm2, %v4343_v0, %v4346_v24  ;;  %vm4443_vm12 = vcmp.lt.s32.totalorder %v9174_v44, 2  ;;  %vm2719_vm1 = vcmp.lt.s32.totalorder %v2699_v56, 2 }
  0xa2   :  { %vm2720_vm7 = vcmp.lt.s32.totalorder %v2699_v56, 3  ;;  %v1021_v2 = vsel %vm1010_vm15, nan, %v1020_v5  ;;  %v4348_v17 = vsel %vm1010_vm15, nan, %v4347_v27  ;;  %vm1114_vm13 = vweird.f32 %v8921_v11 }
  0xa3   :  { %v8112_v29 = vadd.s32 4294967294, %v2650_v37  ;;  %v2722_v59 = vsel %vm2718_vm8, %v2702_v36, %v2705_v38  ;;  %v7542_v46 = vsel %vm917_vm4, %v1021_v2, %v4348_v17  ;;  %v2724_v40 = vsel %vm2720_vm7, %v2708_v39, %v2723_v23 }
  0xa4   :  { %v2726_v30 = vsel %vm2718_vm8, %v2705_v38, %v2708_v39  ;;  %v2727_v32 = vsel %vm2721_vm9, %v2714_v18, 920167782  ;;  %8391 = vmatprep.mubr.msk.f32.mxu0 %vm7589_vm5, %v7542_v46  ;;  %vm9241_vm0 = vcmp.le.f32.partialorder %v2582_v41, 0.7853982  ;;  %v2638_v33 = vadd.s32 %v9128_v3, %v9136_v60 }
  0xa5   :  { %vm8113_vm2 = vcmp.lt.s32.totalorder %v8112_v29, 0  ;;  %v2728_v50 = vsel %vm2720_vm7, %v2711_v34, %v2727_v32  ;;  %v2730_v35 = vsel %vm2718_vm8, %v2708_v39, %v2711_v34  ;;  %v2725_v57 = vsel %vm2719_vm1, %v2722_v59, %v2724_v40  ;;  %v8607_v25 = vpop.eup %8606 }
  0xa6   :  { %v2653_v36 = vsel %vm8113_vm2, 0, %v8112_v29  ;;  %v2729_v61 = vsel %vm2719_vm1, %v2726_v30, %v2728_v50  ;;  %v2731_v53 = vsel %vm2721_vm9, %v2717_v48, 1326507024  ;;  %v2669_v3 = vsel %vm2584_vm3, %v2668_v52, %v9176_v45  ;;  %v8609_v58 = vpop.eup %8608 }
  0xa7   :  { %v2654_v38 = vsub.s32 32, %v2653_v36  ;;  %v2655_v41 = vshll.u32 %v9191_v7, %v2653_v36  ;;  %v2658_v20 = vsub.s32 4294967266, %v2653_v36  ;;  %v2732_v13 = vsel %vm2720_vm7, %v2714_v18, %v2731_v53 }
  0xa8   :  { %v2733_v60 = vsel %vm2719_vm1, %v2730_v35, %v2732_v13  ;;  %v9259_v39 = vmul.u32.u64.low %v9181_v4, %v2729_v61  ;;  %v9260_v34 = vmul.u32.u64.high %v9181_v4, %v2729_v61, %v9259_v39  ;;  %v1122_v6 = vxor.u32 2147483648, %v8607_v25 }
  0xa9   :  { %v2656_v48 = vshrl.u32 %v2638_v33, %v2654_v38  ;;  %v2659_v24 = vadd.s32 127, %v2658_v20  ;;  %v2741_v7 = vmul.u32 %v9181_v4, %v2725_v57  ;;  %v1119_v26 = vxor.u32 2147483648, %v8609_v58 }
  0xaa   :  { %v9264_v18 = vmul.u32.u64.low %v9181_v4, %v2733_v60  ;;  %v9265_v0 = vmul.u32.u64.high %v9181_v4, %v2733_v60, %v9264_v18  ;;  %v1129_v37 = vand.u32 2139095040, %v9196_v14  ;;  %v1123_v45 = vsel %vm1121_vm6, %v1122_v6, %v8609_v58 }
  0xab   :  { %vm13250_vm15 = vcmp.eq.s32.totalorder %v9174_v44, 2  ;;  %v2657_v56 = vor.u32 %v2656_v48, %v2655_v41  ;;  %v2660_v23 = vshll.u32 %v2659_v24, 23  ;;  %v1120_v5 = vsel %vm1118_vm10, %v8607_v25, %v1119_v26 }
  0xac   :  { %v4449_v52 = vsel %vm13250_vm15, %v1122_v6, %v8609_v58  ;;  %v4446_v27 = vsel %vm4444_vm11, %v8607_v25, %v1119_v26  ;;  %v2744_v2 = vadd.s32 1, %v9260_v34  ;;  %v1130_v4 = vshrl.u32 %v1129_v37, 23 }
  0xad   :  { %v1124_v17 = vsel %vm1117_vm14, %v1120_v5, %v1123_v45  ;;  %v4450_v29 = vsel %vm4443_vm12, %v4446_v27, %v4449_v52  ;;  %v2661_v59 = vor.u32 4788187, %v2660_v23  ;;  %v2664_v46 = vcvt.s32.f32 %v2657_v56 }
  0xae   :  { %v1125_v40 = vsel %vm1114_vm13, nan, %v1124_v17  ;;  %v4451_v30 = vsel %vm1114_vm13, nan, %v4450_v29  ;;  %v2671_v32 = vsel %vm9241_vm0, 0, %v2669_v3  ;;  %vm2743_vm6 = vc.u32 %v9265_v0, %v9259_v39 }
  0xaf   :  { %v7543_v15 = vsel %vm917_vm4, %v1125_v40, %v4451_v30  ;;  %v2662_v33 = vand.u32 2147483647, %v2661_v59  ;;  %v2745_v44 = vsel %vm2743_vm6, %v2744_v2, %v9260_v34  ;;  %v8054_v50 = vadd.s32 4294967169, %v1130_v4 }
  0xb0   :  { %8392 = vmatmul.mubr.msk.f32.vlgmr.msra.gmra.mrb[0].mxu0 %vm7589_vm5, %v7543_v15  ;;  %v2746_v35 = vadd.s32 %v2745_v44, %v2741_v7  ;;  %v574_v36 = vadd.f32 %v9061_v42, %v8918_v8  ;;  %v2675_v57 = vadd.s32 3, %v2671_v32  ;;  %v1126_v38 = vand.u32 2147483647, %v9196_v14 }
  0xb1   :  { %v2665_v11 = vmul.f32 %v2664_v46, %v2662_v33  ;;  %v1136_v61 = vadd.s32 1, %v8054_v50  ;;  %v8016_v41 = vadd.f32 -360.0, %v9164_v22  ;;  %vm9298_vm8 = vcmp.gt.f32.partialorder %v687_v19, 8.0 }
  0xb2   :  { %v2747_v53 = vadd.s32 536870912, %v2746_v35  ;;  %v606_v60 = vmul.f32 16.0, %v574_v36  ;;  %v9304_v42 = vand.u32 3, %v2675_v57  ;;  %v9306_v34 = vand.u32 3, %v2671_v32 }
  0xb3   :  { %v2666_v20 = vxor.u32 2147483648, %v2665_v11  ;;  %vm1137_vm7 = vcmp.gt.s32.totalorder %v1136_v61, 0  ;;  %v1133_v19 = vand.u32 8388607, %v1126_v38  ;;  %v815_v48 = vsel %vm9298_vm8, %v8016_v41, %v9164_v22 }
  0xb4   :  { %v2748_v25 = vshrl.u32 %v2747_v53, 30  ;;  %v1138_v3 = vsel %vm1137_vm7, %v1136_v61, 0  ;;  %v9318_v24 = vadd.s32 %v9259_v39, %v9265_v0  ;;  %vm2681_vm9 = vcmp.eq.s32.totalorder %v9304_v42, 2 }
  0xb5   :  { %v2667_v8 = vsel %vm2584_vm3, %v2666_v20, %v2665_v11  ;;  %v1140_v58 = vand.u32 31, %v1138_v3  ;;  %vm2688_vm3 = vcmp.lt.s32.totalorder %v9046_v16, 0  ;;  %vm5992_vm10 = vcmp.eq.s32.totalorder %v9306_v34, 2 }
  0xb6   :  { %v2670_v6 = vsel %vm9241_vm0, %v8924_v12, %v2667_v8  ;;  %v2749_v21 = vshll.u32 %v2748_v25, 30  ;;  %v847_v45 = vmul.f32 3.8197186, %v815_v48  ;;  %v638_v39 = vsub.f32 %v8874_v43, %v606_v60 }
  0xb7   :  { %8610 = vcosq.f32 %v2670_v6  ;;  %v1141_v7 = vsub.s32 32, %v1140_v58  ;;  %v1143_v63 = vshll.u32 %v8789_v49, %v1140_v58  ;;  %v1146_v18 = vshll.u32 %v8790_v51, %v1140_v58 }
  0xb8   :  { %8612 = vsinq.f32 %v2670_v6  ;;  %v9320_v26 = vsub.s32 %v2746_v35, %v2749_v21  ;;  %vm2678_vm11 = vcmp.eq.s32.totalorder %v9304_v42, 0  ;;  %vm5989_vm14 = vcmp.eq.s32.totalorder %v9306_v34, 0 }
  0xb9   :  { %v1144_v22 = vshrl.u32 %v8790_v51, %v1141_v7  ;;  %v1147_v37 = vshrl.u32 %v8791_v9, %v1141_v7  ;;  %v1134_v52 = vor.u32 8388608, %v1133_v19  ;;  %v1149_v56 = vshll.u32 %v8791_v9, %v1140_v58 }
  0xba   :  { %v2752_v0 = vsub.s32 0, %v9320_v26  ;;  %v1150_v23 = vshrl.u32 %v8792_v10, %v1141_v7  ;;  %vm2677_vm12 = vcmp.lt.s32.totalorder %v9304_v42, 2  ;;  %vm5988_vm1 = vcmp.lt.s32.totalorder %v9306_v34, 2 }
  0xbb   :  { %v2772_v5 = vsub.s32 4, %v2748_v25  ;;  %v1139_v27 = vshrl.u32 %v1138_v3, 5  ;;  %v1152_v2 = vshll.u32 %v8792_v10, %v1140_v58  ;;  %v1153_v43 = vshrl.u32 %v8793_v55, %v1141_v7 }
  0xbc   :  { %vm2674_vm13 = vweird.f32 %v8924_v12  ;;  %v8115_v4 = vmin.u32 %v2752_v0, %v9320_v26  ;;  %v1145_v17 = vor.u32 %v1144_v22, %v1143_v63  ;;  %v1148_v29 = vor.u32 %v1147_v37, %v1146_v18 }
  0xbd   :  { %v60_v59 = vadd.s32 152, %v8847_v1  ;;  %v1142_v46 = vshrl.u32 %v8789_v49, %v1141_v7  ;;  %v1154_v40 = vor.u32 %v1153_v43, %v1152_v2  ;;  %v1155_v30 = vshll.u32 %v8793_v55, %v1140_v58 }
  0xbe   :  { %v9344_v32 = vmul.f32 %v8908_v54, %v847_v45  ;;  %v2754_v15 = vclz %v8115_v4  ;;  %v1151_v33 = vor.u32 %v1150_v23, %v1149_v56  ;;  %v9346_v44 = vshll.u32 %v1134_v52, 8 }
  0xbf   :  { %v9348_v50 = vsub.f32 %v574_v36, %v638_v39  ;;  %v2773_v35 = vsel %vm2688_vm3, %v2772_v5, %v2748_v25  ;;  %v1156_v11 = vshrl.u32 %v8794_v62, %v1141_v7  ;;  %vm1158_vm0 = vcmp.lt.s32.totalorder %v1139_v27, 1 }
  0xc0   :  { %vm1160_vm2 = vcmp.lt.s32.totalorder %v1139_v27, 3  ;;  %v8116_v57 = vadd.s32 4294967294, %v2754_v15  ;;  %vm1159_vm15 = vcmp.lt.s32.totalorder %v1139_v27, 2  ;;  %vm1161_vm6 = vcmp.lt.s32.totalorder %v1139_v27, 4 }
  0xc1   :  { %v1166_v61 = vsel %vm1158_vm0, %v1145_v17, %v1148_v29  ;;  %v8611_v53 = vpop.eup %8610  ;;  %v1157_v54 = vor.u32 %v1156_v11, %v1155_v30  ;;  %v1162_v41 = vsel %vm1158_vm0, %v1142_v46, %v1145_v17  ;;  %v1163_v20 = vsel %vm1161_vm6, %v1151_v33, 2102212464 }
  0xc2   :  { %v1167_v13 = vsel %vm1161_vm6, %v1154_v40, 920167782  ;;  %v8613_v36 = vpop.eup %8612  ;;  %v2682_v3 = vxor.u32 2147483648, %v8611_v53  ;;  %vm8117_vm7 = vcmp.lt.s32.totalorder %v8116_v57, 0  ;;  %v1170_v60 = vsel %vm1158_vm0, %v1148_v29, %v1151_v33 }
  0xc3   :  { %v1168_v25 = vsel %vm1160_vm2, %v1151_v33, %v1167_v13  ;;  %v2679_v8 = vxor.u32 2147483648, %v8613_v36  ;;  %v2757_v58 = vsel %vm8117_vm7, 0, %v8116_v57  ;;  %v1164_v6 = vsel %vm1160_vm2, %v1148_v29, %v1163_v20 }
  0xc4   :  { %v1169_v21 = vsel %vm1159_vm15, %v1166_v61, %v1168_v25  ;;  %v2683_v19 = vsel %vm2681_vm9, %v2682_v3, %v8613_v36  ;;  %v5994_v48 = vsel %vm5992_vm10, %v2682_v3, %v8613_v36  ;;  %v2758_v7 = vsub.s32 32, %v2757_v58 }
  0xc5   :  { %v2759_v63 = vshll.u32 %v9320_v26, %v2757_v58  ;;  %v2680_v18 = vsel %vm2678_vm11, %v8611_v53, %v2679_v8  ;;  %v5991_v22 = vsel %vm5989_vm14, %v8611_v53, %v2679_v8  ;;  %v2762_v37 = vsub.s32 4294967266, %v2757_v58 }
  0xc6   :  { %v1171_v45 = vsel %vm1161_vm6, %v1157_v54, 1326507024  ;;  %v2684_v39 = vsel %vm2677_vm12, %v2680_v18, %v2683_v19  ;;  %v5995_v0 = vsel %vm5988_vm1, %v5991_v22, %v5994_v48  ;;  %v2760_v52 = vshrl.u32 %v9318_v24, %v2758_v7 }
  0xc7   :  { %v1172_v56 = vsel %vm1160_vm2, %v1154_v40, %v1171_v45  ;;  %v2685_v26 = vsel %vm2674_vm13, nan, %v2684_v39  ;;  %v5996_v23 = vsel %vm2674_vm13, nan, %v5995_v0  ;;  %v2763_v5 = vadd.s32 127, %v2762_v37 }
  0xc8   :  { %v1173_v2 = vsel %vm1159_vm15, %v1170_v60, %v1172_v56  ;;  %v7558_v42 = vsel %vm917_vm4, %v2685_v26, %v5996_v23  ;;  %v2761_v43 = vor.u32 %v2760_v52, %v2759_v63  ;;  %v1165_v17 = vsel %vm1159_vm15, %v1162_v41, %v1164_v6 }
  0xc9   :  { %v9382_v34 = vmul.u32.u64.low %v9346_v44, %v1173_v2  ;;  %v9383_v4 = vmul.u32.u64.high %v9346_v44, %v1173_v2, %v9382_v34  ;;  %8415 = vmatprep.mubr.msk.f32.mxu1 %vm7589_vm5, %v7558_v42  ;;  %v2764_v24 = vshll.u32 %v2763_v5, 23  ;;  %vm9393_vm8 = vcmp.le.f32.partialorder %v2686_v31, 0.7853982 }
  0xca   :  { %v9388_v29 = vmul.u32.u64.low %v9346_v44, %v1169_v21  ;;  %v9389_v12 = vmul.u32.u64.high %v9346_v44, %v1169_v21, %v9388_v29  ;;  %v1233_v40 = vand.u32 2139095040, %v9344_v32  ;;  %v9398_v30 = vcvt.s32.f32 %v60_v59 }
  0xcb   :  { %v2765_v15 = vor.u32 4788187, %v2764_v24  ;;  %v2768_v33 = vcvt.s32.f32 %v2761_v43  ;;  %v2775_v27 = vsel %vm9393_vm8, 0, %v2773_v35  ;;  %v702_v11 = vand.u32 2147483647, %v9348_v50 }
  0xcc   :  { %v1181_v57 = vmul.u32 %v9346_v44, %v1165_v17  ;;  %vm1183_vm9 = vc.u32 %v9383_v4, %v9388_v29  ;;  %v1234_v61 = vshrl.u32 %v1233_v40, 23  ;;  %v1184_v53 = vadd.s32 1, %v9389_v12 }
  0xcd   :  { %v2766_v31 = vand.u32 2147483647, %v2765_v15  ;;  %v734_v54 = vmul.f32 22.5, %v702_v11  ;;  %v2779_v41 = vadd.s32 3, %v2775_v27  ;;  %v1230_v59 = vand.u32 2147483647, %v9344_v32 }
  0xce   :  { %v8058_v20 = vadd.s32 4294967169, %v1234_v61  ;;  %v1185_v36 = vsel %vm1183_vm9, %v1184_v53, %v9389_v12  ;;  %v158_v35 = vadd.f32 0.5, %v9398_v30  ;;  %v45_v50 = vadd.s32 32, %v8847_v1 }
  0xcf   :  { %v2769_v13 = vmul.f32 %v2768_v33, %v2766_v31  ;;  %v1186_v3 = vadd.s32 %v1185_v36, %v1181_v57  ;;  %v8031_v25 = vadd.f32 -360.0, %v734_v54  ;;  %v9410_v8 = vand.u32 3, %v2775_v27 }
  0xd0   :  { %v1240_v44 = vadd.s32 1, %v8058_v20  ;;  %vm9412_vm10 = vcmp.gt.f32.partialorder %v702_v11, 8.0  ;;  %v9416_v6 = vand.u32 3, %v2779_v41  ;;  %v1237_v19 = vand.u32 8388607, %v1230_v59 }
  0xd1   :  { %v2770_v60 = vxor.u32 2147483648, %v2769_v13  ;;  %v1187_v21 = vadd.s32 536870912, %v1186_v3  ;;  %v9422_v63 = vmul.f32 0.0625, %v158_v35  ;;  %v9424_v18 = vcvt.s32.f32 %v45_v50 }
  0xd2   :  { %vm1241_vm11 = vcmp.gt.s32.totalorder %v1240_v44, 0  ;;  %v830_v39 = vsel %vm9412_vm10, %v8031_v25, %v734_v54  ;;  %vm1128_vm14 = vcmp.lt.s32.totalorder %v9196_v14, 0  ;;  %v9433_v0 = vadd.s32 %v9388_v29, %v9383_v4  ;;  %v9469_v54 = vld [vmem:[#allocation2] ss:$0 sm:$0xff] }
  0xd3   :  { %v2771_v48 = vsel %vm2688_vm3, %v2770_v60, %v2769_v13  ;;  %v1242_v7 = vsel %vm1241_vm11, %v1240_v44, 0  ;;  %v1188_v37 = vshrl.u32 %v1187_v21, 30  ;;  %vm2785_vm3 = vcmp.eq.s32.totalorder %v9416_v6, 2 }
  0xd4   :  { %v2774_v22 = vsel %vm9393_vm8, %v9046_v16, %v2771_v48  ;;  %v1244_v45 = vand.u32 31, %v1242_v7  ;;  %vm6095_vm12 = vcmp.eq.s32.totalorder %v9410_v8, 2  ;;  %v1238_v26 = vor.u32 8388608, %v1237_v19 }
  0xd5   :  { %8614 = vcosq.f32 %v2774_v22  ;;  %v1189_v52 = vshll.u32 %v1188_v37, 30  ;;  %v862_v23 = vmul.f32 3.8197186, %v830_v39  ;;  %v223_v5 = vfloor.f32 %v9422_v63 }
  0xd6   :  { %8616 = vsinq.f32 %v2774_v22  ;;  %v1245_v56 = vsub.s32 32, %v1244_v45  ;;  %v143_v2 = vadd.f32 0.5, %v9424_v18  ;;  %vm2782_vm1 = vcmp.eq.s32.totalorder %v9416_v6, 0 }
  0xd7   :  { %vm6092_vm13 = vcmp.eq.s32.totalorder %v9410_v8, 0  ;;  %v9441_v42 = vsub.s32 %v1186_v3, %v1189_v52  ;;  %v9443_v43 = vshrl.u32 %v1242_v7, 5  ;;  %v1247_v34 = vshll.u32 %v8789_v49, %v1244_v45 }
  0xd8   :  { %v1250_v4 = vshll.u32 %v8790_v51, %v1244_v45  ;;  %vm2781_vm0 = vcmp.lt.s32.totalorder %v9416_v6, 2  ;;  %vm6091_vm2 = vcmp.lt.s32.totalorder %v9410_v8, 2  ;;  %v1248_v24 = vshrl.u32 %v8790_v51, %v1245_v56 }
  0xd9   :  { %v1251_v17 = vshrl.u32 %v8791_v9, %v1245_v56  ;;  %v1256_v29 = vshll.u32 %v8792_v10, %v1244_v45  ;;  %v1257_v12 = vshrl.u32 %v8793_v55, %v1245_v56  ;;  %vm2778_vm15 = vweird.f32 %v9046_v16 }
  0xda   :  { %v1192_v46 = vsub.s32 0, %v9441_v42  ;;  %v1212_v40 = vsub.s32 4, %v1188_v37  ;;  %v1253_v15 = vshll.u32 %v8791_v9, %v1244_v45  ;;  %v1254_v33 = vshrl.u32 %v8792_v10, %v1245_v56 }
  0xdb   :  { %v1259_v27 = vshll.u32 %v8793_v55, %v1244_v45  ;;  %v9458_v11 = vshll.u32 %v1238_v26, 8  ;;  %v9462_v57 = vmul.f32 16.0, %v223_v5  ;;  %v9465_v61 = vadd.s32 40, %v8847_v1 }
  0xdc   :  { %v8055_v31 = vmin.u32 %v1192_v46, %v9441_v42  ;;  %v1246_v53 = vshrl.u32 %v8789_v49, %v1245_v56  ;;  %v9472_v41 = vmul.f32 %v9469_v54, %v862_v23  ;;  %v9474_v20 = vmul.f32 0.0625, %v143_v2 }
  0xdd   :  { %v1249_v13 = vor.u32 %v1248_v24, %v1247_v34  ;;  %v1252_v36 = vor.u32 %v1251_v17, %v1250_v4  ;;  %v1258_v35 = vor.u32 %v1257_v12, %v1256_v29  ;;  %v1260_v50 = vshrl.u32 %v8794_v62, %v1245_v56 }
  0xde   :  { %v1194_v3 = vclz %v8055_v31  ;;  %v1213_v44 = vsel %vm1128_vm14, %v1212_v40, %v1188_v37  ;;  %v1255_v25 = vor.u32 %v1254_v33, %v1253_v15  ;;  %vm1262_vm6 = vcmp.lt.s32.totalorder %v9443_v43, 1 }
  0xdf   :  { %v8615_v60 = vpop.eup %8614  ;;  %v1261_v58 = vor.u32 %v1260_v50, %v1259_v27  ;;  %vm1263_vm7 = vcmp.lt.s32.totalorder %v9443_v43, 2  ;;  %vm1264_vm8 = vcmp.lt.s32.totalorder %v9443_v43, 3  ;;  %vm1265_vm9 = vcmp.lt.s32.totalorder %v9443_v43, 4 }
  0xe0   :  { %v8617_v21 = vpop.eup %8616  ;;  %v2786_v19 = vxor.u32 2147483648, %v8615_v60  ;;  %v8056_v48 = vadd.s32 4294967294, %v1194_v3  ;;  %v1266_v7 = vsel %vm1262_vm6, %v1246_v53, %v1249_v13  ;;  %v1267_v22 = vsel %vm1265_vm9, %v1255_v25, 2102212464 }
  0xe1   :  { %v2783_v37 = vxor.u32 2147483648, %v8617_v21  ;;  %vm9489_vm10 = vcmp.le.f32.partialorder %v1126_v38, 0.7853982  ;;  %v1268_v39 = vsel %vm1264_vm8, %v1252_v36, %v1267_v22  ;;  %v1270_v52 = vsel %vm1262_vm6, %v1249_v13, %v1252_v36 }
  0xe2   :  { %v1271_v56 = vsel %vm1265_vm9, %v1258_v35, 920167782  ;;  %v2787_v26 = vsel %vm2785_vm3, %v2786_v19, %v8617_v21  ;;  %v6097_v23 = vsel %vm6095_vm12, %v2786_v19, %v8617_v21  ;;  %vm8057_vm11 = vcmp.lt.s32.totalorder %v8056_v48, 0 }
  0xe3   :  { %v1274_v38 = vsel %vm1262_vm6, %v1252_v36, %v1255_v25  ;;  %v2784_v2 = vsel %vm2782_vm1, %v8615_v60, %v2783_v37  ;;  %v6094_v34 = vsel %vm6092_vm13, %v8615_v60, %v2783_v37  ;;  %v1197_v4 = vsel %vm8057_vm11, 0, %v8056_v48 }
  0xe4   :  { %v1272_v24 = vsel %vm1264_vm8, %v1255_v25, %v1271_v56  ;;  %v2788_v17 = vsel %vm2781_vm0, %v2784_v2, %v2787_v26  ;;  %v6098_v29 = vsel %vm6091_vm2, %v6094_v34, %v6097_v23  ;;  %v1198_v12 = vsub.s32 32, %v1197_v4 }
  0xe5   :  { %v1199_v46 = vshll.u32 %v9441_v42, %v1197_v4  ;;  %v2789_v40 = vsel %vm2778_vm15, nan, %v2788_v17  ;;  %v6099_v15 = vsel %vm2778_vm15, nan, %v6098_v29  ;;  %v1202_v33 = vsub.s32 4294967266, %v1197_v4 }
  0xe6   :  { %v1273_v27 = vsel %vm1263_vm7, %v1270_v52, %v1272_v24  ;;  %v7559_v6 = vsel %vm917_vm4, %v2789_v40, %v6099_v15  ;;  %v1200_v31 = vshrl.u32 %v9433_v0, %v1198_v12  ;;  %v1269_v8 = vsel %vm1263_vm7, %v1266_v7, %v1268_v39 }
  0xe7   :  { %v1275_v42 = vsel %vm1265_vm9, %v1261_v58, 1326507024  ;;  %8416 = vmatmul.mubr.msk.f32.vlgmr.msra.gmra.mrb[0].mxu1 %vm7589_vm5, %v7559_v6  ;;  %v1203_v53 = vadd.s32 127, %v1202_v33  ;;  %v9533_v13 = vmul.u32.u64.low %v9458_v11, %v1273_v27  ;;  %v9534_v36 = vmul.u32.u64.high %v9458_v11, %v1273_v27, %v9533_v13 }
  0xe8   :  { %v1276_v16 = vsel %vm1264_vm8, %v1258_v35, %v1275_v42  ;;  %v1201_v50 = vor.u32 %v1200_v31, %v1199_v46  ;;  %vm287_vm3 = vcmp.gt.f32.partialorder %v9462_v57, %v9398_v30  ;;  %v208_v3 = vfloor.f32 %v9474_v20 }
  0xe9   :  { %v1277_v0 = vsel %vm1263_vm7, %v1274_v38, %v1276_v16  ;;  %v1204_v25 = vshll.u32 %v1203_v53, 23  ;;  %v2793_v35 = vand.u32 2139095040, %v9472_v41  ;;  %v1215_v19 = vsel %vm9489_vm10, 0, %v1213_v44 }
  0xea   :  { %v9542_v60 = vmul.u32.u64.low %v9458_v11, %v1277_v0  ;;  %v9543_v58 = vmul.u32.u64.high %v9458_v11, %v1277_v0, %v9542_v60  ;;  %v1208_v21 = vcvt.s32.f32 %v1201_v50  ;;  %v1285_v48 = vmul.u32 %v9458_v11, %v1269_v8 }
  0xeb   :  { %v9550_v43 = vcvt.s32.f32 %v9465_v61  ;;  %v1205_v7 = vor.u32 4788187, %v1204_v25  ;;  %v1288_v57 = vadd.s32 1, %v9534_v36  ;;  %v2794_v20 = vshrl.u32 %v2793_v35, 23 }
  0xec   :  { %v7968_v22 = vsel %vm287_vm3, 1.0, %v8788_v47  ;;  %v2790_v37 = vand.u32 2147483647, %v9472_v41  ;;  %v240_v39 = vmul.f32 16.0, %v208_v3  ;;  %vm1287_vm12 = vc.u32 %v9543_v58, %v9533_v13 }
  0xed   :  { %v1206_v52 = vand.u32 2147483647, %v1205_v7  ;;  %v8118_v56 = vadd.s32 4294967169, %v2794_v20  ;;  %v1219_v26 = vadd.s32 3, %v1215_v19  ;;  %v1289_v44 = vsel %vm1287_vm12, %v1288_v57, %v9534_v36 }
  0xee   :  { %v9559_v11 = vsub.f32 %v223_v5, %v7968_v22  ;;  %v144_v61 = vadd.f32 0.5, %v9550_v43  ;;  %v1290_v38 = vadd.s32 %v1289_v44, %v1285_v48  ;;  %vm272_vm1 = vcmp.gt.f32.partialorder %v240_v39, %v9424_v18 }
  0xef   :  { %v1209_v23 = vmul.f32 %v1208_v21, %v1206_v52  ;;  %v2800_v2 = vadd.s32 1, %v8118_v56  ;;  %v2797_v34 = vand.u32 8388607, %v2790_v37  ;;  %v9565_v24 = vand.u32 3, %v1215_v19 }
  0xf0   :  { %v1291_v17 = vadd.s32 536870912, %v1290_v38  ;;  %v415_v63 = vadd.f32 1.0, %v9559_v11  ;;  %v7953_v5 = vsel %vm272_vm1, 1.0, %v8788_v47  ;;  %v9569_v12 = vmul.f32 0.0625, %v144_v61 }
  0xf1   :  { %v1210_v4 = vxor.u32 2147483648, %v1209_v23  ;;  %vm2801_vm13 = vcmp.gt.s32.totalorder %v2800_v2, 0  ;;  %v9573_v40 = vand.u32 3, %v1219_v26  ;;  %v2798_v6 = vor.u32 8388608, %v2797_v34 }
  0xf2   :  { %v2802_v29 = vsel %vm2801_vm13, %v2800_v2, 0  ;;  %v9575_v15 = vshrl.u32 %v1291_v17, 30  ;;  %v61_v31 = vadd.s32 160, %v8847_v1  ;;  %v9582_v53 = vsub.f32 %v208_v3, %v7953_v5 }
  0xf3   :  { %v1211_v46 = vsel %vm1128_vm14, %v1210_v4, %v1209_v23  ;;  %v2804_v33 = vand.u32 31, %v2802_v29  ;;  %v9585_v16 = vadd.s32 %v9533_v13, %v9543_v58  ;;  %v447_v36 = vmul.f32 16.0, %v415_v63 }
  0xf4   :  { %v1214_v27 = vsel %vm9489_vm10, %v9196_v14, %v1211_v46  ;;  %v1293_v8 = vshll.u32 %v9575_v15, 30  ;;  %v209_v50 = vfloor.f32 %v9569_v12  ;;  %vm1225_vm14 = vcmp.eq.s32.totalorder %v9573_v40, 2 }
  0xf5   :  { %8618 = vcosq.f32 %v1214_v27  ;;  %v2805_v42 = vsub.s32 32, %v2804_v33  ;;  %vm4550_vm0 = vcmp.eq.s32.totalorder %v9565_v24, 2  ;;  %v2807_v0 = vshll.u32 %v8789_v49, %v2804_v33 }
  0xf6   :  { %8620 = vsinq.f32 %v1214_v27  ;;  %v9590_v45 = vsub.s32 %v1290_v38, %v1293_v8  ;;  %v2810_v3 = vshll.u32 %v8790_v51, %v2804_v33  ;;  %vm1222_vm2 = vcmp.eq.s32.totalorder %v9573_v40, 0 }
  0xf7   :  { %v2808_v25 = vshrl.u32 %v8790_v51, %v2805_v42  ;;  %vm4547_vm15 = vcmp.eq.s32.totalorder %v9565_v24, 0  ;;  %v9597_v13 = vshrl.u32 %v2802_v29, 5  ;;  %v2811_v60 = vshrl.u32 %v8791_v9, %v2805_v42 }
  0xf8   :  { %v2816_v58 = vshll.u32 %v8792_v10, %v2804_v33  ;;  %v9601_v35 = vshll.u32 %v2798_v6, 8  ;;  %vm1221_vm6 = vcmp.lt.s32.totalorder %v9573_v40, 2  ;;  %vm4546_vm7 = vcmp.lt.s32.totalorder %v9565_v24, 2 }
  0xf9   :  { %v1296_v21 = vsub.s32 0, %v9590_v45  ;;  %v2813_v19 = vshll.u32 %v8791_v9, %v2804_v33  ;;  %v2814_v48 = vshrl.u32 %v8792_v10, %v2805_v42  ;;  %v400_v7 = vadd.f32 1.0, %v9582_v53 }
  0xfa   :  { %vm1218_vm8 = vweird.f32 %v9196_v14  ;;  %v2817_v57 = vshrl.u32 %v8793_v55, %v2805_v42  ;;  %v2819_v20 = vshll.u32 %v8793_v55, %v2804_v33  ;;  %vm479_vm9 = vcmp.le.f32.partialorder %v447_v36, %v9398_v30 }
  0xfb   :  { %v9615_v22 = vmul.f32 16.0, %v209_v50  ;;  %v8059_v39 = vmin.u32 %v1296_v21, %v9590_v45  ;;  %v2809_v52 = vor.u32 %v2808_v25, %v2807_v0  ;;  %v2812_v56 = vor.u32 %v2811_v60, %v2810_v3 }
  0xfc   :  { %v9618_v26 = vcvt.s32.f32 %v61_v31  ;;  %v2806_v44 = vshrl.u32 %v8789_v49, %v2805_v42  ;;  %v2818_v61 = vor.u32 %v2817_v57, %v2816_v58  ;;  %v2820_v23 = vshrl.u32 %v8794_v62, %v2805_v42 }
  0xfd   :  { %vm2822_vm10 = vcmp.lt.s32.totalorder %v9597_v13, 1  ;;  %v1298_v38 = vclz %v8059_v39  ;;  %v2815_v2 = vor.u32 %v2814_v48, %v2813_v19  ;;  %v8000_v34 = vsel %vm479_vm9, 1.0, %v8788_v47 }
  0xfe   :  { %v432_v4 = vmul.f32 16.0, %v400_v7  ;;  %v1316_v17 = vsub.s32 4, %v9575_v15  ;;  %v2821_v29 = vor.u32 %v2820_v23, %v2819_v20  ;;  %vm2824_vm11 = vcmp.lt.s32.totalorder %v9597_v13, 3 }
  0xff   :  { %vm2825_vm3 = vcmp.lt.s32.totalorder %v9597_v13, 4  ;;  %vm273_vm12 = vcmp.gt.f32.partialorder %v9615_v22, %v9550_v43  ;;  %v8619_v63 = vpop.eup %8618  ;;  %v8060_v5 = vadd.s32 4294967294, %v1298_v38  ;;  %vm2823_vm1 = vcmp.lt.s32.totalorder %v9597_v13, 2 }
 0x100   :  { %v2827_v46 = vsel %vm2825_vm3, %v2815_v2, 2102212464  ;;  %v2830_v33 = vsel %vm2822_vm10, %v2809_v52, %v2812_v56  ;;  %v8621_v27 = vpop.eup %8620  ;;  %v1226_v6 = vxor.u32 2147483648, %v8619_v63  ;;  %vm1232_vm13 = vcmp.lt.s32.totalorder %v9344_v32, 0 }
 0x101   :  { %v2826_v31 = vsel %vm2822_vm10, %v2806_v44, %v2809_v52  ;;  %v2828_v8 = vsel %vm2824_vm11, %v2812_v56, %v2827_v46  ;;  %v2831_v42 = vsel %vm2825_vm3, %v2818_v61, 920167782  ;;  %v1223_v36 = vxor.u32 2147483648, %v8621_v27 }
 0x102   :  { %vm8061_vm9 = vcmp.lt.s32.totalorder %v8060_v5, 0  ;;  %v2832_v0 = vsel %vm2824_vm11, %v2815_v2, %v2831_v42  ;;  %v2834_v25 = vsel %vm2822_vm10, %v2812_v56, %v2815_v2  ;;  %v1227_v3 = vsel %vm1225_vm14, %v1226_v6, %v8621_v27 }
 0x103   :  { %v4552_v60 = vsel %vm4550_vm0, %v1226_v6, %v8621_v27  ;;  %v1301_v58 = vsel %vm8061_vm9, 0, %v8060_v5  ;;  %v2833_v21 = vsel %vm2823_vm1, %v2830_v33, %v2832_v0  ;;  %v1224_v19 = vsel %vm1222_vm2, %v8619_v63, %v1223_v36 }
 0x104   :  { %v4549_v48 = vsel %vm4547_vm15, %v8619_v63, %v1223_v36  ;;  %v1302_v7 = vsub.s32 32, %v1301_v58  ;;  %v1303_v57 = vshll.u32 %v9590_v45, %v1301_v58  ;;  %v1228_v20 = vsel %vm1221_vm6, %v1224_v19, %v1227_v3 }
 0x105   :  { %v4553_v39 = vsel %vm4546_vm7, %v4549_v48, %v4552_v60  ;;  %v1306_v52 = vsub.s32 4294967266, %v1301_v58  ;;  %v2835_v56 = vsel %vm2825_vm3, %v2821_v29, 1326507024  ;;  %v1229_v44 = vsel %vm1218_vm8, nan, %v1228_v20 }
 0x106   :  { %v4554_v23 = vsel %vm1218_vm8, nan, %v4553_v39  ;;  %v1304_v38 = vshrl.u32 %v9585_v16, %v1302_v7  ;;  %v2836_v45 = vsel %vm2824_vm11, %v2818_v61, %v2835_v56  ;;  %v2829_v2 = vsel %vm2823_vm1, %v2826_v31, %v2828_v8 }
 0x107   :  { %v7544_v40 = vsel %vm917_vm4, %v1229_v44, %v4554_v23  ;;  %v1307_v24 = vadd.s32 127, %v1306_v52  ;;  %v2837_v29 = vsel %vm2823_vm1, %v2834_v25, %v2836_v45  ;;  %v575_v16 = vadd.f32 %v8000_v34, %v9559_v11 }
 0x108   :  { %8394 = vmatprep.mubr.msk.f32.mxu0 %vm7589_vm5, %v7544_v40  ;;  %v1305_v63 = vor.u32 %v1304_v38, %v1303_v57  ;;  %v9677_v14 = vmul.u32.u64.low %v9601_v35, %v2837_v29  ;;  %v9678_v5 = vmul.u32.u64.high %v9601_v35, %v2837_v29, %v9677_v14  ;;  %vm464_vm14 = vcmp.le.f32.partialorder %v432_v4, %v9424_v18 }
 0x109   :  { %v1308_v61 = vshll.u32 %v1307_v24, 23  ;;  %v9682_v46 = vmul.u32.u64.low %v9601_v35, %v2833_v21  ;;  %v9683_v33 = vmul.u32.u64.high %v9601_v35, %v2833_v21, %v9682_v46  ;;  %v1317_v13 = vsel %vm1232_vm13, %v1316_v17, %v9575_v15 }
 0x10a   :  { %v607_v27 = vmul.f32 16.0, %v575_v16  ;;  %v7985_v6 = vsel %vm464_vm14, 1.0, %v8788_v47  ;;  %v7954_v11 = vsel %vm273_vm12, 1.0, %v8788_v47  ;;  %v1312_v31 = vcvt.s32.f32 %v1305_v63 }
 0x10b   :  { %v1309_v34 = vor.u32 4788187, %v1308_v61  ;;  %v560_v8 = vadd.f32 %v7985_v6, %v9582_v53  ;;  %v369_v42 = vsub.f32 %v209_v50, %v7954_v11  ;;  %v2845_v4 = vmul.u32 %v9601_v35, %v2829_v2 }
 0x10c   :  { %vm2847_vm0 = vc.u32 %v9678_v5, %v9682_v46  ;;  %v639_v15 = vsub.f32 %v9398_v30, %v607_v27  ;;  %v159_v17 = vadd.f32 0.5, %v9618_v26  ;;  %v2848_v22 = vadd.s32 1, %v9683_v33 }
 0x10d   :  { %v1310_v36 = vand.u32 2147483647, %v1309_v34  ;;  %v592_v0 = vmul.f32 16.0, %v560_v8  ;;  %v401_v25 = vadd.f32 1.0, %v369_v42  ;;  %vm9706_vm2 = vcmp.le.f32.partialorder %v1230_v59, 0.7853982 }
 0x10e   :  { %v671_v12 = vsub.f32 %v575_v16, %v639_v15  ;;  %v2849_v35 = vsel %vm2847_vm0, %v2848_v22, %v9683_v33  ;;  %v1319_v60 = vsel %vm9706_vm2, 0, %v1317_v13  ;;  %v9715_v59 = vmul.f32 0.0625, %v159_v17 }
 0x10f   :  { %v1313_v50 = vmul.f32 %v1312_v31, %v1310_v36  ;;  %v624_v3 = vsub.f32 %v9424_v18, %v592_v0  ;;  %v433_v30 = vmul.f32 16.0, %v401_v25  ;;  %v2850_v58 = vadd.s32 %v2849_v35, %v2845_v4 }
 0x110   :  { %v703_v21 = vand.u32 2147483647, %v671_v12  ;;  %v62_v39 = vadd.s32 168, %v8847_v1  ;;  %v1323_v52 = vadd.s32 3, %v1319_v60  ;;  %v9724_v40 = vand.u32 3, %v1319_v60 }
 0x111   :  { %v1314_v19 = vxor.u32 2147483648, %v1313_v50  ;;  %v656_v48 = vsub.f32 %v560_v8, %v624_v3  ;;  %vm465_vm15 = vcmp.le.f32.partialorder %v433_v30, %v9550_v43  ;;  %v2851_v7 = vadd.s32 536870912, %v2850_v58 }
 0x112   :  { %v735_v57 = vmul.f32 22.5, %v703_v21  ;;  %v7986_v20 = vsel %vm465_vm15, 1.0, %v8788_v47  ;;  %vm767_vm6 = vcmp.gt.f32.partialorder %v703_v21, 8.0  ;;  %v224_v2 = vfloor.f32 %v9715_v59 }
 0x113   :  { %v1315_v18 = vsel %vm1232_vm13, %v1314_v19, %v1313_v50  ;;  %v688_v56 = vand.u32 2147483647, %v656_v48  ;;  %v2852_v23 = vshrl.u32 %v2851_v7, 30  ;;  %v561_v45 = vadd.f32 %v7986_v20, %v369_v42 }
 0x114   :  { %v1318_v44 = vsel %vm9706_vm2, %v9344_v32, %v1315_v18  ;;  %v8032_v38 = vadd.f32 -360.0, %v735_v57  ;;  %v9727_v14 = vcvt.s32.f32 %v62_v39  ;;  %v1324_v11 = vand.u32 3, %v1323_v52 }
 0x115   :  { %8622 = vcosq.f32 %v1318_v44  ;;  %v720_v24 = vmul.f32 22.5, %v688_v56  ;;  %v2853_v29 = vshll.u32 %v2852_v23, 30  ;;  %v2876_v16 = vsub.s32 4, %v2852_v23 }
 0x116   :  { %8624 = vsinq.f32 %v1318_v44  ;;  %v831_v63 = vsel %vm767_vm6, %v8032_v38, %v735_v57  ;;  %vm9731_vm7 = vcmp.gt.f32.partialorder %v688_v56, 8.0  ;;  %v593_v6 = vmul.f32 16.0, %v561_v45 }
 0x117   :  { %v863_v61 = vmul.f32 3.8197186, %v831_v63  ;;  %v8017_v33 = vadd.f32 -360.0, %v720_v24  ;;  %v9729_v13 = vsub.s32 %v2850_v58, %v2853_v29  ;;  %vm2792_vm8 = vcmp.lt.s32.totalorder %v9472_v41, 0 }
 0x118   :  { %v256_v31 = vmul.f32 16.0, %v224_v2  ;;  %vm1322_vm10 = vweird.f32 %v9344_v32  ;;  %vm4649_vm11 = vcmp.lt.s32.totalorder %v9724_v40, 2  ;;  %vm9745_vm3 = vcmp.le.f32.partialorder %v2790_v37, 0.7853982 }
 0x119   :  { %v9737_v34 = vmul.f32 %v9469_v54, %v863_v61  ;;  %v2856_v42 = vsub.s32 0, %v9729_v13  ;;  %v160_v4 = vadd.f32 0.5, %v9727_v14  ;;  %v2877_v15 = vsel %vm2792_vm8, %v2876_v16, %v2852_v23 }
 0x11a   :  { %v816_v22 = vsel %vm9731_vm7, %v8017_v33, %v720_v24  ;;  %vm4650_vm12 = vcmp.eq.s32.totalorder %v9724_v40, 0  ;;  %vm4653_vm1 = vcmp.eq.s32.totalorder %v9724_v40, 2  ;;  %v625_v0 = vsub.f32 %v9550_v43, %v593_v6 }
 0x11b   :  { %v2894_v17 = vand.u32 2147483647, %v9737_v34  ;;  %v2897_v36 = vand.u32 2139095040, %v9737_v34  ;;  %v8119_v37 = vmin.u32 %v2856_v42, %v9729_v13  ;;  %vm1325_vm13 = vcmp.lt.s32.totalorder %v1324_v11, 2 }
 0x11c   :  { %vm288_vm9 = vcmp.gt.f32.partialorder %v256_v31, %v9618_v26  ;;  %vm1326_vm14 = vcmp.eq.s32.totalorder %v1324_v11, 0  ;;  %v9766_v50 = vsel %vm9745_vm3, 0, %v2877_v15  ;;  %v848_v35 = vmul.f32 3.8197186, %v816_v22 }
 0x11d   :  { %v2898_v25 = vshrl.u32 %v2897_v36, 23  ;;  %v2901_v53 = vand.u32 8388607, %v2894_v17  ;;  %v2858_v12 = vclz %v8119_v37  ;;  %vm1329_vm0 = vcmp.eq.s32.totalorder %v1324_v11, 2 }
 0x11e   :  { %v2846_v30 = vadd.s32 %v9682_v46, %v9678_v5  ;;  %v9770_v60 = vmul.f32 0.0625, %v160_v4  ;;  %v9772_v48 = vsub.f32 %v561_v45, %v625_v0  ;;  %v9775_v7 = vsel %vm288_vm9, 1.0, %v8788_v47 }
 0x11f   :  { %v8623_v3 = vpop.eup %8622  ;;  %v8122_v43 = vadd.s32 4294967169, %v2898_v25  ;;  %v8120_v19 = vadd.s32 4294967294, %v2858_v12  ;;  %v9778_v20 = vadd.s32 3, %v9766_v50  ;;  %v2902_v39 = vor.u32 8388608, %v2901_v53 }
 0x120   :  { %v8625_v58 = vpop.eup %8624  ;;  %v1330_v21 = vxor.u32 2147483648, %v8623_v3  ;;  %v9783_v46 = vmul.f32 %v9469_v54, %v848_v35  ;;  %v6193_v8 = vand.u32 3, %v9766_v50  ;;  %v9847_v59 = vadd.s32 48, %v8847_v1 }
 0x121   :  { %v1327_v57 = vxor.u32 2147483648, %v8625_v58  ;;  %v2904_v18 = vadd.s32 1, %v8122_v43  ;;  %vm8121_vm2 = vcmp.lt.s32.totalorder %v8120_v19, 0  ;;  %v9798_v31 = vshll.u32 %v2902_v39, 8 }
 0x122   :  { %v1331_v52 = vsel %vm1329_vm0, %v1330_v21, %v8625_v58  ;;  %v4655_v5 = vsel %vm4653_vm1, %v1330_v21, %v8625_v58  ;;  %v2861_v23 = vsel %vm8121_vm2, 0, %v8120_v19  ;;  %v1337_v4 = vand.u32 2139095040, %v9783_v46 }
 0x123   :  { %v1328_v56 = vsel %vm1326_vm14, %v8623_v3, %v1327_v57  ;;  %v4652_v44 = vsel %vm4650_vm12, %v8623_v3, %v1327_v57  ;;  %vm2905_vm15 = vcmp.gt.s32.totalorder %v2904_v18, 0  ;;  %v2862_v24 = vsub.s32 32, %v2861_v23 }
 0x124   :  { %v1332_v38 = vsel %vm1325_vm13, %v1328_v56, %v1331_v52  ;;  %v4656_v45 = vsel %vm4649_vm11, %v4652_v44, %v4655_v5  ;;  %v2863_v29 = vshll.u32 %v9729_v13, %v2861_v23  ;;  %v2866_v61 = vsub.s32 4294967266, %v2861_v23 }
 0x125   :  { %v1333_v63 = vsel %vm1322_vm10, nan, %v1332_v38  ;;  %v4657_v16 = vsel %vm1322_vm10, nan, %v4656_v45  ;;  %v2906_v33 = vsel %vm2905_vm15, %v2904_v18, 0  ;;  %v2864_v6 = vshrl.u32 %v2846_v30, %v2862_v24 }
 0x126   :  { %v7545_v27 = vsel %vm917_vm4, %v1333_v63, %v4657_v16  ;;  %v2908_v11 = vand.u32 31, %v2906_v33  ;;  %v2867_v40 = vadd.s32 127, %v2866_v61  ;;  %v2907_v42 = vshrl.u32 %v2906_v33, 5 }
 0x127   :  { %8395 = vmatmul.mubr.msk.f32.gmra.mrb[2].mxu0 %vm7589_vm5, %v7545_v27  ;;  %v1334_v13 = vand.u32 2147483647, %v9783_v46  ;;  %v2865_v15 = vor.u32 %v2864_v6, %v2863_v29  ;;  %v1338_v33 = vshrl.u32 %v1337_v4, 23  ;;  %vm2882_vm12 = vweird.f32 %v9472_v41 }
 0x128   :  { %v2909_v32 = vsub.s32 32, %v2908_v11  ;;  %v2911_v36 = vshll.u32 %v8789_v49, %v2908_v11  ;;  %v2914_v22 = vshll.u32 %v8790_v51, %v2908_v11  ;;  %v2868_v37 = vshll.u32 %v2867_v40, 23 }
 0x129   :  { %v2917_v0 = vshll.u32 %v8791_v9, %v2908_v11  ;;  %v2920_v25 = vshll.u32 %v8792_v10, %v2908_v11  ;;  %v2923_v53 = vshll.u32 %v8793_v55, %v2908_v11  ;;  %v2872_v12 = vcvt.s32.f32 %v2865_v15 }
 0x12a   :  { %v2910_v35 = vshrl.u32 %v8789_v49, %v2909_v32  ;;  %v2912_v3 = vshrl.u32 %v8790_v51, %v2909_v32  ;;  %v2915_v30 = vshrl.u32 %v8791_v9, %v2909_v32  ;;  %v2869_v43 = vor.u32 4788187, %v2868_v37 }
 0x12b   :  { %v2918_v58 = vshrl.u32 %v8792_v10, %v2909_v32  ;;  %v2921_v21 = vshrl.u32 %v8793_v55, %v2909_v32  ;;  %v2924_v19 = vshrl.u32 %v8794_v62, %v2909_v32  ;;  %vm2926_vm6 = vcmp.lt.s32.totalorder %v2907_v42, 1 }
 0x12c   :  { %v2913_v57 = vor.u32 %v2912_v3, %v2911_v36  ;;  %v2916_v39 = vor.u32 %v2915_v30, %v2914_v22  ;;  %vm2927_vm7 = vcmp.lt.s32.totalorder %v2907_v42, 2  ;;  %v2870_v18 = vand.u32 2147483647, %v2869_v43 }
 0x12d   :  { %v2919_v52 = vor.u32 %v2918_v58, %v2917_v0  ;;  %v2922_v5 = vor.u32 %v2921_v21, %v2920_v25  ;;  %v2925_v56 = vor.u32 %v2924_v19, %v2923_v53  ;;  %vm2928_vm10 = vcmp.lt.s32.totalorder %v2907_v42, 3 }
 0x12e   :  { %vm2929_vm11 = vcmp.lt.s32.totalorder %v2907_v42, 4  ;;  %v2930_v44 = vsel %vm2926_vm6, %v2910_v35, %v2913_v57  ;;  %v2934_v23 = vsel %vm2926_vm6, %v2913_v57, %v2916_v39  ;;  %v2873_v38 = vmul.f32 %v2872_v12, %v2870_v18 }
 0x12f   :  { %v2931_v45 = vsel %vm2929_vm11, %v2919_v52, 2102212464  ;;  %v2935_v24 = vsel %vm2929_vm11, %v2922_v5, 920167782  ;;  %v2938_v29 = vsel %vm2926_vm6, %v2916_v39, %v2919_v52  ;;  %v2939_v61 = vsel %vm2929_vm11, %v2925_v56, 1326507024 }
 0x130   :  { %v2932_v63 = vsel %vm2928_vm10, %v2916_v39, %v2931_v45  ;;  %v2936_v16 = vsel %vm2928_vm10, %v2919_v52, %v2935_v24  ;;  %v2874_v27 = vxor.u32 2147483648, %v2873_v38  ;;  %v2940_v11 = vsel %vm2928_vm10, %v2922_v5, %v2939_v61 }
 0x131   :  { %v2937_v6 = vsel %vm2927_vm7, %v2934_v23, %v2936_v16  ;;  %v689_v40 = vand.u32 2147483647, %v9772_v48  ;;  %v2933_v15 = vsel %vm2927_vm7, %v2930_v44, %v2932_v63  ;;  %v2941_v32 = vsel %vm2927_vm7, %v2938_v29, %v2940_v11 }
 0x132   :  { %v9819_v36 = vmul.u32.u64.low %v9798_v31, %v2937_v6  ;;  %v9820_v22 = vmul.u32.u64.high %v9798_v31, %v2937_v6, %v9819_v36  ;;  %v2875_v37 = vsel %vm2792_vm8, %v2874_v27, %v2873_v38  ;;  %v8062_v25 = vadd.s32 4294967169, %v1338_v33 }
 0x133   :  { %v9825_v0 = vmul.u32.u64.low %v9798_v31, %v2941_v32  ;;  %v9826_v4 = vmul.u32.u64.high %v9798_v31, %v2941_v32, %v9825_v0  ;;  %v2878_v48 = vsel %vm9745_vm3, %v9472_v41, %v2875_v37  ;;  %v1341_v42 = vand.u32 8388607, %v1334_v13 }
 0x134   :  { %v9836_v53 = vsub.f32 %v224_v2, %v9775_v7  ;;  %v225_v12 = vfloor.f32 %v9770_v60  ;;  %8626 = vcosq.f32 %v2878_v48  ;;  %v2949_v35 = vmul.u32 %v9798_v31, %v2933_v15 }
 0x135   :  { %v1344_v3 = vadd.s32 1, %v8062_v25  ;;  %v9840_v30 = vmul.f32 22.5, %v689_v40  ;;  %8628 = vsinq.f32 %v2878_v48  ;;  %v2952_v43 = vadd.s32 1, %v9820_v22 }
 0x136   :  { %v2884_v58 = vand.u32 3, %v9778_v20  ;;  %vm2951_vm8 = vc.u32 %v9826_v4, %v9819_v36  ;;  %v1342_v7 = vor.u32 8388608, %v1341_v42  ;;  %v257_v21 = vmul.f32 16.0, %v225_v12 }
 0x137   :  { %vm1345_vm3 = vcmp.gt.s32.totalorder %v1344_v3, 0  ;;  %v2953_v2 = vsel %vm2951_vm8, %v2952_v43, %v9820_v22  ;;  %v8018_v50 = vadd.f32 -360.0, %v9840_v30  ;;  %v416_v39 = vadd.f32 1.0, %v9836_v53 }
 0x138   :  { %v1346_v31 = vsel %vm1345_vm3, %v1344_v3, 0  ;;  %v2954_v19 = vadd.s32 %v2953_v2, %v2949_v35  ;;  %vm6194_vm1 = vcmp.lt.s32.totalorder %v6193_v8, 2  ;;  %vm6195_vm13 = vcmp.eq.s32.totalorder %v6193_v8, 0 }
 0x139   :  { %v1348_v57 = vand.u32 31, %v1346_v31  ;;  %vm6198_vm9 = vcmp.eq.s32.totalorder %v6193_v8, 2  ;;  %vm9855_vm14 = vcmp.gt.f32.partialorder %v689_v40, 8.0  ;;  %vm2885_vm0 = vcmp.lt.s32.totalorder %v2884_v58, 2 }
 0x13a   :  { %vm2886_vm2 = vcmp.eq.s32.totalorder %v2884_v58, 0  ;;  %v2955_v18 = vadd.s32 536870912, %v2954_v19  ;;  %vm2889_vm15 = vcmp.eq.s32.totalorder %v2884_v58, 2  ;;  %v9860_v5 = vadd.s32 %v9819_v36, %v9826_v4 }
 0x13b   :  { %v1349_v52 = vsub.s32 32, %v1348_v57  ;;  %v9862_v56 = vshll.u32 %v1342_v7, 8  ;;  %vm289_vm6 = vcmp.gt.f32.partialorder %v257_v21, %v9727_v14  ;;  %v1347_v23 = vshrl.u32 %v1346_v31, 5 }
 0x13c   :  { %v9865_v44 = vshrl.u32 %v2955_v18, 30  ;;  %v817_v38 = vsel %vm9855_vm14, %v8018_v50, %v9840_v30  ;;  %v9870_v45 = vmul.f32 16.0, %v416_v39  ;;  %v1351_v24 = vshll.u32 %v8789_v49, %v1348_v57 }
 0x13d   :  { %v1352_v29 = vshrl.u32 %v8790_v51, %v1349_v52  ;;  %v1354_v63 = vshll.u32 %v8790_v51, %v1348_v57  ;;  %v1355_v16 = vshrl.u32 %v8791_v9, %v1349_v52  ;;  %v1357_v27 = vshll.u32 %v8791_v9, %v1348_v57 }
 0x13e   :  { %v8627_v61 = vpop.eup %8626  ;;  %v2957_v33 = vshll.u32 %v9865_v44, 30  ;;  %v1358_v6 = vshrl.u32 %v8792_v10, %v1349_v52  ;;  %v1360_v11 = vshll.u32 %v8792_v10, %v1348_v57  ;;  %v1361_v32 = vshrl.u32 %v8793_v55, %v1349_v52 }
 0x13f   :  { %v8629_v40 = vpop.eup %8628  ;;  %v2890_v15 = vxor.u32 2147483648, %v8627_v61  ;;  %v1363_v36 = vshll.u32 %v8793_v55, %v1348_v57  ;;  %v1364_v22 = vshrl.u32 %v8794_v62, %v1349_v52  ;;  %v1350_v4 = vshrl.u32 %v8789_v49, %v1349_v52 }
 0x140   :  { %v2887_v37 = vxor.u32 2147483648, %v8629_v40  ;;  %v9883_v0 = vsub.s32 %v2954_v19, %v2957_v33  ;;  %vm1366_vm7 = vcmp.lt.s32.totalorder %v1347_v23, 1  ;;  %v1353_v42 = vor.u32 %v1352_v29, %v1351_v24 }
 0x141   :  { %v2891_v25 = vsel %vm2889_vm15, %v2890_v15, %v8629_v40  ;;  %v6200_v48 = vsel %vm6198_vm9, %v2890_v15, %v8629_v40  ;;  %v1356_v35 = vor.u32 %v1355_v16, %v1354_v63  ;;  %v1359_v2 = vor.u32 %v1358_v6, %v1357_v27 }
 0x142   :  { %v2888_v3 = vsel %vm2886_vm2, %v8627_v61, %v2887_v37  ;;  %v6197_v30 = vsel %vm6195_vm13, %v8627_v61, %v2887_v37  ;;  %v2960_v43 = vsub.s32 0, %v9883_v0  ;;  %v1362_v19 = vor.u32 %v1361_v32, %v1360_v11 }
 0x143   :  { %v2892_v7 = vsel %vm2885_vm0, %v2888_v3, %v2891_v25  ;;  %v6201_v31 = vsel %vm6194_vm1, %v6197_v30, %v6200_v48  ;;  %v1365_v57 = vor.u32 %v1364_v22, %v1363_v36  ;;  %vm1369_vm10 = vcmp.lt.s32.totalorder %v1347_v23, 4 }
 0x144   :  { %v2893_v50 = vsel %vm2882_vm12, nan, %v2892_v7  ;;  %v6202_v39 = vsel %vm2882_vm12, nan, %v6201_v31  ;;  %v8123_v20 = vmin.u32 %v2960_v43, %v9883_v0  ;;  %vm1368_vm11 = vcmp.lt.s32.totalorder %v1347_v23, 3 }
 0x145   :  { %v7560_v18 = vsel %vm917_vm4, %v2893_v50, %v6202_v39  ;;  %v849_v52 = vmul.f32 3.8197186, %v817_v38  ;;  %v7970_v8 = vsel %vm289_vm6, 1.0, %v8788_v47  ;;  %vm1367_vm8 = vcmp.lt.s32.totalorder %v1347_v23, 2 }
 0x146   :  { %8418 = vmatprep.mubr.msk.f32.mxu1 %vm7589_vm5, %v7560_v18  ;;  %v2962_v58 = vclz %v8123_v20  ;;  %v1370_v24 = vsel %vm1366_vm7, %v1350_v4, %v1353_v42  ;;  %vm480_vm3 = vcmp.le.f32.partialorder %v9870_v45, %v9618_v26  ;;  %v1371_v41 = vsel %vm1369_vm10, %v1359_v2, 2102212464 }
 0x147   :  { %v1374_v29 = vsel %vm1366_vm7, %v1353_v42, %v1356_v35  ;;  %v1375_v63 = vsel %vm1369_vm10, %v1362_v19, 920167782  ;;  %v1378_v38 = vsel %vm1366_vm7, %v1356_v35, %v1359_v2  ;;  %v1372_v21 = vsel %vm1368_vm11, %v1356_v35, %v1371_v41 }
 0x148   :  { %v8124_v16 = vadd.s32 4294967294, %v2962_v58  ;;  %v1376_v61 = vsel %vm1368_vm11, %v1359_v2, %v1375_v63  ;;  %v1379_v33 = vsel %vm1369_vm10, %v1365_v57, 1326507024  ;;  %v1373_v27 = vsel %vm1367_vm8, %v1370_v24, %v1372_v21 }
 0x149   :  { %v1377_v6 = vsel %vm1367_vm8, %v1374_v29, %v1376_v61  ;;  %v1380_v11 = vsel %vm1368_vm11, %v1362_v19, %v1379_v33  ;;  %v9918_v40 = vmul.f32 %v9469_v54, %v849_v52  ;;  %v2980_v37 = vsub.s32 4, %v9865_v44 }
 0x14a   :  { %vm8125_vm12 = vcmp.lt.s32.totalorder %v8124_v16, 0  ;;  %v1381_v15 = vsel %vm1367_vm8, %v1378_v38, %v1380_v11  ;;  %v9922_v32 = vmul.u32.u64.low %v9862_v56, %v1377_v6  ;;  %v9923_v36 = vmul.u32.u64.high %v9862_v56, %v1377_v6, %v9922_v32 }
 0x14b   :  { %v2965_v22 = vsel %vm8125_vm12, 0, %v8124_v16  ;;  %v9927_v4 = vmul.u32.u64.low %v9862_v56, %v1381_v15  ;;  %v9928_v25 = vmul.u32.u64.high %v9862_v56, %v1381_v15, %v9927_v4  ;;  %v9932_v54 = vcvt.s32.f32 %v9847_v59 }
 0x14c   :  { %v2966_v48 = vsub.s32 32, %v2965_v22  ;;  %v2967_v42 = vshll.u32 %v9883_v0, %v2965_v22  ;;  %v2970_v35 = vsub.s32 4294967266, %v2965_v22  ;;  %v1389_v23 = vmul.u32 %v9862_v56, %v1373_v27 }
 0x14d   :  { %v1441_v3 = vand.u32 2139095040, %v9918_v40  ;;  %v8001_v30 = vsel %vm480_vm3, 1.0, %v8788_v47  ;;  %v9942_v43 = vsub.f32 %v225_v12, %v7970_v8  ;;  %vm2896_vm1 = vcmp.lt.s32.totalorder %v9737_v34, 0 }
 0x14e   :  { %v2968_v0 = vshrl.u32 %v9860_v5, %v2966_v48  ;;  %v2971_v2 = vadd.s32 127, %v2970_v35  ;;  %v1392_v59 = vadd.s32 1, %v9923_v36  ;;  %v2981_v56 = vsel %vm2896_vm1, %v2980_v37, %v9865_v44 }
 0x14f   :  { %vm1391_vm13 = vc.u32 %v9928_v25, %v9922_v32  ;;  %v1438_v45 = vand.u32 2147483647, %v9918_v40  ;;  %v1442_v7 = vshrl.u32 %v1441_v3, 23  ;;  %v576_v19 = vadd.f32 %v8001_v30, %v9836_v53 }
 0x150   :  { %v2969_v31 = vor.u32 %v2968_v0, %v2967_v42  ;;  %v2972_v60 = vshll.u32 %v2971_v2, 23  ;;  %v1393_v12 = vsel %vm1391_vm13, %v1392_v59, %v9923_v36  ;;  %vm9956_vm9 = vcmp.le.f32.partialorder %v2894_v17, 0.7853982 }
 0x151   :  { %v1394_v57 = vadd.s32 %v1393_v12, %v1389_v23  ;;  %v8066_v50 = vadd.s32 4294967169, %v1442_v7  ;;  %v417_v44 = vadd.f32 1.0, %v9942_v43  ;;  %v2983_v18 = vsel %vm9956_vm9, 0, %v2981_v56 }
 0x152   :  { %v2973_v39 = vor.u32 4788187, %v2972_v60  ;;  %v2976_v20 = vcvt.s32.f32 %v2969_v31  ;;  %v608_v52 = vmul.f32 16.0, %v576_v19  ;;  %v1445_v17 = vand.u32 8388607, %v1438_v45 }
 0x153   :  { %v1395_v8 = vadd.s32 536870912, %v1394_v57  ;;  %v1448_v58 = vadd.s32 1, %v8066_v50  ;;  %v449_v24 = vmul.f32 16.0, %v417_v44  ;;  %v2987_v41 = vadd.s32 3, %v2983_v18 }
 0x154   :  { %v2974_v53 = vand.u32 2147483647, %v2973_v39  ;;  %v145_v63 = vadd.f32 0.5, %v9932_v54  ;;  %v640_v21 = vsub.f32 %v9618_v26, %v608_v52  ;;  %v9971_v6 = vand.u32 3, %v2983_v18 }
 0x155   :  { %v9965_v29 = vshrl.u32 %v1395_v8, 30  ;;  %vm1449_vm14 = vcmp.gt.s32.totalorder %v1448_v58, 0  ;;  %vm481_vm0 = vcmp.le.f32.partialorder %v449_v24, %v9727_v14  ;;  %v1446_v11 = vor.u32 8388608, %v1445_v17 }
 0x156   :  { %v2977_v38 = vmul.f32 %v2976_v20, %v2974_v53  ;;  %v1450_v16 = vsel %vm1449_vm14, %v1448_v58, 0  ;;  %v9974_v15 = vadd.s32 56, %v8847_v1  ;;  %v9976_v36 = vand.u32 3, %v2987_v41 }
 0x157   :  { %v1397_v61 = vshll.u32 %v9965_v29, 30  ;;  %v1452_v33 = vand.u32 31, %v1450_v16  ;;  %v9980_v4 = vmul.f32 0.0625, %v145_v63  ;;  %v1390_v48 = vadd.s32 %v9922_v32, %v9928_v25 }
 0x158   :  { %v2978_v27 = vxor.u32 2147483648, %v2977_v38  ;;  %v9985_v42 = vsub.f32 %v576_v19, %v640_v21  ;;  %v8002_v35 = vsel %vm481_vm0, 1.0, %v8788_v47  ;;  %v9996_v32 = vshll.u32 %v1446_v11, 8 }
 0x159   :  { %v9978_v22 = vsub.s32 %v1394_v57, %v1397_v61  ;;  %v1453_v37 = vsub.s32 32, %v1452_v33  ;;  %v1455_v30 = vshll.u32 %v8789_v49, %v1452_v33  ;;  %v1458_v0 = vshll.u32 %v8790_v51, %v1452_v33 }
 0x15a   :  { %v2979_v26 = vsel %vm2896_vm1, %v2978_v27, %v2977_v38  ;;  %v9999_v56 = vshrl.u32 %v1450_v16, 5  ;;  %v210_v7 = vfloor.f32 %v9980_v4  ;;  %vm2993_vm2 = vcmp.eq.s32.totalorder %v9976_v36, 2 }
 0x15b   :  { %v2982_v23 = vsel %vm9956_vm9, %v9737_v34, %v2979_v26  ;;  %v1400_v3 = vsub.s32 0, %v9978_v22  ;;  %v1456_v2 = vshrl.u32 %v8790_v51, %v1453_v37  ;;  %v1459_v59 = vshrl.u32 %v8791_v9, %v1453_v37 }
 0x15c   :  { %8630 = vcosq.f32 %v2982_v23  ;;  %vm6301_vm15 = vcmp.eq.s32.totalorder %v9971_v6, 2  ;;  %v1420_v31 = vsub.s32 4, %v9965_v29  ;;  %v1461_v60 = vshll.u32 %v8791_v9, %v1452_v33 }
 0x15d   :  { %8632 = vsinq.f32 %v2982_v23  ;;  %v8063_v25 = vmin.u32 %v1400_v3, %v9978_v22  ;;  %v704_v12 = vand.u32 2147483647, %v9985_v42  ;;  %v10008_v19 = vadd.f32 %v8002_v35, %v9942_v43 }
 0x15e   :  { %vm2990_vm6 = vcmp.eq.s32.totalorder %v9976_v36, 0  ;;  %vm6298_vm7 = vcmp.eq.s32.totalorder %v9971_v6, 0  ;;  %v1454_v57 = vshrl.u32 %v8789_v49, %v1453_v37  ;;  %v1457_v50 = vor.u32 %v1456_v2, %v1455_v30 }
 0x15f   :  { %v1402_v5 = vclz %v8063_v25  ;;  %v1460_v44 = vor.u32 %v1459_v59, %v1458_v0  ;;  %vm2989_vm10 = vcmp.lt.s32.totalorder %v9976_v36, 2  ;;  %vm6297_vm11 = vcmp.lt.s32.totalorder %v9971_v6, 2 }
 0x160   :  { %v1462_v39 = vshrl.u32 %v8792_v10, %v1453_v37  ;;  %v1464_v20 = vshll.u32 %v8792_v10, %v1452_v33  ;;  %v1465_v43 = vshrl.u32 %v8793_v55, %v1453_v37  ;;  %v1467_v18 = vshll.u32 %v8793_v55, %v1452_v33 }
 0x161   :  { %vm2986_vm8 = vweird.f32 %v9737_v34  ;;  %v8064_v52 = vadd.s32 4294967294, %v1402_v5  ;;  %v1468_v8 = vshrl.u32 %v8794_v62, %v1453_v37  ;;  %vm1470_vm3 = vcmp.lt.s32.totalorder %v9999_v56, 1 }
 0x162   :  { %v242_v58 = vmul.f32 16.0, %v210_v7  ;;  %v1463_v24 = vor.u32 %v1462_v39, %v1461_v60  ;;  %v1466_v53 = vor.u32 %v1465_v43, %v1464_v20  ;;  %vm1471_vm12 = vcmp.lt.s32.totalorder %v9999_v56, 2 }
 0x163   :  { %vm1473_vm1 = vcmp.lt.s32.totalorder %v9999_v56, 4  ;;  %vm8065_vm13 = vcmp.lt.s32.totalorder %v8064_v52, 0  ;;  %v1469_v17 = vor.u32 %v1468_v8, %v1467_v18  ;;  %vm1472_vm9 = vcmp.lt.s32.totalorder %v9999_v56, 3 }
 0x164   :  { %v1474_v41 = vsel %vm1470_vm3, %v1454_v57, %v1457_v50  ;;  %v1405_v63 = vsel %vm8065_vm13, 0, %v8064_v52  ;;  %v1475_v38 = vsel %vm1473_vm1, %v1463_v24, 2102212464  ;;  %v1478_v16 = vsel %vm1470_vm3, %v1457_v50, %v1460_v44 }
 0x165   :  { %v1479_v21 = vsel %vm1473_vm1, %v1466_v53, 920167782  ;;  %v1406_v61 = vsub.s32 32, %v1405_v63  ;;  %v1407_v33 = vshll.u32 %v9978_v22, %v1405_v63  ;;  %v1410_v27 = vsub.s32 4294967266, %v1405_v63 }
 0x166   :  { %v1476_v11 = vsel %vm1472_vm9, %v1460_v44, %v1475_v38  ;;  %v8631_v37 = vpop.eup %8630  ;;  %vm1336_vm14 = vcmp.lt.s32.totalorder %v9783_v46, 0  ;;  %v1480_v35 = vsel %vm1472_vm9, %v1463_v24, %v1479_v21  ;;  %v1482_v23 = vsel %vm1470_vm3, %v1460_v44, %v1463_v24 }
 0x167   :  { %v1477_v26 = vsel %vm1471_vm12, %v1474_v41, %v1476_v11  ;;  %v1483_v3 = vsel %vm1473_vm1, %v1469_v17, 1326507024  ;;  %v8633_v22 = vpop.eup %8632  ;;  %v2994_v30 = vxor.u32 2147483648, %v8631_v37  ;;  %v1408_v0 = vshrl.u32 %v1390_v48, %v1406_v61 }
 0x168   :  { %v1411_v2 = vadd.s32 127, %v1410_v27  ;;  %v1481_v59 = vsel %vm1471_vm12, %v1478_v16, %v1480_v35  ;;  %v2991_v25 = vxor.u32 2147483648, %v8633_v22  ;;  %v1484_v60 = vsel %vm1472_vm9, %v1466_v53, %v1483_v3 }
 0x169   :  { %v10052_v5 = vmul.u32.u64.low %v9996_v32, %v1481_v59  ;;  %v10053_v57 = vmul.u32.u64.high %v9996_v32, %v1481_v59, %v10052_v5  ;;  %v2995_v50 = vsel %vm2993_vm2, %v2994_v30, %v8633_v22  ;;  %v6303_v44 = vsel %vm6301_vm15, %v2994_v30, %v8633_v22  ;;  %v10123_v22 = vld [vmem:[#allocation2] ss:$0 sm:$0xff] }
 0x16a   :  { %v1409_v48 = vor.u32 %v1408_v0, %v1407_v33  ;;  %v1412_v39 = vshll.u32 %v1411_v2, 23  ;;  %v2992_v20 = vsel %vm2990_vm6, %v8631_v37, %v2991_v25  ;;  %v6300_v43 = vsel %vm6298_vm7, %v8631_v37, %v2991_v25 }
 0x16b   :  { %v1485_v18 = vsel %vm1471_vm12, %v1482_v23, %v1484_v60  ;;  %v736_v52 = vmul.f32 22.5, %v704_v12  ;;  %v2996_v8 = vsel %vm2989_vm10, %v2992_v20, %v2995_v50  ;;  %v6304_v24 = vsel %vm6297_vm11, %v6300_v43, %v6303_v44 }
 0x16c   :  { %v1413_v53 = vor.u32 4788187, %v1412_v39  ;;  %v1416_v17 = vcvt.s32.f32 %v1409_v48  ;;  %v2997_v41 = vsel %vm2986_vm8, nan, %v2996_v8  ;;  %v6305_v63 = vsel %vm2986_vm8, nan, %v6304_v24 }
 0x16d   :  { %v10077_v56 = vmul.u32.u64.low %v9996_v32, %v1485_v18  ;;  %v10078_v38 = vmul.u32.u64.high %v9996_v32, %v1485_v18, %v10077_v56  ;;  %v7561_v16 = vsel %vm917_vm4, %v2997_v41, %v6305_v63  ;;  %v1496_v21 = vadd.s32 1, %v10053_v57 }
 0x16e   :  { %v1414_v36 = vand.u32 2147483647, %v1413_v53  ;;  %vm10085_vm0 = vcmp.gt.f32.partialorder %v704_v12, 8.0  ;;  %8419 = vmatmul.mubr.msk.f32.gmra.mrb[2].mxu1 %vm7589_vm5, %v7561_v16  ;;  %v1493_v34 = vmul.u32 %v9996_v32, %v1477_v26  ;;  %v8033_v61 = vadd.f32 -360.0, %v736_v52 }
 0x16f   :  { %v609_v33 = vmul.f32 16.0, %v10008_v19  ;;  %vm274_vm2 = vcmp.gt.f32.partialorder %v242_v58, %v9932_v54  ;;  %v1421_v42 = vsel %vm1336_vm14, %v1420_v31, %v9965_v29  ;;  %v10100_v11 = vcvt.s32.f32 %v9974_v15 }
 0x170   :  { %v1417_v27 = vmul.f32 %v1416_v17, %v1414_v36  ;;  %v7955_v12 = vsel %vm274_vm2, 1.0, %v8788_v47  ;;  %vm10104_vm15 = vcmp.le.f32.partialorder %v1334_v13, 0.7853982  ;;  %vm1495_vm6 = vc.u32 %v10078_v38, %v10052_v5 }
 0x171   :  { %v832_v58 = vsel %vm10085_vm0, %v8033_v61, %v736_v52  ;;  %v641_v37 = vsub.f32 %v9727_v14, %v609_v33  ;;  %v1497_v31 = vsel %vm1495_vm6, %v1496_v21, %v10053_v57  ;;  %v10116_v15 = vsub.f32 %v210_v7, %v7955_v12 }
 0x172   :  { %v1418_v29 = vxor.u32 2147483648, %v1417_v27  ;;  %v864_v26 = vmul.f32 3.8197186, %v832_v58  ;;  %v1423_v13 = vsel %vm10104_vm15, 0, %v1421_v42  ;;  %v1498_v35 = vadd.s32 %v1497_v31, %v1493_v34 }
 0x173   :  { %v673_v23 = vsub.f32 %v10008_v19, %v641_v37  ;;  %v146_v30 = vadd.f32 0.5, %v10100_v11  ;;  %v63_v4 = vadd.s32 176, %v8847_v1  ;;  %v402_v19 = vadd.f32 1.0, %v10116_v15 }
 0x174   :  { %v1419_v3 = vsel %vm1336_vm14, %v1418_v29, %v1417_v27  ;;  %v10126_v14 = vmul.f32 %v10123_v22, %v864_v26  ;;  %v1499_v0 = vadd.s32 536870912, %v1498_v35  ;;  %v1427_v59 = vadd.s32 3, %v1423_v13 }
 0x175   :  { %v1422_v7 = vsel %vm10104_vm15, %v9783_v46, %v1419_v3  ;;  %v705_v2 = vand.u32 2147483647, %v673_v23  ;;  %v4751_v57 = vand.u32 3, %v1423_v13  ;;  %vm1440_vm7 = vcmp.lt.s32.totalorder %v9918_v40, 0 }
 0x176   :  { %8634 = vcosq.f32 %v1422_v7  ;;  %v2998_v25 = vand.u32 2147483647, %v10126_v14  ;;  %v3001_v60 = vand.u32 2139095040, %v10126_v14  ;;  %v1500_v50 = vshrl.u32 %v1499_v0, 30 }
 0x177   :  { %8636 = vsinq.f32 %v1422_v7  ;;  %v737_v44 = vmul.f32 22.5, %v705_v2  ;;  %vm10137_vm10 = vcmp.gt.f32.partialorder %v705_v2, 8.0  ;;  %v10141_v20 = vmul.f32 0.0625, %v146_v30 }
 0x178   :  { %v3002_v48 = vshrl.u32 %v3001_v60, 23  ;;  %v1501_v43 = vshll.u32 %v1500_v50, 30  ;;  %v3005_v18 = vand.u32 8388607, %v2998_v25  ;;  %v434_v8 = vmul.f32 16.0, %v402_v19 }
 0x179   :  { %v8034_v52 = vadd.f32 -360.0, %v737_v44  ;;  %v1428_v24 = vand.u32 3, %v1427_v59  ;;  %vm10147_vm11 = vcmp.le.f32.partialorder %v1438_v45, 0.7853982  ;;  %v1524_v17 = vsub.s32 4, %v1500_v50 }
 0x17a   :  { %v8126_v41 = vadd.s32 4294967169, %v3002_v48  ;;  %vm1426_vm8 = vweird.f32 %v9783_v46  ;;  %vm4752_vm3 = vcmp.lt.s32.totalorder %v4751_v57, 2  ;;  %v10152_v63 = vsub.s32 %v1498_v35, %v1501_v43 }
 0x17b   :  { %v833_v56 = vsel %vm10137_vm10, %v8034_v52, %v737_v44  ;;  %v10156_v16 = vcvt.s32.f32 %v63_v4  ;;  %vm466_vm12 = vcmp.le.f32.partialorder %v434_v8, %v9932_v54  ;;  %v211_v45 = vfloor.f32 %v10141_v20 }
 0x17c   :  { %v3008_v36 = vadd.s32 1, %v8126_v41  ;;  %v865_v21 = vmul.f32 3.8197186, %v833_v56  ;;  %vm4753_vm1 = vcmp.eq.s32.totalorder %v4751_v57, 0  ;;  %vm4756_vm13 = vcmp.eq.s32.totalorder %v4751_v57, 2 }
 0x17d   :  { %v1504_v6 = vsub.s32 0, %v10152_v63  ;;  %v3006_v34 = vor.u32 8388608, %v3005_v18  ;;  %vm1429_vm9 = vcmp.lt.s32.totalorder %v1428_v24, 2  ;;  %vm1430_vm14 = vcmp.eq.s32.totalorder %v1428_v24, 0 }
 0x17e   :  { %v1525_v61 = vsel %vm1440_vm7, %v1524_v17, %v1500_v50  ;;  %vm3009_vm0 = vcmp.gt.s32.totalorder %v3008_v36, 0  ;;  %vm1433_vm2 = vcmp.eq.s32.totalorder %v1428_v24, 2  ;;  %v1494_v33 = vadd.s32 %v10052_v5, %v10078_v38 }
 0x17f   :  { %v8067_v27 = vmin.u32 %v1504_v6, %v10152_v63  ;;  %v7987_v42 = vsel %vm466_vm12, 1.0, %v8788_v47  ;;  %v3010_v32 = vsel %vm3009_vm0, %v3008_v36, 0  ;;  %v10168_v58 = vmul.f32 %v10123_v22, %v865_v21 }
 0x180   :  { %v8635_v12 = vpop.eup %8634  ;;  %v10172_v37 = vmul.f32 16.0, %v211_v45  ;;  %v10175_v29 = vadd.f32 0.5, %v10156_v16  ;;  %v10179_v5 = vsel %vm10147_vm11, 0, %v1525_v61  ;;  %v10181_v38 = vshll.u32 %v3006_v34, 8 }
 0x181   :  { %v8637_v31 = vpop.eup %8636  ;;  %v1434_v26 = vxor.u32 2147483648, %v8635_v12  ;;  %v1506_v13 = vclz %v8067_v27  ;;  %v3012_v23 = vand.u32 31, %v3010_v32  ;;  %v3102_v3 = vand.u32 2147483647, %v10168_v58 }
 0x182   :  { %v1431_v35 = vxor.u32 2147483648, %v8637_v31  ;;  %v10185_v30 = vadd.f32 %v7987_v42, %v10116_v15  ;;  %v3011_v2 = vshrl.u32 %v3010_v32, 5  ;;  %vm275_vm12 = vcmp.gt.f32.partialorder %v10172_v37, %v10100_v11 }
 0x183   :  { %v1435_v4 = vsel %vm1433_vm2, %v1434_v26, %v8637_v31  ;;  %v4758_v7 = vsel %vm4756_vm13, %v1434_v26, %v8637_v31  ;;  %v8068_v0 = vadd.s32 4294967294, %v1506_v13  ;;  %v3013_v60 = vsub.s32 32, %v3012_v23 }
 0x184   :  { %v1432_v19 = vsel %vm1430_vm14, %v8635_v12, %v1431_v35  ;;  %v4755_v59 = vsel %vm4753_vm1, %v8635_v12, %v1431_v35  ;;  %v3015_v50 = vshll.u32 %v8789_v49, %v3012_v23  ;;  %v3018_v15 = vshll.u32 %v8790_v51, %v3012_v23 }
 0x185   :  { %v1436_v44 = vsel %vm1429_vm9, %v1432_v19, %v1435_v4  ;;  %v4759_v48 = vsel %vm4752_vm3, %v4755_v59, %v4758_v7  ;;  %vm8069_vm15 = vcmp.lt.s32.totalorder %v8068_v0, 0  ;;  %v3014_v52 = vshrl.u32 %v8789_v49, %v3013_v60 }
 0x186   :  { %v1437_v39 = vsel %vm1426_vm8, nan, %v1436_v44  ;;  %v4760_v43 = vsel %vm1426_vm8, nan, %v4759_v48  ;;  %v1509_v18 = vsel %vm8069_vm15, 0, %v8068_v0  ;;  %v3016_v41 = vshrl.u32 %v8790_v51, %v3013_v60 }
 0x187   :  { %v7546_v8 = vsel %vm917_vm4, %v1437_v39, %v4760_v43  ;;  %v1510_v17 = vsub.s32 32, %v1509_v18  ;;  %v1511_v24 = vshll.u32 %v10152_v63, %v1509_v18  ;;  %v1514_v57 = vsub.s32 4294967266, %v1509_v18 }
 0x188   :  { %8397 = vmatprep.mubr.msk.f32.mxu0 %vm7589_vm5, %v7546_v8  ;;  %v3019_v56 = vshrl.u32 %v8791_v9, %v3013_v60  ;;  %v3021_v36 = vshll.u32 %v8791_v9, %v3012_v23  ;;  %v3022_v46 = vshrl.u32 %v8792_v10, %v3013_v60  ;;  %v3024_v34 = vshll.u32 %v8792_v10, %v3012_v23 }
 0x189   :  { %v1512_v21 = vshrl.u32 %v1494_v33, %v1510_v17  ;;  %v1515_v6 = vadd.s32 127, %v1514_v57  ;;  %v3025_v61 = vshrl.u32 %v8793_v55, %v3013_v60  ;;  %v3017_v27 = vor.u32 %v3016_v41, %v3015_v50 }
 0x18a   :  { %v3020_v42 = vor.u32 %v3019_v56, %v3018_v15  ;;  %v3023_v63 = vor.u32 %v3022_v46, %v3021_v36  ;;  %v3027_v12 = vshll.u32 %v8793_v55, %v3012_v23  ;;  %v3028_v13 = vshrl.u32 %v8794_v62, %v3013_v60 }
 0x18b   :  { %v1513_v32 = vor.u32 %v1512_v21, %v1511_v24  ;;  %v1516_v31 = vshll.u32 %v1515_v6, 23  ;;  %v3026_v26 = vor.u32 %v3025_v61, %v3024_v34  ;;  %vm3030_vm6 = vcmp.lt.s32.totalorder %v3011_v2, 1 }
 0x18c   :  { %vm3031_vm10 = vcmp.lt.s32.totalorder %v3011_v2, 2  ;;  %vm3032_vm8 = vcmp.lt.s32.totalorder %v3011_v2, 3  ;;  %vm3033_vm3 = vcmp.lt.s32.totalorder %v3011_v2, 4  ;;  %v3029_v4 = vor.u32 %v3028_v13, %v3027_v12 }
 0x18d   :  { %v1517_v33 = vor.u32 4788187, %v1516_v31  ;;  %v1520_v35 = vcvt.s32.f32 %v1513_v32  ;;  %v3034_v7 = vsel %vm3030_vm6, %v3014_v52, %v3017_v27  ;;  %v3035_v0 = vsel %vm3033_vm3, %v3023_v63, 2102212464 }
 0x18e   :  { %v3038_v19 = vsel %vm3030_vm6, %v3017_v27, %v3020_v42  ;;  %v3039_v59 = vsel %vm3033_vm3, %v3026_v26, 920167782  ;;  %v3042_v50 = vsel %vm3030_vm6, %v3020_v42, %v3023_v63  ;;  %v3036_v23 = vsel %vm3032_vm8, %v3020_v42, %v3035_v0 }
 0x18f   :  { %v1518_v44 = vand.u32 2147483647, %v1517_v33  ;;  %v3040_v48 = vsel %vm3032_vm8, %v3023_v63, %v3039_v59  ;;  %v3043_v15 = vsel %vm3033_vm3, %v3029_v4, 1326507024  ;;  %v3037_v60 = vsel %vm3031_vm10, %v3034_v7, %v3036_v23 }
 0x190   :  { %v3041_v39 = vsel %vm3031_vm10, %v3038_v19, %v3040_v48  ;;  %v3044_v43 = vsel %vm3032_vm8, %v3026_v26, %v3043_v15  ;;  %v3105_v18 = vand.u32 2139095040, %v10168_v58  ;;  %v1531_v46 = vadd.s32 3, %v10179_v5 }
 0x191   :  { %v1521_v8 = vmul.f32 %v1520_v35, %v1518_v44  ;;  %v3045_v52 = vsel %vm3031_vm10, %v3042_v50, %v3044_v43  ;;  %v10220_v17 = vmul.u32.u64.low %v10181_v38, %v3041_v39  ;;  %v10221_v24 = vmul.u32.u64.high %v10181_v38, %v3041_v39, %v10220_v17 }
 0x192   :  { %v10224_v57 = vmul.u32.u64.low %v10181_v38, %v3045_v52  ;;  %v10225_v41 = vmul.u32.u64.high %v10181_v38, %v3045_v52, %v10224_v57  ;;  %v3106_v56 = vshrl.u32 %v3105_v18, 23  ;;  %v594_v21 = vmul.f32 16.0, %v10185_v30 }
 0x193   :  { %v1522_v36 = vxor.u32 2147483648, %v1521_v8  ;;  %v3053_v6 = vmul.u32 %v10181_v38, %v3037_v60  ;;  %v10231_v2 = vmul.f32 0.0625, %v10175_v29  ;;  %v64_v61 = vadd.s32 184, %v8847_v1 }
 0x194   :  { %v8130_v34 = vadd.s32 4294967169, %v3106_v56  ;;  %v3056_v42 = vadd.s32 1, %v10221_v24  ;;  %v3109_v63 = vand.u32 8388607, %v3102_v3  ;;  %vm3055_vm1 = vc.u32 %v10225_v41, %v10220_v17 }
 0x195   :  { %v1523_v27 = vsel %vm1440_vm7, %v1522_v36, %v1521_v8  ;;  %v626_v12 = vsub.f32 %v9932_v54, %v594_v21  ;;  %v10246_v32 = vand.u32 3, %v1531_v46  ;;  %v10249_v31 = vand.u32 3, %v10179_v5 }
 0x196   :  { %v1526_v38 = vsel %vm10147_vm11, %v9918_v40, %v1523_v27  ;;  %v3112_v29 = vadd.s32 1, %v8130_v34  ;;  %v3057_v26 = vsel %vm3055_vm1, %v3056_v42, %v10221_v24  ;;  %v3110_v37 = vor.u32 8388608, %v3109_v63 }
 0x197   :  { %8638 = vcosq.f32 %v1526_v38  ;;  %v3058_v13 = vadd.s32 %v3057_v26, %v3053_v6  ;;  %v7956_v53 = vsel %vm275_vm12, 1.0, %v8788_v47  ;;  %v10253_v35 = vcvt.s32.f32 %v64_v61 }
 0x198   :  { %8640 = vsinq.f32 %v1526_v38  ;;  %vm3113_vm7 = vcmp.gt.s32.totalorder %v3112_v29, 0  ;;  %v658_v54 = vsub.f32 %v10185_v30, %v626_v12  ;;  %v226_v0 = vfloor.f32 %v10231_v2 }
 0x199   :  { %v3114_v33 = vsel %vm3113_vm7, %v3112_v29, 0  ;;  %v3059_v4 = vadd.s32 536870912, %v3058_v13  ;;  %vm1533_vm11 = vcmp.lt.s32.totalorder %v10246_v32, 2  ;;  %vm4855_vm13 = vcmp.lt.s32.totalorder %v10249_v31, 2 }
 0x19a   :  { %v3116_v7 = vand.u32 31, %v3114_v33  ;;  %vm4856_vm9 = vcmp.eq.s32.totalorder %v10249_v31, 0  ;;  %vm4859_vm14 = vcmp.eq.s32.totalorder %v10249_v31, 2  ;;  %vm1530_vm0 = vweird.f32 %v9918_v40 }
 0x19b   :  { %vm1534_vm2 = vcmp.eq.s32.totalorder %v10246_v32, 0  ;;  %v10263_v5 = vshrl.u32 %v3059_v4, 30  ;;  %v10267_v30 = vsub.f32 %v211_v45, %v7956_v53  ;;  %vm1537_vm15 = vcmp.eq.s32.totalorder %v10246_v32, 2 }
 0x19c   :  { %v3117_v19 = vsub.s32 32, %v3116_v7  ;;  %v10271_v59 = vadd.s32 %v10220_v17, %v10225_v41  ;;  %v10273_v50 = vshll.u32 %v3110_v37, 8  ;;  %v10276_v44 = vadd.f32 0.5, %v10253_v35 }
 0x19d   :  { %v3061_v23 = vshll.u32 %v10263_v5, 30  ;;  %v10279_v48 = vshrl.u32 %v3114_v33, 5  ;;  %v690_v15 = vand.u32 2147483647, %v658_v54  ;;  %v10283_v20 = vmul.f32 16.0, %v226_v0 }
 0x19e   :  { %v3119_v45 = vshll.u32 %v8789_v49, %v3116_v7  ;;  %v3120_v60 = vshrl.u32 %v8790_v51, %v3117_v19  ;;  %v3122_v39 = vshll.u32 %v8790_v51, %v3116_v7  ;;  %v3123_v43 = vshrl.u32 %v8791_v9, %v3117_v19 }
 0x19f   :  { %v10289_v18 = vsub.s32 %v3058_v13, %v3061_v23  ;;  %v3125_v8 = vshll.u32 %v8791_v9, %v3116_v7  ;;  %v3126_v52 = vshrl.u32 %v8792_v10, %v3117_v19  ;;  %v10294_v17 = vadd.f32 1.0, %v10267_v30 }
 0x1a0   :  { %v3128_v57 = vshll.u32 %v8792_v10, %v3116_v7  ;;  %v3129_v41 = vshrl.u32 %v8793_v55, %v3117_v19  ;;  %v3131_v56 = vshll.u32 %v8793_v55, %v3116_v7  ;;  %v3132_v36 = vshrl.u32 %v8794_v62, %v3117_v19 }
 0x1a1   :  { %v8639_v24 = vpop.eup %8638  ;;  %v3064_v6 = vsub.s32 0, %v10289_v18  ;;  %vm3134_vm6 = vcmp.lt.s32.totalorder %v10279_v48, 1  ;;  %v10302_v34 = vmul.f32 22.5, %v690_v15  ;;  %v3118_v27 = vshrl.u32 %v8789_v49, %v3117_v19 }
 0x1a2   :  { %v8641_v46 = vpop.eup %8640  ;;  %v1538_v21 = vxor.u32 2147483648, %v8639_v24  ;;  %v3121_v42 = vor.u32 %v3120_v60, %v3119_v45  ;;  %v3124_v63 = vor.u32 %v3123_v43, %v3122_v39  ;;  %v3127_v26 = vor.u32 %v3126_v52, %v3125_v8 }
 0x1a3   :  { %v1535_v61 = vxor.u32 2147483648, %v8641_v46  ;;  %v8127_v12 = vmin.u32 %v3064_v6, %v10289_v18  ;;  %vm290_vm10 = vcmp.gt.f32.partialorder %v10283_v20, %v10156_v16  ;;  %v3130_v33 = vor.u32 %v3129_v41, %v3128_v57 }
 0x1a4   :  { %v1539_v38 = vsel %vm1537_vm15, %v1538_v21, %v8641_v46  ;;  %v4861_v29 = vsel %vm4859_vm14, %v1538_v21, %v8641_v46  ;;  %v3133_v53 = vor.u32 %v3132_v36, %v3131_v56  ;;  %vm10316_vm8 = vcmp.gt.f32.partialorder %v690_v15, 8.0 }
 0x1a5   :  { %v1536_v13 = vsel %vm1534_vm2, %v8639_v24, %v1535_v61  ;;  %v4858_v37 = vsel %vm4856_vm9, %v8639_v24, %v1535_v61  ;;  %vm3000_vm3 = vcmp.lt.s32.totalorder %v10126_v14, 0  ;;  %v3066_v19 = vclz %v8127_v12 }
 0x1a6   :  { %v1540_v7 = vsel %vm1533_vm11, %v1536_v13, %v1539_v38  ;;  %v4862_v54 = vsel %vm4855_vm13, %v4858_v37, %v4861_v29  ;;  %vm3137_vm12 = vcmp.lt.s32.totalorder %v10279_v48, 4  ;;  %v3084_v45 = vsub.s32 4, %v10263_v5 }
 0x1a7   :  { %v1541_v23 = vsel %vm1530_vm0, nan, %v1540_v7  ;;  %v4863_v15 = vsel %vm1530_vm0, nan, %v4862_v54  ;;  %vm3136_vm1 = vcmp.lt.s32.totalorder %v10279_v48, 3  ;;  %v8128_v31 = vadd.s32 4294967294, %v3066_v19 }
 0x1a8   :  { %v7547_v32 = vsel %vm917_vm4, %v1541_v23, %v4863_v15  ;;  %vm3135_vm7 = vcmp.lt.s32.totalorder %v10279_v48, 2  ;;  %v3138_v60 = vsel %vm3134_vm6, %v3118_v27, %v3121_v42  ;;  %v3139_v39 = vsel %vm3137_vm12, %v3127_v26, 2102212464 }
 0x1a9   :  { %8398 = vmatmul.mubr.msk.f32.gmra.mrb[4].mxu0 %vm7589_vm5, %v7547_v32  ;;  %v3142_v40 = vsel %vm3134_vm6, %v3121_v42, %v3124_v63  ;;  %v3143_v43 = vsel %vm3137_vm12, %v3130_v33, 920167782  ;;  %v3146_v8 = vsel %vm3134_vm6, %v3124_v63, %v3127_v26  ;;  %vm8129_vm11 = vcmp.lt.s32.totalorder %v8128_v31, 0 }
 0x1aa   :  { %v3140_v52 = vsel %vm3136_vm1, %v3124_v63, %v3139_v39  ;;  %v3144_v24 = vsel %vm3136_vm1, %v3127_v26, %v3143_v43  ;;  %v3147_v57 = vsel %vm3137_vm12, %v3133_v53, 1326507024  ;;  %v3069_v41 = vsel %vm8129_vm11, 0, %v8128_v31 }
 0x1ab   :  { %v3141_v56 = vsel %vm3135_vm7, %v3138_v60, %v3140_v52  ;;  %v3145_v36 = vsel %vm3135_vm7, %v3142_v40, %v3144_v24  ;;  %v3148_v46 = vsel %vm3136_vm1, %v3130_v33, %v3147_v57  ;;  %v3070_v21 = vsub.s32 32, %v3069_v41 }
 0x1ac   :  { %v3071_v6 = vshll.u32 %v10289_v18, %v3069_v41  ;;  %v3074_v61 = vsub.s32 4294967266, %v3069_v41  ;;  %v3149_v27 = vsel %vm3135_vm7, %v3146_v8, %v3148_v46  ;;  %vm10372_vm13 = vcmp.le.f32.partialorder %v2998_v25, 0.7853982 }
 0x1ad   :  { %v10362_v42 = vmul.u32.u64.low %v10273_v50, %v3149_v27  ;;  %v10363_v63 = vmul.u32.u64.high %v10273_v50, %v3149_v27, %v10362_v42  ;;  %v10366_v38 = vmul.u32.u64.low %v10273_v50, %v3145_v36  ;;  %v10367_v29 = vmul.u32.u64.high %v10273_v50, %v3145_v36, %v10366_v38 }
 0x1ae   :  { %v3072_v18 = vshrl.u32 %v10271_v59, %v3070_v21  ;;  %v3075_v26 = vadd.s32 127, %v3074_v61  ;;  %v8019_v48 = vadd.f32 -360.0, %v10302_v34  ;;  %v3085_v13 = vsel %vm3000_vm3, %v3084_v45, %v10263_v5 }
 0x1af   :  { %v3157_v37 = vmul.u32 %v10273_v50, %v3141_v56  ;;  %v435_v33 = vmul.f32 16.0, %v10294_v17  ;;  %v7971_v25 = vsel %vm290_vm10, 1.0, %v8788_v47  ;;  %vm3159_vm9 = vc.u32 %v10363_v63, %v10366_v38 }
 0x1b0   :  { %v3073_v53 = vor.u32 %v3072_v18, %v3071_v6  ;;  %v3076_v7 = vshll.u32 %v3075_v26, 23  ;;  %v818_v59 = vsel %vm10316_vm8, %v8019_v48, %v10302_v34  ;;  %v386_v54 = vsub.f32 %v226_v0, %v7971_v25 }
 0x1b1   :  { %v3160_v5 = vadd.s32 1, %v10367_v29  ;;  %v850_v50 = vmul.f32 3.8197186, %v818_v59  ;;  %v10396_v17 = vmul.f32 0.0625, %v10276_v44  ;;  %vm467_vm14 = vcmp.le.f32.partialorder %v435_v33, %v10100_v11 }
 0x1b2   :  { %v3077_v20 = vor.u32 4788187, %v3076_v7  ;;  %v3080_v19 = vcvt.s32.f32 %v3073_v53  ;;  %v418_v23 = vadd.f32 1.0, %v386_v54  ;;  %v3087_v34 = vsel %vm10372_vm13, 0, %v3085_v13 }
 0x1b3   :  { %v3161_v2 = vsel %vm3159_vm9, %v3160_v5, %v10367_v29  ;;  %v10403_v0 = vmul.f32 %v10123_v22, %v850_v50  ;;  %v7988_v4 = vsel %vm467_vm14, 1.0, %v8788_v47  ;;  %v227_v39 = vfloor.f32 %v10396_v17 }
 0x1b4   :  { %v3078_v15 = vand.u32 2147483647, %v3077_v20  ;;  %v3162_v45 = vadd.s32 %v3161_v2, %v3157_v37  ;;  %v563_v44 = vadd.f32 %v7988_v4, %v10267_v30  ;;  %v450_v32 = vmul.f32 16.0, %v418_v23 }
 0x1b5   :  { %v1542_v31 = vand.u32 2147483647, %v10403_v0  ;;  %v1545_v60 = vand.u32 2139095040, %v10403_v0  ;;  %v3091_v52 = vadd.s32 3, %v3087_v34  ;;  %v259_v21 = vmul.f32 16.0, %v227_v39 }
 0x1b6   :  { %v3081_v40 = vmul.f32 %v3080_v19, %v3078_v15  ;;  %v3163_v43 = vadd.s32 536870912, %v3162_v45  ;;  %v595_v8 = vmul.f32 16.0, %v563_v44  ;;  %vm482_vm0 = vcmp.le.f32.partialorder %v450_v32, %v10156_v16 }
 0x1b7   :  { %v1546_v24 = vshrl.u32 %v1545_v60, 23  ;;  %v8003_v57 = vsel %vm482_vm0, 1.0, %v8788_v47  ;;  %v1549_v46 = vand.u32 8388607, %v1542_v31  ;;  %v10429_v29 = vand.u32 3, %v3091_v52 }
 0x1b8   :  { %v3082_v41 = vxor.u32 2147483648, %v3081_v40  ;;  %v10412_v56 = vshrl.u32 %v3163_v43, 30  ;;  %v627_v30 = vsub.f32 %v10100_v11, %v595_v8  ;;  %v10424_v42 = vadd.f32 %v8003_v57, %v386_v54 }
 0x1b9   :  { %v8070_v36 = vadd.s32 4294967169, %v1546_v24  ;;  %v10431_v18 = vand.u32 3, %v3087_v34  ;;  %v1550_v13 = vor.u32 8388608, %v1549_v46  ;;  %vm291_vm15 = vcmp.gt.f32.partialorder %v259_v21, %v10253_v35 }
 0x1ba   :  { %v3083_v6 = vsel %vm3000_vm3, %v3082_v41, %v3081_v40  ;;  %v3165_v61 = vshll.u32 %v10412_v56, 30  ;;  %v10422_v27 = vsub.f32 %v563_v44, %v627_v30  ;;  %v10439_v12 = vmul.f32 16.0, %v10424_v42 }
 0x1bb   :  { %v3086_v11 = vsel %vm10372_vm13, %v10126_v14, %v3083_v6  ;;  %v1552_v26 = vadd.s32 1, %v8070_v36  ;;  %vm3094_vm6 = vcmp.eq.s32.totalorder %v10429_v29, 0  ;;  %vm3097_vm10 = vcmp.eq.s32.totalorder %v10429_v29, 2 }
 0x1bc   :  { %8642 = vcosq.f32 %v3086_v11  ;;  %v10433_v48 = vsub.s32 %v3162_v45, %v3165_v61  ;;  %v691_v25 = vand.u32 2147483647, %v10422_v27  ;;  %vm6401_vm8 = vcmp.eq.s32.totalorder %v10431_v18, 0 }
 0x1bd   :  { %8644 = vsinq.f32 %v3086_v11  ;;  %vm1553_vm2 = vcmp.gt.s32.totalorder %v1552_v26, 0  ;;  %vm6404_vm3 = vcmp.eq.s32.totalorder %v10431_v18, 2  ;;  %vm3093_vm12 = vcmp.lt.s32.totalorder %v10429_v29, 2 }
 0x1be   :  { %v3168_v37 = vsub.s32 0, %v10433_v48  ;;  %v1554_v33 = vsel %vm1553_vm2, %v1552_v26, 0  ;;  %vm6400_vm1 = vcmp.lt.s32.totalorder %v10431_v18, 2  ;;  %v3158_v7 = vadd.s32 %v10366_v38, %v10363_v63 }
 0x1bf   :  { %v1556_v53 = vand.u32 31, %v1554_v33  ;;  %v3188_v54 = vsub.s32 4, %v10412_v56  ;;  %v10452_v5 = vsel %vm291_vm15, 1.0, %v8788_v47  ;;  %vm3090_vm7 = vweird.f32 %v10126_v14 }
 0x1c0   :  { %v8131_v59 = vmin.u32 %v3168_v37, %v10433_v48  ;;  %v10457_v23 = vshll.u32 %v1550_v13, 8  ;;  %v10459_v2 = vshrl.u32 %v1554_v33, 5  ;;  %v10463_v63 = vmul.f32 22.5, %v691_v25 }
 0x1c1   :  { %v1557_v50 = vsub.s32 32, %v1556_v53  ;;  %v1559_v20 = vshll.u32 %v8789_v49, %v1556_v53  ;;  %v1562_v19 = vshll.u32 %v8790_v51, %v1556_v53  ;;  %v642_v38 = vsub.f32 %v10156_v16, %v10439_v12 }
 0x1c2   :  { %v3170_v34 = vclz %v8131_v59  ;;  %v1565_v44 = vshll.u32 %v8791_v9, %v1556_v53  ;;  %v1568_v40 = vshll.u32 %v8792_v10, %v1556_v53  ;;  %v1571_v24 = vshll.u32 %v8793_v55, %v1556_v53 }
 0x1c3   :  { %v1558_v4 = vshrl.u32 %v8789_v49, %v1557_v50  ;;  %v1560_v15 = vshrl.u32 %v8790_v51, %v1557_v50  ;;  %v1563_v45 = vshrl.u32 %v8791_v9, %v1557_v50  ;;  %v1566_v60 = vshrl.u32 %v8792_v10, %v1557_v50 }
 0x1c4   :  { %v8132_v32 = vadd.s32 4294967294, %v3170_v34  ;;  %v1569_v43 = vshrl.u32 %v8793_v55, %v1557_v50  ;;  %v1572_v57 = vshrl.u32 %v8794_v62, %v1557_v50  ;;  %vm1574_vm13 = vcmp.lt.s32.totalorder %v10459_v2, 1 }
 0x1c5   :  { %v1561_v8 = vor.u32 %v1560_v15, %v1559_v20  ;;  %v1564_v52 = vor.u32 %v1563_v45, %v1562_v19  ;;  %v1567_v30 = vor.u32 %v1566_v60, %v1565_v44  ;;  %vm1575_vm9 = vcmp.lt.s32.totalorder %v10459_v2, 2 }
 0x1c6   :  { %v8643_v41 = vpop.eup %8642  ;;  %vm8133_vm11 = vcmp.lt.s32.totalorder %v8132_v32, 0  ;;  %v1570_v36 = vor.u32 %v1569_v43, %v1568_v40  ;;  %v1573_v61 = vor.u32 %v1572_v57, %v1571_v24  ;;  %vm3104_vm14 = vcmp.lt.s32.totalorder %v10168_v58, 0 }
 0x1c7   :  { %v8645_v46 = vpop.eup %8644  ;;  %v3098_v21 = vxor.u32 2147483648, %v8643_v41  ;;  %v3173_v6 = vsel %vm8133_vm11, 0, %v8132_v32  ;;  %vm1576_vm0 = vcmp.lt.s32.totalorder %v10459_v2, 3  ;;  %vm1577_vm2 = vcmp.lt.s32.totalorder %v10459_v2, 4 }
 0x1c8   :  { %v3095_v11 = vxor.u32 2147483648, %v8645_v46  ;;  %v3174_v26 = vsub.s32 32, %v3173_v6  ;;  %v3175_v13 = vshll.u32 %v10433_v48, %v3173_v6  ;;  %v3178_v37 = vsub.s32 4294967266, %v3173_v6 }
 0x1c9   :  { %v3099_v33 = vsel %vm3097_vm10, %v3098_v21, %v8645_v46  ;;  %v6406_v53 = vsel %vm6404_vm3, %v3098_v21, %v8645_v46  ;;  %v1578_v15 = vsel %vm1574_vm13, %v1558_v4, %v1561_v8  ;;  %v1579_v45 = vsel %vm1577_vm2, %v1567_v30, 2102212464 }
 0x1ca   :  { %v3096_v59 = vsel %vm3094_vm6, %v8643_v41, %v3095_v11  ;;  %v6403_v50 = vsel %vm6401_vm8, %v8643_v41, %v3095_v11  ;;  %v3176_v48 = vshrl.u32 %v3158_v7, %v3174_v26  ;;  %v3179_v20 = vadd.s32 127, %v3178_v37 }
 0x1cb   :  { %v3100_v19 = vsel %vm3093_vm12, %v3096_v59, %v3099_v33  ;;  %v6407_v34 = vsel %vm6400_vm1, %v6403_v50, %v6406_v53  ;;  %vm10504_vm15 = vcmp.le.f32.partialorder %v3102_v3, 0.7853982  ;;  %v1580_v60 = vsel %vm1576_vm0, %v1564_v52, %v1579_v45 }
 0x1cc   :  { %v3101_v44 = vsel %vm3090_vm7, nan, %v3100_v19  ;;  %v6408_v32 = vsel %vm3090_vm7, nan, %v6407_v34  ;;  %v3177_v18 = vor.u32 %v3176_v48, %v3175_v13  ;;  %v3180_v7 = vshll.u32 %v3179_v20, 23 }
 0x1cd   :  { %v7562_v4 = vsel %vm917_vm4, %v3101_v44, %v6408_v32  ;;  %v1582_v40 = vsel %vm1574_vm13, %v1561_v8, %v1564_v52  ;;  %v1583_v14 = vsel %vm1577_vm2, %v1570_v36, 920167782  ;;  %vm10521_vm6 = vcmp.gt.f32.partialorder %v691_v25, 8.0 }
 0x1ce   :  { %8421 = vmatprep.mubr.msk.f32.mxu1 %vm7589_vm5, %v7562_v4  ;;  %v3181_v3 = vor.u32 4788187, %v3180_v7  ;;  %v3184_v43 = vcvt.s32.f32 %v3177_v18  ;;  %v1584_v24 = vsel %vm1576_vm0, %v1567_v30, %v1583_v14  ;;  %v1581_v41 = vsel %vm1575_vm9, %v1578_v15, %v1580_v60 }
 0x1cf   :  { %v1585_v8 = vsel %vm1575_vm9, %v1582_v40, %v1584_v24  ;;  %v1586_v46 = vsel %vm1574_vm13, %v1564_v52, %v1567_v30  ;;  %v1587_v21 = vsel %vm1577_vm2, %v1573_v61, 1326507024  ;;  %v8020_v13 = vadd.f32 -360.0, %v10463_v63 }
 0x1d0   :  { %v3182_v6 = vand.u32 2147483647, %v3181_v3  ;;  %v1588_v27 = vsel %vm1576_vm0, %v1570_v36, %v1587_v21  ;;  %v10536_v25 = vmul.u32.u64.low %v10457_v23, %v1585_v8  ;;  %v10537_v11 = vmul.u32.u64.high %v10457_v23, %v1585_v8, %v10536_v25 }
 0x1d1   :  { %v1589_v26 = vsel %vm1575_vm9, %v1586_v46, %v1588_v27  ;;  %v674_v52 = vsub.f32 %v10424_v42, %v642_v38  ;;  %v387_v30 = vsub.f32 %v227_v39, %v10452_v5  ;;  %v3189_v61 = vsel %vm3104_vm14, %v3188_v54, %v10412_v56 }
 0x1d2   :  { %v3185_v36 = vmul.f32 %v3184_v43, %v3182_v6  ;;  %v10556_v2 = vmul.u32.u64.low %v10457_v23, %v1589_v26  ;;  %v10557_v37 = vmul.u32.u64.high %v10457_v23, %v1589_v26, %v10556_v2  ;;  %v819_v16 = vsel %vm10521_vm6, %v8020_v13, %v10463_v63 }
 0x1d3   :  { %v706_v42 = vand.u32 2147483647, %v674_v52  ;;  %v419_v12 = vadd.f32 1.0, %v387_v30  ;;  %v49_v17 = vadd.s32 64, %v8847_v1  ;;  %v1597_v5 = vmul.u32 %v10457_v23, %v1581_v41 }
 0x1d4   :  { %v3186_v39 = vxor.u32 2147483648, %v3185_v36  ;;  %v1600_v38 = vadd.s32 1, %v10537_v11  ;;  %v851_v33 = vmul.f32 3.8197186, %v819_v16  ;;  %v3191_v56 = vsel %vm10504_vm15, 0, %v3189_v61 }
 0x1d5   :  { %v738_v54 = vmul.f32 22.5, %v706_v42  ;;  %vm10567_vm10 = vcmp.gt.f32.partialorder %v706_v42, 8.0  ;;  %vm1599_vm8 = vc.u32 %v10557_v37, %v10536_v25  ;;  %v451_v23 = vmul.f32 16.0, %v419_v12 }
 0x1d6   :  { %v3187_v63 = vsel %vm3104_vm14, %v3186_v39, %v3185_v36  ;;  %v10576_v59 = vmul.f32 %v10123_v22, %v851_v33  ;;  %v1601_v48 = vsel %vm1599_vm8, %v1600_v38, %v10537_v11  ;;  %v10582_v19 = vcvt.s32.f32 %v49_v17 }
 0x1d7   :  { %v3190_v50 = vsel %vm10504_vm15, %v10168_v58, %v3187_v63  ;;  %v8035_v20 = vadd.f32 -360.0, %v738_v54  ;;  %v3195_v34 = vadd.s32 3, %v3191_v56  ;;  %v1602_v15 = vadd.s32 %v1601_v48, %v1597_v5 }
 0x1d8   :  { %8646 = vcosq.f32 %v3190_v50  ;;  %v1646_v45 = vand.u32 2147483647, %v10576_v59  ;;  %v1649_v44 = vand.u32 2139095040, %v10576_v59  ;;  %v6502_v18 = vand.u32 3, %v3191_v56 }
 0x1d9   :  { %8648 = vsinq.f32 %v3190_v50  ;;  %v834_v32 = vsel %vm10567_vm10, %v8035_v20, %v738_v54  ;;  %v1603_v7 = vadd.s32 536870912, %v1602_v15  ;;  %vm483_vm3 = vcmp.le.f32.partialorder %v451_v23, %v10253_v35 }
 0x1da   :  { %v1650_v29 = vshrl.u32 %v1649_v44, 23  ;;  %v866_v4 = vmul.f32 3.8197186, %v834_v32  ;;  %v147_v60 = vadd.f32 0.5, %v10582_v19  ;;  %v3196_v40 = vand.u32 3, %v3195_v34 }
 0x1db   :  { %vm1544_vm12 = vcmp.lt.s32.totalorder %v10403_v0, 0  ;;  %v1604_v14 = vshrl.u32 %v1603_v7, 30  ;;  %vm3194_vm1 = vweird.f32 %v10168_v58  ;;  %vm10594_vm7 = vcmp.le.f32.partialorder %v1542_v31, 0.7853982 }
 0x1dc   :  { %v8074_v43 = vadd.s32 4294967169, %v1650_v29  ;;  %v1653_v24 = vand.u32 8388607, %v1646_v45  ;;  %v8004_v57 = vsel %vm483_vm3, 1.0, %v8788_v47  ;;  %vm6503_vm11 = vcmp.lt.s32.totalorder %v6502_v18, 2 }
 0x1dd   :  { %vm6504_vm13 = vcmp.eq.s32.totalorder %v6502_v18, 0  ;;  %v1605_v41 = vshll.u32 %v1604_v14, 30  ;;  %v50_v8 = vadd.s32 72, %v8847_v1  ;;  %v1628_v46 = vsub.s32 4, %v1604_v14 }
 0x1de   :  { %v1656_v21 = vadd.s32 1, %v8074_v43  ;;  %v10603_v6 = vmul.f32 %v10123_v22, %v866_v4  ;;  %v10605_v31 = vmul.f32 0.0625, %v147_v60  ;;  %vm3197_vm9 = vcmp.lt.s32.totalorder %v3196_v40, 2 }
 0x1df   :  { %vm6507_vm14 = vcmp.eq.s32.totalorder %v6502_v18, 2  ;;  %v10607_v27 = vsub.s32 %v1602_v15, %v1605_v41  ;;  %v10609_v11 = vadd.f32 %v8004_v57, %v387_v30  ;;  %vm3198_vm0 = vcmp.eq.s32.totalorder %v3196_v40, 0 }
 0x1e0   :  { %vm3201_vm2 = vcmp.eq.s32.totalorder %v3196_v40, 2  ;;  %v1654_v26 = vor.u32 8388608, %v1653_v24  ;;  %vm1657_vm15 = vcmp.gt.s32.totalorder %v1656_v21, 0  ;;  %v1598_v52 = vadd.s32 %v10536_v25, %v10557_v37 }
 0x1e1   :  { %v1608_v36 = vsub.s32 0, %v10607_v27  ;;  %v1658_v22 = vsel %vm1657_vm15, %v1656_v21, 0  ;;  %v10614_v61 = vcvt.s32.f32 %v50_v8  ;;  %v1629_v42 = vsel %vm1544_vm12, %v1628_v46, %v1604_v14 }
 0x1e2   :  { %v8647_v13 = vpop.eup %8646  ;;  %v3209_v30 = vand.u32 2139095040, %v10603_v6  ;;  %v212_v12 = vfloor.f32 %v10605_v31  ;;  %v1660_v5 = vand.u32 31, %v1658_v22  ;;  %v10622_v25 = vmul.f32 16.0, %v10609_v11 }
 0x1e3   :  { %v8649_v2 = vpop.eup %8648  ;;  %v3202_v16 = vxor.u32 2147483648, %v8647_v13  ;;  %v8071_v39 = vmin.u32 %v1608_v36, %v10607_v27  ;;  %v10626_v33 = vshll.u32 %v1654_v26, 8  ;;  %v3206_v56 = vand.u32 2147483647, %v10603_v6 }
 0x1e4   :  { %v3199_v17 = vxor.u32 2147483648, %v8649_v2  ;;  %v10633_v23 = vsel %vm10594_vm7, 0, %v1629_v42  ;;  %v1659_v20 = vshrl.u32 %v1658_v22, 5  ;;  %v3210_v34 = vshrl.u32 %v3209_v30, 23 }
 0x1e5   :  { %v3203_v37 = vsel %vm3201_vm2, %v3202_v16, %v8649_v2  ;;  %v6509_v38 = vsel %vm6507_vm14, %v3202_v16, %v8649_v2  ;;  %v1610_v63 = vclz %v8071_v39  ;;  %v1661_v7 = vsub.s32 32, %v1660_v5 }
 0x1e6   :  { %v3200_v54 = vsel %vm3198_vm0, %v8647_v13, %v3199_v17  ;;  %v6506_v53 = vsel %vm6504_vm13, %v8647_v13, %v3199_v17  ;;  %v1663_v4 = vshll.u32 %v8789_v49, %v1660_v5  ;;  %v1666_v60 = vshll.u32 %v8790_v51, %v1660_v5 }
 0x1e7   :  { %v3204_v50 = vsel %vm3197_vm9, %v3200_v54, %v3203_v37  ;;  %v6510_v48 = vsel %vm6503_vm11, %v6506_v53, %v6509_v38  ;;  %v8072_v32 = vadd.s32 4294967294, %v1610_v63  ;;  %v1669_v18 = vshll.u32 %v8791_v9, %v1660_v5 }
 0x1e8   :  { %v3205_v15 = vsel %vm3194_vm1, nan, %v3204_v50  ;;  %v6511_v44 = vsel %vm3194_vm1, nan, %v6510_v48  ;;  %v1662_v40 = vshrl.u32 %v8789_v49, %v1661_v7  ;;  %v1664_v14 = vshrl.u32 %v8790_v51, %v1661_v7 }
 0x1e9   :  { %v7563_v29 = vsel %vm917_vm4, %v3205_v15, %v6511_v44  ;;  %vm8073_vm6 = vcmp.lt.s32.totalorder %v8072_v32, 0  ;;  %v1667_v58 = vshrl.u32 %v8791_v9, %v1661_v7  ;;  %v1670_v24 = vshrl.u32 %v8792_v10, %v1661_v7 }
 0x1ea   :  { %8422 = vmatmul.mubr.msk.f32.gmra.mrb[4].mxu1 %vm7589_vm5, %v7563_v29  ;;  %v1613_v43 = vsel %vm8073_vm6, 0, %v8072_v32  ;;  %v1672_v57 = vshll.u32 %v8792_v10, %v1660_v5  ;;  %v1673_v41 = vshrl.u32 %v8793_v55, %v1661_v7  ;;  %v1665_v26 = vor.u32 %v1664_v14, %v1663_v4 }
 0x1eb   :  { %v1614_v8 = vsub.s32 32, %v1613_v43  ;;  %v1615_v46 = vshll.u32 %v10607_v27, %v1613_v43  ;;  %v1618_v21 = vsub.s32 4294967266, %v1613_v43  ;;  %v1668_v13 = vor.u32 %v1667_v58, %v1666_v60 }
 0x1ec   :  { %v1671_v36 = vor.u32 %v1670_v24, %v1669_v18  ;;  %v1674_v22 = vor.u32 %v1673_v41, %v1672_v57  ;;  %v1675_v2 = vshll.u32 %v8793_v55, %v1660_v5  ;;  %v1676_v30 = vshrl.u32 %v8794_v62, %v1661_v7 }
 0x1ed   :  { %v1616_v16 = vshrl.u32 %v1598_v52, %v1614_v8  ;;  %v1619_v42 = vadd.s32 127, %v1618_v21  ;;  %vm1678_vm10 = vcmp.lt.s32.totalorder %v1659_v20, 1  ;;  %vm1679_vm8 = vcmp.lt.s32.totalorder %v1659_v20, 2 }
 0x1ee   :  { %vm1680_vm3 = vcmp.lt.s32.totalorder %v1659_v20, 3  ;;  %vm1681_vm1 = vcmp.lt.s32.totalorder %v1659_v20, 4  ;;  %v8134_v17 = vadd.s32 4294967169, %v3210_v34  ;;  %v1677_v38 = vor.u32 %v1676_v30, %v1675_v2 }
 0x1ef   :  { %v1617_v39 = vor.u32 %v1616_v16, %v1615_v46  ;;  %v1620_v37 = vshll.u32 %v1619_v42, 23  ;;  %v1683_v27 = vsel %vm1681_vm1, %v1671_v36, 2102212464  ;;  %v1682_v54 = vsel %vm1678_vm10, %v1662_v40, %v1665_v26 }
 0x1f0   :  { %v1684_v53 = vsel %vm1680_vm3, %v1668_v13, %v1683_v27  ;;  %v1686_v5 = vsel %vm1678_vm10, %v1665_v26, %v1668_v13  ;;  %v1687_v52 = vsel %vm1681_vm1, %v1674_v22, 920167782  ;;  %v1690_v15 = vsel %vm1678_vm10, %v1668_v13, %v1671_v36 }
 0x1f1   :  { %v1621_v63 = vor.u32 4788187, %v1620_v37  ;;  %v1624_v50 = vcvt.s32.f32 %v1617_v39  ;;  %v1688_v48 = vsel %vm1680_vm3, %v1671_v36, %v1687_v52  ;;  %v1635_v34 = vadd.s32 3, %v10633_v23 }
 0x1f2   :  { %v1689_v44 = vsel %vm1679_vm8, %v1686_v5, %v1688_v48  ;;  %v1691_v32 = vsel %vm1681_vm1, %v1677_v38, 1326507024  ;;  %v148_v7 = vadd.f32 0.5, %v10614_v61  ;;  %v1685_v40 = vsel %vm1679_vm8, %v1682_v54, %v1684_v53 }
 0x1f3   :  { %v1622_v29 = vand.u32 2147483647, %v1621_v63  ;;  %v1692_v4 = vsel %vm1680_vm3, %v1674_v22, %v1691_v32  ;;  %v10669_v60 = vmul.u32.u64.low %v10626_v33, %v1689_v44  ;;  %v10670_v18 = vmul.u32.u64.high %v10626_v33, %v1689_v44, %v10669_v60 }
 0x1f4   :  { %v1693_v14 = vsel %vm1679_vm8, %v1690_v15, %v1692_v4  ;;  %v3213_v58 = vand.u32 8388607, %v3206_v56  ;;  %v3216_v43 = vadd.s32 1, %v8134_v17  ;;  %v643_v8 = vsub.f32 %v10253_v35, %v10622_v25 }
 0x1f5   :  { %v1625_v24 = vmul.f32 %v1624_v50, %v1622_v29  ;;  %v10678_v57 = vmul.u32.u64.low %v10626_v33, %v1693_v14  ;;  %v10679_v41 = vmul.u32.u64.high %v10626_v33, %v1693_v14, %v10678_v57  ;;  %v244_v46 = vmul.f32 16.0, %v212_v12 }
 0x1f6   :  { %vm3217_vm11 = vcmp.gt.s32.totalorder %v3216_v43, 0  ;;  %v10685_v21 = vmul.f32 0.0625, %v148_v7  ;;  %v10688_v20 = vadd.s32 192, %v8847_v1  ;;  %v1701_v13 = vmul.u32 %v10626_v33, %v1685_v40 }
 0x1f7   :  { %v1626_v26 = vxor.u32 2147483648, %v1625_v24  ;;  %v1704_v36 = vadd.s32 1, %v10670_v18  ;;  %v3218_v22 = vsel %vm3217_vm11, %v3216_v43, 0  ;;  %v10692_v2 = vand.u32 3, %v1635_v34 }
 0x1f8   :  { %v10695_v16 = vand.u32 3, %v10633_v23  ;;  %v3214_v35 = vor.u32 8388608, %v3213_v58  ;;  %v3220_v25 = vand.u32 31, %v3218_v22  ;;  %vm1703_vm13 = vc.u32 %v10679_v41, %v10669_v60 }
 0x1f9   :  { %v1627_v42 = vsel %vm1544_vm12, %v1626_v26, %v1625_v24  ;;  %v10701_v30 = vshrl.u32 %v3218_v22, 5  ;;  %v10704_v33 = vsub.f32 %v10609_v11, %v643_v8  ;;  %v1705_v23 = vsel %vm1703_vm13, %v1704_v36, %v10670_v18 }
 0x1fa   :  { %v1630_v17 = vsel %vm10594_vm7, %v10403_v0, %v1627_v42  ;;  %v3221_v39 = vsub.s32 32, %v3220_v25  ;;  %v3223_v37 = vshll.u32 %v8789_v49, %v3220_v25  ;;  %v1706_v38 = vadd.s32 %v1705_v23, %v1701_v13 }
 0x1fb   :  { %8650 = vcosq.f32 %v1630_v17  ;;  %v3226_v27 = vshll.u32 %v8790_v51, %v3220_v25  ;;  %v3229_v54 = vshll.u32 %v8791_v9, %v3220_v25  ;;  %vm276_vm12 = vcmp.gt.f32.partialorder %v244_v46, %v10582_v19 }
 0x1fc   :  { %8652 = vsinq.f32 %v1630_v17  ;;  %v3224_v53 = vshrl.u32 %v8790_v51, %v3221_v39  ;;  %v3227_v11 = vshrl.u32 %v8791_v9, %v3221_v39  ;;  %v1707_v3 = vadd.s32 536870912, %v1706_v38 }
 0x1fd   :  { %v3230_v5 = vshrl.u32 %v8792_v10, %v3221_v39  ;;  %v3232_v52 = vshll.u32 %v8792_v10, %v3220_v25  ;;  %v3233_v63 = vshrl.u32 %v8793_v55, %v3221_v39  ;;  %v3235_v15 = vshll.u32 %v8793_v55, %v3220_v25 }
 0x1fe   :  { %v3225_v50 = vor.u32 %v3224_v53, %v3223_v37  ;;  %v3228_v48 = vor.u32 %v3227_v11, %v3226_v27  ;;  %v3236_v34 = vshrl.u32 %v8794_v62, %v3221_v39  ;;  %vm4958_vm7 = vcmp.lt.s32.totalorder %v10695_v16, 2 }
 0x1ff   :  { %v10722_v44 = vshrl.u32 %v1707_v3, 30  ;;  %v3231_v32 = vor.u32 %v3230_v5, %v3229_v54  ;;  %v3234_v7 = vor.u32 %v3233_v63, %v3232_v52  ;;  %vm3238_vm9 = vcmp.lt.s32.totalorder %v10701_v30, 1 }
 0x200   :  { %vm1634_vm14 = vweird.f32 %v10403_v0  ;;  %v3237_v29 = vor.u32 %v3236_v34, %v3235_v15  ;;  %vm3240_vm0 = vcmp.lt.s32.totalorder %v10701_v30, 3  ;;  %vm3241_vm2 = vcmp.lt.s32.totalorder %v10701_v30, 4 }
 0x201   :  { %v7957_v4 = vsel %vm276_vm12, 1.0, %v8788_v47  ;;  %vm4959_vm15 = vcmp.eq.s32.totalorder %v10695_v16, 0  ;;  %vm4962_vm6 = vcmp.eq.s32.totalorder %v10695_v16, 2  ;;  %v1709_v18 = vshll.u32 %v10722_v44, 30 }
 0x202   :  { %vm3239_vm10 = vcmp.lt.s32.totalorder %v10701_v30, 2  ;;  %vm1637_vm8 = vcmp.lt.s32.totalorder %v10692_v2, 2  ;;  %v3246_v40 = vsel %vm3238_vm9, %v3225_v50, %v3228_v48  ;;  %v3247_v14 = vsel %vm3241_vm2, %v3234_v7, 920167782 }
 0x203   :  { %v10740_v58 = vshll.u32 %v3214_v35, 8  ;;  %v10742_v43 = vsub.s32 %v1706_v38, %v1709_v18  ;;  %v3248_v24 = vsel %vm3240_vm0, %v3231_v32, %v3247_v14  ;;  %v707_v57 = vand.u32 2147483647, %v10704_v33 }
 0x204   :  { %v10749_v8 = vsub.f32 %v212_v12, %v7957_v4  ;;  %vm1638_vm3 = vcmp.eq.s32.totalorder %v10692_v2, 0  ;;  %v3222_v46 = vshrl.u32 %v8789_v49, %v3221_v39  ;;  %v3249_v26 = vsel %vm3239_vm10, %v3246_v40, %v3248_v24 }
 0x205   :  { %v3251_v13 = vsel %vm3241_vm2, %v3237_v29, 1326507024  ;;  %v8651_v36 = vpop.eup %8650  ;;  %vm1641_vm1 = vcmp.eq.s32.totalorder %v10692_v2, 2  ;;  %v1712_v22 = vsub.s32 0, %v10742_v43  ;;  %v3243_v31 = vsel %vm3241_vm2, %v3231_v32, 2102212464 }
 0x206   :  { %v3250_v12 = vsel %vm3238_vm9, %v3228_v48, %v3231_v32  ;;  %v8653_v35 = vpop.eup %8652  ;;  %v1642_v25 = vxor.u32 2147483648, %v8651_v36  ;;  %v3252_v42 = vsel %vm3240_vm0, %v3234_v7, %v3251_v13  ;;  %v739_v37 = vmul.f32 22.5, %v707_v57 }
 0x207   :  { %v10766_v33 = vmul.u32.u64.low %v10740_v58, %v3249_v26  ;;  %v10767_v17 = vmul.u32.u64.high %v10740_v58, %v3249_v26, %v10766_v33  ;;  %v1639_v23 = vxor.u32 2147483648, %v8653_v35  ;;  %v8075_v39 = vmin.u32 %v1712_v22, %v10742_v43 }
 0x208   :  { %v404_v38 = vadd.f32 1.0, %v10749_v8  ;;  %v1643_v27 = vsel %vm1641_vm1, %v1642_v25, %v8653_v35  ;;  %v4964_v54 = vsel %vm4962_vm6, %v1642_v25, %v8653_v35  ;;  %v3242_v53 = vsel %vm3238_vm9, %v3222_v46, %v3225_v50  ;;  %v10822_v35 = vld [vmem:[#allocation2] ss:$0 sm:$0xff] }
 0x209   :  { %v3244_v11 = vsel %vm3240_vm0, %v3228_v48, %v3243_v31  ;;  %v1640_v3 = vsel %vm1638_vm3, %v8651_v36, %v1639_v23  ;;  %v4961_v5 = vsel %vm4959_vm15, %v8651_v36, %v1639_v23  ;;  %vm1648_vm11 = vcmp.lt.s32.totalorder %v10576_v59, 0 }
 0x20a   :  { %v1714_v52 = vclz %v8075_v39  ;;  %v3253_v63 = vsel %vm3239_vm10, %v3250_v12, %v3252_v42  ;;  %v1644_v15 = vsel %vm1637_vm8, %v1640_v3, %v1643_v27  ;;  %v4965_v50 = vsel %vm4958_vm7, %v4961_v5, %v4964_v54 }
 0x20b   :  { %v1702_v48 = vadd.s32 %v10669_v60, %v10679_v41  ;;  %vm10791_vm13 = vcmp.gt.f32.partialorder %v707_v57, 8.0  ;;  %v1645_v32 = vsel %vm1634_vm14, nan, %v1644_v15  ;;  %v4966_v7 = vsel %vm1634_vm14, nan, %v4965_v50 }
 0x20c   :  { %v8076_v29 = vadd.s32 4294967294, %v1714_v52  ;;  %v3245_v2 = vsel %vm3239_vm10, %v3242_v53, %v3244_v11  ;;  %v7548_v16 = vsel %vm917_vm4, %v1645_v32, %v4966_v7  ;;  %v8036_v41 = vadd.f32 -360.0, %v739_v37 }
 0x20d   :  { %v10804_v4 = vmul.u32.u64.low %v10740_v58, %v3253_v63  ;;  %v10805_v60 = vmul.u32.u64.high %v10740_v58, %v3253_v63, %v10804_v4  ;;  %8400 = vmatprep.mubr.msk.f32.mxu0 %vm7589_vm5, %v7548_v16  ;;  %v3264_v18 = vadd.s32 1, %v10767_v17  ;;  %v436_v40 = vmul.f32 16.0, %v404_v38 }
 0x20e   :  { %vm8077_vm12 = vcmp.lt.s32.totalorder %v8076_v29, 0  ;;  %v213_v0 = vfloor.f32 %v10685_v21  ;;  %v1732_v30 = vsub.s32 4, %v10722_v44  ;;  %v3261_v24 = vmul.u32 %v10740_v58, %v3245_v2 }
 0x20f   :  { %v1717_v14 = vsel %vm8077_vm12, 0, %v8076_v29  ;;  %v835_v57 = vsel %vm10791_vm13, %v8036_v41, %v739_v37  ;;  %vm3263_vm7 = vc.u32 %v10805_v60, %v10766_v33  ;;  %vm468_vm9 = vcmp.le.f32.partialorder %v436_v40, %v10582_v19 }
 0x210   :  { %v1718_v46 = vsub.s32 32, %v1717_v14  ;;  %v1719_v26 = vshll.u32 %v10742_v43, %v1717_v14  ;;  %v1722_v13 = vsub.s32 4294967266, %v1717_v14  ;;  %v867_v36 = vmul.f32 3.8197186, %v835_v57 }
 0x211   :  { %v245_v22 = vmul.f32 16.0, %v213_v0  ;;  %v10819_v21 = vcvt.s32.f32 %v10688_v20  ;;  %v3265_v58 = vsel %vm3263_vm7, %v3264_v18, %v10767_v17  ;;  %v1733_v43 = vsel %vm1648_vm11, %v1732_v30, %v10722_v44 }
 0x212   :  { %v1720_v31 = vshrl.u32 %v1702_v48, %v1718_v46  ;;  %v1723_v12 = vadd.s32 127, %v1722_v13  ;;  %v10825_v25 = vmul.f32 %v10822_v35, %v867_v36  ;;  %v3266_v42 = vadd.s32 %v3265_v58, %v3261_v24 }
 0x213   :  { %v7989_v23 = vsel %vm468_vm9, 1.0, %v8788_v47  ;;  %vm10833_vm14 = vcmp.le.f32.partialorder %v1646_v45, 0.7853982  ;;  %vm277_vm0 = vcmp.gt.f32.partialorder %v245_v22, %v10614_v61  ;;  %v163_v45 = vadd.f32 0.5, %v10819_v21 }
 0x214   :  { %v1721_v39 = vor.u32 %v1720_v31, %v1719_v26  ;;  %v1724_v17 = vshll.u32 %v1723_v12, 23  ;;  %v3267_v37 = vadd.s32 536870912, %v3266_v42  ;;  %v3310_v38 = vand.u32 2147483647, %v10825_v25 }
 0x215   :  { %v3313_v27 = vand.u32 2139095040, %v10825_v25  ;;  %v564_v44 = vadd.f32 %v7989_v23, %v10749_v8  ;;  %v1735_v11 = vsel %vm10833_vm14, 0, %v1733_v43  ;;  %v7958_v63 = vsel %vm277_vm0, 1.0, %v8788_v47 }
 0x216   :  { %v1725_v54 = vor.u32 4788187, %v1724_v17  ;;  %v1728_v53 = vcvt.s32.f32 %v1721_v39  ;;  %v3268_v3 = vshrl.u32 %v3267_v37, 30  ;;  %v3317_v34 = vand.u32 8388607, %v3310_v38 }
 0x217   :  { %v3314_v5 = vshrl.u32 %v3313_v27, 23  ;;  %v596_v52 = vmul.f32 16.0, %v564_v44  ;;  %v1739_v7 = vadd.s32 3, %v1735_v11  ;;  %v10848_v29 = vsub.f32 %v213_v0, %v7958_v63 }
 0x218   :  { %v1726_v15 = vand.u32 2147483647, %v1725_v54  ;;  %v3269_v50 = vshll.u32 %v3268_v3, 30  ;;  %v10850_v2 = vmul.f32 0.0625, %v163_v45  ;;  %v3292_v4 = vsub.s32 4, %v3268_v3 }
 0x219   :  { %v8138_v48 = vadd.s32 4294967169, %v3314_v5  ;;  %v628_v8 = vsub.f32 %v10582_v19, %v596_v52  ;;  %vm10856_vm2 = vcmp.le.f32.partialorder %v3206_v56, 0.7853982  ;;  %vm13239_vm15 = vcmp.lt.s32.totalorder %v10603_v6, 0 }
 0x21a   :  { %v1729_v32 = vmul.f32 %v1728_v53, %v1726_v15  ;;  %v10852_v16 = vsub.s32 %v3266_v42, %v3269_v50  ;;  %v10861_v14 = vand.u32 3, %v1735_v11  ;;  %v3318_v30 = vor.u32 8388608, %v3317_v34 }
 0x21b   :  { %v3320_v41 = vadd.s32 1, %v8138_v48  ;;  %v660_v19 = vsub.f32 %v564_v44, %v628_v8  ;;  %v10866_v57 = vand.u32 3, %v1739_v7  ;;  %v405_v46 = vadd.f32 1.0, %v10848_v29 }
 0x21c   :  { %v1730_v18 = vxor.u32 2147483648, %v1729_v32  ;;  %v3272_v0 = vsub.s32 0, %v10852_v16  ;;  %v228_v56 = vfloor.f32 %v10850_v2  ;;  %v3293_v36 = vsel %vm13239_vm15, %v3292_v4, %v3268_v3 }
 0x21d   :  { %vm3321_vm6 = vcmp.gt.s32.totalorder %v3320_v41, 0  ;;  %v692_v12 = vand.u32 2147483647, %v660_v19  ;;  %v10879_v58 = vadd.s32 200, %v8847_v1  ;;  %v3262_v43 = vadd.s32 %v10766_v33, %v10805_v60 }
 0x21e   :  { %v1731_v24 = vsel %vm1648_vm11, %v1730_v18, %v1729_v32  ;;  %v8135_v13 = vmin.u32 %v3272_v0, %v10852_v16  ;;  %v3322_v22 = vsel %vm3321_vm6, %v3320_v41, 0  ;;  %v10883_v23 = vshll.u32 %v3318_v30, 8 }
 0x21f   :  { %v1734_v26 = vsel %vm10833_vm14, %v10576_v59, %v1731_v24  ;;  %v10876_v31 = vshrl.u32 %v3322_v22, 5  ;;  %vm1745_vm10 = vcmp.eq.s32.totalorder %v10866_v57, 2  ;;  %vm5065_vm8 = vcmp.eq.s32.totalorder %v10861_v14, 2 }
 0x220   :  { %8654 = vcosq.f32 %v1734_v26  ;;  %v3274_v42 = vclz %v8135_v13  ;;  %v10889_v20 = vsel %vm10856_vm2, 0, %v3293_v36  ;;  %v3324_v39 = vand.u32 31, %v3322_v22 }
 0x221   :  { %8656 = vsinq.f32 %v1734_v26  ;;  %v10891_v17 = vmul.f32 16.0, %v405_v46  ;;  %v10895_v37 = vmul.f32 16.0, %v228_v56  ;;  %vm1742_vm3 = vcmp.eq.s32.totalorder %v10866_v57, 0 }
 0x222   :  { %vm5062_vm1 = vcmp.eq.s32.totalorder %v10861_v14, 0  ;;  %v8136_v33 = vadd.s32 4294967294, %v3274_v42  ;;  %vm3342_vm11 = vcmp.lt.s32.totalorder %v10876_v31, 1  ;;  %vm3344_vm13 = vcmp.lt.s32.totalorder %v10876_v31, 3 }
 0x223   :  { %vm3345_vm12 = vcmp.lt.s32.totalorder %v10876_v31, 4  ;;  %vm1741_vm7 = vcmp.lt.s32.totalorder %v10866_v57, 2  ;;  %vm5061_vm9 = vcmp.lt.s32.totalorder %v10861_v14, 2  ;;  %v3325_v60 = vsub.s32 32, %v3324_v39 }
 0x224   :  { %v3327_v27 = vshll.u32 %v8789_v49, %v3324_v39  ;;  %v3330_v44 = vshll.u32 %v8790_v51, %v3324_v39  ;;  %vm3343_vm14 = vcmp.lt.s32.totalorder %v10876_v31, 2  ;;  %v724_v54 = vmul.f32 22.5, %v692_v12 }
 0x225   :  { %vm1738_vm0 = vweird.f32 %v10576_v59  ;;  %vm8137_vm6 = vcmp.lt.s32.totalorder %v8136_v33, 0  ;;  %v3333_v53 = vshll.u32 %v8791_v9, %v3324_v39  ;;  %v3336_v11 = vshll.u32 %v8792_v10, %v3324_v39 }
 0x226   :  { %v3339_v45 = vshll.u32 %v8793_v55, %v3324_v39  ;;  %v3277_v3 = vsel %vm8137_vm6, 0, %v8136_v33  ;;  %v3326_v5 = vshrl.u32 %v8789_v49, %v3325_v60  ;;  %v3328_v52 = vshrl.u32 %v8790_v51, %v3325_v60 }
 0x227   :  { %v3331_v63 = vshrl.u32 %v8791_v9, %v3325_v60  ;;  %v3278_v15 = vsub.s32 32, %v3277_v3  ;;  %v3279_v50 = vshll.u32 %v10852_v16, %v3277_v3  ;;  %v3282_v48 = vsub.s32 4294967266, %v3277_v3 }
 0x228   :  { %v3334_v34 = vshrl.u32 %v8792_v10, %v3325_v60  ;;  %v3329_v8 = vor.u32 %v3328_v52, %v3327_v27  ;;  %v3337_v7 = vshrl.u32 %v8793_v55, %v3325_v60  ;;  %v3340_v4 = vshrl.u32 %v8794_v62, %v3325_v60 }
 0x229   :  { %v3332_v32 = vor.u32 %v3331_v63, %v3330_v44  ;;  %vm469_vm6 = vcmp.le.f32.partialorder %v10891_v17, %v10614_v61  ;;  %v3280_v41 = vshrl.u32 %v3262_v43, %v3278_v15  ;;  %v3283_v18 = vadd.s32 127, %v3282_v48 }
 0x22a   :  { %v3335_v19 = vor.u32 %v3334_v34, %v3333_v53  ;;  %vm10920_vm15 = vcmp.gt.f32.partialorder %v692_v12, 8.0  ;;  %v8655_v16 = vpop.eup %8654  ;;  %v3338_v30 = vor.u32 %v3337_v7, %v3336_v11  ;;  %v3341_v24 = vor.u32 %v3340_v4, %v3339_v45 }
 0x22b   :  { %v3346_v46 = vsel %vm3342_vm11, %v3326_v5, %v3329_v8  ;;  %v8021_v26 = vadd.f32 -360.0, %v724_v54  ;;  %v8657_v13 = vpop.eup %8656  ;;  %v1746_v36 = vxor.u32 2147483648, %v8655_v16  ;;  %v3281_v22 = vor.u32 %v3280_v41, %v3279_v50 }
 0x22c   :  { %v3284_v42 = vshll.u32 %v3283_v18, 23  ;;  %v3347_v43 = vsel %vm3345_vm12, %v3335_v19, 2102212464  ;;  %v1743_v39 = vxor.u32 2147483648, %v8657_v13  ;;  %v3350_v33 = vsel %vm3342_vm11, %v3329_v8, %v3332_v32 }
 0x22d   :  { %v3348_v12 = vsel %vm3344_vm13, %v3332_v32, %v3347_v43  ;;  %v3351_v60 = vsel %vm3345_vm12, %v3338_v30, 920167782  ;;  %v1747_v27 = vsel %vm1745_vm10, %v1746_v36, %v8657_v13  ;;  %v5067_v44 = vsel %vm5065_vm8, %v1746_v36, %v8657_v13 }
 0x22e   :  { %v3285_v53 = vor.u32 4788187, %v3284_v42  ;;  %v3288_v11 = vcvt.s32.f32 %v3281_v22  ;;  %v1744_v45 = vsel %vm1742_vm3, %v8655_v16, %v1743_v39  ;;  %v5064_v3 = vsel %vm5062_vm1, %v8655_v16, %v1743_v39 }
 0x22f   :  { %v3352_v5 = vsel %vm3344_vm13, %v3335_v19, %v3351_v60  ;;  %v3354_v52 = vsel %vm3342_vm11, %v3332_v32, %v3335_v19  ;;  %v1748_v63 = vsel %vm1741_vm7, %v1744_v45, %v1747_v27  ;;  %v5068_v15 = vsel %vm5061_vm9, %v5064_v3, %v5067_v44 }
 0x230   :  { %v3286_v50 = vand.u32 2147483647, %v3285_v53  ;;  %v3353_v48 = vsel %vm3343_vm14, %v3350_v33, %v3352_v5  ;;  %v1749_v34 = vsel %vm1738_vm0, nan, %v1748_v63  ;;  %v5069_v8 = vsel %vm1738_vm0, nan, %v5068_v15 }
 0x231   :  { %v3349_v7 = vsel %vm3343_vm14, %v3346_v46, %v3348_v12  ;;  %v3355_v57 = vsel %vm3345_vm12, %v3341_v24, 1326507024  ;;  %v7549_v14 = vsel %vm917_vm4, %v1749_v34, %v5069_v8  ;;  %v820_v41 = vsel %vm10920_vm15, %v8021_v26, %v724_v54 }
 0x232   :  { %v3289_v32 = vmul.f32 %v3288_v11, %v3286_v50  ;;  %v3356_v4 = vsel %vm3344_vm13, %v3338_v30, %v3355_v57  ;;  %8401 = vmatmul.mubr.msk.f32.gmra.mrb[6].mxu0 %vm7589_vm5, %v7549_v14  ;;  %v10970_v18 = vmul.u32.u64.low %v10883_v23, %v3353_v48  ;;  %v10971_v19 = vmul.u32.u64.high %v10883_v23, %v3353_v48, %v10970_v18 }
 0x233   :  { %v3357_v59 = vsel %vm3343_vm14, %v3354_v52, %v3356_v4  ;;  %v852_v16 = vmul.f32 3.8197186, %v820_v41  ;;  %v7990_v54 = vsel %vm469_vm6, 1.0, %v8788_v47  ;;  %v51_v31 = vadd.s32 80, %v8847_v1 }
 0x234   :  { %v3290_v24 = vxor.u32 2147483648, %v3289_v32  ;;  %v10974_v46 = vmul.u32.u64.low %v10883_v23, %v3357_v59  ;;  %v10975_v13 = vmul.u32.u64.high %v10883_v23, %v3357_v59, %v10974_v46  ;;  %vm13297_vm15 = vcmp.lt.s32.totalorder %v10603_v6, 0 }
 0x235   :  { %v10982_v0 = vmul.f32 %v10822_v35, %v852_v16  ;;  %v3365_v26 = vmul.u32 %v10883_v23, %v3349_v7  ;;  %v565_v36 = vadd.f32 %v7990_v54, %v10848_v29  ;;  %vm292_vm10 = vcmp.gt.f32.partialorder %v10895_v37, %v10819_v21 }
 0x236   :  { %v3291_v30 = vsel %vm13297_vm15, %v3290_v24, %v3289_v32  ;;  %v3299_v22 = vadd.s32 3, %v10889_v20  ;;  %v3368_v42 = vadd.s32 1, %v10971_v19  ;;  %v10997_v43 = vcvt.s32.f32 %v10879_v58 }
 0x237   :  { %v3294_v17 = vsel %vm10856_vm2, %v10603_v6, %v3291_v30  ;;  %vm3367_vm8 = vc.u32 %v10975_v13, %v10970_v18  ;;  %v1750_v23 = vand.u32 2147483647, %v10982_v0  ;;  %v1753_v29 = vand.u32 2139095040, %v10982_v0 }
 0x238   :  { %8658 = vcosq.f32 %v3294_v17  ;;  %v3369_v37 = vsel %vm3367_vm8, %v3368_v42, %v10971_v19  ;;  %v7973_v40 = vsel %vm292_vm10, 1.0, %v8788_v47  ;;  %v11004_v39 = vcvt.s32.f32 %v51_v31 }
 0x239   :  { %8660 = vsinq.f32 %v3294_v17  ;;  %v6605_v12 = vand.u32 3, %v10889_v20  ;;  %v3370_v33 = vadd.s32 %v3369_v37, %v3365_v26  ;;  %v1754_v60 = vshrl.u32 %v1753_v29, 23 }
 0x23a   :  { %v597_v58 = vmul.f32 16.0, %v565_v36  ;;  %v164_v27 = vadd.f32 0.5, %v10997_v43  ;;  %v1757_v11 = vand.u32 8388607, %v1750_v23  ;;  %v11012_v45 = vsub.f32 %v228_v56, %v7973_v40 }
 0x23b   :  { %v3371_v44 = vadd.s32 536870912, %v3370_v33  ;;  %v8078_v53 = vadd.s32 4294967169, %v1754_v60  ;;  %v3300_v3 = vand.u32 3, %v3299_v22  ;;  %v149_v52 = vadd.f32 0.5, %v11004_v39 }
 0x23c   :  { %v629_v5 = vsub.f32 %v10614_v61, %v597_v58  ;;  %vm3298_vm2 = vweird.f32 %v10603_v6  ;;  %vm6606_vm3 = vcmp.lt.s32.totalorder %v6605_v12, 2  ;;  %vm6607_vm1 = vcmp.eq.s32.totalorder %v6605_v12, 0 }
 0x23d   :  { %v11017_v20 = vshrl.u32 %v3371_v44, 30  ;;  %v1760_v63 = vadd.s32 1, %v8078_v53  ;;  %vm6610_vm11 = vcmp.eq.s32.totalorder %v6605_v12, 2  ;;  %v11019_v15 = vmul.f32 0.0625, %v164_v27 }
 0x23e   :  { %v52_v50 = vadd.s32 88, %v8847_v1  ;;  %v1758_v56 = vor.u32 8388608, %v1757_v11  ;;  %v420_v61 = vadd.f32 1.0, %v11012_v45  ;;  %vm3301_vm12 = vcmp.lt.s32.totalorder %v3300_v3, 2 }
 0x23f   :  { %v3373_v2 = vshll.u32 %v11017_v20, 30  ;;  %vm1761_vm13 = vcmp.gt.s32.totalorder %v1760_v63, 0  ;;  %v661_v34 = vsub.f32 %v565_v36, %v629_v5  ;;  %v11024_v8 = vmul.f32 0.0625, %v149_v52 }
 0x240   :  { %v1762_v48 = vsel %vm1761_vm13, %v1760_v63, 0  ;;  %vm3302_vm7 = vcmp.eq.s32.totalorder %v3300_v3, 0  ;;  %vm3305_vm9 = vcmp.eq.s32.totalorder %v3300_v3, 2  ;;  %v3366_v41 = vadd.s32 %v10970_v18, %v10975_v13 }
 0x241   :  { %v11026_v57 = vsub.s32 %v3370_v33, %v3373_v2  ;;  %v1764_v14 = vand.u32 31, %v1762_v48  ;;  %v229_v59 = vfloor.f32 %v11019_v15  ;;  %v11030_v19 = vcvt.s32.f32 %v52_v50 }
 0x242   :  { %v8659_v7 = vpop.eup %8658  ;;  %v11033_v46 = vshll.u32 %v1758_v56, 8  ;;  %v11035_v54 = vmul.f32 16.0, %v420_v61  ;;  %v693_v26 = vand.u32 2147483647, %v661_v34  ;;  %v214_v36 = vfloor.f32 %v11024_v8 }
 0x243   :  { %v8661_v32 = vpop.eup %8660  ;;  %v3306_v4 = vxor.u32 2147483648, %v8659_v7  ;;  %v3376_v24 = vsub.s32 0, %v11026_v57  ;;  %v1765_v22 = vsub.s32 32, %v1764_v14  ;;  %v3396_v37 = vsub.s32 4, %v11017_v20 }
 0x244   :  { %v3303_v16 = vxor.u32 2147483648, %v8661_v32  ;;  %v11047_v40 = vmul.f32 16.0, %v229_v59  ;;  %v1767_v27 = vshll.u32 %v8789_v49, %v1764_v14  ;;  %v1763_v12 = vshrl.u32 %v1762_v48, 5 }
 0x245   :  { %v3307_v31 = vsel %vm3305_vm9, %v3306_v4, %v8661_v32  ;;  %v6612_v30 = vsel %vm6610_vm11, %v3306_v4, %v8661_v32  ;;  %v8139_v13 = vmin.u32 %v3376_v24, %v11026_v57  ;;  %v725_v53 = vmul.f32 22.5, %v693_v26 }
 0x246   :  { %v3304_v17 = vsel %vm3302_vm7, %v8659_v7, %v3303_v16  ;;  %v6609_v18 = vsel %vm6607_vm1, %v8659_v7, %v3303_v16  ;;  %v11058_v11 = vmul.f32 16.0, %v214_v36  ;;  %vm3312_vm14 = vcmp.lt.s32.totalorder %v10825_v25, 0 }
 0x247   :  { %v3308_v42 = vsel %vm3301_vm12, %v3304_v17, %v3307_v31  ;;  %v6613_v29 = vsel %vm6606_vm3, %v6609_v18, %v6612_v30  ;;  %v3378_v58 = vclz %v8139_v13  ;;  %v1766_v6 = vshrl.u32 %v8789_v49, %v1765_v22 }
 0x248   :  { %v3309_v33 = vsel %vm3298_vm2, nan, %v3308_v42  ;;  %v6614_v60 = vsel %vm3298_vm2, nan, %v6613_v29  ;;  %v1768_v5 = vshrl.u32 %v8790_v51, %v1765_v22  ;;  %v1770_v52 = vshll.u32 %v8790_v51, %v1764_v14 }
 0x249   :  { %v7564_v44 = vsel %vm917_vm4, %v3309_v33, %v6614_v60  ;;  %v8140_v3 = vadd.s32 4294967294, %v3378_v58  ;;  %vm11065_vm0 = vcmp.gt.f32.partialorder %v693_v26, 8.0  ;;  %v1771_v50 = vshrl.u32 %v8791_v9, %v1765_v22 }
 0x24a   :  { %8424 = vmatprep.mubr.msk.f32.mxu1 %vm7589_vm5, %v7564_v44  ;;  %v1773_v2 = vshll.u32 %v8791_v9, %v1764_v14  ;;  %v1774_v56 = vshrl.u32 %v8792_v10, %v1765_v22  ;;  %v1776_v61 = vshll.u32 %v8792_v10, %v1764_v14  ;;  %v1769_v48 = vor.u32 %v1768_v5, %v1767_v27 }
 0x24b   :  { %vm8141_vm6 = vcmp.lt.s32.totalorder %v8140_v3, 0  ;;  %v1777_v34 = vshrl.u32 %v8793_v55, %v1765_v22  ;;  %v1779_v7 = vshll.u32 %v8793_v55, %v1764_v14  ;;  %vm484_vm15 = vcmp.le.f32.partialorder %v11035_v54, %v10819_v21 }
 0x24c   :  { %v3381_v32 = vsel %vm8141_vm6, 0, %v8140_v3  ;;  %v1772_v4 = vor.u32 %v1771_v50, %v1770_v52  ;;  %v1775_v16 = vor.u32 %v1774_v56, %v1773_v2  ;;  %v1780_v24 = vshrl.u32 %v8794_v62, %v1765_v22 }
 0x24d   :  { %vm11080_vm10 = vcmp.le.f32.partialorder %v3310_v38, 0.7853982  ;;  %v3382_v30 = vsub.s32 32, %v3381_v32  ;;  %v3383_v26 = vshll.u32 %v11026_v57, %v3381_v32  ;;  %v3386_v17 = vsub.s32 4294967266, %v3381_v32 }
 0x24e   :  { %v1778_v18 = vor.u32 %v1777_v34, %v1776_v61  ;;  %v1781_v14 = vor.u32 %v1780_v24, %v1779_v7  ;;  %vm1782_vm8 = vcmp.lt.s32.totalorder %v1763_v12, 1  ;;  %vm1783_vm2 = vcmp.lt.s32.totalorder %v1763_v12, 2 }
 0x24f   :  { %vm1784_vm3 = vcmp.lt.s32.totalorder %v1763_v12, 3  ;;  %v3384_v13 = vshrl.u32 %v3366_v41, %v3382_v30  ;;  %v3387_v42 = vadd.s32 127, %v3386_v17  ;;  %vm1785_vm1 = vcmp.lt.s32.totalorder %v1763_v12, 4 }
 0x250   :  { %v1786_v29 = vsel %vm1782_vm8, %v1766_v6, %v1769_v48  ;;  %v1787_v22 = vsel %vm1785_vm1, %v1775_v16, 2102212464  ;;  %v1790_v33 = vsel %vm1782_vm8, %v1769_v48, %v1772_v4  ;;  %v1791_v60 = vsel %vm1785_vm1, %v1778_v18, 920167782 }
 0x251   :  { %v1794_v38 = vsel %vm1782_vm8, %v1772_v4, %v1775_v16  ;;  %v3385_v58 = vor.u32 %v3384_v13, %v3383_v26  ;;  %v3388_v27 = vshll.u32 %v3387_v42, 23  ;;  %v1788_v44 = vsel %vm1784_vm3, %v1772_v4, %v1787_v22 }
 0x252   :  { %v1792_v57 = vsel %vm1784_vm3, %v1775_v16, %v1791_v60  ;;  %v3397_v3 = vsel %vm3312_vm14, %v3396_v37, %v11017_v20  ;;  %v1795_v41 = vsel %vm1785_vm1, %v1781_v14, 1326507024  ;;  %v8022_v52 = vadd.f32 -360.0, %v725_v53 }
 0x253   :  { %v1793_v5 = vsel %vm1783_vm2, %v1790_v33, %v1792_v57  ;;  %v3389_v50 = vor.u32 4788187, %v3388_v27  ;;  %v3392_v6 = vcvt.s32.f32 %v3385_v58  ;;  %v1789_v2 = vsel %vm1783_vm2, %v1786_v29, %v1788_v44 }
 0x254   :  { %v1796_v56 = vsel %vm1784_vm3, %v1778_v18, %v1795_v41  ;;  %v11095_v48 = vmul.u32.u64.low %v11033_v46, %v1793_v5  ;;  %v11096_v34 = vmul.u32.u64.high %v11033_v46, %v1793_v5, %v11095_v48  ;;  %v821_v20 = vsel %vm11065_vm0, %v8022_v52, %v725_v53 }
 0x255   :  { %v1797_v61 = vsel %vm1783_vm2, %v1794_v38, %v1796_v56  ;;  %v3390_v37 = vand.u32 2147483647, %v3389_v50  ;;  %v853_v4 = vmul.f32 3.8197186, %v821_v20  ;;  %v3399_v16 = vsel %vm11080_vm10, 0, %v3397_v3 }
 0x256   :  { %v11102_v7 = vmul.u32.u64.low %v11033_v46, %v1797_v61  ;;  %v11103_v32 = vmul.u32.u64.high %v11033_v46, %v1797_v61, %v11102_v7  ;;  %v8005_v12 = vsel %vm484_vm15, 1.0, %v8788_v47  ;;  %vm293_vm11 = vcmp.gt.f32.partialorder %v11047_v40, %v10997_v43 }
 0x257   :  { %v3393_v24 = vmul.f32 %v3392_v6, %v3390_v37  ;;  %v1805_v53 = vmul.u32 %v11033_v46, %v1789_v2  ;;  %v11115_v63 = vmul.f32 %v10822_v35, %v853_v4  ;;  %v7974_v30 = vsel %vm293_vm11, 1.0, %v8788_v47 }
 0x258   :  { %v1808_v26 = vadd.s32 1, %v11096_v34  ;;  %v580_v17 = vadd.f32 %v8005_v12, %v11012_v45  ;;  %v389_v18 = vsub.f32 %v229_v59, %v7974_v30  ;;  %vm278_vm13 = vcmp.gt.f32.partialorder %v11058_v11, %v11004_v39 }
 0x259   :  { %v3394_v54 = vxor.u32 2147483648, %v3393_v24  ;;  %vm1807_vm12 = vc.u32 %v11103_v32, %v11095_v48  ;;  %v1854_v46 = vand.u32 2147483647, %v11115_v63  ;;  %v150_v40 = vadd.f32 0.5, %v11030_v19 }
 0x25a   :  { %v3403_v14 = vadd.s32 3, %v3399_v16  ;;  %v1809_v13 = vsel %vm1807_vm12, %v1808_v26, %v11096_v34  ;;  %v1857_v42 = vand.u32 2139095040, %v11115_v63  ;;  %v11132_v15 = vand.u32 3, %v3399_v16 }
 0x25b   :  { %v3395_v45 = vsel %vm3312_vm14, %v3394_v54, %v3393_v24  ;;  %v1810_v59 = vadd.s32 %v1809_v13, %v1805_v53  ;;  %v7959_v11 = vsel %vm278_vm13, 1.0, %v8788_v47  ;;  %v612_v33 = vmul.f32 16.0, %v580_v17 }
 0x25c   :  { %v3398_v29 = vsel %vm11080_vm10, %v10825_v25, %v3395_v45  ;;  %v1858_v22 = vshrl.u32 %v1857_v42, 23  ;;  %v421_v60 = vadd.f32 1.0, %v389_v18  ;;  %v1861_v58 = vand.u32 8388607, %v1854_v46 }
 0x25d   :  { %8662 = vcosq.f32 %v3398_v29  ;;  %v1811_v38 = vadd.s32 536870912, %v1810_v59  ;;  %v11140_v27 = vmul.f32 0.0625, %v150_v40  ;;  %v644_v57 = vsub.f32 %v10819_v21, %v612_v33 }
 0x25e   :  { %8664 = vsinq.f32 %v3398_v29  ;;  %v8082_v44 = vadd.s32 4294967169, %v1858_v22  ;;  %v453_v3 = vmul.f32 16.0, %v421_v60  ;;  %v3404_v5 = vand.u32 3, %v3403_v14 }
 0x25f   :  { %v11143_v41 = vshrl.u32 %v1811_v38, 30  ;;  %v11147_v31 = vsub.f32 %v214_v36, %v7959_v11  ;;  %v11149_v50 = vsub.f32 %v580_v17, %v644_v57  ;;  %vm6709_vm7 = vcmp.lt.s32.totalorder %v11132_v15, 2 }
 0x260   :  { %v1864_v52 = vadd.s32 1, %v8082_v44  ;;  %vm485_vm9 = vcmp.le.f32.partialorder %v453_v3, %v10997_v43  ;;  %vm3402_vm14 = vweird.f32 %v10825_v25  ;;  %vm6710_vm0 = vcmp.eq.s32.totalorder %v11132_v15, 0 }
 0x261   :  { %v1813_v6 = vshll.u32 %v11143_v41, 30  ;;  %v1862_v21 = vor.u32 8388608, %v1861_v58  ;;  %v215_v2 = vfloor.f32 %v11140_v27  ;;  %vm3405_vm15 = vcmp.lt.s32.totalorder %v3404_v5, 2 }
 0x262   :  { %vm1865_vm6 = vcmp.gt.s32.totalorder %v1864_v52, 0  ;;  %v406_v56 = vadd.f32 1.0, %v11147_v31  ;;  %vm3406_vm10 = vcmp.eq.s32.totalorder %v3404_v5, 0  ;;  %v708_v34 = vand.u32 2147483647, %v11149_v50 }
 0x263   :  { %v11157_v8 = vsub.s32 %v1810_v59, %v1813_v6  ;;  %v1866_v36 = vsel %vm1865_vm6, %v1864_v52, 0  ;;  %v8006_v20 = vsel %vm485_vm9, 1.0, %v8788_v47  ;;  %vm3409_vm8 = vcmp.eq.s32.totalorder %v3404_v5, 2 }
 0x264   :  { %v1868_v61 = vand.u32 31, %v1866_v36  ;;  %vm6713_vm2 = vcmp.eq.s32.totalorder %v11132_v15, 2  ;;  %v1806_v37 = vadd.s32 %v11095_v48, %v11103_v32  ;;  %v11167_v12 = vshll.u32 %v1862_v21, 8 }
 0x265   :  { %v1816_v7 = vsub.s32 0, %v11157_v8  ;;  %v11171_v24 = vmul.f32 16.0, %v215_v2  ;;  %v1836_v26 = vsub.s32 4, %v11143_v41  ;;  %v11175_v17 = vadd.f32 %v8006_v20, %v389_v18 }
 0x266   :  { %v1869_v4 = vsub.s32 32, %v1868_v61  ;;  %v1871_v16 = vshll.u32 %v8789_v49, %v1868_v61  ;;  %v11177_v54 = vmul.f32 16.0, %v406_v56  ;;  %v1867_v40 = vshrl.u32 %v1866_v36, 5 }
 0x267   :  { %v8663_v53 = vpop.eup %8662  ;;  %v8079_v30 = vmin.u32 %v1816_v7, %v11157_v8  ;;  %v11182_v13 = vmul.f32 22.5, %v708_v34  ;;  %v1874_v59 = vshll.u32 %v8790_v51, %v1868_v61  ;;  %v1877_v11 = vshll.u32 %v8791_v9, %v1868_v61 }
 0x268   :  { %v8665_v48 = vpop.eup %8664  ;;  %v3410_v32 = vxor.u32 2147483648, %v8663_v53  ;;  %v1872_v14 = vshrl.u32 %v8790_v51, %v1869_v4  ;;  %v1870_v22 = vshrl.u32 %v8789_v49, %v1869_v4  ;;  %v1875_v44 = vshrl.u32 %v8791_v9, %v1869_v4 }
 0x269   :  { %v3407_v42 = vxor.u32 2147483648, %v8665_v48  ;;  %v1818_v45 = vclz %v8079_v30  ;;  %v1878_v52 = vshrl.u32 %v8792_v10, %v1869_v4  ;;  %v1880_v6 = vshll.u32 %v8792_v10, %v1868_v61 }
 0x26a   :  { %v3411_v18 = vsel %vm3409_vm8, %v3410_v32, %v8665_v48  ;;  %v6715_v29 = vsel %vm6713_vm2, %v3410_v32, %v8665_v48  ;;  %v1873_v33 = vor.u32 %v1872_v14, %v1871_v16  ;;  %v1876_v56 = vor.u32 %v1875_v44, %v1874_v59 }
 0x26b   :  { %v3408_v60 = vsel %vm3406_vm10, %v8663_v53, %v3407_v42  ;;  %v6712_v38 = vsel %vm6710_vm0, %v8663_v53, %v3407_v42  ;;  %v8080_v58 = vadd.s32 4294967294, %v1818_v45  ;;  %vm470_vm1 = vcmp.le.f32.partialorder %v11177_v54, %v11004_v39 }
 0x26c   :  { %v3412_v57 = vsel %vm3405_vm15, %v3408_v60, %v3411_v18  ;;  %v6716_v3 = vsel %vm6709_vm7, %v6712_v38, %v6715_v29  ;;  %v1879_v20 = vor.u32 %v1878_v52, %v1877_v11  ;;  %v1881_v7 = vshrl.u32 %v8793_v55, %v1869_v4 }
 0x26d   :  { %v3413_v21 = vsel %vm3402_vm14, nan, %v3412_v57  ;;  %v6717_v36 = vsel %vm3402_vm14, nan, %v6716_v3  ;;  %vm8081_vm3 = vcmp.lt.s32.totalorder %v8080_v58, 0  ;;  %vm1752_vm11 = vcmp.lt.s32.totalorder %v10982_v0, 0 }
 0x26e   :  { %v7565_v5 = vsel %vm917_vm4, %v3413_v21, %v6717_v36  ;;  %v1821_v15 = vsel %vm8081_vm3, 0, %v8080_v58  ;;  %v1883_v30 = vshll.u32 %v8793_v55, %v1868_v61  ;;  %v1882_v48 = vor.u32 %v1881_v7, %v1880_v6 }
 0x26f   :  { %8425 = vmatmul.mubr.msk.f32.gmra.mrb[6].mxu1 %vm7589_vm5, %v7565_v5  ;;  %v1822_v16 = vsub.s32 32, %v1821_v15  ;;  %v1823_v25 = vshll.u32 %v11157_v8, %v1821_v15  ;;  %v1826_v53 = vsub.s32 4294967266, %v1821_v15  ;;  %v1884_v32 = vshrl.u32 %v8794_v62, %v1869_v4 }
 0x270   :  { %vm1886_vm13 = vcmp.lt.s32.totalorder %v1867_v40, 1  ;;  %vm1887_vm12 = vcmp.lt.s32.totalorder %v1867_v40, 2  ;;  %vm1888_vm7 = vcmp.lt.s32.totalorder %v1867_v40, 3  ;;  %vm1889_vm9 = vcmp.lt.s32.totalorder %v1867_v40, 4 }
 0x271   :  { %v1824_v14 = vshrl.u32 %v1806_v37, %v1822_v16  ;;  %v1827_v42 = vadd.s32 127, %v1826_v53  ;;  %v1885_v45 = vor.u32 %v1884_v32, %v1883_v30  ;;  %v1890_v59 = vsel %vm1886_vm13, %v1870_v22, %v1873_v33 }
 0x272   :  { %v1891_v11 = vsel %vm1889_vm9, %v1879_v20, 2102212464  ;;  %v1894_v18 = vsel %vm1886_vm13, %v1873_v33, %v1876_v56  ;;  %v1895_v38 = vsel %vm1889_vm9, %v1882_v48, 920167782  ;;  %v1898_v58 = vsel %vm1886_vm13, %v1876_v56, %v1879_v20 }
 0x273   :  { %v1825_v29 = vor.u32 %v1824_v14, %v1823_v25  ;;  %v1828_v60 = vshll.u32 %v1827_v42, 23  ;;  %v1892_v8 = vsel %vm1888_vm7, %v1876_v56, %v1891_v11  ;;  %v1896_v61 = vsel %vm1888_vm7, %v1879_v20, %v1895_v38 }
 0x274   :  { %v1899_v44 = vsel %vm1889_vm9, %v1885_v45, 1326507024  ;;  %vm11217_vm14 = vcmp.gt.f32.partialorder %v708_v34, 8.0  ;;  %v1897_v22 = vsel %vm1887_vm12, %v1894_v18, %v1896_v61  ;;  %v1893_v3 = vsel %vm1887_vm12, %v1890_v59, %v1892_v8 }
 0x275   :  { %v1829_v4 = vor.u32 4788187, %v1828_v60  ;;  %v1832_v57 = vcvt.s32.f32 %v1825_v29  ;;  %v1900_v33 = vsel %vm1888_vm7, %v1882_v48, %v1899_v44  ;;  %v8037_v56 = vadd.f32 -360.0, %v11182_v13 }
 0x276   :  { %v1901_v52 = vsel %vm1887_vm12, %v1898_v58, %v1900_v33  ;;  %v11226_v6 = vmul.u32.u64.low %v11167_v12, %v1897_v22  ;;  %v11227_v21 = vmul.u32.u64.high %v11167_v12, %v1897_v22, %v11226_v6  ;;  %v1837_v5 = vsel %vm1752_vm11, %v1836_v26, %v11143_v41 }
 0x277   :  { %v1830_v50 = vand.u32 2147483647, %v1829_v4  ;;  %v11231_v34 = vmul.u32.u64.low %v11167_v12, %v1901_v52  ;;  %v11232_v36 = vmul.u32.u64.high %v11167_v12, %v1901_v52, %v11231_v34  ;;  %v613_v40 = vmul.f32 16.0, %v11175_v17 }
 0x278   :  { %v7991_v15 = vsel %vm470_vm1, 1.0, %v8788_v47  ;;  %v1909_v7 = vmul.u32 %v11167_v12, %v1893_v3  ;;  %v836_v16 = vsel %vm11217_vm14, %v8037_v56, %v11182_v13  ;;  %v1912_v53 = vadd.s32 1, %v11227_v21 }
 0x279   :  { %v1833_v20 = vmul.f32 %v1832_v57, %v1830_v50  ;;  %v566_v25 = vadd.f32 %v7991_v15, %v11147_v31  ;;  %v868_v30 = vmul.f32 3.8197186, %v836_v16  ;;  %v645_v41 = vsub.f32 %v10997_v43, %v613_v40 }
 0x27a   :  { %vm279_vm0 = vcmp.gt.f32.partialorder %v11171_v24, %v11030_v19  ;;  %vm1751_vm6 = vcmp.le.f32.partialorder %v1750_v23, 0.7853982  ;;  %vm1911_vm15 = vc.u32 %v11232_v36, %v11226_v6  ;;  %v67_v60 = vadd.s32 208, %v8847_v1 }
 0x27b   :  { %v1834_v26 = vxor.u32 2147483648, %v1833_v20  ;;  %v598_v12 = vmul.f32 16.0, %v566_v25  ;;  %v1839_v54 = vsel %vm1751_vm6, 0, %v1837_v5  ;;  %v1913_v13 = vsel %vm1911_vm15, %v1912_v53, %v11227_v21 }
 0x27c   :  { %v11260_v31 = vmul.f32 %v10822_v35, %v868_v30  ;;  %v677_v48 = vsub.f32 %v11175_v17, %v645_v41  ;;  %v1914_v24 = vadd.s32 %v1913_v13, %v1909_v7  ;;  %v7960_v32 = vsel %vm279_vm0, 1.0, %v8788_v47 }
 0x27d   :  { %v1835_v43 = vsel %vm1752_vm11, %v1834_v26, %v1833_v20  ;;  %v630_v45 = vsub.f32 %v11004_v39, %v598_v12  ;;  %v1843_v59 = vadd.s32 3, %v1839_v54  ;;  %v5163_v17 = vand.u32 3, %v1839_v54 }
 0x27e   :  { %v1838_v23 = vsel %vm1751_vm6, %v10982_v0, %v1835_v43  ;;  %v3414_v14 = vand.u32 2147483647, %v11260_v31  ;;  %v3417_v42 = vand.u32 2139095040, %v11260_v31  ;;  %v1915_v11 = vadd.s32 536870912, %v1914_v24 }
 0x27f   :  { %8666 = vcosq.f32 %v1838_v23  ;;  %v709_v18 = vand.u32 2147483647, %v677_v48  ;;  %v11275_v58 = vsub.f32 %v215_v2, %v7960_v32  ;;  %v11281_v37 = vsub.f32 %v566_v25, %v630_v45 }
 0x280   :  { %8668 = vsinq.f32 %v1838_v23  ;;  %v3418_v29 = vshrl.u32 %v3417_v42, 23  ;;  %v1916_v8 = vshrl.u32 %v1915_v11, 30  ;;  %v3421_v38 = vand.u32 8388607, %v3414_v14 }
 0x281   :  { %v741_v61 = vmul.f32 22.5, %v709_v18  ;;  %vm11277_vm10 = vcmp.gt.f32.partialorder %v709_v18, 8.0  ;;  %v1844_v4 = vand.u32 3, %v1843_v59  ;;  %vm1842_vm8 = vweird.f32 %v10982_v0 }
 0x282   :  { %v8142_v44 = vadd.s32 4294967169, %v3418_v29  ;;  %v1917_v57 = vshll.u32 %v1916_v8, 30  ;;  %vm5164_vm2 = vcmp.lt.s32.totalorder %v5163_v17, 2  ;;  %vm1856_vm3 = vcmp.lt.s32.totalorder %v11115_v63, 0 }
 0x283   :  { %v8038_v22 = vadd.f32 -360.0, %v741_v61  ;;  %v11285_v3 = vcvt.s32.f32 %v67_v60  ;;  %v3422_v2 = vor.u32 8388608, %v3421_v38  ;;  %v407_v21 = vadd.f32 1.0, %v11275_v58 }
 0x284   :  { %v3424_v33 = vadd.s32 1, %v8142_v44  ;;  %v11287_v27 = vsub.s32 %v1914_v24, %v1917_v57  ;;  %vm5165_vm1 = vcmp.eq.s32.totalorder %v5163_v17, 0  ;;  %v1940_v50 = vsub.s32 4, %v1916_v8 }
 0x285   :  { %v837_v52 = vsel %vm11277_vm10, %v8038_v22, %v741_v61  ;;  %v694_v34 = vand.u32 2147483647, %v11281_v37  ;;  %vm1845_vm13 = vcmp.lt.s32.totalorder %v1844_v4, 2  ;;  %vm5168_vm12 = vcmp.eq.s32.totalorder %v5163_v17, 2 }
 0x286   :  { %vm3425_vm11 = vcmp.gt.s32.totalorder %v3424_v33, 0  ;;  %v1920_v56 = vsub.s32 0, %v11287_v27  ;;  %vm1846_vm7 = vcmp.eq.s32.totalorder %v1844_v4, 0  ;;  %vm1849_vm9 = vcmp.eq.s32.totalorder %v1844_v4, 2 }
 0x287   :  { %v3426_v5 = vsel %vm3425_vm11, %v3424_v33, 0  ;;  %v869_v15 = vmul.f32 3.8197186, %v837_v52  ;;  %v1910_v7 = vadd.s32 %v11226_v6, %v11232_v36  ;;  %v11297_v25 = vshll.u32 %v3422_v2, 8 }
 0x288   :  { %v3428_v40 = vand.u32 31, %v3426_v5  ;;  %v8083_v16 = vmin.u32 %v1920_v56, %v11287_v27  ;;  %v11299_v53 = vmul.f32 16.0, %v407_v21  ;;  %v11303_v26 = vsel %vm1856_vm3, %v1940_v50, %v1916_v8 }
 0x289   :  { %v8667_v20 = vpop.eup %8666  ;;  %v11305_v54 = vmul.f32 22.5, %v694_v34  ;;  %v3427_v43 = vshrl.u32 %v3426_v5, 5  ;;  %v11312_v23 = vmul.f32 %v10822_v35, %v869_v15  ;;  %vm11331_vm0 = vcmp.gt.f32.partialorder %v694_v34, 8.0 }
 0x28a   :  { %v8669_v30 = vpop.eup %8668  ;;  %v1850_v41 = vxor.u32 2147483648, %v8667_v20  ;;  %v3429_v12 = vsub.s32 32, %v3428_v40  ;;  %v1922_v48 = vclz %v8083_v16  ;;  %v3431_v6 = vshll.u32 %v8789_v49, %v3428_v40 }
 0x28b   :  { %v1847_v13 = vxor.u32 2147483648, %v8669_v30  ;;  %v3434_v60 = vshll.u32 %v8790_v51, %v3428_v40  ;;  %v3437_v17 = vshll.u32 %v8791_v9, %v3428_v40  ;;  %v3440_v2 = vshll.u32 %v8792_v10, %v3428_v40 }
 0x28c   :  { %v1851_v36 = vsel %vm1849_vm9, %v1850_v41, %v8669_v30  ;;  %v5170_v24 = vsel %vm5168_vm12, %v1850_v41, %v8669_v30  ;;  %v3430_v32 = vshrl.u32 %v8789_v49, %v3429_v12  ;;  %v8084_v59 = vadd.s32 4294967294, %v1922_v48 }
 0x28d   :  { %v1848_v42 = vsel %vm1846_vm7, %v8667_v20, %v1847_v13  ;;  %v5167_v45 = vsel %vm5165_vm1, %v8667_v20, %v1847_v13  ;;  %v3432_v11 = vshrl.u32 %v8790_v51, %v3429_v12  ;;  %v3435_v8 = vshrl.u32 %v8791_v9, %v3429_v12 }
 0x28e   :  { %v1852_v18 = vsel %vm1845_vm13, %v1848_v42, %v1851_v36  ;;  %v5171_v29 = vsel %vm5164_vm2, %v5167_v45, %v5170_v24  ;;  %vm8085_vm14 = vcmp.lt.s32.totalorder %v8084_v59, 0  ;;  %v3438_v33 = vshrl.u32 %v8792_v10, %v3429_v12 }
 0x28f   :  { %v1853_v38 = vsel %vm1842_vm8, nan, %v1852_v18  ;;  %v5172_v35 = vsel %vm1842_vm8, nan, %v5171_v29  ;;  %v3433_v61 = vor.u32 %v3432_v11, %v3431_v6  ;;  %v1925_v39 = vsel %vm8085_vm14, 0, %v8084_v59 }
 0x290   :  { %v7550_v44 = vsel %vm917_vm4, %v1853_v38, %v5172_v35  ;;  %v3436_v37 = vor.u32 %v3435_v8, %v3434_v60  ;;  %v1926_v4 = vsub.s32 32, %v1925_v39  ;;  %v1927_v57 = vshll.u32 %v11287_v27, %v1925_v39 }
 0x291   :  { %8403 = vmatprep.mubr.msk.f32.mxu0 %vm7589_vm5, %v7550_v44  ;;  %v1930_v22 = vsub.s32 4294967266, %v1925_v39  ;;  %v3441_v52 = vshrl.u32 %v8793_v55, %v3429_v12  ;;  %v3443_v21 = vshll.u32 %v8793_v55, %v3428_v40  ;;  %v3444_v50 = vshrl.u32 %v8794_v62, %v3429_v12 }
 0x292   :  { %v1928_v56 = vshrl.u32 %v1910_v7, %v1926_v4  ;;  %v3439_v15 = vor.u32 %v3438_v33, %v3437_v17  ;;  %vm3446_vm6 = vcmp.lt.s32.totalorder %v3427_v43, 1  ;;  %vm3447_vm15 = vcmp.lt.s32.totalorder %v3427_v43, 2 }
 0x293   :  { %v1931_v5 = vadd.s32 127, %v1930_v22  ;;  %v3442_v27 = vor.u32 %v3441_v52, %v3440_v2  ;;  %v3445_v20 = vor.u32 %v3444_v50, %v3443_v21  ;;  %vm3448_vm10 = vcmp.lt.s32.totalorder %v3427_v43, 3  ;;  %v11385_v50 = vld [vmem:[#allocation2] ss:$0 sm:$0xff] }
 0x294   :  { %v1929_v34 = vor.u32 %v1928_v56, %v1927_v57  ;;  %vm3449_vm8 = vcmp.lt.s32.totalorder %v3427_v43, 4  ;;  %v3450_v30 = vsel %vm3446_vm6, %v3430_v32, %v3433_v61  ;;  %v3454_v13 = vsel %vm3446_vm6, %v3433_v61, %v3436_v37 }
 0x295   :  { %v1932_v16 = vshll.u32 %v1931_v5, 23  ;;  %v3451_v41 = vsel %vm3449_vm8, %v3439_v15, 2102212464  ;;  %v3455_v48 = vsel %vm3449_vm8, %v3442_v27, 920167782  ;;  %v3458_v6 = vsel %vm3446_vm6, %v3436_v37, %v3439_v15 }
 0x296   :  { %v1936_v40 = vcvt.s32.f32 %v1929_v34  ;;  %v3452_v12 = vsel %vm3448_vm10, %v3436_v37, %v3451_v41  ;;  %v3456_v7 = vsel %vm3448_vm10, %v3439_v15, %v3455_v48  ;;  %v3459_v45 = vsel %vm3449_vm8, %v3445_v20, 1326507024 }
 0x297   :  { %v1933_v36 = vor.u32 4788187, %v1932_v16  ;;  %v3453_v24 = vsel %vm3447_vm15, %v3450_v30, %v3452_v12  ;;  %v3457_v42 = vsel %vm3447_vm15, %v3454_v13, %v3456_v7  ;;  %v8023_v59 = vadd.f32 -360.0, %v11305_v54 }
 0x298   :  { %v3460_v32 = vsel %vm3448_vm10, %v3442_v27, %v3459_v45  ;;  %v11346_v18 = vmul.u32.u64.low %v11297_v25, %v3457_v42  ;;  %v11347_v29 = vmul.u32.u64.high %v11297_v25, %v3457_v42, %v11346_v18  ;;  %vm11351_vm2 = vcmp.le.f32.partialorder %v1854_v46, 0.7853982 }
 0x299   :  { %v1934_v11 = vand.u32 2147483647, %v1933_v36  ;;  %v3461_v8 = vsel %vm3447_vm15, %v3458_v6, %v3460_v32  ;;  %vm471_vm1 = vcmp.le.f32.partialorder %v11299_v53, %v11030_v19  ;;  %v165_v38 = vadd.f32 0.5, %v11285_v3 }
 0x29a   :  { %v11360_v61 = vmul.u32.u64.low %v11297_v25, %v3461_v8  ;;  %v11361_v44 = vmul.u32.u64.high %v11297_v25, %v3461_v8, %v11360_v61  ;;  %v3521_v39 = vand.u32 2139095040, %v11312_v23  ;;  %v1943_v46 = vsel %vm11351_vm2, 0, %v11303_v26 }
 0x29b   :  { %v1937_v35 = vmul.f32 %v1936_v40, %v1934_v11  ;;  %v3469_v37 = vmul.u32 %v11297_v25, %v3453_v24  ;;  %v3518_v43 = vand.u32 2147483647, %v11312_v23  ;;  %v822_v53 = vsel %vm11331_vm0, %v8023_v59, %v11305_v54 }
 0x29c   :  { %v3472_v4 = vadd.s32 1, %v11347_v29  ;;  %v3522_v57 = vshrl.u32 %v3521_v39, 23  ;;  %v854_v22 = vmul.f32 3.8197186, %v822_v53  ;;  %v7992_v33 = vsel %vm471_vm1, 1.0, %v8788_v47 }
 0x29d   :  { %v1938_v17 = vxor.u32 2147483648, %v1937_v35  ;;  %v11374_v2 = vmul.f32 0.0625, %v165_v38  ;;  %v1947_v52 = vadd.s32 3, %v1943_v46  ;;  %vm3471_vm11 = vc.u32 %v11361_v44, %v11346_v18 }
 0x29e   :  { %v8146_v25 = vadd.s32 4294967169, %v3522_v57  ;;  %v3473_v0 = vsel %vm3471_vm11, %v3472_v4, %v11347_v29  ;;  %v3525_v21 = vand.u32 8388607, %v3518_v43  ;;  %v11388_v56 = vmul.f32 %v11385_v50, %v854_v22 }
 0x29f   :  { %v1939_v26 = vsel %vm1856_vm3, %v1938_v17, %v1937_v35  ;;  %v3474_v5 = vadd.s32 %v3473_v0, %v3469_v37  ;;  %v11391_v27 = vadd.f32 %v7992_v33, %v11275_v58  ;;  %v5266_v20 = vand.u32 3, %v1943_v46 }
 0x2a0   :  { %v1942_v54 = vsel %vm11351_vm2, %v11115_v63, %v1939_v26  ;;  %v3528_v15 = vadd.s32 1, %v8146_v25  ;;  %v1961_v34 = vand.u32 2139095040, %v11388_v56  ;;  %v230_v16 = vfloor.f32 %v11374_v2 }
 0x2a1   :  { %8670 = vcosq.f32 %v1942_v54  ;;  %v3475_v30 = vadd.s32 536870912, %v3474_v5  ;;  %v1948_v41 = vand.u32 3, %v1947_v52  ;;  %v3526_v13 = vor.u32 8388608, %v3525_v21 }
 0x2a2   :  { %8672 = vsinq.f32 %v1942_v54  ;;  %vm3529_vm3 = vcmp.gt.s32.totalorder %v3528_v15, 0  ;;  %v1958_v40 = vand.u32 2147483647, %v11388_v56  ;;  %v11399_v12 = vmul.f32 16.0, %v11391_v27 }
 0x2a3   :  { %v3530_v48 = vsel %vm3529_vm3, %v3528_v15, 0  ;;  %v11395_v6 = vshrl.u32 %v3475_v30, 30  ;;  %vm1946_vm13 = vweird.f32 %v11115_v63  ;;  %vm5267_vm12 = vcmp.lt.s32.totalorder %v5266_v20, 2 }
 0x2a4   :  { %v3532_v36 = vand.u32 31, %v3530_v48  ;;  %v1962_v58 = vshrl.u32 %v1961_v34, 23  ;;  %v11404_v7 = vmul.f32 16.0, %v230_v16  ;;  %vm5268_vm7 = vcmp.eq.s32.totalorder %v5266_v20, 0 }
 0x2a5   :  { %vm5271_vm9 = vcmp.eq.s32.totalorder %v5266_v20, 2  ;;  %v3477_v24 = vshll.u32 %v11395_v6, 30  ;;  %vm1949_vm14 = vcmp.lt.s32.totalorder %v1948_v41, 2  ;;  %vm1950_vm0 = vcmp.eq.s32.totalorder %v1948_v41, 0 }
 0x2a6   :  { %v3533_v42 = vsub.s32 32, %v3532_v36  ;;  %vm1953_vm6 = vcmp.eq.s32.totalorder %v1948_v41, 2  ;;  %v11408_v45 = vadd.s32 %v11346_v18, %v11361_v44  ;;  %v11412_v11 = vshll.u32 %v3526_v13, 8 }
 0x2a7   :  { %v11410_v59 = vsub.s32 %v3474_v5, %v3477_v24  ;;  %v11416_v32 = vand.u32 8388607, %v1958_v40  ;;  %v631_v29 = vsub.f32 %v11030_v19, %v11399_v12  ;;  %v11420_v60 = vshrl.u32 %v3530_v48, 5 }
 0x2a8   :  { %v3535_v8 = vshll.u32 %v8789_v49, %v3532_v36  ;;  %v3536_v38 = vshrl.u32 %v8790_v51, %v3533_v42  ;;  %v11424_v35 = vadd.s32 4294967169, %v1962_v58  ;;  %v3538_v44 = vshll.u32 %v8790_v51, %v3532_v36 }
 0x2a9   :  { %v3480_v61 = vsub.s32 0, %v11410_v59  ;;  %v3539_v39 = vshrl.u32 %v8791_v9, %v3533_v42  ;;  %v3541_v46 = vshll.u32 %v8791_v9, %v3532_v36  ;;  %v3542_v17 = vshrl.u32 %v8792_v10, %v3533_v42 }
 0x2aa   :  { %v3544_v4 = vshll.u32 %v8792_v10, %v3532_v36  ;;  %v3545_v57 = vshrl.u32 %v8793_v55, %v3533_v42  ;;  %vm3416_vm15 = vcmp.lt.s32.totalorder %v11260_v31, 0  ;;  %v3500_v26 = vsub.s32 4, %v11395_v6 }
 0x2ab   :  { %v8671_v18 = vpop.eup %8670  ;;  %v8143_v33 = vmin.u32 %v3480_v61, %v11410_v59  ;;  %v3547_v52 = vshll.u32 %v8793_v55, %v3532_v36  ;;  %v3534_v0 = vshrl.u32 %v8789_v49, %v3533_v42  ;;  %v3537_v21 = vor.u32 %v3536_v38, %v3535_v8 }
 0x2ac   :  { %v8673_v37 = vpop.eup %8672  ;;  %v1954_v53 = vxor.u32 2147483648, %v8671_v18  ;;  %v3540_v30 = vor.u32 %v3539_v39, %v3538_v44  ;;  %vm294_vm10 = vcmp.gt.f32.partialorder %v11404_v7, %v11285_v3  ;;  %v3543_v36 = vor.u32 %v3542_v17, %v3541_v46 }
 0x2ad   :  { %v1951_v22 = vxor.u32 2147483648, %v8673_v37  ;;  %v3482_v34 = vclz %v8143_v33  ;;  %v3546_v58 = vor.u32 %v3545_v57, %v3544_v4  ;;  %vm11455_vm8 = vcmp.le.f32.partialorder %v3414_v14, 0.7853982 }
 0x2ae   :  { %v1955_v25 = vsel %vm1953_vm6, %v1954_v53, %v8673_v37  ;;  %v5273_v54 = vsel %vm5271_vm9, %v1954_v53, %v8673_v37  ;;  %vm3550_vm2 = vcmp.lt.s32.totalorder %v11420_v60, 1  ;;  %vm3551_vm1 = vcmp.lt.s32.totalorder %v11420_v60, 2 }
 0x2af   :  { %v1952_v5 = vsel %vm1950_vm0, %v8671_v18, %v1951_v22  ;;  %v5270_v15 = vsel %vm5268_vm7, %v8671_v18, %v1951_v22  ;;  %v8144_v38 = vadd.s32 4294967294, %v3482_v34  ;;  %v3548_v18 = vshrl.u32 %v8794_v62, %v3533_v42 }
 0x2b0   :  { %v1956_v13 = vsel %vm1949_vm14, %v1952_v5, %v1955_v25  ;;  %v5274_v48 = vsel %vm5267_vm12, %v5270_v15, %v5273_v54  ;;  %vm3552_vm11 = vcmp.lt.s32.totalorder %v11420_v60, 3  ;;  %v3554_v20 = vsel %vm3550_vm2, %v3534_v0, %v3537_v21 }
 0x2b1   :  { %v1957_v24 = vsel %vm1946_vm13, nan, %v1956_v13  ;;  %v5275_v8 = vsel %vm1946_vm13, nan, %v5274_v48  ;;  %vm8145_vm3 = vcmp.lt.s32.totalorder %v8144_v38, 0  ;;  %v3549_v63 = vor.u32 %v3548_v18, %v3547_v52 }
 0x2b2   :  { %v7551_v61 = vsel %vm917_vm4, %v1957_v24, %v5275_v8  ;;  %vm3553_vm13 = vcmp.lt.s32.totalorder %v11420_v60, 4  ;;  %v3485_v42 = vsel %vm8145_vm3, 0, %v8144_v38  ;;  %v3558_v44 = vsel %vm3550_vm2, %v3537_v21, %v3540_v30 }
 0x2b3   :  { %8404 = vmatmul.mubr.msk.f32.gmra.mrb[8].mxu0 %vm7589_vm5, %v7551_v61  ;;  %v3555_v14 = vsel %vm3553_vm13, %v3543_v36, 2102212464  ;;  %v3559_v39 = vsel %vm3553_vm13, %v3546_v58, 920167782  ;;  %v3486_v46 = vsub.s32 32, %v3485_v42  ;;  %v3487_v37 = vshll.u32 %v11410_v59, %v3485_v42 }
 0x2b4   :  { %v3490_v53 = vsub.s32 4294967266, %v3485_v42  ;;  %v3556_v17 = vsel %vm3552_vm11, %v3540_v30, %v3555_v14  ;;  %v3501_v4 = vsel %vm3416_vm15, %v3500_v26, %v11395_v6  ;;  %v3560_v57 = vsel %vm3552_vm11, %v3543_v36, %v3559_v39 }
 0x2b5   :  { %v3562_v22 = vsel %vm3550_vm2, %v3540_v30, %v3543_v36  ;;  %v3563_v33 = vsel %vm3553_vm13, %v3549_v63, 1326507024  ;;  %v3488_v52 = vshrl.u32 %v11408_v45, %v3486_v46  ;;  %v3561_v59 = vsel %vm3551_vm1, %v3558_v44, %v3560_v57 }
 0x2b6   :  { %v3491_v25 = vadd.s32 127, %v3490_v53  ;;  %v3564_v54 = vsel %vm3552_vm11, %v3546_v58, %v3563_v33  ;;  %v3557_v0 = vsel %vm3551_vm1, %v3554_v20, %v3556_v17  ;;  %v1968_v30 = vadd.s32 1, %v11424_v35 }
 0x2b7   :  { %v3565_v6 = vsel %vm3551_vm1, %v3562_v22, %v3564_v54  ;;  %v11488_v26 = vmul.u32.u64.low %v11412_v11, %v3561_v59  ;;  %v11489_v21 = vmul.u32.u64.high %v11412_v11, %v3561_v59, %v11488_v26  ;;  %v3489_v5 = vor.u32 %v3488_v52, %v3487_v37 }
 0x2b8   :  { %v3492_v45 = vshll.u32 %v3491_v25, 23  ;;  %v11493_v15 = vmul.u32.u64.low %v11412_v11, %v3565_v6  ;;  %v11494_v34 = vmul.u32.u64.high %v11412_v11, %v3565_v6, %v11493_v15  ;;  %v663_v13 = vsub.f32 %v11391_v27, %v631_v29 }
 0x2b9   :  { %v7975_v60 = vsel %vm294_vm10, 1.0, %v8788_v47  ;;  %v68_v48 = vadd.s32 216, %v8847_v1  ;;  %v3496_v58 = vcvt.s32.f32 %v3489_v5  ;;  %v3503_v24 = vsel %vm11455_vm8, 0, %v3501_v4 }
 0x2ba   :  { %v3493_v36 = vor.u32 4788187, %v3492_v45  ;;  %v3573_v8 = vmul.u32 %v11412_v11, %v3557_v0  ;;  %v3576_v35 = vadd.s32 1, %v11489_v21  ;;  %v1966_v19 = vor.u32 8388608, %v11416_v32 }
 0x2bb   :  { %vm1969_vm12 = vcmp.gt.s32.totalorder %v1968_v30, 0  ;;  %vm3575_vm7 = vc.u32 %v11494_v34, %v11488_v26  ;;  %v11515_v7 = vsub.f32 %v230_v16, %v7975_v60  ;;  %v3507_v29 = vadd.s32 3, %v3503_v24 }
 0x2bc   :  { %v3494_v27 = vand.u32 2147483647, %v3493_v36  ;;  %v1970_v12 = vsel %vm1969_vm12, %v1968_v30, 0  ;;  %v3577_v38 = vsel %vm3575_vm7, %v3576_v35, %v11489_v21  ;;  %v11518_v61 = vcvt.s32.f32 %v68_v48 }
 0x2bd   :  { %v1972_v18 = vand.u32 31, %v1970_v12  ;;  %v11520_v63 = vand.u32 3, %v3503_v24  ;;  %v3578_v32 = vadd.s32 %v3577_v38, %v3573_v8  ;;  %v695_v20 = vand.u32 2147483647, %v663_v13 }
 0x2be   :  { %v3497_v11 = vmul.f32 %v3496_v58, %v3494_v27  ;;  %v11522_v42 = vshrl.u32 %v1970_v12, 5  ;;  %v11541_v54 = vand.u32 3, %v3507_v29  ;;  %v11543_v0 = vshll.u32 %v1966_v19, 8 }
 0x2bf   :  { %v1973_v14 = vsub.s32 32, %v1972_v18  ;;  %v1975_v44 = vshll.u32 %v8789_v49, %v1972_v18  ;;  %v1978_v2 = vshll.u32 %v8790_v51, %v1972_v18  ;;  %v3579_v39 = vadd.s32 536870912, %v3578_v32 }
 0x2c0   :  { %v3498_v16 = vxor.u32 2147483648, %v3497_v11  ;;  %v1981_v46 = vshll.u32 %v8791_v9, %v1972_v18  ;;  %v1984_v37 = vshll.u32 %v8792_v10, %v1972_v18  ;;  %v1987_v57 = vshll.u32 %v8793_v55, %v1972_v18 }
 0x2c1   :  { %v1976_v53 = vshrl.u32 %v8790_v51, %v1973_v14  ;;  %v1979_v17 = vshrl.u32 %v8791_v9, %v1973_v14  ;;  %v1982_v4 = vshrl.u32 %v8792_v10, %v1973_v14  ;;  %v11534_v33 = vshrl.u32 %v3579_v39, 30 }
 0x2c2   :  { %v3499_v22 = vsel %vm3416_vm15, %v3498_v16, %v3497_v11  ;;  %v1985_v52 = vshrl.u32 %v8793_v55, %v1973_v14  ;;  %v1988_v25 = vshrl.u32 %v8794_v62, %v1973_v14  ;;  %v422_v6 = vadd.f32 1.0, %v11515_v7 }
 0x2c3   :  { %v3502_v59 = vsel %vm11455_vm8, %v11260_v31, %v3499_v22  ;;  %v3581_v21 = vshll.u32 %v11534_v33, 30  ;;  %v1974_v5 = vshrl.u32 %v8789_v49, %v1973_v14  ;;  %v727_v45 = vmul.f32 22.5, %v695_v20 }
 0x2c4   :  { %8674 = vcosq.f32 %v3502_v59  ;;  %v1983_v15 = vor.u32 %v1982_v4, %v1981_v46  ;;  %v1986_v30 = vor.u32 %v1985_v52, %v1984_v37  ;;  %v1989_v13 = vor.u32 %v1988_v25, %v1987_v57 }
 0x2c5   :  { %8676 = vsinq.f32 %v3502_v59  ;;  %vm6816_vm9 = vcmp.eq.s32.totalorder %v11520_v63, 2  ;;  %v11549_v41 = vsub.s32 %v3578_v32, %v3581_v21  ;;  %v1977_v60 = vor.u32 %v1976_v53, %v1975_v44 }
 0x2c6   :  { %v1980_v48 = vor.u32 %v1979_v17, %v1978_v2  ;;  %vm1993_vm14 = vcmp.lt.s32.totalorder %v11522_v42, 4  ;;  %vm3510_vm0 = vcmp.eq.s32.totalorder %v11541_v54, 0  ;;  %vm6813_vm6 = vcmp.eq.s32.totalorder %v11520_v63, 0 }
 0x2c7   :  { %vm1990_vm15 = vcmp.lt.s32.totalorder %v11522_v42, 1  ;;  %v1995_v36 = vsel %vm1993_vm14, %v1983_v15, 2102212464  ;;  %vm11557_vm10 = vcmp.gt.f32.partialorder %v695_v20, 8.0  ;;  %v166_v24 = vadd.f32 0.5, %v11518_v61 }
 0x2c8   :  { %vm3509_vm8 = vcmp.lt.s32.totalorder %v11541_v54, 2  ;;  %vm6812_vm2 = vcmp.lt.s32.totalorder %v11520_v63, 2  ;;  %v3584_v8 = vsub.s32 0, %v11549_v41  ;;  %vm1992_vm1 = vcmp.lt.s32.totalorder %v11522_v42, 3 }
 0x2c9   :  { %v8024_v35 = vadd.f32 -360.0, %v727_v45  ;;  %v454_v19 = vmul.f32 16.0, %v422_v6  ;;  %vm3506_vm11 = vweird.f32 %v11260_v31  ;;  %v1994_v27 = vsel %vm1990_vm15, %v1974_v5, %v1977_v60 }
 0x2ca   :  { %v1996_v12 = vsel %vm1992_vm1, %v1980_v48, %v1995_v36  ;;  %v1999_v29 = vsel %vm1993_vm14, %v1986_v30, 920167782  ;;  %v2003_v38 = vsel %vm1993_vm14, %v1989_v13, 1326507024  ;;  %v8147_v18 = vmin.u32 %v3584_v8, %v11549_v41 }
 0x2cb   :  { %vm1991_vm3 = vcmp.lt.s32.totalorder %v11522_v42, 2  ;;  %v1998_v11 = vsel %vm1990_vm15, %v1977_v60, %v1980_v48  ;;  %v2002_v32 = vsel %vm1990_vm15, %v1980_v48, %v1983_v15  ;;  %vm3513_vm13 = vcmp.eq.s32.totalorder %v11541_v54, 2 }
 0x2cc   :  { %v2000_v20 = vsel %vm1992_vm1, %v1983_v15, %v1999_v29  ;;  %v2004_v14 = vsel %vm1992_vm1, %v1986_v30, %v2003_v38  ;;  %v53_v44 = vadd.s32 96, %v8847_v1  ;;  %v3574_v2 = vadd.s32 %v11488_v26, %v11494_v34 }
 0x2cd   :  { %v3586_v16 = vclz %v8147_v18  ;;  %v1997_v39 = vsel %vm1991_vm3, %v1994_v27, %v1996_v12  ;;  %v11583_v46 = vmul.f32 0.0625, %v166_v24  ;;  %v2001_v37 = vsel %vm1991_vm3, %v1998_v11, %v2000_v20 }
 0x2ce   :  { %v2005_v53 = vsel %vm1991_vm3, %v2002_v32, %v2004_v14  ;;  %v823_v17 = vsel %vm11557_vm10, %v8024_v35, %v727_v45  ;;  %vm486_vm12 = vcmp.le.f32.partialorder %v454_v19, %v11285_v3  ;;  %v8675_v42 = vpop.eup %8674  ;;  %v3604_v34 = vsub.s32 4, %v11534_v33 }
 0x2cf   :  { %v8148_v4 = vadd.s32 4294967294, %v3586_v16  ;;  %v11589_v57 = vmul.u32.u64.low %v11543_v0, %v2005_v53  ;;  %v11590_v22 = vmul.u32.u64.high %v11543_v0, %v2005_v53, %v11589_v57  ;;  %v855_v52 = vmul.f32 3.8197186, %v823_v17  ;;  %v8677_v25 = vpop.eup %8676 }
 0x2d0   :  { %v3514_v26 = vxor.u32 2147483648, %v8675_v42  ;;  %v11594_v59 = vmul.u32.u64.low %v11543_v0, %v2001_v37  ;;  %v11595_v6 = vmul.u32.u64.high %v11543_v0, %v2001_v37, %v11594_v59  ;;  %v3511_v21 = vxor.u32 2147483648, %v8677_v25 }
 0x2d1   :  { %vm8149_vm7 = vcmp.lt.s32.totalorder %v8148_v4, 0  ;;  %v2013_v5 = vmul.u32 %v11543_v0, %v1997_v39  ;;  %v8007_v45 = vsel %vm486_vm12, 1.0, %v8788_v47  ;;  %v11605_v60 = vmul.f32 %v11385_v50, %v855_v52 }
 0x2d2   :  { %v3515_v15 = vsel %vm3513_vm13, %v3514_v26, %v8677_v25  ;;  %v6818_v30 = vsel %vm6816_vm9, %v3514_v26, %v8677_v25  ;;  %v3589_v13 = vsel %vm8149_vm7, 0, %v8148_v4  ;;  %v3512_v48 = vsel %vm3510_vm0, %v8675_v42, %v3511_v21 }
 0x2d3   :  { %v6815_v36 = vsel %vm6813_vm6, %v8675_v42, %v3511_v21  ;;  %v3590_v58 = vsub.s32 32, %v3589_v13  ;;  %v3591_v0 = vshll.u32 %v11549_v41, %v3589_v13  ;;  %v3516_v24 = vsel %vm3509_vm8, %v3512_v48, %v3515_v15 }
 0x2d4   :  { %v6819_v8 = vsel %vm6812_vm2, %v6815_v36, %v6818_v30  ;;  %v3594_v35 = vsub.s32 4294967266, %v3589_v13  ;;  %v582_v19 = vadd.f32 %v8007_v45, %v11515_v7  ;;  %v3517_v27 = vsel %vm3506_vm11, nan, %v3516_v24 }
 0x2d5   :  { %v6820_v12 = vsel %vm3506_vm11, nan, %v6819_v8  ;;  %v3592_v29 = vshrl.u32 %v3574_v2, %v3590_v58  ;;  %vm2015_vm9 = vc.u32 %v11590_v22, %v11594_v59  ;;  %v2016_v63 = vadd.s32 1, %v11595_v6 }
 0x2d6   :  { %v7566_v54 = vsel %vm917_vm4, %v3517_v27, %v6820_v12  ;;  %v3595_v41 = vadd.s32 127, %v3594_v35  ;;  %v231_v38 = vfloor.f32 %v11583_v46  ;;  %vm3520_vm14 = vcmp.lt.s32.totalorder %v11312_v23, 0 }
 0x2d7   :  { %8427 = vmatprep.mubr.msk.f32.mxu1 %vm7589_vm5, %v7566_v54  ;;  %v3593_v7 = vor.u32 %v3592_v29, %v3591_v0  ;;  %v2065_v31 = vand.u32 2139095040, %v11605_v60  ;;  %v3605_v11 = vsel %vm3520_vm14, %v3604_v34, %v11534_v33  ;;  %v2017_v32 = vsel %vm2015_vm9, %v2016_v63, %v11595_v6 }
 0x2d8   :  { %v3596_v18 = vshll.u32 %v3595_v41, 23  ;;  %v2062_v20 = vand.u32 2147483647, %v11605_v60  ;;  %vm11637_vm0 = vcmp.le.f32.partialorder %v3518_v43, 0.7853982  ;;  %v2018_v2 = vadd.s32 %v2017_v32, %v2013_v5 }
 0x2d9   :  { %v2066_v16 = vshrl.u32 %v2065_v31, 23  ;;  %v614_v39 = vmul.f32 16.0, %v582_v19  ;;  %v3600_v37 = vcvt.s32.f32 %v3593_v7  ;;  %v263_v53 = vmul.f32 16.0, %v231_v38 }
 0x2da   :  { %v3597_v46 = vor.u32 4788187, %v3596_v18  ;;  %v11641_v17 = vcvt.s32.f32 %v53_v44  ;;  %v3607_v33 = vsel %vm11637_vm0, 0, %v3605_v11  ;;  %v2019_v42 = vadd.s32 536870912, %v2018_v2 }
 0x2db   :  { %v8090_v4 = vadd.s32 4294967169, %v2066_v16  ;;  %v646_v57 = vsub.f32 %v11285_v3, %v614_v39  ;;  %v2069_v43 = vand.u32 8388607, %v2062_v20  ;;  %vm295_vm6 = vcmp.gt.f32.partialorder %v263_v53, %v11518_v61 }
 0x2dc   :  { %v3598_v52 = vand.u32 2147483647, %v3597_v46  ;;  %v11649_v25 = vshrl.u32 %v2019_v42, 30  ;;  %v3611_v6 = vadd.s32 3, %v3607_v33  ;;  %v151_v44 = vadd.f32 0.5, %v11641_v17 }
 0x2dd   :  { %v2072_v26 = vadd.s32 1, %v8090_v4  ;;  %v678_v5 = vsub.f32 %v582_v19, %v646_v57  ;;  %v7976_v45 = vsel %vm295_vm6, 1.0, %v8788_v47  ;;  %v2070_v15 = vor.u32 8388608, %v2069_v43 }
 0x2de   :  { %v3601_v34 = vmul.f32 %v3600_v37, %v3598_v52  ;;  %v2021_v21 = vshll.u32 %v11649_v25, 30  ;;  %v54_v36 = vadd.s32 104, %v8847_v1  ;;  %v11659_v0 = vand.u32 3, %v3611_v6 }
 0x2df   :  { %vm2073_vm15 = vcmp.gt.s32.totalorder %v2072_v26, 0  ;;  %v11661_v24 = vand.u32 3, %v3607_v33  ;;  %v11663_v8 = vsub.f32 %v231_v38, %v7976_v45  ;;  %v710_v27 = vand.u32 2147483647, %v678_v5 }
 0x2e0   :  { %v3602_v3 = vxor.u32 2147483648, %v3601_v34  ;;  %v2074_v30 = vsel %vm2073_vm15, %v2072_v26, 0  ;;  %v11654_v13 = vsub.s32 %v2018_v2, %v2021_v21  ;;  %v11669_v12 = vmul.f32 0.0625, %v151_v44 }
 0x2e1   :  { %v2076_v48 = vand.u32 31, %v2074_v30  ;;  %v2014_v29 = vadd.s32 %v11594_v59, %v11590_v22  ;;  %v11673_v41 = vshll.u32 %v2070_v15, 8  ;;  %v2044_v38 = vsub.s32 4, %v11649_v25 }
 0x2e2   :  { %v3603_v58 = vsel %vm3520_vm14, %v3602_v3, %v3601_v34  ;;  %v2024_v19 = vsub.s32 0, %v11654_v13  ;;  %v11677_v7 = vcvt.s32.f32 %v54_v36  ;;  %vm3617_vm10 = vcmp.eq.s32.totalorder %v11659_v0, 2 }
 0x2e3   :  { %v3606_v35 = vsel %vm11637_vm0, %v11312_v23, %v3603_v58  ;;  %v2077_v54 = vsub.s32 32, %v2076_v48  ;;  %vm6919_vm8 = vcmp.eq.s32.totalorder %v11661_v24, 2  ;;  %v2079_v31 = vshll.u32 %v8789_v49, %v2076_v48 }
 0x2e4   :  { %8678 = vcosq.f32 %v3606_v35  ;;  %v8087_v63 = vmin.u32 %v2024_v19, %v11654_v13  ;;  %v2082_v22 = vshll.u32 %v8790_v51, %v2076_v48  ;;  %v11685_v59 = vadd.f32 1.0, %v11663_v8 }
 0x2e5   :  { %8680 = vsinq.f32 %v3606_v35  ;;  %v2080_v18 = vshrl.u32 %v8790_v51, %v2077_v54  ;;  %vm3614_vm2 = vcmp.eq.s32.totalorder %v11659_v0, 0  ;;  %vm6916_vm1 = vcmp.eq.s32.totalorder %v11661_v24, 0 }
 0x2e6   :  { %v2026_v11 = vclz %v8087_v63  ;;  %v2075_v32 = vshrl.u32 %v2074_v30, 5  ;;  %v11689_v14 = vmul.f32 22.5, %v710_v27  ;;  %v216_v2 = vfloor.f32 %v11669_v12 }
 0x2e7   :  { %vm3613_vm11 = vcmp.lt.s32.totalorder %v11659_v0, 2  ;;  %vm6915_vm3 = vcmp.lt.s32.totalorder %v11661_v24, 2  ;;  %v2078_v16 = vshrl.u32 %v8789_v49, %v2077_v54  ;;  %v2083_v39 = vshrl.u32 %v8791_v9, %v2077_v54 }
 0x2e8   :  { %v2085_v46 = vshll.u32 %v8791_v9, %v2076_v48  ;;  %v2086_v37 = vshrl.u32 %v8792_v10, %v2077_v54  ;;  %vm3610_vm13 = vweird.f32 %v11312_v23  ;;  %v8088_v53 = vadd.s32 4294967294, %v2026_v11 }
 0x2e9   :  { %v2088_v33 = vshll.u32 %v8792_v10, %v2076_v48  ;;  %v2089_v42 = vshrl.u32 %v8793_v55, %v2077_v54  ;;  %v2091_v4 = vshll.u32 %v8793_v55, %v2076_v48  ;;  %v2081_v57 = vor.u32 %v2080_v18, %v2079_v31 }
 0x2ea   :  { %v2084_v52 = vor.u32 %v2083_v39, %v2082_v22  ;;  %v2087_v43 = vor.u32 %v2086_v37, %v2085_v46  ;;  %v2092_v26 = vshrl.u32 %v8794_v62, %v2077_v54  ;;  %vm8089_vm12 = vcmp.lt.s32.totalorder %v8088_v53, 0 }
 0x2eb   :  { %v2090_v34 = vor.u32 %v2089_v42, %v2088_v33  ;;  %vm2094_vm7 = vcmp.lt.s32.totalorder %v2075_v32, 1  ;;  %vm2096_vm9 = vcmp.lt.s32.totalorder %v2075_v32, 3  ;;  %vm11703_vm14 = vcmp.gt.f32.partialorder %v710_v27, 8.0 }
 0x2ec   :  { %v2029_v44 = vsel %vm8089_vm12, 0, %v8088_v53  ;;  %v2093_v21 = vor.u32 %v2092_v26, %v2091_v4  ;;  %vm2097_vm0 = vcmp.lt.s32.totalorder %v2075_v32, 4  ;;  %v2098_v5 = vsel %vm2094_vm7, %v2078_v16, %v2081_v57 }
 0x2ed   :  { %v2030_v45 = vsub.s32 32, %v2029_v44  ;;  %v2031_v3 = vshll.u32 %v11654_v13, %v2029_v44  ;;  %v2034_v15 = vsub.s32 4294967266, %v2029_v44  ;;  %v2099_v30 = vsel %vm2097_vm0, %v2087_v43, 2102212464 }
 0x2ee   :  { %v8679_v48 = vpop.eup %8678  ;;  %vm1960_vm6 = vcmp.lt.s32.totalorder %v11388_v56, 0  ;;  %vm2095_vm15 = vcmp.lt.s32.totalorder %v2075_v32, 2  ;;  %v2100_v36 = vsel %vm2096_vm9, %v2084_v52, %v2099_v30  ;;  %v2102_v58 = vsel %vm2094_vm7, %v2081_v57, %v2084_v52 }
 0x2ef   :  { %v2103_v35 = vsel %vm2097_vm0, %v2090_v34, 920167782  ;;  %v8681_v19 = vpop.eup %8680  ;;  %v3618_v27 = vxor.u32 2147483648, %v8679_v48  ;;  %v2032_v54 = vshrl.u32 %v2014_v29, %v2030_v45  ;;  %v2035_v63 = vadd.s32 127, %v2034_v15 }
 0x2f0   :  { %v2106_v31 = vsel %vm2094_vm7, %v2084_v52, %v2087_v43  ;;  %v3615_v13 = vxor.u32 2147483648, %v8681_v19  ;;  %v2101_v18 = vsel %vm2095_vm15, %v2098_v5, %v2100_v36  ;;  %v2104_v22 = vsel %vm2096_vm9, %v2087_v43, %v2103_v35 }
 0x2f1   :  { %v2107_v11 = vsel %vm2097_vm0, %v2093_v21, 1326507024  ;;  %v3619_v16 = vsel %vm3617_vm10, %v3618_v27, %v8681_v19  ;;  %v6921_v39 = vsel %vm6919_vm8, %v3618_v27, %v8681_v19  ;;  %v2033_v46 = vor.u32 %v2032_v54, %v2031_v3 }
 0x2f2   :  { %v2036_v37 = vshll.u32 %v2035_v63, 23  ;;  %v3616_v29 = vsel %vm3614_vm2, %v8679_v48, %v3615_v13  ;;  %v6918_v53 = vsel %vm6916_vm1, %v8679_v48, %v3615_v13  ;;  %v2105_v33 = vsel %vm2095_vm15, %v2102_v58, %v2104_v22 }
 0x2f3   :  { %v2108_v42 = vsel %vm2096_vm9, %v2090_v34, %v2107_v11  ;;  %v3620_v4 = vsel %vm3613_vm11, %v3616_v29, %v3619_v16  ;;  %v6922_v57 = vsel %vm6915_vm3, %v6918_v53, %v6921_v39  ;;  %v2040_v43 = vcvt.s32.f32 %v2033_v46 }
 0x2f4   :  { %v2037_v52 = vor.u32 4788187, %v2036_v37  ;;  %v3621_v26 = vsel %vm3610_vm13, nan, %v3620_v4  ;;  %v6923_v44 = vsel %vm3610_vm13, nan, %v6922_v57  ;;  %v2109_v21 = vsel %vm2095_vm15, %v2106_v31, %v2108_v42 }
 0x2f5   :  { %v8039_v5 = vadd.f32 -360.0, %v11689_v14  ;;  %v7567_v34 = vsel %vm917_vm4, %v3621_v26, %v6923_v44  ;;  %v11741_v45 = vmul.u32.u64.low %v11673_v41, %v2109_v21  ;;  %v11742_v24 = vmul.u32.u64.high %v11673_v41, %v2109_v21, %v11741_v45 }
 0x2f6   :  { %v2038_v0 = vand.u32 2147483647, %v2037_v52  ;;  %8428 = vmatmul.mubr.msk.f32.gmra.mrb[8].mxu1 %vm7589_vm5, %v7567_v34  ;;  %v11746_v3 = vmul.u32.u64.low %v11673_v41, %v2105_v33  ;;  %v11747_v15 = vmul.u32.u64.high %v11673_v41, %v2105_v33, %v11746_v3  ;;  %v455_v32 = vmul.f32 16.0, %v11685_v59 }
 0x2f7   :  { %v838_v23 = vsel %vm11703_vm14, %v8039_v5, %v11689_v14  ;;  %v2045_v48 = vsel %vm1960_vm6, %v2044_v38, %v11649_v25  ;;  %v248_v58 = vmul.f32 16.0, %v216_v2  ;;  %vm1959_vm10 = vcmp.le.f32.partialorder %v1958_v40, 0.7853982 }
 0x2f8   :  { %v2041_v30 = vmul.f32 %v2040_v43, %v2038_v0  ;;  %v870_v36 = vmul.f32 3.8197186, %v838_v23  ;;  %vm487_vm8 = vcmp.le.f32.partialorder %v455_v32, %v11518_v61  ;;  %v2117_v14 = vmul.u32 %v11673_v41, %v2101_v18 }
 0x2f9   :  { %vm2119_vm2 = vc.u32 %v11742_v24, %v11746_v3  ;;  %v2047_v35 = vsel %vm1959_vm10, 0, %v2045_v48  ;;  %v2120_v25 = vadd.s32 1, %v11747_v15  ;;  %v8008_v38 = vsel %vm487_vm8, 1.0, %v8788_v47 }
 0x2fa   :  { %v2042_v6 = vxor.u32 2147483648, %v2041_v30  ;;  %v11768_v59 = vmul.f32 %v11385_v50, %v870_v36  ;;  %v152_v19 = vadd.f32 0.5, %v11677_v7  ;;  %vm280_vm1 = vcmp.gt.f32.partialorder %v248_v58, %v11641_v17 }
 0x2fb   :  { %v69_v41 = vadd.s32 224, %v8847_v1  ;;  %v2121_v50 = vsel %vm2119_vm2, %v2120_v25, %v11747_v15  ;;  %v583_v31 = vadd.f32 %v8008_v38, %v11663_v8  ;;  %v2051_v13 = vadd.s32 3, %v2047_v35 }
 0x2fc   :  { %v2043_v40 = vsel %vm1960_vm6, %v2042_v6, %v2041_v30  ;;  %v3625_v27 = vand.u32 2139095040, %v11768_v59  ;;  %v3622_v63 = vand.u32 2147483647, %v11768_v59  ;;  %v2122_v18 = vadd.s32 %v2121_v50, %v2117_v14 }
 0x2fd   :  { %v2046_v54 = vsel %vm1959_vm10, %v11388_v56, %v2043_v40  ;;  %v5369_v11 = vand.u32 3, %v2047_v35  ;;  %v615_v16 = vmul.f32 16.0, %v583_v31  ;;  %v7961_v39 = vsel %vm280_vm1, 1.0, %v8788_v47 }
 0x2fe   :  { %8682 = vcosq.f32 %v2046_v54  ;;  %v3626_v22 = vshrl.u32 %v3625_v27, 23  ;;  %v2123_v46 = vadd.s32 536870912, %v2122_v18  ;;  %v11783_v29 = vmul.f32 0.0625, %v152_v19 }
 0x2ff   :  { %8684 = vsinq.f32 %v2046_v54  ;;  %v3629_v53 = vand.u32 8388607, %v3622_v63  ;;  %v647_v33 = vsub.f32 %v11518_v61, %v615_v16  ;;  %v11790_v8 = vsub.f32 %v216_v2, %v7961_v39 }
 0x300   :  { %v8150_v37 = vadd.s32 4294967169, %v3626_v22  ;;  %v11792_v42 = vcvt.s32.f32 %v69_v41  ;;  %v2052_v4 = vand.u32 3, %v2051_v13  ;;  %v2124_v57 = vshrl.u32 %v2123_v46, 30 }
 0x301   :  { %vm2050_vm11 = vweird.f32 %v11388_v56  ;;  %vm5370_vm3 = vcmp.lt.s32.totalorder %v5369_v11, 2  ;;  %vm5371_vm13 = vcmp.eq.s32.totalorder %v5369_v11, 0  ;;  %vm2064_vm12 = vcmp.lt.s32.totalorder %v11605_v60, 0 }
 0x302   :  { %v3632_v52 = vadd.s32 1, %v8150_v37  ;;  %v679_v43 = vsub.f32 %v583_v31, %v647_v33  ;;  %v2125_v26 = vshll.u32 %v2124_v57, 30  ;;  %v217_v61 = vfloor.f32 %v11783_v29 }
 0x303   :  { %v70_v12 = vadd.s32 232, %v8847_v1  ;;  %v3630_v2 = vor.u32 8388608, %v3629_v53  ;;  %v408_v21 = vadd.f32 1.0, %v11790_v8  ;;  %v167_v5 = vadd.f32 0.5, %v11792_v42 }
 0x304   :  { %vm3633_vm7 = vcmp.gt.s32.totalorder %v3632_v52, 0  ;;  %vm2053_vm9 = vcmp.lt.s32.totalorder %v2052_v4, 2  ;;  %vm5374_vm14 = vcmp.eq.s32.totalorder %v5369_v11, 2  ;;  %v11800_v34 = vsub.s32 %v2122_v18, %v2125_v26 }
 0x305   :  { %v3634_v44 = vsel %vm3633_vm7, %v3632_v52, 0  ;;  %v2148_v0 = vsub.s32 4, %v2124_v57  ;;  %vm2054_vm0 = vcmp.eq.s32.totalorder %v2052_v4, 0  ;;  %vm2057_vm6 = vcmp.eq.s32.totalorder %v2052_v4, 2 }
 0x306   :  { %v3636_v45 = vand.u32 31, %v3634_v44  ;;  %v711_v15 = vand.u32 2147483647, %v679_v43  ;;  %v2118_v32 = vadd.s32 %v11746_v3, %v11742_v24  ;;  %v2128_v30 = vsub.s32 0, %v11800_v34 }
 0x307   :  { %v11807_v48 = vmul.f32 16.0, %v217_v61  ;;  %v11809_v36 = vcvt.s32.f32 %v70_v12  ;;  %v11811_v14 = vshll.u32 %v3630_v2, 8  ;;  %v11813_v35 = vmul.f32 16.0, %v408_v21 }
 0x308   :  { %v8683_v23 = vpop.eup %8682  ;;  %v11815_v25 = vmul.f32 0.0625, %v167_v5  ;;  %v8091_v19 = vmin.u32 %v2128_v30, %v11800_v34  ;;  %v11820_v24 = vsel %vm2064_vm12, %v2148_v0, %v2124_v57  ;;  %v11822_v3 = vshrl.u32 %v3634_v44, 5 }
 0x309   :  { %v8685_v58 = vpop.eup %8684  ;;  %v2058_v6 = vxor.u32 2147483648, %v8683_v23  ;;  %v3637_v41 = vsub.s32 32, %v3636_v45  ;;  %v11826_v54 = vmul.f32 22.5, %v711_v15  ;;  %v3639_v18 = vshll.u32 %v8789_v49, %v3636_v45 }
 0x30a   :  { %v2055_v38 = vxor.u32 2147483648, %v8685_v58  ;;  %v2130_v13 = vclz %v8091_v19  ;;  %v3642_v39 = vshll.u32 %v8790_v51, %v3636_v45  ;;  %v3645_v46 = vshll.u32 %v8791_v9, %v3636_v45 }
 0x30b   :  { %v2059_v40 = vsel %vm2057_vm6, %v2058_v6, %v8685_v58  ;;  %v5376_v27 = vsel %vm5374_vm14, %v2058_v6, %v8685_v58  ;;  %v3638_v57 = vshrl.u32 %v8789_v49, %v3637_v41  ;;  %v3640_v4 = vshrl.u32 %v8790_v51, %v3637_v41 }
 0x30c   :  { %v2056_v50 = vsel %vm2054_vm0, %v8683_v23, %v2055_v38  ;;  %v5373_v31 = vsel %vm5371_vm13, %v8683_v23, %v2055_v38  ;;  %v8092_v33 = vadd.s32 4294967294, %v2130_v13  ;;  %v3643_v11 = vshrl.u32 %v8791_v9, %v3637_v41 }
 0x30d   :  { %v2060_v22 = vsel %vm2053_vm9, %v2056_v50, %v2059_v40  ;;  %v5377_v16 = vsel %vm5370_vm3, %v5373_v31, %v5376_v27  ;;  %v3646_v43 = vshrl.u32 %v8792_v10, %v3637_v41  ;;  %v3648_v26 = vshll.u32 %v8792_v10, %v3636_v45 }
 0x30e   :  { %v2061_v37 = vsel %vm2050_vm11, nan, %v2060_v22  ;;  %v5378_v53 = vsel %vm2050_vm11, nan, %v5377_v16  ;;  %vm8093_vm15 = vcmp.lt.s32.totalorder %v8092_v33, 0  ;;  %v3649_v56 = vshrl.u32 %v8793_v55, %v3637_v41 }
 0x30f   :  { %v7552_v52 = vsel %vm917_vm4, %v2061_v37, %v5378_v53  ;;  %v3651_v12 = vshll.u32 %v8793_v55, %v3636_v45  ;;  %vm11849_vm10 = vcmp.gt.f32.partialorder %v711_v15, 8.0  ;;  %vm281_vm8 = vcmp.gt.f32.partialorder %v11807_v48, %v11677_v7 }
 0x310   :  { %8406 = vmatprep.mubr.msk.f32.mxu0 %vm7589_vm5, %v7552_v52  ;;  %v2133_v44 = vsel %vm8093_vm15, 0, %v8092_v33  ;;  %v3641_v21 = vor.u32 %v3640_v4, %v3639_v18  ;;  %v3644_v5 = vor.u32 %v3643_v11, %v3642_v39  ;;  %v3647_v0 = vor.u32 %v3646_v43, %v3645_v46 }
 0x311   :  { %vm11857_vm2 = vcmp.le.f32.partialorder %v2062_v20, 0.7853982  ;;  %v2134_v30 = vsub.s32 32, %v2133_v44  ;;  %v2135_v45 = vshll.u32 %v11800_v34, %v2133_v44  ;;  %v2138_v15 = vsub.s32 4294967266, %v2133_v44 }
 0x312   :  { %v3650_v58 = vor.u32 %v3649_v56, %v3648_v26  ;;  %v3652_v6 = vshrl.u32 %v8794_v62, %v3637_v41  ;;  %vm3654_vm1 = vcmp.lt.s32.totalorder %v11822_v3, 1  ;;  %vm3655_vm11 = vcmp.lt.s32.totalorder %v11822_v3, 2 }
 0x313   :  { %vm3656_vm3 = vcmp.lt.s32.totalorder %v11822_v3, 3  ;;  %v2136_v38 = vshrl.u32 %v2118_v32, %v2134_v30  ;;  %v2139_v19 = vadd.s32 127, %v2138_v15  ;;  %vm3657_vm13 = vcmp.lt.s32.totalorder %v11822_v3, 4 }
 0x314   :  { %v3658_v20 = vsel %vm3654_vm1, %v3638_v57, %v3641_v21  ;;  %v3653_v40 = vor.u32 %v3652_v6, %v3651_v12  ;;  %v3659_v27 = vsel %vm3657_vm13, %v3647_v0, 2102212464  ;;  %v3662_v34 = vsel %vm3654_vm1, %v3641_v21, %v3644_v5 }
 0x315   :  { %v3663_v50 = vsel %vm3657_vm13, %v3650_v58, 920167782  ;;  %v2137_v41 = vor.u32 %v2136_v38, %v2135_v45  ;;  %v2140_v31 = vshll.u32 %v2139_v19, 23  ;;  %v3660_v13 = vsel %vm3656_vm3, %v3644_v5, %v3659_v27 }
 0x316   :  { %v3664_v32 = vsel %vm3656_vm3, %v3647_v0, %v3663_v50  ;;  %v3666_v22 = vsel %vm3654_vm1, %v3644_v5, %v3647_v0  ;;  %v3667_v16 = vsel %vm3657_vm13, %v3653_v40, 1326507024  ;;  %vm472_vm7 = vcmp.le.f32.partialorder %v11813_v35, %v11641_v17 }
 0x317   :  { %v3665_v18 = vsel %vm3655_vm11, %v3662_v34, %v3664_v32  ;;  %v2141_v39 = vor.u32 4788187, %v2140_v31  ;;  %v2144_v46 = vcvt.s32.f32 %v2137_v41  ;;  %v3661_v37 = vsel %vm3655_vm11, %v3658_v20, %v3660_v13 }
 0x318   :  { %v3668_v53 = vsel %vm3656_vm3, %v3650_v58, %v3667_v16  ;;  %v11888_v57 = vmul.u32.u64.low %v11811_v14, %v3665_v18  ;;  %v11889_v52 = vmul.u32.u64.high %v11811_v14, %v3665_v18, %v11888_v57  ;;  %v8040_v4 = vadd.f32 -360.0, %v11826_v54 }
 0x319   :  { %v3669_v33 = vsel %vm3655_vm11, %v3666_v22, %v3668_v53  ;;  %v2142_v11 = vand.u32 2147483647, %v2141_v39  ;;  %v7993_v26 = vsel %vm472_vm7, 1.0, %v8788_v47  ;;  %v2151_v56 = vsel %vm11857_vm2, 0, %v11820_v24 }
 0x31a   :  { %v11894_v35 = vmul.u32.u64.low %v11811_v14, %v3669_v33  ;;  %v11895_v43 = vmul.u32.u64.high %v11811_v14, %v3669_v33, %v11894_v35  ;;  %v839_v3 = vsel %vm11849_vm10, %v8040_v4, %v11826_v54  ;;  %v568_v12 = vadd.f32 %v7993_v26, %v11790_v8  ;;  %v11916_v8 = vld [vmem:[#allocation2] ss:$0 sm:$0xff] }
 0x31b   :  { %v7962_v44 = vsel %vm281_vm8, 1.0, %v8788_v47  ;;  %v2145_v21 = vmul.f32 %v2144_v46, %v2142_v11  ;;  %v3677_v5 = vmul.u32 %v11811_v14, %v3661_v37  ;;  %v871_v0 = vmul.f32 3.8197186, %v839_v3 }
 0x31c   :  { %v377_v30 = vsub.f32 %v217_v61, %v7962_v44  ;;  %v3680_v24 = vadd.s32 1, %v11889_v52  ;;  %v600_v45 = vmul.f32 16.0, %v568_v12  ;;  %v232_v2 = vfloor.f32 %v11815_v25 }
 0x31d   :  { %v2146_v54 = vxor.u32 2147483648, %v2145_v21  ;;  %v2155_v15 = vadd.s32 3, %v2151_v56  ;;  %vm3679_vm9 = vc.u32 %v11895_v43, %v11888_v57  ;;  %v11919_v48 = vmul.f32 %v11916_v8, %v871_v0 }
 0x31e   :  { %v3681_v14 = vsel %vm3679_vm9, %v3680_v24, %v11889_v52  ;;  %v632_v29 = vsub.f32 %v11641_v17, %v600_v45  ;;  %v409_v61 = vadd.f32 1.0, %v377_v30  ;;  %v168_v38 = vadd.f32 0.5, %v11809_v36 }
 0x31f   :  { %v2147_v58 = vsel %vm2064_vm12, %v2146_v54, %v2145_v21  ;;  %v3682_v6 = vadd.s32 %v3681_v14, %v3677_v5  ;;  %v3726_v25 = vand.u32 2147483647, %v11919_v48  ;;  %v3729_v20 = vand.u32 2139095040, %v11919_v48 }
 0x320   :  { %v2150_v19 = vsel %vm11857_vm2, %v11605_v60, %v2147_v58  ;;  %v664_v40 = vsub.f32 %v568_v12, %v632_v29  ;;  %v264_v27 = vmul.f32 16.0, %v232_v2  ;;  %v11931_v34 = vand.u32 3, %v2155_v15 }
 0x321   :  { %8686 = vcosq.f32 %v2150_v19  ;;  %v11933_v17 = vand.u32 3, %v2151_v56  ;;  %v3683_v50 = vadd.s32 536870912, %v3682_v6  ;;  %v3730_v41 = vshrl.u32 %v3729_v20, 23 }
 0x322   :  { %8688 = vsinq.f32 %v2150_v19  ;;  %v696_v31 = vand.u32 2147483647, %v664_v40  ;;  %v441_v13 = vmul.f32 16.0, %v409_v61  ;;  %vm3624_vm12 = vcmp.lt.s32.totalorder %v11768_v59, 0 }
 0x323   :  { %v3684_v32 = vshrl.u32 %v3683_v50, 30  ;;  %v3733_v23 = vand.u32 8388607, %v3726_v25  ;;  %v8154_v18 = vadd.s32 4294967169, %v3730_v41  ;;  %vm296_vm0 = vcmp.gt.f32.partialorder %v264_v27, %v11792_v42 }
 0x324   :  { %v728_v22 = vmul.f32 22.5, %v696_v31  ;;  %vm473_vm14 = vcmp.le.f32.partialorder %v441_v13, %v11677_v7  ;;  %vm5473_vm6 = vcmp.lt.s32.totalorder %v11933_v17, 2  ;;  %vm5474_vm15 = vcmp.eq.s32.totalorder %v11933_v17, 0 }
 0x325   :  { %v3685_v16 = vshll.u32 %v3684_v32, 30  ;;  %v7994_v39 = vsel %vm473_vm14, 1.0, %v8788_v47  ;;  %vm2154_vm10 = vweird.f32 %v11605_v60  ;;  %vm2157_vm8 = vcmp.lt.s32.totalorder %v11931_v34, 2 }
 0x326   :  { %vm5477_vm2 = vcmp.eq.s32.totalorder %v11933_v17, 2  ;;  %v3736_v46 = vadd.s32 1, %v8154_v18  ;;  %v11946_v37 = vmul.f32 0.0625, %v168_v38  ;;  %v3734_v33 = vor.u32 8388608, %v3733_v23 }
 0x327   :  { %v11948_v53 = vsub.s32 %v3682_v6, %v3685_v16  ;;  %v8025_v52 = vadd.f32 -360.0, %v728_v22  ;;  %v7977_v4 = vsel %vm296_vm0, 1.0, %v8788_v47  ;;  %v3708_v11 = vsub.s32 4, %v3684_v32 }
 0x328   :  { %vm3737_vm1 = vcmp.gt.s32.totalorder %v3736_v46, 0  ;;  %vm11951_vm11 = vcmp.gt.f32.partialorder %v696_v31, 8.0  ;;  %v11955_v26 = vadd.f32 %v7994_v39, %v377_v30  ;;  %vm2158_vm3 = vcmp.eq.s32.totalorder %v11931_v34, 0 }
 0x329   :  { %vm2161_vm13 = vcmp.eq.s32.totalorder %v11931_v34, 2  ;;  %v3688_v56 = vsub.s32 0, %v11948_v53  ;;  %v3738_v3 = vsel %vm3737_vm1, %v3736_v46, 0  ;;  %v3678_v12 = vadd.s32 %v11888_v57, %v11895_v43 }
 0x32a   :  { %v3740_v44 = vand.u32 31, %v3738_v3  ;;  %v233_v21 = vfloor.f32 %v11946_v37  ;;  %v11964_v5 = vadd.s32 112, %v8847_v1  ;;  %v11967_v24 = vshll.u32 %v3734_v33, 8 }
 0x32b   :  { %v8687_v0 = vpop.eup %8686  ;;  %v8151_v30 = vmin.u32 %v3688_v56, %v11948_v53  ;;  %v824_v45 = vsel %vm11951_vm11, %v8025_v52, %v728_v22  ;;  %v11971_v54 = vsub.f32 %v232_v2, %v7977_v4  ;;  %v11975_v57 = vsel %vm3624_vm12, %v3708_v11, %v3684_v32 }
 0x32c   :  { %v8689_v15 = vpop.eup %8688  ;;  %v2162_v14 = vxor.u32 2147483648, %v8687_v0  ;;  %v3741_v43 = vsub.s32 32, %v3740_v44  ;;  %v11978_v29 = vmul.f32 16.0, %v11955_v26  ;;  %v11980_v6 = vshrl.u32 %v3738_v3, 5 }
 0x32d   :  { %v2159_v61 = vxor.u32 2147483648, %v8689_v15  ;;  %v3690_v58 = vclz %v8151_v30  ;;  %v3743_v38 = vshll.u32 %v8789_v49, %v3740_v44  ;;  %v856_v40 = vmul.f32 3.8197186, %v824_v45 }
 0x32e   :  { %v2163_v2 = vsel %vm2161_vm13, %v2162_v14, %v8689_v15  ;;  %v5479_v19 = vsel %vm5477_vm2, %v2162_v14, %v8689_v15  ;;  %v3742_v20 = vshrl.u32 %v8789_v49, %v3741_v43  ;;  %v3744_v31 = vshrl.u32 %v8790_v51, %v3741_v43 }
 0x32f   :  { %v2160_v27 = vsel %vm2158_vm3, %v8687_v0, %v2159_v61  ;;  %v5476_v50 = vsel %vm5474_vm15, %v8687_v0, %v2159_v61  ;;  %v8152_v41 = vadd.s32 4294967294, %v3690_v58  ;;  %v3746_v23 = vshll.u32 %v8790_v51, %v3740_v44 }
 0x330   :  { %v2164_v13 = vsel %vm2157_vm8, %v2160_v27, %v2163_v2  ;;  %v5480_v32 = vsel %vm5473_vm6, %v5476_v50, %v5479_v19  ;;  %v3747_v18 = vshrl.u32 %v8791_v9, %v3741_v43  ;;  %v3745_v39 = vor.u32 %v3744_v31, %v3743_v38 }
 0x331   :  { %v2165_v22 = vsel %vm2154_vm10, nan, %v2164_v13  ;;  %v5481_v16 = vsel %vm2154_vm10, nan, %v5480_v32  ;;  %vm8153_vm7 = vcmp.lt.s32.totalorder %v8152_v41, 0  ;;  %v3749_v17 = vshll.u32 %v8791_v9, %v3740_v44 }
 0x332   :  { %v7553_v46 = vsel %vm917_vm4, %v2165_v22, %v5481_v16  ;;  %v3693_v34 = vsel %vm8153_vm7, 0, %v8152_v41  ;;  %v3748_v33 = vor.u32 %v3747_v18, %v3746_v23  ;;  %vm12009_vm9 = vcmp.le.f32.partialorder %v3622_v63, 0.7853982 }
 0x333   :  { %8407 = vmatmul.mubr.msk.f32.gmra.mrb[10].mxu0 %vm7589_vm5, %v7553_v46  ;;  %v3694_v4 = vsub.s32 32, %v3693_v34  ;;  %v3695_v60 = vshll.u32 %v11948_v53, %v3693_v34  ;;  %v3698_v11 = vsub.s32 4294967266, %v3693_v34  ;;  %v3750_v35 = vshrl.u32 %v8792_v10, %v3741_v43 }
 0x334   :  { %v3752_v56 = vshll.u32 %v8792_v10, %v3740_v44  ;;  %v3753_v3 = vshrl.u32 %v8793_v55, %v3741_v43  ;;  %v3755_v0 = vshll.u32 %v8793_v55, %v3740_v44  ;;  %v3756_v30 = vshrl.u32 %v8794_v62, %v3741_v43 }
 0x335   :  { %v3696_v45 = vshrl.u32 %v3678_v12, %v3694_v4  ;;  %v3699_v15 = vadd.s32 127, %v3698_v11  ;;  %v3751_v63 = vor.u32 %v3750_v35, %v3749_v17  ;;  %vm3758_vm14 = vcmp.lt.s32.totalorder %v11980_v6, 1 }
 0x336   :  { %v3754_v14 = vor.u32 %v3753_v3, %v3752_v56  ;;  %v3757_v61 = vor.u32 %v3756_v30, %v3755_v0  ;;  %vm3759_vm0 = vcmp.lt.s32.totalorder %v11980_v6, 2  ;;  %vm3760_vm6 = vcmp.lt.s32.totalorder %v11980_v6, 3 }
 0x337   :  { %v3697_v53 = vor.u32 %v3696_v45, %v3695_v60  ;;  %v3700_v58 = vshll.u32 %v3699_v15, 23  ;;  %vm3761_vm15 = vcmp.lt.s32.totalorder %v11980_v6, 4  ;;  %v3762_v38 = vsel %vm3758_vm14, %v3742_v20, %v3745_v39 }
 0x338   :  { %v3763_v2 = vsel %vm3761_vm15, %v3751_v63, 2102212464  ;;  %v3766_v44 = vsel %vm3758_vm14, %v3745_v39, %v3748_v33  ;;  %v3767_v19 = vsel %vm3761_vm15, %v3754_v14, 920167782  ;;  %v3770_v43 = vsel %vm3758_vm14, %v3748_v33, %v3751_v63 }
 0x339   :  { %v3701_v12 = vor.u32 4788187, %v3700_v58  ;;  %v3704_v27 = vcvt.s32.f32 %v3697_v53  ;;  %v3764_v50 = vsel %vm3760_vm6, %v3748_v33, %v3763_v2  ;;  %v3768_v41 = vsel %vm3760_vm6, %v3751_v63, %v3767_v19 }
 0x33a   :  { %v3769_v31 = vsel %vm3759_vm0, %v3766_v44, %v3768_v41  ;;  %v3771_v13 = vsel %vm3761_vm15, %v3757_v61, 1326507024  ;;  %v12030_v32 = vmul.f32 %v11916_v8, %v856_v40  ;;  %v633_v20 = vsub.f32 %v11677_v7, %v11978_v29 }
 0x33b   :  { %v3702_v23 = vand.u32 2147483647, %v3701_v12  ;;  %v3772_v18 = vsel %vm3760_vm6, %v3754_v14, %v3771_v13  ;;  %v12037_v22 = vmul.u32.u64.low %v11967_v24, %v3769_v31  ;;  %v12038_v16 = vmul.u32.u64.high %v11967_v24, %v3769_v31, %v12037_v22 }
 0x33c   :  { %v3711_v39 = vsel %vm12009_vm9, 0, %v11975_v57  ;;  %v3765_v46 = vsel %vm3759_vm0, %v3762_v38, %v3764_v50  ;;  %v3773_v40 = vsel %vm3759_vm0, %v3770_v43, %v3772_v18  ;;  %v2166_v7 = vand.u32 2147483647, %v12030_v32 }
 0x33d   :  { %v3705_v29 = vmul.f32 %v3704_v27, %v3702_v23  ;;  %v12049_v34 = vmul.u32.u64.low %v11967_v24, %v3773_v40  ;;  %v12050_v33 = vmul.u32.u64.high %v11967_v24, %v3773_v40, %v12049_v34  ;;  %v2169_v17 = vand.u32 2139095040, %v12030_v32 }
 0x33e   :  { %v665_v4 = vsub.f32 %v11955_v26, %v633_v20  ;;  %v265_v57 = vmul.f32 16.0, %v233_v21  ;;  %v3781_v11 = vmul.u32 %v11967_v24, %v3765_v46  ;;  %v3784_v6 = vadd.s32 1, %v12038_v16 }
 0x33f   :  { %v3706_v60 = vxor.u32 2147483648, %v3705_v29  ;;  %v2170_v35 = vshrl.u32 %v2169_v17, 23  ;;  %v3715_v56 = vadd.s32 3, %v3711_v39  ;;  %v2173_v3 = vand.u32 8388607, %v2166_v7 }
 0x340   :  { %v697_v0 = vand.u32 2147483647, %v665_v4  ;;  %v12061_v30 = vcvt.s32.f32 %v11964_v5  ;;  %vm3783_vm10 = vc.u32 %v12050_v33, %v12037_v22  ;;  %v424_v15 = vadd.f32 1.0, %v11971_v54 }
 0x341   :  { %v3707_v26 = vsel %vm3624_vm12, %v3706_v60, %v3705_v29  ;;  %v8094_v45 = vadd.s32 4294967169, %v2170_v35  ;;  %v3785_v63 = vsel %vm3783_vm10, %v3784_v6, %v12038_v16  ;;  %vm297_vm8 = vcmp.gt.f32.partialorder %v265_v57, %v11809_v36 }
 0x342   :  { %v3710_v24 = vsel %vm12009_vm9, %v11768_v59, %v3707_v26  ;;  %v729_v14 = vmul.f32 22.5, %v697_v0  ;;  %v12072_v5 = vand.u32 3, %v3711_v39  ;;  %v3786_v61 = vadd.s32 %v3785_v63, %v3781_v11 }
 0x343   :  { %8690 = vcosq.f32 %v3710_v24  ;;  %v2176_v53 = vadd.s32 1, %v8094_v45  ;;  %v3716_v58 = vand.u32 3, %v3715_v56  ;;  %vm12074_vm12 = vcmp.gt.f32.partialorder %v697_v0, 8.0 }
 0x344   :  { %8692 = vsinq.f32 %v3710_v24  ;;  %v8026_v2 = vadd.f32 -360.0, %v729_v14  ;;  %v3787_v44 = vadd.s32 536870912, %v3786_v61  ;;  %v456_v52 = vmul.f32 16.0, %v424_v15 }
 0x345   :  { %vm2177_vm2 = vcmp.gt.s32.totalorder %v2176_v53, 0  ;;  %v7978_v19 = vsel %vm297_vm8, 1.0, %v8788_v47  ;;  %v2174_v43 = vor.u32 8388608, %v2173_v3  ;;  %vm7018_vm1 = vcmp.lt.s32.totalorder %v12072_v5, 2 }
 0x346   :  { %v2178_v12 = vsel %vm2177_vm2, %v2176_v53, 0  ;;  %v12080_v27 = vshrl.u32 %v3787_v44, 30  ;;  %v153_v41 = vadd.f32 0.5, %v12061_v30  ;;  %vm3714_vm11 = vweird.f32 %v11768_v59 }
 0x347   :  { %v2180_v50 = vand.u32 31, %v2178_v12  ;;  %vm7019_vm3 = vcmp.eq.s32.totalorder %v12072_v5, 0  ;;  %vm7022_vm13 = vcmp.eq.s32.totalorder %v12072_v5, 2  ;;  %v825_v31 = vsel %vm12074_vm12, %v8026_v2, %v729_v14 }
 0x348   :  { %v12090_v13 = vsub.f32 %v233_v21, %v7978_v19  ;;  %vm3717_vm7 = vcmp.lt.s32.totalorder %v3716_v58, 2  ;;  %v3789_v20 = vshll.u32 %v12080_v27, 30  ;;  %vm488_vm9 = vcmp.le.f32.partialorder %v456_v52, %v11792_v42 }
 0x349   :  { %v2181_v23 = vsub.s32 32, %v2180_v50  ;;  %vm3718_vm14 = vcmp.eq.s32.totalorder %v3716_v58, 0  ;;  %vm3721_vm0 = vcmp.eq.s32.totalorder %v3716_v58, 2  ;;  %v3782_v18 = vadd.s32 %v12037_v22, %v12050_v33 }
 0x34a   :  { %v12095_v16 = vshll.u32 %v2174_v43, 8  ;;  %v12097_v39 = vsub.s32 %v3786_v61, %v3789_v20  ;;  %v12099_v46 = vshrl.u32 %v2178_v12, 5  ;;  %v12101_v40 = vmul.f32 3.8197186, %v825_v31 }
 0x34b   :  { %v12103_v37 = vmul.f32 0.0625, %v153_v41  ;;  %v2183_v21 = vshll.u32 %v8789_v49, %v2180_v50  ;;  %v2184_v29 = vshrl.u32 %v8790_v51, %v2181_v23  ;;  %v12108_v34 = vsel %vm488_vm9, 1.0, %v8788_v47 }
 0x34c   :  { %v12111_v17 = vadd.f32 1.0, %v12090_v13  ;;  %v3792_v33 = vsub.s32 0, %v12097_v39  ;;  %v2186_v4 = vshll.u32 %v8790_v51, %v2180_v50  ;;  %v2187_v57 = vshrl.u32 %v8791_v9, %v2181_v23 }
 0x34d   :  { %v8691_v22 = vpop.eup %8690  ;;  %v2189_v60 = vshll.u32 %v8791_v9, %v2180_v50  ;;  %v2190_v35 = vshrl.u32 %v8792_v10, %v2181_v23  ;;  %v2192_v56 = vshll.u32 %v8792_v10, %v2180_v50  ;;  %v2193_v3 = vshrl.u32 %v8793_v55, %v2181_v23 }
 0x34e   :  { %v8693_v11 = vpop.eup %8692  ;;  %v3722_v6 = vxor.u32 2147483648, %v8691_v22  ;;  %vm3728_vm6 = vcmp.lt.s32.totalorder %v11919_v48, 0  ;;  %v8155_v26 = vmin.u32 %v3792_v33, %v12097_v39  ;;  %v3812_v45 = vsub.s32 4, %v12080_v27 }
 0x34f   :  { %v3719_v0 = vxor.u32 2147483648, %v8693_v11  ;;  %v2195_v15 = vshll.u32 %v8793_v55, %v2180_v50  ;;  %v2182_v14 = vshrl.u32 %v8789_v49, %v2181_v23  ;;  %v2185_v61 = vor.u32 %v2184_v29, %v2183_v21 }
 0x350   :  { %v3723_v24 = vsel %vm3721_vm0, %v3722_v6, %v8693_v11  ;;  %v7024_v63 = vsel %vm7022_vm13, %v3722_v6, %v8693_v11  ;;  %v3794_v2 = vclz %v8155_v26  ;;  %v2188_v44 = vor.u32 %v2187_v57, %v2186_v4 }
 0x351   :  { %v3720_v53 = vsel %vm3718_vm14, %v8691_v22, %v3719_v0  ;;  %v7021_v38 = vsel %vm7019_vm3, %v8691_v22, %v3719_v0  ;;  %v2191_v43 = vor.u32 %v2190_v35, %v2189_v60  ;;  %v2194_v12 = vor.u32 %v2193_v3, %v2192_v56 }
 0x352   :  { %v3724_v52 = vsel %vm3717_vm7, %v3720_v53, %v3723_v24  ;;  %v7025_v19 = vsel %vm7018_vm1, %v7021_v38, %v7024_v63  ;;  %v8156_v31 = vadd.s32 4294967294, %v3794_v2  ;;  %v2196_v20 = vshrl.u32 %v8794_v62, %v2181_v23 }
 0x353   :  { %v3725_v50 = vsel %vm3714_vm11, nan, %v3724_v52  ;;  %v7026_v41 = vsel %vm3714_vm11, nan, %v7025_v19  ;;  %vm2198_vm15 = vcmp.lt.s32.totalorder %v12099_v46, 1  ;;  %vm2199_vm10 = vcmp.lt.s32.totalorder %v12099_v46, 2 }
 0x354   :  { %v7568_v21 = vsel %vm917_vm4, %v3725_v50, %v7026_v41  ;;  %vm2200_vm8 = vcmp.lt.s32.totalorder %v12099_v46, 3  ;;  %vm8157_vm12 = vcmp.lt.s32.totalorder %v8156_v31, 0  ;;  %v2197_v5 = vor.u32 %v2196_v20, %v2195_v15 }
 0x355   :  { %8430 = vmatprep.mubr.msk.f32.mxu1 %vm7589_vm5, %v7568_v21  ;;  %vm2201_vm2 = vcmp.lt.s32.totalorder %v12099_v46, 4  ;;  %v2202_v59 = vsel %vm2198_vm15, %v2182_v14, %v2185_v61  ;;  %v3797_v58 = vsel %vm8157_vm12, 0, %v8156_v31  ;;  %v2206_v29 = vsel %vm2198_vm15, %v2185_v61, %v2188_v44 }
 0x356   :  { %v2203_v23 = vsel %vm2201_vm2, %v2191_v43, 2102212464  ;;  %v2207_v22 = vsel %vm2201_vm2, %v2194_v12, 920167782  ;;  %v3798_v33 = vsub.s32 32, %v3797_v58  ;;  %v3799_v4 = vshll.u32 %v12097_v39, %v3797_v58 }
 0x357   :  { %v3802_v57 = vsub.s32 4294967266, %v3797_v58  ;;  %v2204_v60 = vsel %vm2200_vm8, %v2188_v44, %v2203_v23  ;;  %v3813_v11 = vsel %vm3728_vm6, %v3812_v45, %v12080_v27  ;;  %v2208_v6 = vsel %vm2200_vm8, %v2191_v43, %v2207_v22 }
 0x358   :  { %v2210_v35 = vsel %vm2198_vm15, %v2188_v44, %v2191_v43  ;;  %v2211_v56 = vsel %vm2201_vm2, %v2197_v5, 1326507024  ;;  %v3800_v3 = vshrl.u32 %v3782_v18, %v3798_v33  ;;  %v2209_v39 = vsel %vm2199_vm10, %v2206_v29, %v2208_v6 }
 0x359   :  { %v3803_v0 = vadd.s32 127, %v3802_v57  ;;  %v2212_v26 = vsel %vm2200_vm8, %v2194_v12, %v2211_v56  ;;  %v2205_v15 = vsel %vm2199_vm10, %v2202_v59, %v2204_v60  ;;  %vm12179_vm1 = vcmp.le.f32.partialorder %v3726_v25, 0.7853982 }
 0x35a   :  { %v2213_v27 = vsel %vm2199_vm10, %v2210_v35, %v2212_v26  ;;  %v12169_v45 = vmul.u32.u64.low %v12095_v16, %v2209_v39  ;;  %v12170_v24 = vmul.u32.u64.high %v12095_v16, %v2209_v39, %v12169_v45  ;;  %v3801_v63 = vor.u32 %v3800_v3, %v3799_v4 }
 0x35b   :  { %v3804_v18 = vshll.u32 %v3803_v0, 23  ;;  %v12174_v14 = vmul.u32.u64.low %v12095_v16, %v2213_v27  ;;  %v12175_v61 = vmul.u32.u64.high %v12095_v16, %v2213_v27, %v12174_v14  ;;  %v12185_v46 = vmul.f32 %v11916_v8, %v12101_v40 }
 0x35c   :  { %v218_v38 = vfloor.f32 %v12103_v37  ;;  %v3808_v44 = vcvt.s32.f32 %v3801_v63  ;;  %v2221_v52 = vmul.u32 %v12095_v16, %v2205_v15  ;;  %v457_v19 = vmul.f32 16.0, %v12111_v17 }
 0x35d   :  { %v3805_v2 = vor.u32 4788187, %v3804_v18  ;;  %v3815_v43 = vsel %vm12179_vm1, 0, %v3813_v11  ;;  %v2224_v25 = vadd.s32 1, %v12170_v24  ;;  %v2273_v12 = vand.u32 2139095040, %v12185_v46 }
 0x35e   :  { %v584_v50 = vadd.f32 %v12108_v34, %v11971_v54  ;;  %vm2223_vm11 = vc.u32 %v12175_v61, %v12169_v45  ;;  %v56_v37 = vadd.s32 120, %v8847_v1  ;;  %v2270_v17 = vand.u32 2147483647, %v12185_v46 }
 0x35f   :  { %v3806_v40 = vand.u32 2147483647, %v3805_v2  ;;  %v2225_v16 = vsel %vm2223_vm11, %v2224_v25, %v12170_v24  ;;  %v2274_v41 = vshrl.u32 %v2273_v12, 23  ;;  %v250_v31 = vmul.f32 16.0, %v218_v38 }
 0x360   :  { %v3819_v21 = vadd.s32 3, %v3815_v43  ;;  %v2226_v5 = vadd.s32 %v2225_v16, %v2221_v52  ;;  %vm489_vm3 = vcmp.le.f32.partialorder %v457_v19, %v11809_v36  ;;  %v616_v58 = vmul.f32 16.0, %v584_v50 }
 0x361   :  { %v3809_v20 = vmul.f32 %v3808_v44, %v3806_v40  ;;  %v8098_v59 = vadd.s32 4294967169, %v2274_v41  ;;  %v8010_v23 = vsel %vm489_vm3, 1.0, %v8788_v47  ;;  %v2277_v29 = vand.u32 8388607, %v2270_v17 }
 0x362   :  { %v2227_v34 = vadd.s32 536870912, %v2226_v5  ;;  %vm282_vm13 = vcmp.gt.f32.partialorder %v250_v31, %v12061_v30  ;;  %v12206_v33 = vcvt.s32.f32 %v56_v37  ;;  %v12210_v57 = vand.u32 3, %v3819_v21 }
 0x363   :  { %v3810_v54 = vxor.u32 2147483648, %v3809_v20  ;;  %v2280_v22 = vadd.s32 1, %v8098_v59  ;;  %v12212_v60 = vand.u32 3, %v3815_v43  ;;  %v648_v35 = vsub.f32 %v11792_v42, %v616_v58 }
 0x364   :  { %v12214_v11 = vshrl.u32 %v2227_v34, 30  ;;  %v12221_v56 = vadd.f32 %v8010_v23, %v12090_v13  ;;  %v7963_v39 = vsel %vm282_vm13, 1.0, %v8788_v47  ;;  %v2278_v26 = vor.u32 8388608, %v2277_v29 }
 0x365   :  { %v3811_v4 = vsel %vm3728_vm6, %v3810_v54, %v3809_v20  ;;  %vm2281_vm7 = vcmp.gt.s32.totalorder %v2280_v22, 0  ;;  %vm3825_vm9 = vcmp.eq.s32.totalorder %v12210_v57, 2  ;;  %vm7125_vm14 = vcmp.eq.s32.totalorder %v12212_v60, 2 }
 0x366   :  { %v3814_v6 = vsel %vm12179_vm1, %v11919_v48, %v3811_v4  ;;  %v2229_v3 = vshll.u32 %v12214_v11, 30  ;;  %v2282_v0 = vsel %vm2281_vm7, %v2280_v22, 0  ;;  %vm3822_vm0 = vcmp.eq.s32.totalorder %v12210_v57, 0 }
 0x367   :  { %8694 = vcosq.f32 %v3814_v6  ;;  %v2284_v15 = vand.u32 31, %v2282_v0  ;;  %vm7122_vm6 = vcmp.eq.s32.totalorder %v12212_v60, 0  ;;  %v12231_v13 = vsub.f32 %v584_v50, %v648_v35 }
 0x368   :  { %8696 = vsinq.f32 %v3814_v6  ;;  %v12227_v27 = vsub.s32 %v2226_v5, %v2229_v3  ;;  %v12234_v24 = vmul.f32 16.0, %v12221_v56  ;;  %v12236_v63 = vsub.f32 %v218_v38, %v7963_v39 }
 0x369   :  { %v2285_v42 = vsub.s32 32, %v2284_v15  ;;  %vm3821_vm15 = vcmp.lt.s32.totalorder %v12210_v57, 2  ;;  %vm7121_vm10 = vcmp.lt.s32.totalorder %v12212_v60, 2  ;;  %v2287_v14 = vshll.u32 %v8789_v49, %v2284_v15 }
 0x36a   :  { %v2232_v18 = vsub.s32 0, %v12227_v27  ;;  %v2290_v53 = vshll.u32 %v8790_v51, %v2284_v15  ;;  %v12244_v2 = vadd.f32 0.5, %v12206_v33  ;;  %vm3818_vm8 = vweird.f32 %v11919_v48 }
 0x36b   :  { %v2222_v44 = vadd.s32 %v12169_v45, %v12175_v61  ;;  %v2288_v38 = vshrl.u32 %v8790_v51, %v2285_v42  ;;  %v2291_v52 = vshrl.u32 %v8791_v9, %v2285_v42  ;;  %v12251_v19 = vshll.u32 %v2278_v26, 8 }
 0x36c   :  { %v8095_v43 = vmin.u32 %v2232_v18, %v12227_v27  ;;  %v2283_v25 = vshrl.u32 %v2282_v0, 5  ;;  %v2293_v12 = vshll.u32 %v8791_v9, %v2284_v15  ;;  %v2294_v50 = vshrl.u32 %v8792_v10, %v2285_v42 }
 0x36d   :  { %v2252_v40 = vsub.s32 4, %v12214_v11  ;;  %v712_v37 = vand.u32 2147483647, %v12231_v13  ;;  %v649_v45 = vsub.f32 %v11809_v36, %v12234_v24  ;;  %v410_v61 = vadd.f32 1.0, %v12236_v63 }
 0x36e   :  { %v2234_v16 = vclz %v8095_v43  ;;  %v2286_v41 = vshrl.u32 %v8789_v49, %v2285_v42  ;;  %v2289_v31 = vor.u32 %v2288_v38, %v2287_v14  ;;  %v2292_v20 = vor.u32 %v2291_v52, %v2290_v53 }
 0x36f   :  { %v2296_v21 = vshll.u32 %v8792_v10, %v2284_v15  ;;  %v2297_v5 = vshrl.u32 %v8793_v55, %v2285_v42  ;;  %v2299_v59 = vshll.u32 %v8793_v55, %v2284_v15  ;;  %v2300_v58 = vshrl.u32 %v8794_v62, %v2285_v42 }
 0x370   :  { %v8096_v34 = vadd.s32 4294967294, %v2234_v16  ;;  %v2295_v23 = vor.u32 %v2294_v50, %v2293_v12  ;;  %vm2302_vm12 = vcmp.lt.s32.totalorder %v2283_v25, 1  ;;  %vm2303_vm2 = vcmp.lt.s32.totalorder %v2283_v25, 2 }
 0x371   :  { %v8695_v54 = vpop.eup %8694  ;;  %v2298_v22 = vor.u32 %v2297_v5, %v2296_v21  ;;  %vm2304_vm1 = vcmp.lt.s32.totalorder %v2283_v25, 3  ;;  %vm2305_vm11 = vcmp.lt.s32.totalorder %v2283_v25, 4  ;;  %v2301_v6 = vor.u32 %v2300_v58, %v2299_v59 }
 0x372   :  { %v8697_v36 = vpop.eup %8696  ;;  %v3826_v29 = vxor.u32 2147483648, %v8695_v54  ;;  %vm8097_vm3 = vcmp.lt.s32.totalorder %v8096_v34, 0  ;;  %v2307_v35 = vsel %vm2305_vm11, %v2295_v23, 2102212464  ;;  %v2306_v26 = vsel %vm2302_vm12, %v2286_v41, %v2289_v31 }
 0x373   :  { %v3823_v4 = vxor.u32 2147483648, %v8697_v36  ;;  %v2237_v39 = vsel %vm8097_vm3, 0, %v8096_v34  ;;  %v2308_v38 = vsel %vm2304_vm1, %v2292_v20, %v2307_v35  ;;  %v2310_v50 = vsel %vm2302_vm12, %v2289_v31, %v2292_v20 }
 0x374   :  { %v3827_v3 = vsel %vm3825_vm9, %v3826_v29, %v8697_v36  ;;  %v7127_v0 = vsel %vm7125_vm14, %v3826_v29, %v8697_v36  ;;  %v2238_v13 = vsub.s32 32, %v2237_v39  ;;  %v2239_v24 = vshll.u32 %v12227_v27, %v2237_v39 }
 0x375   :  { %v3824_v15 = vsel %vm3822_vm0, %v8695_v54, %v3823_v4  ;;  %v7124_v42 = vsel %vm7122_vm6, %v8695_v54, %v3823_v4  ;;  %v2242_v53 = vsub.s32 4294967266, %v2237_v39  ;;  %v2311_v16 = vsel %vm2305_vm11, %v2298_v22, 920167782 }
 0x376   :  { %v3828_v18 = vsel %vm3821_vm15, %v3824_v15, %v3827_v3  ;;  %v7128_v14 = vsel %vm7121_vm10, %v7124_v42, %v7127_v0  ;;  %v2240_v12 = vshrl.u32 %v2222_v44, %v2238_v13  ;;  %v2314_v60 = vsel %vm2302_vm12, %v2292_v20, %v2295_v23 }
 0x377   :  { %v3829_v52 = vsel %vm3818_vm8, nan, %v3828_v18  ;;  %v7129_v43 = vsel %vm3818_vm8, nan, %v7128_v14  ;;  %v2243_v57 = vadd.s32 127, %v2242_v53  ;;  %v2309_v21 = vsel %vm2303_vm2, %v2306_v26, %v2308_v38 }
 0x378   :  { %v7569_v27 = vsel %vm917_vm4, %v3829_v52, %v7129_v43  ;;  %v2241_v41 = vor.u32 %v2240_v12, %v2239_v24  ;;  %v2312_v5 = vsel %vm2304_vm1, %v2295_v23, %v2311_v16  ;;  %v2315_v48 = vsel %vm2305_vm11, %v2301_v6, 1326507024 }
 0x379   :  { %8431 = vmatmul.mubr.msk.f32.gmra.mrb[10].mxu1 %vm7589_vm5, %v7569_v27  ;;  %v2244_v44 = vshll.u32 %v2243_v57, 23  ;;  %v2313_v31 = vsel %vm2303_vm2, %v2310_v50, %v2312_v5  ;;  %v2316_v59 = vsel %vm2304_vm1, %v2298_v22, %v2315_v48  ;;  %v744_v58 = vmul.f32 22.5, %v712_v37 }
 0x37a   :  { %v2248_v54 = vcvt.s32.f32 %v2241_v41  ;;  %v2317_v34 = vsel %vm2303_vm2, %v2314_v60, %v2316_v59  ;;  %v12299_v20 = vmul.u32.u64.low %v12251_v19, %v2313_v31  ;;  %v12300_v36 = vmul.u32.u64.high %v12251_v19, %v2313_v31, %v12299_v20 }
 0x37b   :  { %v2245_v29 = vor.u32 4788187, %v2244_v44  ;;  %v12304_v4 = vmul.u32.u64.low %v12251_v19, %v2317_v34  ;;  %v12305_v23 = vmul.u32.u64.high %v12251_v19, %v2317_v34, %v12304_v4  ;;  %vm12307_vm13 = vcmp.gt.f32.partialorder %v712_v37, 8.0 }
 0x37c   :  { %vm2168_vm7 = vcmp.lt.s32.totalorder %v12030_v32, 0  ;;  %v8041_v22 = vadd.f32 -360.0, %v744_v58  ;;  %v681_v25 = vsub.f32 %v12221_v56, %v649_v45  ;;  %v442_v35 = vmul.f32 16.0, %v410_v61 }
 0x37d   :  { %v2246_v3 = vand.u32 2147483647, %v2245_v29  ;;  %v2253_v0 = vsel %vm2168_vm7, %v2252_v40, %v12214_v11  ;;  %v2325_v39 = vmul.u32 %v12251_v19, %v2309_v21  ;;  %v2328_v37 = vadd.s32 1, %v12300_v36 }
 0x37e   :  { %v840_v26 = vsel %vm12307_vm13, %v8041_v22, %v744_v58  ;;  %v713_v15 = vand.u32 2147483647, %v681_v25  ;;  %v12323_v42 = vmul.f32 0.0625, %v12244_v2  ;;  %vm12327_vm9 = vcmp.le.f32.partialorder %v2166_v7, 0.7853982 }
 0x37f   :  { %v2249_v45 = vmul.f32 %v2248_v54, %v2246_v3  ;;  %vm2327_vm14 = vc.u32 %v12305_v23, %v12299_v20  ;;  %v872_v11 = vmul.f32 3.8197186, %v840_v26  ;;  %v2255_v19 = vsel %vm12327_vm9, 0, %v2253_v0 }
 0x380   :  { %v2329_v40 = vsel %vm2327_vm14, %v2328_v37, %v12300_v36  ;;  %v745_v61 = vmul.f32 22.5, %v713_v15  ;;  %vm474_vm0 = vcmp.le.f32.partialorder %v442_v35, %v12061_v30  ;;  %vm12340_vm6 = vcmp.gt.f32.partialorder %v713_v15, 8.0 }
 0x381   :  { %v2250_v2 = vxor.u32 2147483648, %v2249_v45  ;;  %v2330_v13 = vadd.s32 %v2329_v40, %v2325_v39  ;;  %v12338_v7 = vmul.f32 %v11916_v8, %v872_v11  ;;  %v219_v14 = vfloor.f32 %v12323_v42 }
 0x382   :  { %v8042_v18 = vadd.f32 -360.0, %v745_v61  ;;  %v2259_v38 = vadd.s32 3, %v2255_v19  ;;  %v7995_v57 = vsel %vm474_vm0, 1.0, %v8788_v47  ;;  %v12355_v16 = vand.u32 3, %v2255_v19 }
 0x383   :  { %v2251_v53 = vsel %vm2168_vm7, %v2250_v2, %v2249_v45  ;;  %v2331_v52 = vadd.s32 536870912, %v2330_v13  ;;  %v3830_v43 = vand.u32 2147483647, %v12338_v7  ;;  %v3833_v50 = vand.u32 2139095040, %v12338_v7 }
 0x384   :  { %v2254_v12 = vsel %vm12327_vm9, %v12030_v32, %v2251_v53  ;;  %v841_v27 = vsel %vm12340_vm6, %v8042_v18, %v745_v61  ;;  %v71_v5 = vadd.s32 240, %v8847_v1  ;;  %v12361_v59 = vadd.f32 %v7995_v57, %v12236_v63 }
 0x385   :  { %8698 = vcosq.f32 %v2254_v12  ;;  %v2332_v60 = vshrl.u32 %v2331_v52, 30  ;;  %v3834_v41 = vshrl.u32 %v3833_v50, 23  ;;  %v873_v21 = vmul.f32 3.8197186, %v841_v27 }
 0x386   :  { %8700 = vsinq.f32 %v2254_v12  ;;  %v3837_v31 = vand.u32 8388607, %v3830_v43  ;;  %v2260_v58 = vand.u32 3, %v2259_v38  ;;  %vm2272_vm15 = vcmp.lt.s32.totalorder %v12185_v46, 0 }
 0x387   :  { %v2333_v48 = vshll.u32 %v2332_v60, 30  ;;  %v2356_v44 = vsub.s32 4, %v2332_v60  ;;  %v8158_v54 = vadd.s32 4294967169, %v3834_v41  ;;  %v251_v34 = vmul.f32 16.0, %v219_v14 }
 0x388   :  { %vm5576_vm10 = vcmp.lt.s32.totalorder %v12355_v16, 2  ;;  %vm12369_vm8 = vcmp.le.f32.partialorder %v2270_v17, 0.7853982  ;;  %v12376_v63 = vmul.f32 %v11916_v8, %v873_v21  ;;  %vm2258_vm12 = vweird.f32 %v12030_v32 }
 0x389   :  { %v12373_v29 = vsub.s32 %v2330_v13, %v2333_v48  ;;  %vm5577_vm2 = vcmp.eq.s32.totalorder %v12355_v16, 0  ;;  %v2357_v4 = vsel %vm2272_vm15, %v2356_v44, %v2332_v60  ;;  %v3840_v6 = vadd.s32 1, %v8158_v54 }
 0x38a   :  { %v12382_v22 = vcvt.s32.f32 %v71_v5  ;;  %vm5580_vm1 = vcmp.eq.s32.totalorder %v12355_v16, 2  ;;  %v3838_v25 = vor.u32 8388608, %v3837_v31  ;;  %v12387_v35 = vmul.f32 16.0, %v12361_v59 }
 0x38b   :  { %v2336_v17 = vsub.s32 0, %v12373_v29  ;;  %vm2261_vm11 = vcmp.lt.s32.totalorder %v2260_v58, 2  ;;  %vm3841_vm3 = vcmp.gt.s32.totalorder %v3840_v6, 0  ;;  %v3934_v8 = vand.u32 2147483647, %v12376_v63 }
 0x38c   :  { %vm283_vm13 = vcmp.gt.f32.partialorder %v251_v34, %v12206_v33  ;;  %vm2262_vm7 = vcmp.eq.s32.totalorder %v2260_v58, 0  ;;  %v12394_v0 = vsel %vm12369_vm8, 0, %v2357_v4  ;;  %v3937_v39 = vand.u32 2139095040, %v12376_v63 }
 0x38d   :  { %v8099_v3 = vmin.u32 %v2336_v17, %v12373_v29  ;;  %vm2265_vm9 = vcmp.eq.s32.totalorder %v2260_v58, 2  ;;  %v2326_v37 = vadd.s32 %v12299_v20, %v12305_v23  ;;  %v3842_v26 = vsel %vm3841_vm3, %v3840_v6, 0 }
 0x38e   :  { %v12400_v15 = vadd.f32 0.5, %v12382_v22  ;;  %v12402_v11 = vshll.u32 %v3838_v25, 8  ;;  %v634_v19 = vsub.f32 %v12061_v30, %v12387_v35  ;;  %v12407_v40 = vsel %vm283_vm13, 1.0, %v8788_v47 }
 0x38f   :  { %v8699_v56 = vpop.eup %8698  ;;  %v2338_v45 = vclz %v8099_v3  ;;  %v12410_v13 = vadd.s32 3, %v12394_v0  ;;  %v3844_v20 = vand.u32 31, %v3842_v26  ;;  %v12414_v23 = vand.u32 8388607, %v3934_v8 }
 0x390   :  { %v8701_v61 = vpop.eup %8700  ;;  %v2266_v2 = vxor.u32 2147483648, %v8699_v56  ;;  %v12416_v53 = vshrl.u32 %v3842_v26, 5  ;;  %v3938_v38 = vshrl.u32 %v3937_v39, 23  ;;  %vm2362_vm13 = vweird.f32 %v12185_v46 }
 0x391   :  { %v2263_v24 = vxor.u32 2147483648, %v8701_v61  ;;  %v8100_v18 = vadd.s32 4294967294, %v2338_v45  ;;  %v3845_v50 = vsub.s32 32, %v3844_v20  ;;  %v3847_v27 = vshll.u32 %v8789_v49, %v3844_v20 }
 0x392   :  { %v2267_v52 = vsel %vm2265_vm9, %v2266_v2, %v8701_v61  ;;  %v5582_v12 = vsel %vm5580_vm1, %v2266_v2, %v8701_v61  ;;  %v3850_v41 = vshll.u32 %v8790_v51, %v3844_v20  ;;  %v3853_v3 = vshll.u32 %v8791_v9, %v3844_v20 }
 0x393   :  { %v2264_v57 = vsel %vm2262_vm7, %v8699_v56, %v2263_v24  ;;  %v5579_v60 = vsel %vm5577_vm2, %v8699_v56, %v2263_v24  ;;  %vm8101_vm14 = vcmp.lt.s32.totalorder %v8100_v18, 0  ;;  %v3846_v44 = vshrl.u32 %v8789_v49, %v3845_v50 }
 0x394   :  { %v2268_v21 = vsel %vm2261_vm11, %v2264_v57, %v2267_v52  ;;  %v5583_v5 = vsel %vm5576_vm10, %v5579_v60, %v5582_v12  ;;  %v2341_v48 = vsel %vm8101_vm14, 0, %v8100_v18  ;;  %v3848_v17 = vshrl.u32 %v8790_v51, %v3845_v50 }
 0x395   :  { %v2269_v31 = vsel %vm2258_vm12, nan, %v2268_v21  ;;  %v5584_v54 = vsel %vm2258_vm12, nan, %v5583_v5  ;;  %v2342_v34 = vsub.s32 32, %v2341_v48  ;;  %v2343_v4 = vshll.u32 %v12373_v29, %v2341_v48 }
 0x396   :  { %v7554_v6 = vsel %vm917_vm4, %v2269_v31, %v5584_v54  ;;  %v2346_v58 = vsub.s32 4294967266, %v2341_v48  ;;  %v3851_v16 = vshrl.u32 %v8791_v9, %v3845_v50  ;;  %v3854_v39 = vshrl.u32 %v8792_v10, %v3845_v50 }
 0x397   :  { %8409 = vmatprep.mubr.msk.f32.mxu0 %vm7589_vm5, %v7554_v6  ;;  %v2344_v25 = vshrl.u32 %v2326_v37, %v2342_v34  ;;  %v3856_v32 = vshll.u32 %v8792_v10, %v3844_v20  ;;  %v3849_v56 = vor.u32 %v3848_v17, %v3847_v27  ;;  %v3857_v45 = vshrl.u32 %v8793_v55, %v3845_v50 }
 0x398   :  { %v2347_v26 = vadd.s32 127, %v2346_v58  ;;  %v3852_v29 = vor.u32 %v3851_v16, %v3850_v41  ;;  %v3855_v2 = vor.u32 %v3854_v39, %v3853_v3  ;;  %v3859_v24 = vshll.u32 %v8793_v55, %v3844_v20 }
 0x399   :  { %v2345_v61 = vor.u32 %v2344_v25, %v2343_v4  ;;  %v3860_v18 = vshrl.u32 %v8794_v62, %v3845_v50  ;;  %v3858_v12 = vor.u32 %v3857_v45, %v3856_v32  ;;  %vm3862_vm0 = vcmp.lt.s32.totalorder %v12416_v53, 1 }
 0x39a   :  { %v2348_v52 = vshll.u32 %v2347_v26, 23  ;;  %v8162_v37 = vadd.s32 4294967169, %v3938_v38  ;;  %vm3863_vm6 = vcmp.lt.s32.totalorder %v12416_v53, 2  ;;  %vm3864_vm10 = vcmp.lt.s32.totalorder %v12416_v53, 3 }
 0x39b   :  { %v3861_v57 = vor.u32 %v3860_v18, %v3859_v24  ;;  %vm3865_vm12 = vcmp.lt.s32.totalorder %v12416_v53, 4  ;;  %v2352_v60 = vcvt.s32.f32 %v2345_v61  ;;  %v3870_v21 = vsel %vm3862_vm0, %v3849_v56, %v3852_v29 }
 0x39c   :  { %v2349_v27 = vor.u32 4788187, %v2348_v52  ;;  %v3867_v41 = vsel %vm3865_vm12, %v3855_v2, 2102212464  ;;  %v3866_v5 = vsel %vm3862_vm0, %v3846_v44, %v3849_v56  ;;  %v3871_v20 = vsel %vm3865_vm12, %v3858_v12, 920167782 }
 0x39d   :  { %v3874_v48 = vsel %vm3862_vm0, %v3852_v29, %v3855_v2  ;;  %v3875_v50 = vsel %vm3865_vm12, %v3861_v57, 1326507024  ;;  %v3868_v54 = vsel %vm3864_vm10, %v3852_v29, %v3867_v41  ;;  %v3872_v34 = vsel %vm3864_vm10, %v3855_v2, %v3871_v20 }
 0x39e   :  { %v2350_v31 = vand.u32 2147483647, %v2349_v27  ;;  %v3876_v4 = vsel %vm3864_vm10, %v3858_v12, %v3875_v50  ;;  %v3873_v38 = vsel %vm3863_vm6, %v3870_v21, %v3872_v34  ;;  %v3944_v58 = vadd.s32 1, %v8162_v37 }
 0x39f   :  { %v3877_v6 = vsel %vm3863_vm6, %v3874_v48, %v3876_v4  ;;  %v12458_v17 = vsub.f32 %v12361_v59, %v634_v19  ;;  %v12467_v3 = vsub.f32 %v219_v14, %v12407_v40  ;;  %v3869_v39 = vsel %vm3863_vm6, %v3866_v5, %v3868_v54 }
 0x3a0   :  { %v2353_v44 = vmul.f32 %v2352_v60, %v2350_v31  ;;  %v12461_v16 = vmul.u32.u64.low %v12402_v11, %v3877_v6  ;;  %v12462_v25 = vmul.u32.u64.high %v12402_v11, %v3877_v6, %v12461_v16  ;;  %vm3945_vm2 = vcmp.gt.s32.totalorder %v3944_v58, 0 }
 0x3a1   :  { %v12472_v32 = vmul.u32.u64.low %v12402_v11, %v3873_v38  ;;  %v12473_v26 = vmul.u32.u64.high %v12402_v11, %v3873_v38, %v12472_v32  ;;  %v12477_v59 = vand.u32 3, %v12394_v0  ;;  %v3946_v35 = vsel %vm3945_vm2, %v3944_v58, 0 }
 0x3a2   :  { %v2354_v30 = vxor.u32 2147483648, %v2353_v44  ;;  %v12480_v19 = vmul.f32 0.0625, %v12400_v15  ;;  %v12483_v42 = vand.u32 3, %v12410_v13  ;;  %v3942_v14 = vor.u32 8388608, %v12414_v23 }
 0x3a3   :  { %v3948_v40 = vand.u32 31, %v3946_v35  ;;  %v698_v53 = vand.u32 2147483647, %v12458_v17  ;;  %v3885_v29 = vmul.u32 %v12402_v11, %v3869_v39  ;;  %vm3887_vm1 = vc.u32 %v12462_v25, %v12472_v32 }
 0x3a4   :  { %v2355_v56 = vsel %vm2272_vm15, %v2354_v30, %v2353_v44  ;;  %v12492_v0 = vshrl.u32 %v3946_v35, 5  ;;  %v3888_v13 = vadd.s32 1, %v12473_v26  ;;  %vm5683_vm15 = vcmp.eq.s32.totalorder %v12477_v59, 2 }
 0x3a5   :  { %v2358_v15 = vsel %vm12369_vm8, %v12185_v46, %v2355_v56  ;;  %v3949_v23 = vsub.s32 32, %v3948_v40  ;;  %v3951_v45 = vshll.u32 %v8789_v49, %v3948_v40  ;;  %v3954_v61 = vshll.u32 %v8790_v51, %v3948_v40 }
 0x3a6   :  { %8702 = vcosq.f32 %v2358_v15  ;;  %v3957_v2 = vshll.u32 %v8791_v9, %v3948_v40  ;;  %v3960_v11 = vshll.u32 %v8792_v10, %v3948_v40  ;;  %v3889_v24 = vsel %vm3887_vm1, %v3888_v13, %v12473_v26 }
 0x3a7   :  { %8704 = vsinq.f32 %v2358_v15  ;;  %v3952_v18 = vshrl.u32 %v8790_v51, %v3949_v23  ;;  %v730_v52 = vmul.f32 22.5, %v698_v53  ;;  %v3890_v36 = vadd.s32 %v3889_v24, %v3885_v29 }
 0x3a8   :  { %v3955_v12 = vshrl.u32 %v8791_v9, %v3949_v23  ;;  %v3958_v37 = vshrl.u32 %v8792_v10, %v3949_v23  ;;  %v3961_v57 = vshrl.u32 %v8793_v55, %v3949_v23  ;;  %vm5680_vm8 = vcmp.eq.s32.totalorder %v12477_v59, 0 }
 0x3a9   :  { %v3953_v27 = vor.u32 %v3952_v18, %v3951_v45  ;;  %v3963_v60 = vshll.u32 %v8793_v55, %v3948_v40  ;;  %v3964_v41 = vshrl.u32 %v8794_v62, %v3949_v23  ;;  %vm3966_vm11 = vcmp.lt.s32.totalorder %v12492_v0, 1 }
 0x3aa   :  { %vm5679_vm3 = vcmp.lt.s32.totalorder %v12477_v59, 2  ;;  %v3891_v21 = vadd.s32 536870912, %v3890_v36  ;;  %v3956_v5 = vor.u32 %v3955_v12, %v3954_v61  ;;  %v3959_v20 = vor.u32 %v3958_v37, %v3957_v2 }
 0x3ab   :  { %v3962_v48 = vor.u32 %v3961_v57, %v3960_v11  ;;  %vm2366_vm7 = vcmp.eq.s32.totalorder %v12483_v42, 0  ;;  %v3965_v50 = vor.u32 %v3964_v41, %v3963_v60  ;;  %vm3968_vm9 = vcmp.lt.s32.totalorder %v12492_v0, 3 }
 0x3ac   :  { %vm3969_vm14 = vcmp.lt.s32.totalorder %v12492_v0, 4  ;;  %v3892_v31 = vshrl.u32 %v3891_v21, 30  ;;  %v3950_v54 = vshrl.u32 %v8789_v49, %v3949_v23  ;;  %vm3967_vm0 = vcmp.lt.s32.totalorder %v12492_v0, 2 }
 0x3ad   :  { %v3982_v34 = vshll.u32 %v3942_v14, 8  ;;  %v3974_v4 = vsel %vm3966_vm11, %v3953_v27, %v3956_v5  ;;  %v3975_v38 = vsel %vm3969_vm14, %v3962_v48, 920167782  ;;  %v3978_v6 = vsel %vm3966_vm11, %v3956_v5, %v3959_v20 }
 0x3ae   :  { %v3979_v58 = vsel %vm3969_vm14, %v3965_v50, 1326507024  ;;  %v3893_v17 = vshll.u32 %v3892_v31, 30  ;;  %v3971_v44 = vsel %vm3969_vm14, %v3959_v20, 2102212464  ;;  %v3976_v16 = vsel %vm3968_vm9, %v3959_v20, %v3975_v38 }
 0x3af   :  { %v8027_v39 = vadd.f32 -360.0, %v730_v52  ;;  %vm2369_vm6 = vcmp.eq.s32.totalorder %v12483_v42, 2  ;;  %v3980_v26 = vsel %vm3968_vm9, %v3962_v48, %v3979_v58  ;;  %vm12528_vm10 = vcmp.gt.f32.partialorder %v698_v53, 8.0  ;;  %v12585_v58 = vld [vmem:[#allocation2] ss:$0 sm:$0xff] }
 0x3b0   :  { %v411_v35 = vadd.f32 1.0, %v12467_v3  ;;  %v8703_v14 = vpop.eup %8702  ;;  %v12533_v40 = vsub.s32 %v3890_v36, %v3893_v17  ;;  %v3970_v56 = vsel %vm3966_vm11, %v3950_v54, %v3953_v27  ;;  %v3977_v29 = vsel %vm3967_vm0, %v3974_v4, %v3976_v16 }
 0x3b1   :  { %v3981_v15 = vsel %vm3967_vm0, %v3978_v6, %v3980_v26  ;;  %v8705_v13 = vpop.eup %8704  ;;  %v2370_v23 = vxor.u32 2147483648, %v8703_v14  ;;  %v3972_v53 = vsel %vm3968_vm9, %v3956_v5, %v3971_v44  ;;  %vm2365_vm12 = vcmp.lt.s32.totalorder %v12483_v42, 2 }
 0x3b2   :  { %v12543_v45 = vmul.u32.u64.low %v3982_v34, %v3981_v15  ;;  %v12544_v61 = vmul.u32.u64.high %v3982_v34, %v3981_v15, %v12543_v45  ;;  %v2367_v2 = vxor.u32 2147483648, %v8705_v13  ;;  %v3896_v11 = vsub.s32 0, %v12533_v40 }
 0x3b3   :  { %v826_v24 = vsel %vm12528_vm10, %v8027_v39, %v730_v52  ;;  %v2371_v18 = vsel %vm2369_vm6, %v2370_v23, %v8705_v13  ;;  %v5685_v36 = vsel %vm5683_vm15, %v2370_v23, %v8705_v13  ;;  %v3973_v52 = vsel %vm3967_vm0, %v3970_v56, %v3972_v53 }
 0x3b4   :  { %v12554_v12 = vmul.u32.u64.low %v3982_v34, %v3977_v29  ;;  %v12555_v37 = vmul.u32.u64.high %v3982_v34, %v3977_v29, %v12554_v12  ;;  %v2368_v57 = vsel %vm2366_vm7, %v8703_v14, %v2367_v2  ;;  %v5682_v27 = vsel %vm5680_vm8, %v8703_v14, %v2367_v2 }
 0x3b5   :  { %v8159_v60 = vmin.u32 %v3896_v11, %v12533_v40  ;;  %v2372_v41 = vsel %vm2365_vm12, %v2368_v57, %v2371_v18  ;;  %v5686_v21 = vsel %vm5679_vm3, %v5682_v27, %v5685_v36  ;;  %v858_v5 = vmul.f32 3.8197186, %v826_v24 }
 0x3b6   :  { %v443_v20 = vmul.f32 16.0, %v411_v35  ;;  %v2373_v48 = vsel %vm2362_vm13, nan, %v2372_v41  ;;  %v5687_v42 = vsel %vm2362_vm13, nan, %v5686_v21  ;;  %v3916_v54 = vsub.s32 4, %v3892_v31 }
 0x3b7   :  { %v3898_v50 = vclz %v8159_v60  ;;  %v7555_v4 = vsel %vm917_vm4, %v2373_v48, %v5687_v42  ;;  %v3989_v38 = vmul.u32 %v3982_v34, %v3973_v52  ;;  %v72_v0 = vadd.s32 248, %v8847_v1 }
 0x3b8   :  { %8410 = vmatmul.mubr.msk.f32.gmra.mrb[12].mxu0 %vm7589_vm5, %v7555_v4  ;;  %vm3832_vm2 = vcmp.lt.s32.totalorder %v12338_v7, 0  ;;  %vm3991_vm1 = vc.u32 %v12544_v61, %v12554_v12  ;;  %v3992_v6 = vadd.s32 1, %v12555_v37  ;;  %vm12581_vm15 = vcmp.le.f32.partialorder %v3830_v43, 0.7853982 }
 0x3b9   :  { %v8160_v59 = vadd.s32 4294967294, %v3898_v50  ;;  %v12588_v1 = vmul.f32 %v12585_v58, %v858_v5  ;;  %vm475_vm8 = vcmp.le.f32.partialorder %v443_v20, %v12206_v33  ;;  %v234_v34 = vfloor.f32 %v12480_v19 }
 0x3ba   :  { %v3886_v17 = vadd.s32 %v12472_v32, %v12462_v25  ;;  %v3917_v44 = vsel %vm3832_vm2, %v3916_v54, %v3892_v31  ;;  %v3993_v43 = vsel %vm3991_vm1, %v3992_v6, %v12555_v37  ;;  %v7996_v30 = vsel %vm475_vm8, 1.0, %v8788_v47 }
 0x3bb   :  { %vm8161_vm11 = vcmp.lt.s32.totalorder %v8160_v59, 0  ;;  %v3994_v39 = vadd.s32 %v3993_v43, %v3989_v38  ;;  %v2374_v26 = vand.u32 2147483647, %v12588_v1  ;;  %v2377_v19 = vand.u32 2139095040, %v12588_v1 }
 0x3bc   :  { %v3901_v16 = vsel %vm8161_vm11, 0, %v8160_v59  ;;  %v3919_v25 = vsel %vm12581_vm15, 0, %v3917_v44  ;;  %v571_v13 = vadd.f32 %v7996_v30, %v12467_v3  ;;  %v266_v45 = vmul.f32 16.0, %v234_v34 }
 0x3bd   :  { %v3902_v35 = vsub.s32 32, %v3901_v16  ;;  %v3903_v14 = vshll.u32 %v12533_v40, %v3901_v16  ;;  %v3906_v56 = vsub.s32 4294967266, %v3901_v16  ;;  %v3995_v32 = vadd.s32 536870912, %v3994_v39 }
 0x3be   :  { %v2378_v15 = vshrl.u32 %v2377_v19, 23  ;;  %v2381_v53 = vand.u32 8388607, %v2374_v26  ;;  %v12606_v2 = vcvt.s32.f32 %v72_v0  ;;  %v603_v18 = vmul.f32 16.0, %v571_v13 }
 0x3bf   :  { %v3904_v29 = vshrl.u32 %v3886_v17, %v3902_v35  ;;  %v3907_v31 = vadd.s32 127, %v3906_v56  ;;  %v3996_v23 = vshrl.u32 %v3995_v32, 30  ;;  %v3923_v36 = vadd.s32 3, %v3919_v25 }
 0x3c0   :  { %v8102_v24 = vadd.s32 4294967169, %v2378_v15  ;;  %v635_v52 = vsub.f32 %v12206_v33, %v603_v18  ;;  %v2382_v3 = vor.u32 8388608, %v2381_v53  ;;  %vm298_vm3 = vcmp.gt.f32.partialorder %v266_v45, %v12382_v22 }
 0x3c1   :  { %v3905_v40 = vor.u32 %v3904_v29, %v3903_v14  ;;  %v3908_v11 = vshll.u32 %v3907_v31, 23  ;;  %v3997_v37 = vshll.u32 %v3996_v23, 30  ;;  %v170_v21 = vadd.f32 0.5, %v12606_v2 }
 0x3c2   :  { %v2384_v60 = vadd.s32 1, %v8102_v24  ;;  %vm3936_vm13 = vcmp.lt.s32.totalorder %v12376_v63, 0  ;;  %v4020_v20 = vsub.s32 4, %v3996_v23  ;;  %v12614_v48 = vand.u32 3, %v3919_v25 }
 0x3c3   :  { %v3909_v57 = vor.u32 4788187, %v3908_v11  ;;  %v3912_v27 = vcvt.s32.f32 %v3905_v40  ;;  %v12609_v41 = vsub.s32 %v3994_v39, %v3997_v37  ;;  %v12617_v54 = vsub.f32 %v571_v13, %v635_v52 }
 0x3c4   :  { %vm2385_vm7 = vcmp.gt.s32.totalorder %v2384_v60, 0  ;;  %v12619_v4 = vand.u32 3, %v3923_v36  ;;  %v7979_v0 = vsel %vm298_vm3, 1.0, %v8788_v47  ;;  %v3990_v59 = vadd.s32 %v12554_v12, %v12544_v61 }
 0x3c5   :  { %v3910_v5 = vand.u32 2147483647, %v3909_v57  ;;  %v4000_v42 = vsub.s32 0, %v12609_v41  ;;  %v2386_v50 = vsel %vm2385_vm7, %v2384_v60, 0  ;;  %v12625_v17 = vshll.u32 %v2382_v3, 8 }
 0x3c6   :  { %v2388_v38 = vand.u32 31, %v2386_v50  ;;  %v12627_v44 = vmul.f32 0.0625, %v170_v21  ;;  %v12631_v16 = vsel %vm3936_vm13, %v4020_v20, %v3996_v23  ;;  %v2387_v14 = vshrl.u32 %v2386_v50, 5 }
 0x3c7   :  { %v3913_v33 = vmul.f32 %v3912_v27, %v3910_v5  ;;  %v8163_v6 = vmin.u32 %v4000_v42, %v12609_v41  ;;  %v699_v56 = vand.u32 2147483647, %v12617_v54  ;;  %v12635_v19 = vsub.f32 %v234_v34, %v7979_v0 }
 0x3c8   :  { %v2389_v39 = vsub.s32 32, %v2388_v38  ;;  %v2391_v30 = vshll.u32 %v8789_v49, %v2388_v38  ;;  %v2394_v32 = vshll.u32 %v8790_v51, %v2388_v38  ;;  %v2397_v13 = vshll.u32 %v8791_v9, %v2388_v38 }
 0x3c9   :  { %v3914_v43 = vxor.u32 2147483648, %v3913_v33  ;;  %v4002_v35 = vclz %v8163_v6  ;;  %v2400_v53 = vshll.u32 %v8792_v10, %v2388_v38  ;;  %vm3929_vm14 = vcmp.eq.s32.totalorder %v12619_v4, 2 }
 0x3ca   :  { %v2390_v12 = vshrl.u32 %v8789_v49, %v2389_v39  ;;  %v2392_v25 = vshrl.u32 %v8790_v51, %v2389_v39  ;;  %v2395_v15 = vshrl.u32 %v8791_v9, %v2389_v39  ;;  %v2398_v23 = vshrl.u32 %v8792_v10, %v2389_v39 }
 0x3cb   :  { %v3915_v61 = vsel %vm3832_vm2, %v3914_v43, %v3913_v33  ;;  %v8164_v31 = vadd.s32 4294967294, %v4002_v35  ;;  %v2401_v40 = vshrl.u32 %v8793_v55, %v2389_v39  ;;  %vm7228_vm0 = vcmp.eq.s32.totalorder %v12614_v48, 2 }
 0x3cc   :  { %v3918_v29 = vsel %vm12581_vm15, %v12338_v7, %v3915_v61  ;;  %v2393_v34 = vor.u32 %v2392_v25, %v2391_v30  ;;  %v2396_v45 = vor.u32 %v2395_v15, %v2394_v32  ;;  %v2399_v11 = vor.u32 %v2398_v23, %v2397_v13 }
 0x3cd   :  { %8706 = vcosq.f32 %v3918_v29  ;;  %vm8165_vm9 = vcmp.lt.s32.totalorder %v8164_v31, 0  ;;  %v2403_v24 = vshll.u32 %v8793_v55, %v2388_v38  ;;  %v2404_v18 = vshrl.u32 %v8794_v62, %v2389_v39 }
 0x3ce   :  { %8708 = vsinq.f32 %v3918_v29  ;;  %v4005_v46 = vsel %vm8165_vm9, 0, %v8164_v31  ;;  %vm3926_vm6 = vcmp.eq.s32.totalorder %v12619_v4, 0  ;;  %vm7225_vm10 = vcmp.eq.s32.totalorder %v12614_v48, 0 }
 0x3cf   :  { %v4006_v36 = vsub.s32 32, %v4005_v46  ;;  %v4007_v37 = vshll.u32 %v12609_v41, %v4005_v46  ;;  %v4010_v57 = vsub.s32 4294967266, %v4005_v46  ;;  %v2402_v27 = vor.u32 %v2401_v40, %v2400_v53 }
 0x3d0   :  { %vm3925_vm12 = vcmp.lt.s32.totalorder %v12619_v4, 2  ;;  %vm7224_vm2 = vcmp.lt.s32.totalorder %v12614_v48, 2  ;;  %v2405_v60 = vor.u32 %v2404_v18, %v2403_v24  ;;  %vm2406_vm1 = vcmp.lt.s32.totalorder %v2387_v14, 1 }
 0x3d1   :  { %vm2407_vm15 = vcmp.lt.s32.totalorder %v2387_v14, 2  ;;  %vm2408_vm8 = vcmp.lt.s32.totalorder %v2387_v14, 3  ;;  %vm3922_vm11 = vweird.f32 %v12338_v7  ;;  %v4008_v52 = vshrl.u32 %v3990_v59, %v4006_v36 }
 0x3d2   :  { %v4011_v3 = vadd.s32 127, %v4010_v57  ;;  %vm2409_vm3 = vcmp.lt.s32.totalorder %v2387_v14, 4  ;;  %v2410_v21 = vsel %vm2406_vm1, %v2390_v12, %v2393_v34  ;;  %vm12662_vm7 = vcmp.le.f32.partialorder %v3934_v8, 0.7853982 }
 0x3d3   :  { %v2411_v5 = vsel %vm2409_vm3, %v2399_v11, 2102212464  ;;  %v2414_v20 = vsel %vm2406_vm1, %v2393_v34, %v2396_v45  ;;  %v2415_v42 = vsel %vm2409_vm3, %v2402_v27, 920167782  ;;  %v2418_v50 = vsel %vm2406_vm1, %v2396_v45, %v2399_v11 }
 0x3d4   :  { %v4009_v54 = vor.u32 %v4008_v52, %v4007_v37  ;;  %v4012_v33 = vshll.u32 %v4011_v3, 23  ;;  %v2412_v38 = vsel %vm2408_vm8, %v2396_v45, %v2411_v5  ;;  %v2416_v0 = vsel %vm2408_vm8, %v2399_v11, %v2415_v42 }
 0x3d5   :  { %v2417_v59 = vsel %vm2407_vm15, %v2414_v20, %v2416_v0  ;;  %v2419_v6 = vsel %vm2409_vm3, %v2405_v60, 1326507024  ;;  %v731_v43 = vmul.f32 22.5, %v699_v56  ;;  %v235_v39 = vfloor.f32 %v12627_v44 }
 0x3d6   :  { %v4013_v8 = vor.u32 4788187, %v4012_v33  ;;  %v4016_v30 = vcvt.s32.f32 %v4009_v54  ;;  %v2413_v35 = vsel %vm2407_vm15, %v2410_v21, %v2412_v38  ;;  %v2420_v61 = vsel %vm2408_vm8, %v2402_v27, %v2419_v6 }
 0x3d7   :  { %v8707_v12 = vpop.eup %8706  ;;  %v2421_v25 = vsel %vm2407_vm15, %v2418_v50, %v2420_v61  ;;  %v12674_v32 = vmul.u32.u64.low %v12625_v17, %v2417_v59  ;;  %v12675_v29 = vmul.u32.u64.high %v12625_v17, %v2417_v59, %v12674_v32  ;;  %vm12678_vm9 = vcmp.gt.f32.partialorder %v699_v56, 8.0 }
 0x3d8   :  { %v8709_v15 = vpop.eup %8708  ;;  %v3930_v44 = vxor.u32 2147483648, %v8707_v12  ;;  %v4014_v13 = vand.u32 2147483647, %v4013_v8  ;;  %v12683_v34 = vmul.u32.u64.low %v12625_v17, %v2421_v25  ;;  %v12684_v23 = vmul.u32.u64.high %v12625_v17, %v2421_v25, %v12683_v34 }
 0x3d9   :  { %v3927_v53 = vxor.u32 2147483648, %v8709_v15  ;;  %v2429_v14 = vmul.u32 %v12625_v17, %v2413_v35  ;;  %v8028_v45 = vadd.f32 -360.0, %v731_v43  ;;  %v426_v40 = vadd.f32 1.0, %v12635_v19 }
 0x3da   :  { %v3931_v46 = vsel %vm3929_vm14, %v3930_v44, %v8709_v15  ;;  %v7230_v56 = vsel %vm7228_vm0, %v3930_v44, %v8709_v15  ;;  %v4017_v11 = vmul.f32 %v4016_v30, %v4014_v13  ;;  %v267_v24 = vmul.f32 16.0, %v235_v39 }
 0x3db   :  { %v3928_v18 = vsel %vm3926_vm6, %v8707_v12, %v3927_v53  ;;  %v7227_v36 = vsel %vm7225_vm10, %v8707_v12, %v3927_v53  ;;  %v2432_v37 = vadd.s32 1, %v12675_v29  ;;  %v827_v17 = vsel %vm12678_vm9, %v8028_v45, %v731_v43 }
 0x3dc   :  { %v3932_v57 = vsel %vm3925_vm12, %v3928_v18, %v3931_v46  ;;  %v7231_v27 = vsel %vm7224_vm2, %v7227_v36, %v7230_v56  ;;  %v4018_v60 = vxor.u32 2147483648, %v4017_v11  ;;  %v4023_v52 = vsel %vm12662_vm7, 0, %v12631_v16 }
 0x3dd   :  { %v3933_v3 = vsel %vm3922_vm11, nan, %v3932_v57  ;;  %v7232_v21 = vsel %vm3922_vm11, nan, %v7231_v27  ;;  %vm2431_vm14 = vc.u32 %v12684_v23, %v12674_v32  ;;  %v859_v5 = vmul.f32 3.8197186, %v827_v17 }
 0x3de   :  { %v7570_v4 = vsel %vm917_vm4, %v3933_v3, %v7232_v21  ;;  %v4019_v48 = vsel %vm3936_vm13, %v4018_v60, %v4017_v11  ;;  %v2433_v20 = vsel %vm2431_vm14, %v2432_v37, %v12675_v29  ;;  %v458_v42 = vmul.f32 16.0, %v426_v40 }
 0x3df   :  { %8433 = vmatprep.mubr.msk.f32.mxu1 %vm7589_vm5, %v7570_v4  ;;  %v4022_v7 = vsel %vm12662_vm7, %v12376_v63, %v4019_v48  ;;  %v2434_v16 = vadd.s32 %v2433_v20, %v2429_v14  ;;  %v12722_v50 = vmul.f32 %v12585_v58, %v859_v5  ;;  %vm299_vm0 = vcmp.gt.f32.partialorder %v267_v24, %v12606_v2 }
 0x3e0   :  { %8710 = vcosq.f32 %v4022_v7  ;;  %vm490_vm6 = vcmp.le.f32.partialorder %v458_v42, %v12382_v22  ;;  %v7980_v54 = vsel %vm299_vm0, 1.0, %v8788_v47  ;;  %v4027_v0 = vadd.s32 3, %v4023_v52 }
 0x3e1   :  { %8712 = vsinq.f32 %v4022_v7  ;;  %v2435_v33 = vadd.s32 536870912, %v2434_v16  ;;  %v2478_v38 = vand.u32 2147483647, %v12722_v50  ;;  %v2481_v59 = vand.u32 2139095040, %v12722_v50 }
 0x3e2   :  { %v8011_v41 = vsel %vm490_vm6, 1.0, %v8788_v47  ;;  %v12730_v6 = vsub.f32 %v235_v39, %v7980_v54  ;;  %v7326_v12 = vand.u32 3, %v4023_v52  ;;  %vm4026_vm13 = vweird.f32 %v12376_v63 }
 0x3e3   :  { %v2436_v43 = vshrl.u32 %v2435_v33, 30  ;;  %v586_v8 = vadd.f32 %v8011_v41, %v12635_v19  ;;  %v2482_v30 = vshrl.u32 %v2481_v59, 23  ;;  %v2485_v35 = vand.u32 8388607, %v2478_v38 }
 0x3e4   :  { %v427_v61 = vadd.f32 1.0, %v12730_v6  ;;  %v4028_v31 = vand.u32 3, %v4027_v0  ;;  %vm2376_vm10 = vcmp.lt.s32.totalorder %v12588_v1, 0  ;;  %vm12742_vm12 = vcmp.le.f32.partialorder %v2374_v26, 0.7853982 }
 0x3e5   :  { %v2437_v25 = vshll.u32 %v2436_v43, 30  ;;  %v618_v29 = vmul.f32 16.0, %v586_v8  ;;  %v8106_v15 = vadd.s32 4294967169, %v2482_v30  ;;  %v2460_v44 = vsub.s32 4, %v2436_v43 }
 0x3e6   :  { %v459_v13 = vmul.f32 16.0, %v427_v61  ;;  %v2486_v34 = vor.u32 8388608, %v2485_v35  ;;  %vm7327_vm2 = vcmp.lt.s32.totalorder %v7326_v12, 2  ;;  %vm7328_vm1 = vcmp.eq.s32.totalorder %v7326_v12, 0 }
 0x3e7   :  { %v12738_v39 = vsub.s32 %v2434_v16, %v2437_v25  ;;  %v2488_v53 = vadd.s32 1, %v8106_v15  ;;  %v650_v14 = vsub.f32 %v12382_v22, %v618_v29  ;;  %vm7331_vm15 = vcmp.eq.s32.totalorder %v7326_v12, 2 }
 0x3e8   :  { %vm4029_vm8 = vcmp.lt.s32.totalorder %v4028_v31, 2  ;;  %vm4030_vm11 = vcmp.eq.s32.totalorder %v4028_v31, 0  ;;  %vm4033_vm3 = vcmp.eq.s32.totalorder %v4028_v31, 2  ;;  %v2461_v11 = vsel %vm2376_vm10, %v2460_v44, %v2436_v43 }
 0x3e9   :  { %v2440_v45 = vsub.s32 0, %v12738_v39  ;;  %vm2489_vm7 = vcmp.gt.s32.totalorder %v2488_v53, 0  ;;  %vm491_vm9 = vcmp.le.f32.partialorder %v459_v13, %v12606_v2  ;;  %v2430_v24 = vadd.s32 %v12674_v32, %v12684_v23 }
 0x3ea   :  { %v8711_v40 = vpop.eup %8710  ;;  %v12754_v18 = vshll.u32 %v2486_v34, 8  ;;  %v12756_v36 = vsub.f32 %v586_v8, %v650_v14  ;;  %v2490_v27 = vsel %vm2489_vm7, %v2488_v53, 0  ;;  %v12763_v3 = vsel %vm12742_vm12, 0, %v2461_v11 }
 0x3eb   :  { %v8713_v46 = vpop.eup %8712  ;;  %v4034_v56 = vxor.u32 2147483648, %v8711_v40  ;;  %v8103_v26 = vmin.u32 %v2440_v45, %v12738_v39  ;;  %v12766_v21 = vsel %vm491_vm9, 1.0, %v8788_v47  ;;  %v12770_v4 = vshrl.u32 %v2490_v27, 5 }
 0x3ec   :  { %v4031_v22 = vxor.u32 2147483648, %v8713_v46  ;;  %v2492_v42 = vand.u32 31, %v2490_v27  ;;  %v714_v7 = vand.u32 2147483647, %v12756_v36 }
 0x3ed   :  { %v4035_v37 = vsel %vm4033_vm3, %v4034_v56, %v8713_v46  ;;  %v7333_v17 = vsel %vm7331_vm15, %v4034_v56, %v8713_v46  ;;  %v2442_v57 = vclz %v8103_v26  ;;  %vm2510_vm0 = vcmp.lt.s32.totalorder %v12770_v4, 1  ;;  %v8417_v46 = vpop.f32.mrb[0].mxu1 }
 0x3ee   :  { %v4032_v60 = vsel %vm4030_vm11, %v8711_v40, %v4031_v22  ;;  %v7330_v52 = vsel %vm7328_vm1, %v8711_v40, %v4031_v22  ;;  %vm2511_vm6 = vcmp.lt.s32.totalorder %v12770_v4, 2  ;;  %v2493_v54 = vsub.s32 32, %v2492_v42  ;;  %v8393_v40 = vpop.f32.mrb[0].mxu0  ;;  %v7832_v22 = vpop.f32.mrb[1].mxu1 }
 0x3ef   :  { %v4036_v32 = vsel %vm4029_vm8, %v4032_v60, %v4035_v37  ;;  %v7334_v23 = vsel %vm7327_vm2, %v7330_v52, %v7333_v17  ;;  %v8104_v5 = vadd.s32 4294967294, %v2442_v57  ;;  %v2495_v33 = vshll.u32 %v8789_v49, %v2492_v42  ;;  %v7752_v11 = vpop.f32.mrb[1].mxu0  ;;  %v8420_v27 = vpop.f32.mrb[2].mxu1 }
 0x3f0   :  { %v4037_v48 = vsel %vm4026_vm13, nan, %v4036_v32  ;;  %v7335_v20 = vsel %vm4026_vm13, nan, %v7334_v23  ;;  %v2498_v63 = vshll.u32 %v8790_v51, %v2492_v42  ;;  %v2501_v43 = vshll.u32 %v8791_v9, %v2492_v42  ;;  %v8396_v57 = vpop.f32.mrb[2].mxu0 }
 0x3f1   :  { %v7571_v47 = vsel %vm917_vm4, %v4037_v48, %v7335_v20  ;;  %vm8105_vm14 = vcmp.lt.s32.totalorder %v8104_v5, 0  ;;  %v2494_v8 = vshrl.u32 %v8789_v49, %v2493_v54  ;;  %v2496_v30 = vshrl.u32 %v8790_v51, %v2493_v54  ;;  %v7842_v48 = vpop.f32.mrb[3].mxu1 }
 0x3f2   :  { %8434 = vmatmul.mubr.msk.f32.gmra.mrb[12].mxu1 %vm7589_vm5, %v7571_v47  ;;  %v2445_v16 = vsel %vm8105_vm14, 0, %v8104_v5  ;;  %v2499_v35 = vshrl.u32 %v8791_v9, %v2493_v54  ;;  %v2502_v61 = vshrl.u32 %v8792_v10, %v2493_v54  ;;  %v2504_v29 = vshll.u32 %v8792_v10, %v2492_v42  ;;  %v7762_v5 = vpop.f32.mrb[3].mxu0 }
 0x3f3   :  { %v2446_v0 = vsub.s32 32, %v2445_v16  ;;  %v2447_v59 = vshll.u32 %v12738_v39, %v2445_v16  ;;  %v2450_v41 = vsub.s32 4294967266, %v2445_v16  ;;  %v2505_v31 = vshrl.u32 %v8793_v55, %v2493_v54 }
 0x3f4   :  { %v2497_v15 = vor.u32 %v2496_v30, %v2495_v33  ;;  %v2500_v44 = vor.u32 %v2499_v35, %v2498_v63  ;;  %v2503_v39 = vor.u32 %v2502_v61, %v2501_v43  ;;  %v2507_v13 = vshll.u32 %v8793_v55, %v2492_v42  ;;  %v12814_v33 = vpop.f32.mrb[4].mxu1  ;;  %v12828_v43 = vld [vmem:[%s13237_s2] ss:$0 sm:$0xff] }
 0x3f5   :  { %v2448_v12 = vshrl.u32 %v2430_v24, %v2446_v0  ;;  %v2451_v25 = vadd.s32 127, %v2450_v41  ;;  %v2506_v14 = vor.u32 %v2505_v31, %v2504_v29  ;;  %v2508_v45 = vshrl.u32 %v8794_v62, %v2493_v54  ;;  %v8399_v54 = vpop.f32.mrb[4].mxu0  ;;  %v12830_v30 = vpop.f32.mrb[5].mxu1 }
 0x3f6   :  { %vm2512_vm13 = vcmp.lt.s32.totalorder %v12770_v4, 3  ;;  %vm2513_vm2 = vcmp.lt.s32.totalorder %v12770_v4, 4  ;;  %v2514_v56 = vsel %vm2510_vm0, %v2494_v8, %v2497_v15  ;;  %v2518_v26 = vsel %vm2510_vm0, %v2497_v15, %v2500_v44  ;;  %v7772_v8 = vpop.f32.mrb[5].mxu0  ;;  %v12841_v29 = vpop.f32.mrb[6].mxu1 }
 0x3f7   :  { %v2449_v34 = vor.u32 %v2448_v12, %v2447_v59  ;;  %v2452_v53 = vshll.u32 %v2451_v25, 23  ;;  %v2509_v37 = vor.u32 %v2508_v45, %v2507_v13  ;;  %v2515_v17 = vsel %vm2513_vm2, %v2503_v39, 2102212464  ;;  %v12849_v4 = vpop.f32.mrb[7].mxu1 }
 0x3f8   :  { %v2516_v60 = vsel %vm2512_vm13, %v2500_v44, %v2515_v17  ;;  %v2519_v52 = vsel %vm2513_vm2, %v2506_v14, 920167782  ;;  %v2522_v32 = vsel %vm2510_vm0, %v2500_v44, %v2503_v39  ;;  %v746_v23 = vmul.f32 22.5, %v714_v7 }
 0x3f9   :  { %v2453_v24 = vor.u32 4788187, %v2452_v53  ;;  %v2456_v36 = vcvt.s32.f32 %v2449_v34  ;;  %v2517_v42 = vsel %vm2511_vm6, %v2514_v56, %v2516_v60  ;;  %v2520_v47 = vsel %vm2512_vm13, %v2503_v39, %v2519_v52 }
 0x3fa   :  { %v2523_v16 = vsel %vm2513_vm2, %v2509_v37, 1326507024  ;;  %v2521_v63 = vsel %vm2511_vm6, %v2518_v26, %v2520_v47  ;;  %v2533_v59 = vmul.u32 %v12754_v18, %v2517_v42  ;;  %vm12821_vm1 = vcmp.gt.f32.partialorder %v714_v7, 8.0  ;;  %v12839_v7 = vpop.f32.mrb[6].mxu0  ;;  %v12856_v26 = vpop.f32.mrb[8].mxu1 }
 0x3fb   :  { %v2454_v20 = vand.u32 2147483647, %v2453_v24  ;;  %v2524_v0 = vsel %vm2512_vm13, %v2506_v14, %v2523_v16  ;;  %v12835_v12 = vmul.u32.u64.low %v12754_v18, %v2521_v63  ;;  %v12836_v25 = vmul.u32.u64.high %v12754_v18, %v2521_v63, %v12835_v12  ;;  %v7782_v13 = vpop.f32.mrb[7].mxu0  ;;  %v12864_v37 = vpop.f32.mrb[9].mxu1 }
 0x3fc   :  { %v2525_v61 = vsel %vm2511_vm6, %v2522_v32, %v2524_v0  ;;  %v8043_v44 = vadd.f32 -360.0, %v746_v23  ;;  %v587_v39 = vadd.f32 %v12766_v21, %v12730_v6  ;;  %v7758_v53 = vadd.f32 %v8393_v40, %v12828_v43  ;;  %v12854_v56 = vpop.f32.mrb[8].mxu0 }
 0x3fd   :  { %v2457_v35 = vmul.f32 %v2456_v36, %v2454_v20  ;;  %v12844_v31 = vmul.u32.u64.low %v12754_v18, %v2525_v61  ;;  %v12845_v15 = vmul.u32.u64.high %v12754_v18, %v2525_v61, %v12844_v31  ;;  %v7753_v14 = vadd.f32 %v12828_v43, %v7752_v11  ;;  %v12862_v36 = vpop.f32.mrb[9].mxu0 }
 0x3fe   :  { %v7838_v45 = vadd.f32 %v8417_v46, %v12828_v43  ;;  %v842_v18 = vsel %vm12821_vm1, %v8043_v44, %v746_v23  ;;  %v619_v24 = vmul.f32 16.0, %v587_v39  ;;  %v7833_v6 = vadd.f32 %v12828_v43, %v7832_v22  ;;  %7912 = vst.msk [vmem:[%s13238_s3 + $0x8] sm:$0xff] %vm7589_vm5, %v7758_v53 }
 0x3ff   :  { %v2458_v34 = vxor.u32 2147483648, %v2457_v35  ;;  %v7768_v21 = vadd.f32 %v8396_v57, %v12828_v43  ;;  %v2536_v46 = vadd.s32 1, %v12836_v25  ;;  %v874_v11 = vmul.f32 3.8197186, %v842_v18  ;;  %7911 = vst.msk [vmem:[%s13238_s3] sm:$0xff] %vm7589_vm5, %v7753_v14 }
 0x400   :  { %7928 = vst.msk [vmem:[%s13238_s3 + $0x88] sm:$0xff] %vm7589_vm5, %v7838_v45  ;;  %v7763_v22 = vadd.f32 %v12828_v43, %v7762_v5  ;;  %v2467_v57 = vadd.s32 3, %v12763_v3  ;;  %v651_v60 = vsub.f32 %v12606_v2, %v619_v24  ;;  %7927 = vst.msk [vmem:[%s13238_s3 + $0x80] sm:$0xff] %vm7589_vm5, %v7833_v6  ;;  %v7848_v2 = vadd.f32 %v8420_v27, %v12828_v43 }
 0x401   :  { %v2459_v40 = vsel %vm2376_vm10, %v2458_v34, %v2457_v35  ;;  %vm2535_vm10 = vc.u32 %v12845_v15, %v12835_v12  ;;  %7914 = vst.msk [vmem:[%s13238_s3 + $0x18] sm:$0xff] %vm7589_vm5, %v7768_v21  ;;  %v12899_v52 = vmul.f32 %v12585_v58, %v874_v11  ;;  %v7843_v5 = vadd.f32 %v12828_v43, %v7842_v48 }
 0x402   :  { %v2462_v17 = vsel %vm12742_vm12, %v12588_v1, %v2459_v40  ;;  %v2537_v19 = vsel %vm2535_vm10, %v2536_v46, %v12836_v25  ;;  %7913 = vst.msk [vmem:[%s13238_s3 + $0x10] sm:$0xff] %vm7589_vm5, %v7763_v22  ;;  %v683_v23 = vsub.f32 %v587_v39, %v651_v60  ;;  %7930 = vst.msk [vmem:[%s13238_s3 + $0x98] sm:$0xff] %vm7589_vm5, %v7848_v2  ;;  %v2468_v48 = vand.u32 3, %v2467_v57 }
 0x403   :  { %8714 = vcosq.f32 %v2462_v17  ;;  %v2538_v32 = vadd.s32 %v2537_v19, %v2533_v59  ;;  %v4041_v20 = vand.u32 2139095040, %v12899_v52  ;;  %7929 = vst.msk [vmem:[%s13238_s3 + $0x90] sm:$0xff] %vm7589_vm5, %v7843_v5  ;;  %v7778_v27 = vadd.f32 %v8399_v54, %v12828_v43 }
 0x404   :  { %8716 = vsinq.f32 %v2462_v17  ;;  %v715_v47 = vand.u32 2147483647, %v683_v23  ;;  %v7773_v16 = vadd.f32 %v12828_v43, %v7772_v8  ;;  %v5781_v0 = vand.u32 3, %v12763_v3 }
 0x405   :  { %v2539_v42 = vadd.s32 536870912, %v2538_v32  ;;  %v4042_v59 = vshrl.u32 %v4041_v20, 23  ;;  %v7858_v41 = vadd.f32 %v12814_v33, %v12828_v43  ;;  %v4038_v25 = vand.u32 2147483647, %v12899_v52  ;;  %7916 = vst.msk [vmem:[%s13238_s3 + $0x28] sm:$0xff] %vm7589_vm5, %v7778_v27 }
 0x406   :  { %v12918_v63 = vpop.f32.mrb[10].mxu0  ;;  %v747_v31 = vmul.f32 22.5, %v715_v47  ;;  %7915 = vst.msk [vmem:[%s13238_s3 + $0x20] sm:$0xff] %vm7589_vm5, %v7773_v16  ;;  %v7853_v3 = vadd.f32 %v12828_v43, %v12830_v30  ;;  %vm12938_vm12 = vcmp.gt.f32.partialorder %v715_v47, 8.0  ;;  %v7788_v8 = vadd.f32 %v12839_v7, %v12828_v43 }
 0x407   :  { %v12923_v35 = vpop.f32.mrb[11].mxu0  ;;  %v12925_v61 = vshrl.u32 %v2539_v42, 30  ;;  %v8166_v54 = vadd.s32 4294967169, %v4042_v59  ;;  %7932 = vst.msk [vmem:[%s13238_s3 + $0xa8] sm:$0xff] %vm7589_vm5, %v7858_v41  ;;  %v7783_v44 = vadd.f32 %v12828_v43, %v7782_v13  ;;  %vm2466_vm15 = vweird.f32 %v12588_v1 }
 0x408   :  { %v8044_v30 = vadd.f32 -360.0, %v747_v31  ;;  %7931 = vst.msk [vmem:[%s13238_s3 + $0xa0] sm:$0xff] %vm7589_vm5, %v7853_v3  ;;  %v7868_v34 = vadd.f32 %v12841_v29, %v12828_v43  ;;  %vm5783_vm8 = vcmp.eq.s32.totalorder %v5781_v0, 0  ;;  %7918 = vst.msk [vmem:[%s13238_s3 + $0x38] sm:$0xff] %vm7589_vm5, %v7788_v8  ;;  %v7863_v7 = vadd.f32 %v12828_v43, %v12849_v4 }
 0x409   :  { %v2541_v39 = vshll.u32 %v12925_v61, 30  ;;  %v4048_v53 = vadd.s32 1, %v8166_v54  ;;  %7917 = vst.msk [vmem:[%s13238_s3 + $0x30] sm:$0xff] %vm7589_vm5, %v7783_v44  ;;  %v7798_v13 = vadd.f32 %v12854_v56, %v12828_v43  ;;  %v4045_v29 = vand.u32 8388607, %v4038_v25 }
 0x40a   :  { %v843_v45 = vsel %vm12938_vm12, %v8044_v30, %v747_v31  ;;  %7934 = vst.msk [vmem:[%s13238_s3 + $0xb8] sm:$0xff] %vm7589_vm5, %v7868_v34  ;;  %v7793_v18 = vadd.f32 %v12828_v43, %v12862_v36  ;;  %vm2470_vm11 = vcmp.eq.s32.totalorder %v2468_v48, 0  ;;  %vm2473_vm3 = vcmp.eq.s32.totalorder %v2468_v48, 2  ;;  %7933 = vst.msk [vmem:[%s13238_s3 + $0xb0] sm:$0xff] %vm7589_vm5, %v7863_v7 }
 0x40b   :  { %v12969_v14 = vsub.s32 %v2538_v32, %v2541_v39  ;;  %vm5786_vm7 = vcmp.eq.s32.totalorder %v5781_v0, 2  ;;  %7920 = vst.msk [vmem:[%s13238_s3 + $0x48] sm:$0xff] %vm7589_vm5, %v7798_v13  ;;  %v7878_v56 = vadd.f32 %v12856_v26, %v12828_v43  ;;  %vm4049_vm9 = vcmp.gt.s32.totalorder %v4048_v53, 0 }
 0x40c   :  { %v875_v36 = vmul.f32 3.8197186, %v843_v45  ;;  %7919 = vst.msk [vmem:[%s13238_s3 + $0x40] sm:$0xff] %vm7589_vm5, %v7793_v18  ;;  %vm2469_vm14 = vcmp.lt.s32.totalorder %v2468_v48, 2  ;;  %vm5782_vm0 = vcmp.lt.s32.totalorder %v5781_v0, 2  ;;  %v7873_v26 = vadd.f32 %v12828_v43, %v12864_v37 }
 0x40d   :  { %v8715_v4 = vpop.eup %8714  ;;  %v2544_v21 = vsub.s32 0, %v12969_v14  ;;  %7936 = vst.msk [vmem:[%s13238_s3 + $0xc8] sm:$0xff] %vm7589_vm5, %v7878_v56  ;;  %v4046_v17 = vor.u32 8388608, %v4045_v29  ;;  %v2564_v19 = vsub.s32 4, %v12925_v61  ;;  %v4050_v2 = vsel %vm4049_vm9, %v4048_v53, 0 }
 0x40e   :  { %v8717_v24 = vpop.eup %8716  ;;  %v2474_v6 = vxor.u32 2147483648, %v8715_v4  ;;  %7935 = vst.msk [vmem:[%s13238_s3 + $0xc0] sm:$0xff] %vm7589_vm5, %v7873_v26  ;;  %v13013_v5 = vmul.f32 %v12585_v58, %v875_v36  ;;  %vm2480_vm6 = vcmp.lt.s32.totalorder %v12722_v50, 0  ;;  %v4051_v16 = vshrl.u32 %v4050_v2, 5 }
 0x40f   :  { %v2471_v40 = vxor.u32 2147483648, %v8717_v24  ;;  %v8107_v22 = vmin.u32 %v2544_v21, %v12969_v14  ;;  %v2534_v48 = vadd.s32 %v12835_v12, %v12845_v15  ;;  %v2565_v58 = vsel %vm2480_vm6, %v2564_v19, %v12925_v61 }
 0x410   :  { %v2475_v46 = vsel %vm2473_vm3, %v2474_v6, %v8717_v24  ;;  %v5788_v11 = vsel %vm5786_vm7, %v2474_v6, %v8717_v24  ;;  %v4052_v0 = vand.u32 31, %v4050_v2  ;;  %v13028_v59 = vshll.u32 %v4046_v17, 8 }
 0x411   :  { %v2472_v57 = vsel %vm2470_vm11, %v8715_v4, %v2471_v40  ;;  %v5785_v60 = vsel %vm5783_vm8, %v8715_v4, %v2471_v40  ;;  %v2546_v23 = vclz %v8107_v22  ;;  %vm4070_vm2 = vcmp.lt.s32.totalorder %v4051_v16, 1 }
 0x412   :  { %v2476_v37 = vsel %vm2469_vm14, %v2472_v57, %v2475_v46  ;;  %v5789_v32 = vsel %vm5782_vm0, %v5785_v60, %v5788_v11  ;;  %vm4071_vm1 = vcmp.lt.s32.totalorder %v4051_v16, 2  ;;  %v4145_v1 = vand.u32 2139095040, %v13013_v5 }
 0x413   :  { %v2477_v20 = vsel %vm2466_vm15, nan, %v2476_v37  ;;  %v5790_v42 = vsel %vm2466_vm15, nan, %v5789_v32  ;;  %v8108_v27 = vadd.s32 4294967294, %v2546_v23  ;;  %vm13033_vm10 = vcmp.le.f32.partialorder %v2478_v38, 0.7853982 }
 0x414   :  { %v7556_v47 = vsel %vm917_vm4, %v2477_v20, %v5790_v42  ;;  %v4053_v12 = vsub.s32 32, %v4052_v0  ;;  %v4055_v15 = vshll.u32 %v8789_v49, %v4052_v0  ;;  %v4058_v61 = vshll.u32 %v8790_v51, %v4052_v0 }
 0x415   :  { %8412 = vmatprep.mubr.msk.f32.mxu0 %vm7589_vm5, %v7556_v47  ;;  %vm8109_vm13 = vcmp.lt.s32.totalorder %v8108_v27, 0  ;;  %v4061_v8 = vshll.u32 %v8791_v9, %v4052_v0  ;;  %v4064_v7 = vshll.u32 %v8792_v10, %v4052_v0  ;;  %v4067_v18 = vshll.u32 %v8793_v55, %v4052_v0 }
 0x416   :  { %v2549_v31 = vsel %vm8109_vm13, 0, %v8108_v27  ;;  %v4054_v44 = vshrl.u32 %v8789_v49, %v4053_v12  ;;  %v4056_v39 = vshrl.u32 %v8790_v51, %v4053_v12  ;;  %v4059_v38 = vshrl.u32 %v8791_v9, %v4053_v12 }
 0x417   :  { %v2550_v3 = vsub.s32 32, %v2549_v31  ;;  %v2551_v54 = vshll.u32 %v12969_v14, %v2549_v31  ;;  %v2554_v33 = vsub.s32 4294967266, %v2549_v31  ;;  %v4062_v30 = vshrl.u32 %v8792_v10, %v4053_v12 }
 0x418   :  { %v4065_v13 = vshrl.u32 %v8793_v55, %v4053_v12  ;;  %v4057_v29 = vor.u32 %v4056_v39, %v4055_v15  ;;  %v4060_v45 = vor.u32 %v4059_v38, %v4058_v61  ;;  %v4068_v6 = vshrl.u32 %v8794_v62, %v4053_v12 }
 0x419   :  { %v2552_v34 = vshrl.u32 %v2534_v48, %v2550_v3  ;;  %v2555_v53 = vadd.s32 127, %v2554_v33  ;;  %v4063_v14 = vor.u32 %v4062_v30, %v4061_v8  ;;  %vm4072_vm12 = vcmp.lt.s32.totalorder %v4051_v16, 3 }
 0x41a   :  { %v4066_v24 = vor.u32 %v4065_v13, %v4064_v7  ;;  %vm4073_vm15 = vcmp.lt.s32.totalorder %v4051_v16, 4  ;;  %v4074_v21 = vsel %vm4070_vm2, %v4054_v44, %v4057_v29  ;;  %v4078_v36 = vsel %vm4070_vm2, %v4057_v29, %v4060_v45 }
 0x41b   :  { %v2553_v4 = vor.u32 %v2552_v34, %v2551_v54  ;;  %v2556_v56 = vshll.u32 %v2555_v53, 23  ;;  %v4069_v46 = vor.u32 %v4068_v6, %v4067_v18  ;;  %v4075_v11 = vsel %vm4073_vm15, %v4063_v14, 2102212464 }
 0x41c   :  { %v4076_v22 = vsel %vm4072_vm12, %v4060_v45, %v4075_v11  ;;  %v4079_v17 = vsel %vm4073_vm15, %v4066_v24, 920167782  ;;  %v4082_v57 = vsel %vm4070_vm2, %v4060_v45, %v4063_v14  ;;  %v4146_v60 = vshrl.u32 %v4145_v1, 23 }
 0x41d   :  { %v2557_v40 = vor.u32 4788187, %v2556_v56  ;;  %v2560_v26 = vcvt.s32.f32 %v2553_v4  ;;  %v2567_v2 = vsel %vm13033_vm10, 0, %v2565_v58  ;;  %v4080_v37 = vsel %vm4072_vm12, %v4063_v14, %v4079_v17 }
 0x41e   :  { %v4083_v32 = vsel %vm4073_vm15, %v4069_v46, 1326507024  ;;  %v4077_v23 = vsel %vm4071_vm1, %v4074_v21, %v4076_v22  ;;  %v4081_v20 = vsel %vm4071_vm1, %v4078_v36, %v4080_v37  ;;  %v8170_v47 = vadd.s32 4294967169, %v4146_v60 }
 0x41f   :  { %v2558_v19 = vand.u32 2147483647, %v2557_v40  ;;  %v4084_v42 = vsel %vm4072_vm12, %v4066_v24, %v4083_v32  ;;  %v13061_v0 = vmul.u32.u64.low %v13028_v59, %v4081_v20  ;;  %v13062_v1 = vmul.u32.u64.high %v13028_v59, %v4081_v20, %v13061_v0 }
 0x420   :  { %v4085_v48 = vsel %vm4071_vm1, %v4082_v57, %v4084_v42  ;;  %v4152_v12 = vadd.s32 1, %v8170_v47  ;;  %v7808_v61 = vadd.f32 %v12918_v63, %v12828_v43  ;;  %v7803_v3 = vadd.f32 %v12828_v43, %v12923_v35 }
 0x421   :  { %v2561_v27 = vmul.f32 %v2560_v26, %v2558_v19  ;;  %v13066_v58 = vmul.u32.u64.low %v13028_v59, %v4085_v48  ;;  %v13067_v31 = vmul.u32.u64.high %v13028_v59, %v4085_v48, %v13066_v58  ;;  %v2571_v54 = vadd.s32 3, %v2567_v2 }
 0x422   :  { %v4093_v16 = vmul.u32 %v13028_v59, %v4077_v23  ;;  %vm4153_vm8 = vcmp.gt.s32.totalorder %v4152_v12, 0  ;;  %v4096_v8 = vadd.s32 1, %v13062_v1  ;;  %v4142_v44 = vand.u32 2147483647, %v13013_v5  ;;  %7922 = vst.msk [vmem:[%s13238_s3 + $0x58] sm:$0xff] %vm7589_vm5, %v7808_v61  ;;  %7921 = vst.msk [vmem:[%s13238_s3 + $0x50] sm:$0xff] %vm7589_vm5, %v7803_v3 }
 0x423   :  { %v2562_v15 = vxor.u32 2147483648, %v2561_v27  ;;  %v4154_v39 = vsel %vm4153_vm8, %v4152_v12, 0  ;;  %vm4095_vm11 = vc.u32 %v13067_v31, %v13061_v0  ;;  %v2572_v38 = vand.u32 3, %v2571_v54 }
 0x424   :  { %v4097_v35 = vsel %vm4095_vm11, %v4096_v8, %v13062_v1  ;;  %v4156_v59 = vand.u32 31, %v4154_v39  ;;  %v5884_v30 = vand.u32 3, %v2567_v2  ;;  %v4149_v53 = vand.u32 8388607, %v4142_v44 }
 0x425   :  { %v2563_v33 = vsel %vm2480_vm6, %v2562_v15, %v2561_v27  ;;  %v4098_v34 = vadd.s32 %v4097_v35, %v4093_v16  ;;  %v13094_v7 = vshrl.u32 %v4154_v39, 5  ;;  %vm2570_vm3 = vweird.f32 %v12722_v50 }
 0x426   :  { %v2566_v63 = vsel %vm13033_vm10, %v12722_v50, %v2563_v33  ;;  %v4157_v13 = vsub.s32 32, %v4156_v59  ;;  %v4159_v41 = vshll.u32 %v8789_v49, %v4156_v59  ;;  %v4162_v45 = vshll.u32 %v8790_v51, %v4156_v59 }
 0x427   :  { %8718 = vcosq.f32 %v2566_v63  ;;  %v4099_v29 = vadd.s32 536870912, %v4098_v34  ;;  %v4168_v14 = vshll.u32 %v8792_v10, %v4156_v59  ;;  %v4171_v18 = vshll.u32 %v8793_v55, %v4156_v59 }
 0x428   :  { %8720 = vsinq.f32 %v2566_v63  ;;  %v4160_v4 = vshrl.u32 %v8790_v51, %v4157_v13  ;;  %v4163_v56 = vshrl.u32 %v8791_v9, %v4157_v13  ;;  %v4165_v24 = vshll.u32 %v8791_v9, %v4156_v59 }
 0x429   :  { %v4166_v6 = vshrl.u32 %v8792_v10, %v4157_v13  ;;  %vm5885_vm7 = vcmp.lt.s32.totalorder %v5884_v30, 2  ;;  %v13105_v21 = vshrl.u32 %v4099_v29, 30  ;;  %v4169_v36 = vshrl.u32 %v8793_v55, %v4157_v13 }
 0x42a   :  { %v4172_v40 = vshrl.u32 %v8794_v62, %v4157_v13  ;;  %vm2573_vm9 = vcmp.lt.s32.totalorder %v2572_v38, 2  ;;  %vm5886_vm14 = vcmp.eq.s32.totalorder %v5884_v30, 0  ;;  %v4150_v26 = vor.u32 8388608, %v4149_v53 }
 0x42b   :  { %vm4177_vm0 = vcmp.lt.s32.totalorder %v13094_v7, 4  ;;  %vm2574_vm6 = vcmp.eq.s32.totalorder %v2572_v38, 0  ;;  %v4101_v51 = vshll.u32 %v13105_v21, 30  ;;  %v4170_v9 = vor.u32 %v4169_v36, %v4168_v14 }
 0x42c   :  { %v4173_v46 = vor.u32 %v4172_v40, %v4171_v18  ;;  %v4158_v10 = vshrl.u32 %v8789_v49, %v4157_v13  ;;  %v4161_v11 = vor.u32 %v4160_v4, %v4159_v41  ;;  %v4164_v22 = vor.u32 %v4163_v56, %v4162_v45 }
 0x42d   :  { %v4167_v17 = vor.u32 %v4166_v6, %v4165_v24  ;;  %v4102_v57 = vsub.s32 %v4098_v34, %v4101_v51  ;;  %vm4174_vm13 = vcmp.lt.s32.totalorder %v13094_v7, 1  ;;  %vm4176_vm2 = vcmp.lt.s32.totalorder %v13094_v7, 3 }
 0x42e   :  { %v4183_v55 = vsel %vm4177_vm0, %v4170_v9, 920167782  ;;  %vm2577_vm1 = vcmp.eq.s32.totalorder %v2572_v38, 2  ;;  %vm5889_vm10 = vcmp.eq.s32.totalorder %v5884_v30, 2  ;;  %vm4175_vm12 = vcmp.lt.s32.totalorder %v13094_v7, 2 }
 0x42f   :  { %v4190_v60 = vshll.u32 %v4150_v26, 8  ;;  %v4104_v49 = vsub.s32 0, %v4102_v57  ;;  %v4179_v37 = vsel %vm4177_vm0, %v4167_v17, 2102212464  ;;  %v4187_v32 = vsel %vm4177_vm0, %v4173_v46, 1326507024 }
 0x430   :  { %v4178_v20 = vsel %vm4174_vm13, %v4158_v10, %v4161_v11  ;;  %v4182_v42 = vsel %vm4174_vm13, %v4161_v11, %v4164_v22  ;;  %v4184_v47 = vsel %vm4176_vm2, %v4167_v17, %v4183_v55  ;;  %v4186_v58 = vsel %vm4174_vm13, %v4164_v22, %v4167_v17 }
 0x431   :  { %v8719_v62 = vpop.eup %8718  ;;  %v8167_v1 = vmin.u32 %v4104_v49, %v4102_v57  ;;  %v4180_v61 = vsel %vm4176_vm2, %v4164_v22, %v4179_v37  ;;  %v4188_v3 = vsel %vm4176_vm2, %v4170_v9, %v4187_v32  ;;  %v4185_v8 = vsel %vm4175_vm12, %v4182_v42, %v4184_v47 }
 0x432   :  { %v8721_v19 = vpop.eup %8720  ;;  %v2578_v2 = vxor.u32 2147483648, %v8719_v62  ;;  %v4181_v38 = vsel %vm4175_vm12, %v4178_v20, %v4180_v61  ;;  %v4189_v30 = vsel %vm4175_vm12, %v4186_v58, %v4188_v3  ;;  %v4094_v50 = vadd.s32 %v13061_v0, %v13067_v31 }
 0x433   :  { %v2575_v23 = vxor.u32 2147483648, %v8721_v19  ;;  %v4106_v33 = vclz %v8167_v1  ;;  %v13150_v34 = vmul.u32.u64.low %v4190_v60, %v4189_v30  ;;  %v13151_v53 = vmul.u32.u64.high %v4190_v60, %v4189_v30, %v13150_v34 }
 0x434   :  { %v2579_v27 = vsel %vm2577_vm1, %v2578_v2, %v8721_v19  ;;  %v5891_v48 = vsel %vm5889_vm10, %v2578_v2, %v8721_v19  ;;  %v13153_v13 = vmul.u32.u64.low %v4190_v60, %v4185_v8  ;;  %v13154_v41 = vmul.u32.u64.high %v4190_v60, %v4185_v8, %v13153_v13 }
 0x435   :  { %v2576_v12 = vsel %vm2574_vm6, %v8719_v62, %v2575_v23  ;;  %v5888_v15 = vsel %vm5886_vm14, %v8719_v62, %v2575_v23  ;;  %v8168_v59 = vadd.s32 4294967294, %v4106_v33  ;;  %v4197_v4 = vmul.u32 %v4190_v60, %v4181_v38 }
 0x436   :  { %v2580_v54 = vsel %vm2573_vm9, %v2576_v12, %v2579_v27  ;;  %v5892_v16 = vsel %vm5885_vm7, %v5888_v15, %v5891_v48  ;;  %vm4199_vm8 = vc.u32 %v13151_v53, %v13153_v13  ;;  %v4200_v7 = vadd.s32 1, %v13154_v41 }
 0x437   :  { %v2581_v39 = vsel %vm2570_vm3, nan, %v2580_v54  ;;  %v5893_v63 = vsel %vm2570_vm3, nan, %v5892_v16  ;;  %vm8169_vm15 = vcmp.lt.s32.totalorder %v8168_v59, 0  ;;  %v4124_v46 = vsub.s32 4, %v13105_v21 }
 0x438   :  { %v7557_v35 = vsel %vm917_vm4, %v2581_v39, %v5893_v63  ;;  %v4109_v29 = vsel %vm8169_vm15, 0, %v8168_v59  ;;  %v4201_v6 = vsel %vm4199_vm8, %v4200_v7, %v13154_v41  ;;  %vm4040_vm11 = vcmp.lt.s32.totalorder %v12899_v52, 0 }
 0x439   :  { %8413 = vmatmul.mubr.msk.f32.gmra.mrb[14].mxu0 %vm7589_vm5, %v7557_v35  ;;  %v4110_v45 = vsub.s32 32, %v4109_v29  ;;  %v4111_v14 = vshll.u32 %v4102_v57, %v4109_v29  ;;  %v4114_v18 = vsub.s32 4294967266, %v4109_v29  ;;  %v4202_v26 = vadd.s32 %v4201_v6, %v4197_v4 }
 0x43a   :  { %vm4039_vm3 = vcmp.le.f32.partialorder %v4038_v25, 0.7853982  ;;  %v4125_v57 = vsel %vm4040_vm11, %v4124_v46, %v13105_v21  ;;  %v4198_v48 = vadd.s32 %v13153_v13, %v13151_v53  ;;  %vm4130_vm1 = vweird.f32 %v12899_v52 }
 0x43b   :  { %v4112_v56 = vshrl.u32 %v4094_v50, %v4110_v45  ;;  %v4115_v24 = vadd.s32 127, %v4114_v18  ;;  %v4203_v0 = vadd.s32 536870912, %v4202_v26  ;;  %v4127_v2 = vsel %vm4039_vm3, 0, %v4125_v57 }
 0x43c   :  { %v4131_v20 = vadd.s32 3, %v4127_v2  ;;  %v7429_v27 = vand.u32 3, %v4127_v2  ;;  %vm4144_vm10 = vcmp.lt.s32.totalorder %v13013_v5, 0  ;;  %vm4143_vm12 = vcmp.le.f32.partialorder %v4142_v44, 0.7853982 }
 0x43d   :  { %v4113_v36 = vor.u32 %v4112_v56, %v4111_v14  ;;  %v4116_v40 = vshll.u32 %v4115_v24, 23  ;;  %v13162_v10 = vshrl.u32 %v4203_v0, 30 }
 0x43e   :  { %v4132_v47 = vand.u32 3, %v4131_v20  ;;  %vm7434_vm14 = vcmp.eq.s32.totalorder %v7429_v27, 2  ;;  %vm7430_vm6 = vcmp.lt.s32.totalorder %v7429_v27, 2  ;;  %vm7431_vm13 = vcmp.eq.s32.totalorder %v7429_v27, 0 }
 0x43f   :  { %v4117_v51 = vor.u32 4788187, %v4116_v40  ;;  %v4120_v9 = vcvt.s32.f32 %v4113_v36  ;;  %v4205_v22 = vshll.u32 %v13162_v10, 30  ;;  %v4228_v14 = vsub.s32 4, %v13162_v10 }
 0x440   :  { %vm4137_vm9 = vcmp.eq.s32.totalorder %v4132_v47, 2  ;;  %vm4134_vm0 = vcmp.eq.s32.totalorder %v4132_v47, 0  ;;  %vm4133_vm2 = vcmp.lt.s32.totalorder %v4132_v47, 2 }
 0x441   :  { %v4118_v31 = vand.u32 2147483647, %v4117_v51  ;;  %v4206_v55 = vsub.s32 %v4202_v26, %v4205_v22  ;;  %v4229_v7 = vsel %vm4144_vm10, %v4228_v14, %v13162_v10 }
 0x442   :  { %v4231_v6 = vsel %vm4143_vm12, 0, %v4229_v7 }
 0x443   :  { %v4121_v11 = vmul.f32 %v4120_v9, %v4118_v31  ;;  %v4208_v60 = vsub.s32 0, %v4206_v55  ;;  %v4235_v36 = vadd.s32 3, %v4231_v6  ;;  %v7532_v26 = vand.u32 3, %v4231_v6 }
 0x445   :  { %v4122_v17 = vxor.u32 2147483648, %v4121_v11  ;;  %v8171_v37 = vmin.u32 %v4208_v60, %v4206_v55  ;;  %v4236_v40 = vand.u32 3, %v4235_v36  ;;  %vm7537_vm8 = vcmp.eq.s32.totalorder %v7532_v26, 2 }
 0x447   :  { %v4123_v62 = vsel %vm4040_vm11, %v4122_v17, %v4121_v11  ;;  %v4210_v42 = vclz %v8171_v37  ;;  %vm4241_vm15 = vcmp.eq.s32.totalorder %v4236_v40, 2  ;;  %vm4238_vm11 = vcmp.eq.s32.totalorder %v4236_v40, 0 }
 0x448   :  { %v4126_v19 = vsel %vm4039_vm3, %v12899_v52, %v4123_v62  ;;  %vm7534_vm3 = vcmp.eq.s32.totalorder %v7532_v26, 0 }
 0x449   :  { %8722 = vcosq.f32 %v4126_v19  ;;  %v8172_v21 = vadd.s32 4294967294, %v4210_v42 }
 0x44a   :  { %8724 = vsinq.f32 %v4126_v19 }
 0x44b   :  { %vm8173_vm7 = vcmp.lt.s32.totalorder %v8172_v21, 0 }
 0x44c   :  { %v8432_v49 = vpop.f32.mrb[10].mxu1  ;;  %v4213_v1 = vsel %vm8173_vm7, 0, %v8172_v21  ;;  %vm4237_vm7 = vcmp.lt.s32.totalorder %v4236_v40, 2 }
 0x44d   :  { %v7882_v32 = vpop.f32.mrb[11].mxu1  ;;  %v7888_v23 = vadd.f32 %v8432_v49, %v12828_v43  ;;  %v4214_v58 = vsub.s32 32, %v4213_v1  ;;  %v4215_v12 = vshll.u32 %v4206_v55, %v4213_v1  ;;  %v4218_v15 = vsub.s32 4294967266, %v4213_v1 }
 0x44e   :  { %v7883_v25 = vadd.f32 %v12828_v43, %v7882_v32 }
 0x44f   :  { %7938 = vst.msk [vmem:[%s13238_s3 + $0xd8] sm:$0xff] %vm7589_vm5, %v7888_v23  ;;  %v4216_v3 = vshrl.u32 %v4198_v48, %v4214_v58  ;;  %v4219_v54 = vadd.s32 127, %v4218_v15 }
 0x450   :  { %7937 = vst.msk [vmem:[%s13238_s3 + $0xd0] sm:$0xff] %vm7589_vm5, %v7883_v25 }
 0x451   :  { %v4217_v39 = vor.u32 %v4216_v3, %v4215_v12  ;;  %v4220_v63 = vshll.u32 %v4219_v54, 23 }
 0x453   :  { %v8723_v61 = vpop.eup %8722  ;;  %v4221_v34 = vor.u32 4788187, %v4220_v63  ;;  %v4224_v53 = vcvt.s32.f32 %v4217_v39 }
 0x454   :  { %v8725_v16 = vpop.eup %8724  ;;  %v4138_v33 = vxor.u32 2147483648, %v8723_v61 }
 0x455   :  { %v4135_v8 = vxor.u32 2147483648, %v8725_v16  ;;  %v4222_v45 = vand.u32 2147483647, %v4221_v34 }
 0x456   :  { %v4139_v35 = vsel %vm4137_vm9, %v4138_v33, %v8725_v16  ;;  %v7436_v59 = vsel %vm7434_vm14, %v4138_v33, %v8725_v16  ;;  %vm7533_vm9 = vcmp.lt.s32.totalorder %v7532_v26, 2  ;;  %vm4234_vm14 = vweird.f32 %v13013_v5 }
 0x457   :  { %v4136_v38 = vsel %vm4134_vm0, %v8723_v61, %v4135_v8  ;;  %v7433_v30 = vsel %vm7431_vm13, %v8723_v61, %v4135_v8  ;;  %v4225_v4 = vmul.f32 %v4224_v53, %v4222_v45 }
 0x458   :  { %v4140_v13 = vsel %vm4133_vm2, %v4136_v38, %v4139_v35  ;;  %v7437_v41 = vsel %vm7430_vm6, %v7433_v30, %v7436_v59 }
 0x459   :  { %v4141_v50 = vsel %vm4130_vm1, nan, %v4140_v13  ;;  %v7438_v29 = vsel %vm4130_vm1, nan, %v7437_v41  ;;  %v4226_v52 = vxor.u32 2147483648, %v4225_v4 }
 0x45a   :  { %v7572_v18 = vsel %vm917_vm4, %v4141_v50, %v7438_v29 }
 0x45b   :  { %8436 = vmatprep.mubr.msk.f32.mxu1 %vm7589_vm5, %v7572_v18  ;;  %v4227_v56 = vsel %vm4144_vm10, %v4226_v52, %v4225_v4 }
 0x45c   :  { %v4230_v24 = vsel %vm4143_vm12, %v13013_v5, %v4227_v56 }
 0x45d   :  { %8726 = vcosq.f32 %v4230_v24 }
 0x45e   :  { %8728 = vsinq.f32 %v4230_v24 }
 0x467   :  { %v8727_v51 = vpop.eup %8726 }
 0x468   :  { %v8729_v9 = vpop.eup %8728  ;;  %v4242_v0 = vxor.u32 2147483648, %v8727_v51 }
 0x469   :  { %v4239_v44 = vxor.u32 2147483648, %v8729_v9 }
 0x46a   :  { %v4243_v31 = vsel %vm4241_vm15, %v4242_v0, %v8729_v9  ;;  %v7539_v46 = vsel %vm7537_vm8, %v4242_v0, %v8729_v9 }
 0x46b   :  { %v4240_v10 = vsel %vm4238_vm11, %v8727_v51, %v4239_v44  ;;  %v7536_v11 = vsel %vm7534_vm3, %v8727_v51, %v4239_v44 }
 0x46c   :  { %v4244_v22 = vsel %vm4237_vm7, %v4240_v10, %v4243_v31  ;;  %v7540_v17 = vsel %vm7533_vm9, %v7536_v11, %v7539_v46 }
 0x46d   :  { %v4245_v57 = vsel %vm4234_vm14, nan, %v4244_v22  ;;  %v7541_v55 = vsel %vm4234_vm14, nan, %v7540_v17 }
 0x46e   :  { %v7573_v62 = vsel %vm917_vm4, %v4245_v57, %v7541_v55 }
 0x46f   :  { %8437 = vmatmul.mubr.msk.f32.gmra.mrb[14].mxu1 %vm7589_vm5, %v7573_v62 }
 0x48b   :  { %v8411_v60 = vpop.f32.mrb[12].mxu0 }
 0x48c   :  { %v7818_v19 = vadd.f32 %v8411_v60, %v12828_v43  ;;  %v7812_v2 = vpop.f32.mrb[13].mxu0 }
 0x48d   :  { %v7813_v49 = vadd.f32 %v12828_v43, %v7812_v2 }
 0x48e   :  { %7924 = vst.msk [vmem:[%s13238_s3 + $0x68] sm:$0xff] %vm7589_vm5, %v7818_v19 }
 0x48f   :  { %7923 = vst.msk [vmem:[%s13238_s3 + $0x60] sm:$0xff] %vm7589_vm5, %v7813_v49 }
 0x4c5   :  { %v8435_v28 = vpop.f32.mrb[12].mxu1 }
 0x4c6   :  { %v7898_v5 = vadd.f32 %v8435_v28, %v12828_v43  ;;  %v7892_v37 = vpop.f32.mrb[13].mxu1 }
 0x4c7   :  { %v7893_v32 = vadd.f32 %v12828_v43, %v7892_v37 }
 0x4c8   :  { %7940 = vst.msk [vmem:[%s13238_s3 + $0xe8] sm:$0xff] %vm7589_vm5, %v7898_v5 }
 0x4c9   :  { %7939 = vst.msk [vmem:[%s13238_s3 + $0xe0] sm:$0xff] %vm7589_vm5, %v7893_v32 }
 0x50c   :  { %v8414_v23 = vpop.f32.mrb[14].mxu0 }
 0x50d   :  { %v7828_v20 = vadd.f32 %v8414_v23, %v12828_v43  ;;  %v7822_v42 = vpop.f32.mrb[15].mxu0 }
 0x50e   :  { %v7823_v25 = vadd.f32 %v12828_v43, %v7822_v42 }
 0x50f   :  { %7926 = vst.msk [vmem:[%s13238_s3 + $0x78] sm:$0xff] %vm7589_vm5, %v7828_v20 }
 0x510   :  { %7925 = vst.msk [vmem:[%s13238_s3 + $0x70] sm:$0xff] %vm7589_vm5, %v7823_v25 }
 0x542   :  { %v8438_v21 = vpop.f32.mrb[14].mxu1 }
 0x543   :  { %v7908_v47 = vadd.f32 %v8438_v21, %v12828_v43  ;;  %v7902_v27 = vpop.f32.mrb[15].mxu1 }
 0x544   :  { %v7903_v48 = vadd.f32 %v12828_v43, %v7902_v27 }
 0x545   :  { %7942 = vst.msk [vmem:[%s13238_s3 + $0xf8] sm:$0xff] %vm7589_vm5, %v7908_v47 }
 0x546   :  { %7941 = vst.msk [vmem:[%s13238_s3 + $0xf0] sm:$0xff] %vm7589_vm5, %v7903_v48 }
 0x547   :  { %7947 = vsyncpa [#allocation3], 1 }
 0x548   :  { %7948 = vsyncpa [#allocation5], 1 }

</bundles_post_ra>
